<compile_context>
chip_gen: v6e
topology: v6e:2x2x1
jax: 0.10.0
libtpu: 0.0.40
codegen_flags: <defaults>
</compile_context>

<pallas_src>
import numpy as np
import jax
import jax.numpy as jnp
from jax.experimental import pallas as pl
from jax.experimental.pallas import tpu as pltpu


# ----------------------------------------------------------------------------
# Pallas kernel: full ConvGRU recurrence for one batch-block per grid point.
# ----------------------------------------------------------------------------
def convgru_kernel(x_ref, h0_ref, mx_ref, bx_ref, mru_ref, mo_ref,
                   nf_ref, nl_ref, out_ref, xf_scr):
    # x_ref   : (T, Bb*H, W*Cx)        folded input sequence (batch in rows)
    # h0_ref  : (Bb*H, W*Ch)           folded initial hidden state
    # mx_ref  : (3*W*Cx, 3*W*Ch)       K-stacked banded x-path weights [r|u|o]
    # bx_ref  : (1, 3*W*Ch)            folded biases [r|u|o] (f32)
    # mru_ref : (3*W*Ch, 2*W*Ch)       K-stacked banded h-path weights [r|u]
    # mo_ref  : (3*W*Ch, W*Ch)         K-stacked banded h-path candidate weight
    # nf_ref  : (T*Bb*H, 1)            1.0 except at image row 0     (f32)
    # nl_ref  : (T*Bb*H, 1)            1.0 except at image row H-1   (f32)
    # out_ref : (T, Bb*H, W*Ch)
    # xf_scr  : (T, Bb*H, 3*W*Ch)      VMEM scratch: per-step x-path features
    T, BbH, WCx = x_ref.shape
    WC = h0_ref.shape[-1]
    M = T * BbH
    f32 = jnp.float32
    md = mx_ref.dtype                     # matmul operand dtype (bf16 or f32)

    nf_all = nf_ref[...]                  # (T*Bb*H, 1)
    nl_all = nl_ref[...]                  # (T*Bb*H, 1)

    def shifted_taps(a, nf, nl):
        # K-stacked LHS for one banded conv: [row y-1 | row y | row y+1].
        # Rolls run on the XLU; the hoisted masks implement the vertical
        # zero padding of the 'same' conv (and isolate batch/time images).
        m = a.shape[0]
        a_dn = pltpu.roll(a, 1, axis=0) * nf       # row y reads row y-1
        a_up = pltpu.roll(a, m - 1, axis=0) * nl   # row y reads row y+1
        return jnp.concatenate([a_dn, a, a_up], axis=-1).astype(md)

    # ---- prologue: x-path of all 3 convs, all T steps, one big matmul ------
    # Independent of the recurrence -> off the sequential critical path.
    x_all = x_ref[...].reshape(M, WCx)                       # layout-preserving
    xf = (jnp.dot(shifted_taps(x_all, nf_all, nl_all), mx_ref[...],
                  preferred_element_type=f32)
          + bx_ref[...])                                     # (M, 3*W*Ch) f32
    xf_scr[...] = xf.reshape(T, BbH, 3 * WC)

    # ---- recurrence over T: only the h-dependent half per step -------------
    nf = nf_all[:BbH]
    nl = nl_all[:BbH]
    mru = mru_ref[...]
    mo = mo_ref[...]

    def step(t, h):
        xf_t = xf_scr[t]                                     # (Bb*H, 3*W*Ch)
        # read + update gates: one K-stacked matmul for both gates
        acc_ru = xf_t[:, :2 * WC] + jnp.dot(
            shifted_taps(h, nf, nl), mru, preferred_element_type=f32)
        r = jax.nn.sigmoid(acc_ru[:, :WC])
        u = jax.nn.sigmoid(acc_ru[:, WC:])
        # candidate conv on (r * h): one K-stacked matmul
        c = jnp.maximum(
            xf_t[:, 2 * WC:] + jnp.dot(
                shifted_taps(r * h, nf, nl), mo, preferred_element_type=f32),
            0.0)
        out = u * h + (1.0 - u) * c
        out_ref[t] = out                                     # lane-dense store
        return out

    jax.lax.fori_loop(0, T, step, h0_ref[...], unroll=True)


# ----------------------------------------------------------------------------
# Glue: parameter setup, banded-weight construction, pallas_call wrapper.
# ----------------------------------------------------------------------------
def make_conv_params(key, cin, cout, k=3, sn_eps=1e-4):
    """Conv2d weight/bias, spectral-normalized (weight / max singular value)."""
    wkey, bkey = jax.random.split(key)
    w = jax.random.normal(wkey, (cout, cin, k, k), jnp.float32) * 0.1
    b = jax.random.normal(bkey, (cout,), jnp.float32) * 0.1
    # TODO(synk): PyTorch spectral_norm uses power iteration; synthetic weights
    # here are normalized by the exact sigma instead.
    sigma = jnp.linalg.norm(w.reshape(cout, -1), ord=2)
    w = w / jnp.maximum(sigma, sn_eps)
    return w, b


def band_weights(w_parts, W):
    """Banded folded-lane conv weights.

    w_parts: list of (Cout, Cin, 3, 3) weights (one per fused gate).
    Returns (3, W*Cin, n_gates*W*Cout): for vertical tap ky,
      M[ky, x*Cin + ci, g*W*Cout + x2*Cout + co] = w_g[co, ci, ky, x - x2 + 1]
    (zero outside the +-1 horizontal band; this also implements the horizontal
    zero padding of the 'same' conv).

    TODO(synk): the band is only ~3/W dense and grows O(W^2); for W >> 16 tile
    the W axis into 128-lane blocks and multiply only the 3 diagonal blocks.
    """
    mats = []
    for wp in w_parts:
        Cout, Cin, KH, KW = wp.shape
        wt = jnp.transpose(wp, (2, 3, 1, 0)).astype(jnp.float32)  # (KH,KW,Ci,Co)
        x = jnp.arange(W)[None, :, None]
        x2 = jnp.arange(W)[None, None, :]
        kx = jnp.arange(KW)[:, None, None]
        sel = (x == x2 + kx - (KW // 2)).astype(jnp.float32)      # (KW, W, W)
        m = (sel[None, :, :, None, :, None]
             * wt[:, :, None, :, None, :]).sum(axis=1)            # (KH,W,Ci,W,Co)
        mats.append(m.reshape(KH, W * Cin, W * Cout))
    return jnp.concatenate(mats, axis=-1)


def fold_bias(biases, W):
    """[(Cout,), ...] -> (1, n_gates*W*Cout) folded bias row."""
    return jnp.concatenate(
        [jnp.tile(b.astype(jnp.float32), W) for b in biases]).reshape(1, -1)


def convgru_pallas(x_seq, h0, params, *, matmul_dtype=jnp.bfloat16,
                   num_batch_blocks=None):
    """x_seq: (T, B, Cx, H, W), h0: (B, Ch, H, W)  ->  (T, B, Ch, H, W)."""
    (wr, br), (wu, bu), (wo, bo) = params
    T, B, Cx, H, W = x_seq.shape
    Ch = h0.shape[1]
    WC, WCx = W * Ch, W * Cx

    if num_batch_blocks is None:
        # v7x has 2 TensorCores/chip: split the batch across them with a
        # "parallel" grid axis.  On single-TC v5e/v6e a batch grid is just a
        # serial loop, so fold the whole batch into the matmul M dimension.
        try:
            kind = jax.devices()[0].device_kind.lower()
        except Exception:  # pragma: no cover
            kind = ""
        num_batch_blocks = 2 if ("v7" in kind and B % 2 == 0) else 1
    assert B % num_batch_blocks == 0
    G = num_batch_blocks
    Bb = B // G
    BbH = Bb * H

    # Folded, lane-dense layouts; batch stacked along the matmul M (row) axis.
    #   x: (T,B,Cx,H,W) -> (G, T, Bb*H, W*Cx), rows ordered (batch, image-row)
    xfold = jnp.transpose(x_seq, (1, 0, 3, 4, 2)).reshape(G, Bb, T, H, WCx)
    xfold = jnp.transpose(xfold, (0, 2, 1, 3, 4)).reshape(G, T, BbH, WCx)
    #   h0: (B,Ch,H,W) -> (G, Bb*H, W*Ch)
    h0fold = jnp.transpose(h0, (0, 2, 3, 1)).reshape(G, BbH, WC)

    # Split conv weights into x / h input-channel parts; band + K-stack them.
    wrx, wrh = wr[:, :Cx], wr[:, Cx:]
    wux, wuh = wu[:, :Cx], wu[:, Cx:]
    wox, woh = wo[:, :Cx], wo[:, Cx:]
    mx = band_weights([wrx, wux, wox], W).reshape(3 * WCx, 3 * WC)
    mru = band_weights([wrh, wuh], W).reshape(3 * WC, 2 * WC)
    mo = band_weights([woh], W).reshape(3 * WC, WC)
    mx = mx.astype(matmul_dtype)          # bf16 MXU operands; f32 accumulation
    mru = mru.astype(matmul_dtype)
    mo = mo.astype(matmul_dtype)
    bx = fold_bias([br, bu, bo], W)       # (1, 3*W*Ch), kept f32

    # Vertical 'same'-padding boundary masks (precomputed, passed as inputs).
    row = np.arange(T * BbH) % H
    nf = jnp.asarray((row != 0).astype(np.float32)[:, None])      # (T*Bb*H, 1)
    nl = jnp.asarray((row != H - 1).astype(np.float32)[:, None])  # (T*Bb*H, 1)

    out = pl.pallas_call(
        convgru_kernel,
        out_shape=jax.ShapeDtypeStruct((G, T, BbH, WC), jnp.float32),
        grid_spec=pltpu.PrefetchScalarGridSpec(
            num_scalar_prefetch=0,
            grid=(G,),
            in_specs=[
                pl.BlockSpec((None, T, BbH, WCx), lambda g: (g, 0, 0, 0)),
                pl.BlockSpec((None, BbH, WC), lambda g: (g, 0, 0)),
                pl.BlockSpec((3 * WCx, 3 * WC), lambda g: (0, 0)),
                pl.BlockSpec((1, 3 * WC), lambda g: (0, 0)),
                pl.BlockSpec((3 * WC, 2 * WC), lambda g: (0, 0)),
                pl.BlockSpec((3 * WC, WC), lambda g: (0, 0)),
                pl.BlockSpec((T * BbH, 1), lambda g: (0, 0)),
                pl.BlockSpec((T * BbH, 1), lambda g: (0, 0)),
            ],
            out_specs=pl.BlockSpec((None, T, BbH, WC), lambda g: (g, 0, 0, 0)),
            scratch_shapes=[pltpu.VMEM((T, BbH, 3 * WC), jnp.float32)],
        ),
        compiler_params=pltpu.CompilerParams(
            dimension_semantics=("parallel",)),   # batch blocks -> 2nd TC on v7x
    )(xfold, h0fold, mx, bx, mru, mo, nf, nl)

    # (G, T, Bb*H, W*Ch) -> (T, B, Ch, H, W)
    out = out.reshape(G, T, Bb, H, W, Ch)
    return jnp.transpose(out, (1, 0, 2, 5, 3, 4)).reshape(T, B, Ch, H, W)


# ----------------------------------------------------------------------------
# Pure-JAX reference (mirrors the PyTorch forward exactly).
# ----------------------------------------------------------------------------
def convgru_ref(x_seq, h0, params):
    (wr, br), (wu, bu), (wo, bo) = params

    def conv(a, w, b):
        y = jax.lax.conv_general_dilated(
            a, w, window_strides=(1, 1), padding=((1, 1), (1, 1)),
            dimension_numbers=('NCHW', 'OIHW', 'NCHW'))
        return y + b[None, :, None, None]

    # NOTE: calculate_tensor_size_in_mib in the original module has no effect
    # on the output and is not reproduced.
    h = h0
    outs = []
    for t in range(x_seq.shape[0]):
        x = x_seq[t]
        xh = jnp.concatenate([x, h], axis=1)
        r = jax.nn.sigmoid(conv(xh, wr, br))
        u = jax.nn.sigmoid(conv(xh, wu, bu))
        gi = jnp.concatenate([x, r * h], axis=1)
        c = jax.nn.relu(conv(gi, wo, bo))
        out = u * h + (1.0 - u) * c
        h = out
        outs.append(out)
    return jnp.stack(outs, axis=0)


if __name__ == "__main__":
    T, B, Cx, Ch, H, W = 8, 2, 4, 8, 16, 16     # W*Ch == 128 -> lane-dense
    key = jax.random.PRNGKey(0)
    k_x, k_h, k_r, k_u, k_o = jax.random.split(key, 5)

    # (T, B, Cx, H, W) input sequence and initial hidden state, PyTorch layout.
    # TODO(synk): hidden_state=None default in the PyTorch module is not usable
    # (torch.cat with None); an explicit initial state is required here.
    x_seq = jax.random.normal(k_x, (T, B, Cx, H, W), jnp.float32)
    h0 = jax.random.normal(k_h, (B, Ch, H, W), jnp.float32)

    params = (
        make_conv_params(k_r, Cx + Ch, Ch),   # read gate conv
        make_conv_params(k_u, Cx + Ch, Ch),   # update gate conv
        make_conv_params(k_o, Cx + Ch, Ch),   # output conv
    )

    ref = jax.block_until_ready(convgru_ref(x_seq, h0, params))

    # Exact-math validation: f32 matmul operands, tight tolerance.
    out_f32 = jax.block_until_ready(
        convgru_pallas(x_seq, h0, params, matmul_dtype=jnp.float32))
    assert out_f32.shape == (T, B, Ch, H, W)
    err_f32 = float(jnp.max(jnp.abs(out_f32 - ref)))
    assert jnp.allclose(out_f32, ref, rtol=1e-3, atol=1e-3), err_f32

    # Performance configuration: bf16 MXU operands (f32 accumulation).
    # Looser tolerance accounts for bf16 rounding through an 8-step recurrence.
    out_bf16 = jax.block_until_ready(convgru_pallas(x_seq, h0, params))
    assert out_bf16.shape == (T, B, Ch, H, W)
    err_bf16 = float(jnp.max(jnp.abs(out_bf16 - ref)))
    assert jnp.allclose(out_bf16, ref, rtol=5e-2, atol=5e-2), err_bf16

    print("KERNEL_OK")
</pallas_src>

<mosaic_0001>
module attributes {stable_mosaic.version = 11 : i64} {
  func.func @convgru_kernel(%arg0: i32, %arg1: memref<1x8x32x64xf32, #tpu.memory_space<vmem>>, %arg2: memref<1x32x128xf32, #tpu.memory_space<vmem>>, %arg3: memref<192x384xf32, #tpu.memory_space<vmem>>, %arg4: memref<1x384xf32, #tpu.memory_space<vmem>>, %arg5: memref<384x256xf32, #tpu.memory_space<vmem>>, %arg6: memref<384x128xf32, #tpu.memory_space<vmem>>, %arg7: memref<256x1xf32, #tpu.memory_space<vmem>>, %arg8: memref<256x1xf32, #tpu.memory_space<vmem>>, %arg9: memref<1x8x32x128xf32, #tpu.memory_space<vmem>>, %arg10: memref<8x32x384xf32, #tpu.memory_space<vmem>>) attributes {dimension_semantics = [#tpu.dimension_semantics<parallel>], iteration_bounds = array<i64: 1>, scalar_prefetch = 0 : i64, scratch_operands = 1 : i64, tpu.core_type = #tpu.core_type<tc>, window_params = [{transform_indices = @transform_0, window_bounds = array<i64: 1, 8, 32, 64>}, {transform_indices = @transform_1, window_bounds = array<i64: 1, 32, 128>}, {pipeline_mode = #tpu.pipeline_mode<synchronous>, transform_indices = @transform_2, window_bounds = array<i64: 192, 384>}, {pipeline_mode = #tpu.pipeline_mode<synchronous>, transform_indices = @transform_3, window_bounds = array<i64: 1, 384>}, {pipeline_mode = #tpu.pipeline_mode<synchronous>, transform_indices = @transform_4, window_bounds = array<i64: 384, 256>}, {pipeline_mode = #tpu.pipeline_mode<synchronous>, transform_indices = @transform_5, window_bounds = array<i64: 384, 128>}, {pipeline_mode = #tpu.pipeline_mode<synchronous>, transform_indices = @transform_6, window_bounds = array<i64: 256, 1>}, {pipeline_mode = #tpu.pipeline_mode<synchronous>, transform_indices = @transform_7, window_bounds = array<i64: 256, 1>}, {transform_indices = @transform_8, window_bounds = array<i64: 1, 8, 32, 128>}]} {
    %c0 = arith.constant 0 : index
    %c0_0 = arith.constant 0 : index
    %0 = vector.load %arg7[%c0, %c0_0] : memref<256x1xf32, #tpu.memory_space<vmem>>, vector<256x1xf32>
    %c0_1 = arith.constant 0 : index
    %c0_2 = arith.constant 0 : index
    %1 = vector.load %arg8[%c0_1, %c0_2] : memref<256x1xf32, #tpu.memory_space<vmem>>, vector<256x1xf32>
    %c0_3 = arith.constant 0 : index
    %c0_4 = arith.constant 0 : index
    %c0_5 = arith.constant 0 : index
    %c0_6 = arith.constant 0 : index
    %2 = vector.load %arg1[%c0_3, %c0_4, %c0_5, %c0_6] : memref<1x8x32x64xf32, #tpu.memory_space<vmem>>, vector<1x8x32x64xf32>
    %3 = vector.shape_cast %2 : vector<1x8x32x64xf32> to vector<8x32x64xf32>
    %4 = vector.shape_cast %3 : vector<8x32x64xf32> to vector<256x64xf32>
    %c1_i32 = arith.constant 1 : i32
    %5 = tpu.dynamic_rotate %4 by %c1_i32 dim 0 : vector<256x64xf32>, i32 -> vector<256x64xf32>
    %6 = vector.broadcast %0 : vector<256x1xf32> to vector<256x64xf32>
    %7 = arith.mulf %5, %6 : vector<256x64xf32>
    %c255_i32 = arith.constant 255 : i32
    %8 = tpu.dynamic_rotate %4 by %c255_i32 dim 0 : vector<256x64xf32>, i32 -> vector<256x64xf32>
    %9 = vector.broadcast %1 : vector<256x1xf32> to vector<256x64xf32>
    %10 = arith.mulf %8, %9 : vector<256x64xf32>
    %11 = tpu.concatenate %7, %4, %10 in 1 : vector<256x64xf32>, vector<256x64xf32>, vector<256x64xf32> -> vector<256x192xf32>
    %c0_7 = arith.constant 0 : index
    %c0_8 = arith.constant 0 : index
    %12 = vector.load %arg3[%c0_7, %c0_8] : memref<192x384xf32, #tpu.memory_space<vmem>>, vector<192x384xf32>
    %cst = arith.constant dense<0.000000e+00> : vector<256x384xf32>
    %13 = tpu.matmul %11, %12, %cst {dimension_numbers = #tpu.dot_dimension_numbers<[1], [0], [0], [1], [0, 0, 1, 1], [], []>} : vector<256x192xf32>, vector<192x384xf32>, vector<256x384xf32> -> vector<256x384xf32>
    %c0_9 = arith.constant 0 : index
    %c0_10 = arith.constant 0 : index
    %14 = vector.load %arg4[%c0_9, %c0_10] : memref<1x384xf32, #tpu.memory_space<vmem>>, vector<1x384xf32>
    %15 = vector.broadcast %14 : vector<1x384xf32> to vector<256x384xf32>
    %16 = arith.addf %13, %15 : vector<256x384xf32>
    %17 = vector.shape_cast %16 : vector<256x384xf32> to vector<8x32x384xf32>
    %c0_11 = arith.constant 0 : index
    %c0_12 = arith.constant 0 : index
    %c0_13 = arith.constant 0 : index
    %18 = vector.load %arg10[%c0_11, %c0_12, %c0_13] : memref<8x32x384xf32, #tpu.memory_space<vmem>>, vector<8x32x384xf32>
    tpu.vector_store %arg10[%c0_11, %c0_12, %c0_13], %17 {strides = array<i32>} : memref<8x32x384xf32, #tpu.memory_space<vmem>>, vector<8x32x384xf32>,
    %19 = vector.extract_strided_slice %0 {offsets = [0, 0], sizes = [32, 1], strides = [1, 1]} : vector<256x1xf32> to vector<32x1xf32>
    %20 = vector.extract_strided_slice %1 {offsets = [0, 0], sizes = [32, 1], strides = [1, 1]} : vector<256x1xf32> to vector<32x1xf32>
    %c0_14 = arith.constant 0 : index
    %c0_15 = arith.constant 0 : index
    %21 = vector.load %arg5[%c0_14, %c0_15] : memref<384x256xf32, #tpu.memory_space<vmem>>, vector<384x256xf32>
    %c0_16 = arith.constant 0 : index
    %c0_17 = arith.constant 0 : index
    %22 = vector.load %arg6[%c0_16, %c0_17] : memref<384x128xf32, #tpu.memory_space<vmem>>, vector<384x128xf32>
    %c0_18 = arith.constant 0 : index
    %c0_19 = arith.constant 0 : index
    %c0_20 = arith.constant 0 : index
    %23 = vector.load %arg2[%c0_18, %c0_19, %c0_20] : memref<1x32x128xf32, #tpu.memory_space<vmem>>, vector<1x32x128xf32>
    %24 = vector.shape_cast %23 : vector<1x32x128xf32> to vector<32x128xf32>
    %c0_i32 = arith.constant 0 : i32
    %25 = arith.index_cast %c0_i32 : i32 to index
    %c0_21 = arith.constant 0 : index
    %c0_22 = arith.constant 0 : index
    %26 = vector.load %arg10[%25, %c0_21, %c0_22] : memref<8x32x384xf32, #tpu.memory_space<vmem>>, vector<1x32x384xf32>
    %27 = vector.shape_cast %26 : vector<1x32x384xf32> to vector<32x384xf32>
    %28 = vector.extract_strided_slice %27 {offsets = [0, 0], sizes = [32, 256], strides = [1, 1]} : vector<32x384xf32> to vector<32x256xf32>
    %c1_i32_23 = arith.constant 1 : i32
    %29 = tpu.dynamic_rotate %24 by %c1_i32_23 dim 0 : vector<32x128xf32>, i32 -> vector<32x128xf32>
    %30 = vector.broadcast %19 : vector<32x1xf32> to vector<32x128xf32>
    %31 = arith.mulf %29, %30 : vector<32x128xf32>
    %c31_i32 = arith.constant 31 : i32
    %32 = tpu.dynamic_rotate %24 by %c31_i32 dim 0 : vector<32x128xf32>, i32 -> vector<32x128xf32>
    %33 = vector.broadcast %20 : vector<32x1xf32> to vector<32x128xf32>
    %34 = arith.mulf %32, %33 : vector<32x128xf32>
    %35 = tpu.concatenate %31, %24, %34 in 1 : vector<32x128xf32>, vector<32x128xf32>, vector<32x128xf32> -> vector<32x384xf32>
    %cst_24 = arith.constant dense<0.000000e+00> : vector<32x256xf32>
    %36 = tpu.matmul %35, %21, %cst_24 {dimension_numbers = #tpu.dot_dimension_numbers<[1], [0], [0], [1], [0, 0, 1, 1], [], []>} : vector<32x384xf32>, vector<384x256xf32>, vector<32x256xf32> -> vector<32x256xf32>
    %37 = arith.addf %28, %36 : vector<32x256xf32>
    %38 = vector.extract_strided_slice %37 {offsets = [0, 0], sizes = [32, 128], strides = [1, 1]} : vector<32x256xf32> to vector<32x128xf32>
    %39 = arith.negf %38 : vector<32x128xf32>
    %40 = math.exp %39 : vector<32x128xf32>
    %cst_25 = arith.constant 1.000000e+00 : f32
    %41 = vector.broadcast %cst_25 : f32 to vector<32x128xf32>
    %42 = arith.addf %41, %40 : vector<32x128xf32>
    %43 = arith.divf %41, %42 : vector<32x128xf32>
    %44 = vector.extract_strided_slice %37 {offsets = [0, 128], sizes = [32, 128], strides = [1, 1]} : vector<32x256xf32> to vector<32x128xf32>
    %45 = arith.negf %44 : vector<32x128xf32>
    %46 = math.exp %45 : vector<32x128xf32>
    %cst_26 = arith.constant 1.000000e+00 : f32
    %47 = vector.broadcast %cst_26 : f32 to vector<32x128xf32>
    %48 = arith.addf %47, %46 : vector<32x128xf32>
    %49 = arith.divf %47, %48 : vector<32x128xf32>
    %50 = vector.extract_strided_slice %27 {offsets = [0, 256], sizes = [32, 128], strides = [1, 1]} : vector<32x384xf32> to vector<32x128xf32>
    %51 = arith.mulf %43, %24 : vector<32x128xf32>
    %c1_i32_27 = arith.constant 1 : i32
    %52 = tpu.dynamic_rotate %51 by %c1_i32_27 dim 0 : vector<32x128xf32>, i32 -> vector<32x128xf32>
    %53 = vector.broadcast %19 : vector<32x1xf32> to vector<32x128xf32>
    %54 = arith.mulf %52, %53 : vector<32x128xf32>
    %c31_i32_28 = arith.constant 31 : i32
    %55 = tpu.dynamic_rotate %51 by %c31_i32_28 dim 0 : vector<32x128xf32>, i32 -> vector<32x128xf32>
    %56 = vector.broadcast %20 : vector<32x1xf32> to vector<32x128xf32>
    %57 = arith.mulf %55, %56 : vector<32x128xf32>
    %58 = tpu.concatenate %54, %51, %57 in 1 : vector<32x128xf32>, vector<32x128xf32>, vector<32x128xf32> -> vector<32x384xf32>
    %cst_29 = arith.constant dense<0.000000e+00> : vector<32x128xf32>
    %59 = tpu.matmul %58, %22, %cst_29 {dimension_numbers = #tpu.dot_dimension_numbers<[1], [0], [0], [1], [0, 0, 1, 1], [], []>} : vector<32x384xf32>, vector<384x128xf32>, vector<32x128xf32> -> vector<32x128xf32>
    %60 = arith.addf %50, %59 : vector<32x128xf32>
    %cst_30 = arith.constant 0.000000e+00 : f32
    %61 = vector.broadcast %cst_30 : f32 to vector<32x128xf32>
    %62 = arith.maximumf %60, %61 : vector<32x128xf32>
    %63 = arith.mulf %49, %24 : vector<32x128xf32>
    %cst_31 = arith.constant 1.000000e+00 : f32
    %64 = vector.broadcast %cst_31 : f32 to vector<32x128xf32>
    %65 = arith.subf %64, %49 : vector<32x128xf32>
    %66 = arith.mulf %65, %62 : vector<32x128xf32>
    %67 = arith.addf %63, %66 : vector<32x128xf32>
    %c0_32 = arith.constant 0 : index
    %68 = arith.index_cast %c0_i32 : i32 to index
    %c0_33 = arith.constant 0 : index
    %c0_34 = arith.constant 0 : index
    %69 = vector.load %arg9[%c0_32, %68, %c0_33, %c0_34] : memref<1x8x32x128xf32, #tpu.memory_space<vmem>>, vector<1x1x32x128xf32>
    %70 = vector.shape_cast %69 : vector<1x1x32x128xf32> to vector<32x128xf32>
    %71 = vector.shape_cast %67 : vector<32x128xf32> to vector<1x1x32x128xf32>
    tpu.vector_store %arg9[%c0_32, %68, %c0_33, %c0_34], %71 {strides = array<i32>} : memref<1x8x32x128xf32, #tpu.memory_space<vmem>>, vector<1x1x32x128xf32>,
    %c1_i32_35 = arith.constant 1 : i32
    %72 = arith.index_cast %c1_i32_35 : i32 to index
    %c0_36 = arith.constant 0 : index
    %c0_37 = arith.constant 0 : index
    %73 = vector.load %arg10[%72, %c0_36, %c0_37] : memref<8x32x384xf32, #tpu.memory_space<vmem>>, vector<1x32x384xf32>
    %74 = vector.shape_cast %73 : vector<1x32x384xf32> to vector<32x384xf32>
    %75 = vector.extract_strided_slice %74 {offsets = [0, 0], sizes = [32, 256], strides = [1, 1]} : vector<32x384xf32> to vector<32x256xf32>
    %c1_i32_38 = arith.constant 1 : i32
    %76 = tpu.dynamic_rotate %67 by %c1_i32_38 dim 0 : vector<32x128xf32>, i32 -> vector<32x128xf32>
    %77 = vector.broadcast %19 : vector<32x1xf32> to vector<32x128xf32>
    %78 = arith.mulf %76, %77 : vector<32x128xf32>
    %c31_i32_39 = arith.constant 31 : i32
    %79 = tpu.dynamic_rotate %67 by %c31_i32_39 dim 0 : vector<32x128xf32>, i32 -> vector<32x128xf32>
    %80 = vector.broadcast %20 : vector<32x1xf32> to vector<32x128xf32>
    %81 = arith.mulf %79, %80 : vector<32x128xf32>
    %82 = tpu.concatenate %78, %67, %81 in 1 : vector<32x128xf32>, vector<32x128xf32>, vector<32x128xf32> -> vector<32x384xf32>
    %cst_40 = arith.constant dense<0.000000e+00> : vector<32x256xf32>
    %83 = tpu.matmul %82, %21, %cst_40 {dimension_numbers = #tpu.dot_dimension_numbers<[1], [0], [0], [1], [0, 0, 1, 1], [], []>} : vector<32x384xf32>, vector<384x256xf32>, vector<32x256xf32> -> vector<32x256xf32>
    %84 = arith.addf %75, %83 : vector<32x256xf32>
    %85 = vector.extract_strided_slice %84 {offsets = [0, 0], sizes = [32, 128], strides = [1, 1]} : vector<32x256xf32> to vector<32x128xf32>
    %86 = arith.negf %85 : vector<32x128xf32>
    %87 = math.exp %86 : vector<32x128xf32>
    %cst_41 = arith.constant 1.000000e+00 : f32
    %88 = vector.broadcast %cst_41 : f32 to vector<32x128xf32>
    %89 = arith.addf %88, %87 : vector<32x128xf32>
    %90 = arith.divf %88, %89 : vector<32x128xf32>
    %91 = vector.extract_strided_slice %84 {offsets = [0, 128], sizes = [32, 128], strides = [1, 1]} : vector<32x256xf32> to vector<32x128xf32>
    %92 = arith.negf %91 : vector<32x128xf32>
    %93 = math.exp %92 : vector<32x128xf32>
    %cst_42 = arith.constant 1.000000e+00 : f32
    %94 = vector.broadcast %cst_42 : f32 to vector<32x128xf32>
    %95 = arith.addf %94, %93 : vector<32x128xf32>
    %96 = arith.divf %94, %95 : vector<32x128xf32>
    %97 = vector.extract_strided_slice %74 {offsets = [0, 256], sizes = [32, 128], strides = [1, 1]} : vector<32x384xf32> to vector<32x128xf32>
    %98 = arith.mulf %90, %67 : vector<32x128xf32>
    %c1_i32_43 = arith.constant 1 : i32
    %99 = tpu.dynamic_rotate %98 by %c1_i32_43 dim 0 : vector<32x128xf32>, i32 -> vector<32x128xf32>
    %100 = vector.broadcast %19 : vector<32x1xf32> to vector<32x128xf32>
    %101 = arith.mulf %99, %100 : vector<32x128xf32>
    %c31_i32_44 = arith.constant 31 : i32
    %102 = tpu.dynamic_rotate %98 by %c31_i32_44 dim 0 : vector<32x128xf32>, i32 -> vector<32x128xf32>
    %103 = vector.broadcast %20 : vector<32x1xf32> to vector<32x128xf32>
    %104 = arith.mulf %102, %103 : vector<32x128xf32>
    %105 = tpu.concatenate %101, %98, %104 in 1 : vector<32x128xf32>, vector<32x128xf32>, vector<32x128xf32> -> vector<32x384xf32>
    %cst_45 = arith.constant dense<0.000000e+00> : vector<32x128xf32>
    %106 = tpu.matmul %105, %22, %cst_45 {dimension_numbers = #tpu.dot_dimension_numbers<[1], [0], [0], [1], [0, 0, 1, 1], [], []>} : vector<32x384xf32>, vector<384x128xf32>, vector<32x128xf32> -> vector<32x128xf32>
    %107 = arith.addf %97, %106 : vector<32x128xf32>
    %cst_46 = arith.constant 0.000000e+00 : f32
    %108 = vector.broadcast %cst_46 : f32 to vector<32x128xf32>
    %109 = arith.maximumf %107, %108 : vector<32x128xf32>
    %110 = arith.mulf %96, %67 : vector<32x128xf32>
    %cst_47 = arith.constant 1.000000e+00 : f32
    %111 = vector.broadcast %cst_47 : f32 to vector<32x128xf32>
    %112 = arith.subf %111, %96 : vector<32x128xf32>
    %113 = arith.mulf %112, %109 : vector<32x128xf32>
    %114 = arith.addf %110, %113 : vector<32x128xf32>
    %c0_48 = arith.constant 0 : index
    %115 = arith.index_cast %c1_i32_35 : i32 to index
    %c0_49 = arith.constant 0 : index
    %c0_50 = arith.constant 0 : index
    %116 = vector.load %arg9[%c0_48, %115, %c0_49, %c0_50] : memref<1x8x32x128xf32, #tpu.memory_space<vmem>>, vector<1x1x32x128xf32>
    %117 = vector.shape_cast %116 : vector<1x1x32x128xf32> to vector<32x128xf32>
    %118 = vector.shape_cast %114 : vector<32x128xf32> to vector<1x1x32x128xf32>
    tpu.vector_store %arg9[%c0_48, %115, %c0_49, %c0_50], %118 {strides = array<i32>} : memref<1x8x32x128xf32, #tpu.memory_space<vmem>>, vector<1x1x32x128xf32>,
    %c2_i32 = arith.constant 2 : i32
    %119 = arith.index_cast %c2_i32 : i32 to index
    %c0_51 = arith.constant 0 : index
    %c0_52 = arith.constant 0 : index
    %120 = vector.load %arg10[%119, %c0_51, %c0_52] : memref<8x32x384xf32, #tpu.memory_space<vmem>>, vector<1x32x384xf32>
    %121 = vector.shape_cast %120 : vector<1x32x384xf32> to vector<32x384xf32>
    %122 = vector.extract_strided_slice %121 {offsets = [0, 0], sizes = [32, 256], strides = [1, 1]} : vector<32x384xf32> to vector<32x256xf32>
    %c1_i32_53 = arith.constant 1 : i32
    %123 = tpu.dynamic_rotate %114 by %c1_i32_53 dim 0 : vector<32x128xf32>, i32 -> vector<32x128xf32>
    %124 = vector.broadcast %19 : vector<32x1xf32> to vector<32x128xf32>
    %125 = arith.mulf %123, %124 : vector<32x128xf32>
    %c31_i32_54 = arith.constant 31 : i32
    %126 = tpu.dynamic_rotate %114 by %c31_i32_54 dim 0 : vector<32x128xf32>, i32 -> vector<32x128xf32>
    %127 = vector.broadcast %20 : vector<32x1xf32> to vector<32x128xf32>
    %128 = arith.mulf %126, %127 : vector<32x128xf32>
    %129 = tpu.concatenate %125, %114, %128 in 1 : vector<32x128xf32>, vector<32x128xf32>, vector<32x128xf32> -> vector<32x384xf32>
    %cst_55 = arith.constant dense<0.000000e+00> : vector<32x256xf32>
    %130 = tpu.matmul %129, %21, %cst_55 {dimension_numbers = #tpu.dot_dimension_numbers<[1], [0], [0], [1], [0, 0, 1, 1], [], []>} : vector<32x384xf32>, vector<384x256xf32>, vector<32x256xf32> -> vector<32x256xf32>
    %131 = arith.addf %122, %130 : vector<32x256xf32>
    %132 = vector.extract_strided_slice %131 {offsets = [0, 0], sizes = [32, 128], strides = [1, 1]} : vector<32x256xf32> to vector<32x128xf32>
    %133 = arith.negf %132 : vector<32x128xf32>
    %134 = math.exp %133 : vector<32x128xf32>
    %cst_56 = arith.constant 1.000000e+00 : f32
    %135 = vector.broadcast %cst_56 : f32 to vector<32x128xf32>
    %136 = arith.addf %135, %134 : vector<32x128xf32>
    %137 = arith.divf %135, %136 : vector<32x128xf32>
    %138 = vector.extract_strided_slice %131 {offsets = [0, 128], sizes = [32, 128], strides = [1, 1]} : vector<32x256xf32> to vector<32x128xf32>
    %139 = arith.negf %138 : vector<32x128xf32>
    %140 = math.exp %139 : vector<32x128xf32>
    %cst_57 = arith.constant 1.000000e+00 : f32
    %141 = vector.broadcast %cst_57 : f32 to vector<32x128xf32>
    %142 = arith.addf %141, %140 : vector<32x128xf32>
    %143 = arith.divf %141, %142 : vector<32x128xf32>
    %144 = vector.extract_strided_slice %121 {offsets = [0, 256], sizes = [32, 128], strides = [1, 1]} : vector<32x384xf32> to vector<32x128xf32>
    %145 = arith.mulf %137, %114 : vector<32x128xf32>
    %c1_i32_58 = arith.constant 1 : i32
    %146 = tpu.dynamic_rotate %145 by %c1_i32_58 dim 0 : vector<32x128xf32>, i32 -> vector<32x128xf32>
    %147 = vector.broadcast %19 : vector<32x1xf32> to vector<32x128xf32>
    %148 = arith.mulf %146, %147 : vector<32x128xf32>
    %c31_i32_59 = arith.constant 31 : i32
    %149 = tpu.dynamic_rotate %145 by %c31_i32_59 dim 0 : vector<32x128xf32>, i32 -> vector<32x128xf32>
    %150 = vector.broadcast %20 : vector<32x1xf32> to vector<32x128xf32>
    %151 = arith.mulf %149, %150 : vector<32x128xf32>
    %152 = tpu.concatenate %148, %145, %151 in 1 : vector<32x128xf32>, vector<32x128xf32>, vector<32x128xf32> -> vector<32x384xf32>
    %cst_60 = arith.constant dense<0.000000e+00> : vector<32x128xf32>
    %153 = tpu.matmul %152, %22, %cst_60 {dimension_numbers = #tpu.dot_dimension_numbers<[1], [0], [0], [1], [0, 0, 1, 1], [], []>} : vector<32x384xf32>, vector<384x128xf32>, vector<32x128xf32> -> vector<32x128xf32>
    %154 = arith.addf %144, %153 : vector<32x128xf32>
    %cst_61 = arith.constant 0.000000e+00 : f32
    %155 = vector.broadcast %cst_61 : f32 to vector<32x128xf32>
    %156 = arith.maximumf %154, %155 : vector<32x128xf32>
    %157 = arith.mulf %143, %114 : vector<32x128xf32>
    %cst_62 = arith.constant 1.000000e+00 : f32
    %158 = vector.broadcast %cst_62 : f32 to vector<32x128xf32>
    %159 = arith.subf %158, %143 : vector<32x128xf32>
    %160 = arith.mulf %159, %156 : vector<32x128xf32>
    %161 = arith.addf %157, %160 : vector<32x128xf32>
    %c0_63 = arith.constant 0 : index
    %162 = arith.index_cast %c2_i32 : i32 to index
    %c0_64 = arith.constant 0 : index
    %c0_65 = arith.constant 0 : index
    %163 = vector.load %arg9[%c0_63, %162, %c0_64, %c0_65] : memref<1x8x32x128xf32, #tpu.memory_space<vmem>>, vector<1x1x32x128xf32>
    %164 = vector.shape_cast %163 : vector<1x1x32x128xf32> to vector<32x128xf32>
    %165 = vector.shape_cast %161 : vector<32x128xf32> to vector<1x1x32x128xf32>
    tpu.vector_store %arg9[%c0_63, %162, %c0_64, %c0_65], %165 {strides = array<i32>} : memref<1x8x32x128xf32, #tpu.memory_space<vmem>>, vector<1x1x32x128xf32>,
    %c3_i32 = arith.constant 3 : i32
    %166 = arith.index_cast %c3_i32 : i32 to index
    %c0_66 = arith.constant 0 : index
    %c0_67 = arith.constant 0 : index
    %167 = vector.load %arg10[%166, %c0_66, %c0_67] : memref<8x32x384xf32, #tpu.memory_space<vmem>>, vector<1x32x384xf32>
    %168 = vector.shape_cast %167 : vector<1x32x384xf32> to vector<32x384xf32>
    %169 = vector.extract_strided_slice %168 {offsets = [0, 0], sizes = [32, 256], strides = [1, 1]} : vector<32x384xf32> to vector<32x256xf32>
    %c1_i32_68 = arith.constant 1 : i32
    %170 = tpu.dynamic_rotate %161 by %c1_i32_68 dim 0 : vector<32x128xf32>, i32 -> vector<32x128xf32>
    %171 = vector.broadcast %19 : vector<32x1xf32> to vector<32x128xf32>
    %172 = arith.mulf %170, %171 : vector<32x128xf32>
    %c31_i32_69 = arith.constant 31 : i32
    %173 = tpu.dynamic_rotate %161 by %c31_i32_69 dim 0 : vector<32x128xf32>, i32 -> vector<32x128xf32>
    %174 = vector.broadcast %20 : vector<32x1xf32> to vector<32x128xf32>
    %175 = arith.mulf %173, %174 : vector<32x128xf32>
    %176 = tpu.concatenate %172, %161, %175 in 1 : vector<32x128xf32>, vector<32x128xf32>, vector<32x128xf32> -> vector<32x384xf32>
    %cst_70 = arith.constant dense<0.000000e+00> : vector<32x256xf32>
    %177 = tpu.matmul %176, %21, %cst_70 {dimension_numbers = #tpu.dot_dimension_numbers<[1], [0], [0], [1], [0, 0, 1, 1], [], []>} : vector<32x384xf32>, vector<384x256xf32>, vector<32x256xf32> -> vector<32x256xf32>
    %178 = arith.addf %169, %177 : vector<32x256xf32>
    %179 = vector.extract_strided_slice %178 {offsets = [0, 0], sizes = [32, 128], strides = [1, 1]} : vector<32x256xf32> to vector<32x128xf32>
    %180 = arith.negf %179 : vector<32x128xf32>
    %181 = math.exp %180 : vector<32x128xf32>
    %cst_71 = arith.constant 1.000000e+00 : f32
    %182 = vector.broadcast %cst_71 : f32 to vector<32x128xf32>
    %183 = arith.addf %182, %181 : vector<32x128xf32>
    %184 = arith.divf %182, %183 : vector<32x128xf32>
    %185 = vector.extract_strided_slice %178 {offsets = [0, 128], sizes = [32, 128], strides = [1, 1]} : vector<32x256xf32> to vector<32x128xf32>
    %186 = arith.negf %185 : vector<32x128xf32>
    %187 = math.exp %186 : vector<32x128xf32>
    %cst_72 = arith.constant 1.000000e+00 : f32
    %188 = vector.broadcast %cst_72 : f32 to vector<32x128xf32>
    %189 = arith.addf %188, %187 : vector<32x128xf32>
    %190 = arith.divf %188, %189 : vector<32x128xf32>
    %191 = vector.extract_strided_slice %168 {offsets = [0, 256], sizes = [32, 128], strides = [1, 1]} : vector<32x384xf32> to vector<32x128xf32>
    %192 = arith.mulf %184, %161 : vector<32x128xf32>
    %c1_i32_73 = arith.constant 1 : i32
    %193 = tpu.dynamic_rotate %192 by %c1_i32_73 dim 0 : vector<32x128xf32>, i32 -> vector<32x128xf32>
    %194 = vector.broadcast %19 : vector<32x1xf32> to vector<32x128xf32>
    %195 = arith.mulf %193, %194 : vector<32x128xf32>
    %c31_i32_74 = arith.constant 31 : i32
    %196 = tpu.dynamic_rotate %192 by %c31_i32_74 dim 0 : vector<32x128xf32>, i32 -> vector<32x128xf32>
    %197 = vector.broadcast %20 : vector<32x1xf32> to vector<32x128xf32>
    %198 = arith.mulf %196, %197 : vector<32x128xf32>
    %199 = tpu.concatenate %195, %192, %198 in 1 : vector<32x128xf32>, vector<32x128xf32>, vector<32x128xf32> -> vector<32x384xf32>
    %cst_75 = arith.constant dense<0.000000e+00> : vector<32x128xf32>
    %200 = tpu.matmul %199, %22, %cst_75 {dimension_numbers = #tpu.dot_dimension_numbers<[1], [0], [0], [1], [0, 0, 1, 1], [], []>} : vector<32x384xf32>, vector<384x128xf32>, vector<32x128xf32> -> vector<32x128xf32>
    %201 = arith.addf %191, %200 : vector<32x128xf32>
    %cst_76 = arith.constant 0.000000e+00 : f32
    %202 = vector.broadcast %cst_76 : f32 to vector<32x128xf32>
    %203 = arith.maximumf %201, %202 : vector<32x128xf32>
    %204 = arith.mulf %190, %161 : vector<32x128xf32>
    %cst_77 = arith.constant 1.000000e+00 : f32
    %205 = vector.broadcast %cst_77 : f32 to vector<32x128xf32>
    %206 = arith.subf %205, %190 : vector<32x128xf32>
    %207 = arith.mulf %206, %203 : vector<32x128xf32>
    %208 = arith.addf %204, %207 : vector<32x128xf32>
    %c0_78 = arith.constant 0 : index
    %209 = arith.index_cast %c3_i32 : i32 to index
    %c0_79 = arith.constant 0 : index
    %c0_80 = arith.constant 0 : index
    %210 = vector.load %arg9[%c0_78, %209, %c0_79, %c0_80] : memref<1x8x32x128xf32, #tpu.memory_space<vmem>>, vector<1x1x32x128xf32>
    %211 = vector.shape_cast %210 : vector<1x1x32x128xf32> to vector<32x128xf32>
    %212 = vector.shape_cast %208 : vector<32x128xf32> to vector<1x1x32x128xf32>
    tpu.vector_store %arg9[%c0_78, %209, %c0_79, %c0_80], %212 {strides = array<i32>} : memref<1x8x32x128xf32, #tpu.memory_space<vmem>>, vector<1x1x32x128xf32>,
    %c4_i32 = arith.constant 4 : i32
    %213 = arith.index_cast %c4_i32 : i32 to index
    %c0_81 = arith.constant 0 : index
    %c0_82 = arith.constant 0 : index
    %214 = vector.load %arg10[%213, %c0_81, %c0_82] : memref<8x32x384xf32, #tpu.memory_space<vmem>>, vector<1x32x384xf32>
    %215 = vector.shape_cast %214 : vector<1x32x384xf32> to vector<32x384xf32>
    %216 = vector.extract_strided_slice %215 {offsets = [0, 0], sizes = [32, 256], strides = [1, 1]} : vector<32x384xf32> to vector<32x256xf32>
    %c1_i32_83 = arith.constant 1 : i32
    %217 = tpu.dynamic_rotate %208 by %c1_i32_83 dim 0 : vector<32x128xf32>, i32 -> vector<32x128xf32>
    %218 = vector.broadcast %19 : vector<32x1xf32> to vector<32x128xf32>
    %219 = arith.mulf %217, %218 : vector<32x128xf32>
    %c31_i32_84 = arith.constant 31 : i32
    %220 = tpu.dynamic_rotate %208 by %c31_i32_84 dim 0 : vector<32x128xf32>, i32 -> vector<32x128xf32>
    %221 = vector.broadcast %20 : vector<32x1xf32> to vector<32x128xf32>
    %222 = arith.mulf %220, %221 : vector<32x128xf32>
    %223 = tpu.concatenate %219, %208, %222 in 1 : vector<32x128xf32>, vector<32x128xf32>, vector<32x128xf32> -> vector<32x384xf32>
    %cst_85 = arith.constant dense<0.000000e+00> : vector<32x256xf32>
    %224 = tpu.matmul %223, %21, %cst_85 {dimension_numbers = #tpu.dot_dimension_numbers<[1], [0], [0], [1], [0, 0, 1, 1], [], []>} : vector<32x384xf32>, vector<384x256xf32>, vector<32x256xf32> -> vector<32x256xf32>
    %225 = arith.addf %216, %224 : vector<32x256xf32>
    %226 = vector.extract_strided_slice %225 {offsets = [0, 0], sizes = [32, 128], strides = [1, 1]} : vector<32x256xf32> to vector<32x128xf32>
    %227 = arith.negf %226 : vector<32x128xf32>
    %228 = math.exp %227 : vector<32x128xf32>
    %cst_86 = arith.constant 1.000000e+00 : f32
    %229 = vector.broadcast %cst_86 : f32 to vector<32x128xf32>
    %230 = arith.addf %229, %228 : vector<32x128xf32>
    %231 = arith.divf %229, %230 : vector<32x128xf32>
    %232 = vector.extract_strided_slice %225 {offsets = [0, 128], sizes = [32, 128], strides = [1, 1]} : vector<32x256xf32> to vector<32x128xf32>
    %233 = arith.negf %232 : vector<32x128xf32>
    %234 = math.exp %233 : vector<32x128xf32>
    %cst_87 = arith.constant 1.000000e+00 : f32
    %235 = vector.broadcast %cst_87 : f32 to vector<32x128xf32>
    %236 = arith.addf %235, %234 : vector<32x128xf32>
    %237 = arith.divf %235, %236 : vector<32x128xf32>
    %238 = vector.extract_strided_slice %215 {offsets = [0, 256], sizes = [32, 128], strides = [1, 1]} : vector<32x384xf32> to vector<32x128xf32>
    %239 = arith.mulf %231, %208 : vector<32x128xf32>
    %c1_i32_88 = arith.constant 1 : i32
    %240 = tpu.dynamic_rotate %239 by %c1_i32_88 dim 0 : vector<32x128xf32>, i32 -> vector<32x128xf32>
    %241 = vector.broadcast %19 : vector<32x1xf32> to vector<32x128xf32>
    %242 = arith.mulf %240, %241 : vector<32x128xf32>
    %c31_i32_89 = arith.constant 31 : i32
    %243 = tpu.dynamic_rotate %239 by %c31_i32_89 dim 0 : vector<32x128xf32>, i32 -> vector<32x128xf32>
    %244 = vector.broadcast %20 : vector<32x1xf32> to vector<32x128xf32>
    %245 = arith.mulf %243, %244 : vector<32x128xf32>
    %246 = tpu.concatenate %242, %239, %245 in 1 : vector<32x128xf32>, vector<32x128xf32>, vector<32x128xf32> -> vector<32x384xf32>
    %cst_90 = arith.constant dense<0.000000e+00> : vector<32x128xf32>
    %247 = tpu.matmul %246, %22, %cst_90 {dimension_numbers = #tpu.dot_dimension_numbers<[1], [0], [0], [1], [0, 0, 1, 1], [], []>} : vector<32x384xf32>, vector<384x128xf32>, vector<32x128xf32> -> vector<32x128xf32>
    %248 = arith.addf %238, %247 : vector<32x128xf32>
    %cst_91 = arith.constant 0.000000e+00 : f32
    %249 = vector.broadcast %cst_91 : f32 to vector<32x128xf32>
    %250 = arith.maximumf %248, %249 : vector<32x128xf32>
    %251 = arith.mulf %237, %208 : vector<32x128xf32>
    %cst_92 = arith.constant 1.000000e+00 : f32
    %252 = vector.broadcast %cst_92 : f32 to vector<32x128xf32>
    %253 = arith.subf %252, %237 : vector<32x128xf32>
    %254 = arith.mulf %253, %250 : vector<32x128xf32>
    %255 = arith.addf %251, %254 : vector<32x128xf32>
    %c0_93 = arith.constant 0 : index
    %256 = arith.index_cast %c4_i32 : i32 to index
    %c0_94 = arith.constant 0 : index
    %c0_95 = arith.constant 0 : index
    %257 = vector.load %arg9[%c0_93, %256, %c0_94, %c0_95] : memref<1x8x32x128xf32, #tpu.memory_space<vmem>>, vector<1x1x32x128xf32>
    %258 = vector.shape_cast %257 : vector<1x1x32x128xf32> to vector<32x128xf32>
    %259 = vector.shape_cast %255 : vector<32x128xf32> to vector<1x1x32x128xf32>
    tpu.vector_store %arg9[%c0_93, %256, %c0_94, %c0_95], %259 {strides = array<i32>} : memref<1x8x32x128xf32, #tpu.memory_space<vmem>>, vector<1x1x32x128xf32>,
    %c5_i32 = arith.constant 5 : i32
    %260 = arith.index_cast %c5_i32 : i32 to index
    %c0_96 = arith.constant 0 : index
    %c0_97 = arith.constant 0 : index
    %261 = vector.load %arg10[%260, %c0_96, %c0_97] : memref<8x32x384xf32, #tpu.memory_space<vmem>>, vector<1x32x384xf32>
    %262 = vector.shape_cast %261 : vector<1x32x384xf32> to vector<32x384xf32>
    %263 = vector.extract_strided_slice %262 {offsets = [0, 0], sizes = [32, 256], strides = [1, 1]} : vector<32x384xf32> to vector<32x256xf32>
    %c1_i32_98 = arith.constant 1 : i32
    %264 = tpu.dynamic_rotate %255 by %c1_i32_98 dim 0 : vector<32x128xf32>, i32 -> vector<32x128xf32>
    %265 = vector.broadcast %19 : vector<32x1xf32> to vector<32x128xf32>
    %266 = arith.mulf %264, %265 : vector<32x128xf32>
    %c31_i32_99 = arith.constant 31 : i32
    %267 = tpu.dynamic_rotate %255 by %c31_i32_99 dim 0 : vector<32x128xf32>, i32 -> vector<32x128xf32>
    %268 = vector.broadcast %20 : vector<32x1xf32> to vector<32x128xf32>
    %269 = arith.mulf %267, %268 : vector<32x128xf32>
    %270 = tpu.concatenate %266, %255, %269 in 1 : vector<32x128xf32>, vector<32x128xf32>, vector<32x128xf32> -> vector<32x384xf32>
    %cst_100 = arith.constant dense<0.000000e+00> : vector<32x256xf32>
    %271 = tpu.matmul %270, %21, %cst_100 {dimension_numbers = #tpu.dot_dimension_numbers<[1], [0], [0], [1], [0, 0, 1, 1], [], []>} : vector<32x384xf32>, vector<384x256xf32>, vector<32x256xf32> -> vector<32x256xf32>
    %272 = arith.addf %263, %271 : vector<32x256xf32>
    %273 = vector.extract_strided_slice %272 {offsets = [0, 0], sizes = [32, 128], strides = [1, 1]} : vector<32x256xf32> to vector<32x128xf32>
    %274 = arith.negf %273 : vector<32x128xf32>
    %275 = math.exp %274 : vector<32x128xf32>
    %cst_101 = arith.constant 1.000000e+00 : f32
    %276 = vector.broadcast %cst_101 : f32 to vector<32x128xf32>
    %277 = arith.addf %276, %275 : vector<32x128xf32>
    %278 = arith.divf %276, %277 : vector<32x128xf32>
    %279 = vector.extract_strided_slice %272 {offsets = [0, 128], sizes = [32, 128], strides = [1, 1]} : vector<32x256xf32> to vector<32x128xf32>
    %280 = arith.negf %279 : vector<32x128xf32>
    %281 = math.exp %280 : vector<32x128xf32>
    %cst_102 = arith.constant 1.000000e+00 : f32
    %282 = vector.broadcast %cst_102 : f32 to vector<32x128xf32>
    %283 = arith.addf %282, %281 : vector<32x128xf32>
    %284 = arith.divf %282, %283 : vector<32x128xf32>
    %285 = vector.extract_strided_slice %262 {offsets = [0, 256], sizes = [32, 128], strides = [1, 1]} : vector<32x384xf32> to vector<32x128xf32>
    %286 = arith.mulf %278, %255 : vector<32x128xf32>
    %c1_i32_103 = arith.constant 1 : i32
    %287 = tpu.dynamic_rotate %286 by %c1_i32_103 dim 0 : vector<32x128xf32>, i32 -> vector<32x128xf32>
    %288 = vector.broadcast %19 : vector<32x1xf32> to vector<32x128xf32>
    %289 = arith.mulf %287, %288 : vector<32x128xf32>
    %c31_i32_104 = arith.constant 31 : i32
    %290 = tpu.dynamic_rotate %286 by %c31_i32_104 dim 0 : vector<32x128xf32>, i32 -> vector<32x128xf32>
    %291 = vector.broadcast %20 : vector<32x1xf32> to vector<32x128xf32>
    %292 = arith.mulf %290, %291 : vector<32x128xf32>
    %293 = tpu.concatenate %289, %286, %292 in 1 : vector<32x128xf32>, vector<32x128xf32>, vector<32x128xf32> -> vector<32x384xf32>
    %cst_105 = arith.constant dense<0.000000e+00> : vector<32x128xf32>
    %294 = tpu.matmul %293, %22, %cst_105 {dimension_numbers = #tpu.dot_dimension_numbers<[1], [0], [0], [1], [0, 0, 1, 1], [], []>} : vector<32x384xf32>, vector<384x128xf32>, vector<32x128xf32> -> vector<32x128xf32>
    %295 = arith.addf %285, %294 : vector<32x128xf32>
    %cst_106 = arith.constant 0.000000e+00 : f32
    %296 = vector.broadcast %cst_106 : f32 to vector<32x128xf32>
    %297 = arith.maximumf %295, %296 : vector<32x128xf32>
    %298 = arith.mulf %284, %255 : vector<32x128xf32>
    %cst_107 = arith.constant 1.000000e+00 : f32
    %299 = vector.broadcast %cst_107 : f32 to vector<32x128xf32>
    %300 = arith.subf %299, %284 : vector<32x128xf32>
    %301 = arith.mulf %300, %297 : vector<32x128xf32>
    %302 = arith.addf %298, %301 : vector<32x128xf32>
    %c0_108 = arith.constant 0 : index
    %303 = arith.index_cast %c5_i32 : i32 to index
    %c0_109 = arith.constant 0 : index
    %c0_110 = arith.constant 0 : index
    %304 = vector.load %arg9[%c0_108, %303, %c0_109, %c0_110] : memref<1x8x32x128xf32, #tpu.memory_space<vmem>>, vector<1x1x32x128xf32>
    %305 = vector.shape_cast %304 : vector<1x1x32x128xf32> to vector<32x128xf32>
    %306 = vector.shape_cast %302 : vector<32x128xf32> to vector<1x1x32x128xf32>
    tpu.vector_store %arg9[%c0_108, %303, %c0_109, %c0_110], %306 {strides = array<i32>} : memref<1x8x32x128xf32, #tpu.memory_space<vmem>>, vector<1x1x32x128xf32>,
    %c6_i32 = arith.constant 6 : i32
    %307 = arith.index_cast %c6_i32 : i32 to index
    %c0_111 = arith.constant 0 : index
    %c0_112 = arith.constant 0 : index
    %308 = vector.load %arg10[%307, %c0_111, %c0_112] : memref<8x32x384xf32, #tpu.memory_space<vmem>>, vector<1x32x384xf32>
    %309 = vector.shape_cast %308 : vector<1x32x384xf32> to vector<32x384xf32>
    %310 = vector.extract_strided_slice %309 {offsets = [0, 0], sizes = [32, 256], strides = [1, 1]} : vector<32x384xf32> to vector<32x256xf32>
    %c1_i32_113 = arith.constant 1 : i32
    %311 = tpu.dynamic_rotate %302 by %c1_i32_113 dim 0 : vector<32x128xf32>, i32 -> vector<32x128xf32>
    %312 = vector.broadcast %19 : vector<32x1xf32> to vector<32x128xf32>
    %313 = arith.mulf %311, %312 : vector<32x128xf32>
    %c31_i32_114 = arith.constant 31 : i32
    %314 = tpu.dynamic_rotate %302 by %c31_i32_114 dim 0 : vector<32x128xf32>, i32 -> vector<32x128xf32>
    %315 = vector.broadcast %20 : vector<32x1xf32> to vector<32x128xf32>
    %316 = arith.mulf %314, %315 : vector<32x128xf32>
    %317 = tpu.concatenate %313, %302, %316 in 1 : vector<32x128xf32>, vector<32x128xf32>, vector<32x128xf32> -> vector<32x384xf32>
    %cst_115 = arith.constant dense<0.000000e+00> : vector<32x256xf32>
    %318 = tpu.matmul %317, %21, %cst_115 {dimension_numbers = #tpu.dot_dimension_numbers<[1], [0], [0], [1], [0, 0, 1, 1], [], []>} : vector<32x384xf32>, vector<384x256xf32>, vector<32x256xf32> -> vector<32x256xf32>
    %319 = arith.addf %310, %318 : vector<32x256xf32>
    %320 = vector.extract_strided_slice %319 {offsets = [0, 0], sizes = [32, 128], strides = [1, 1]} : vector<32x256xf32> to vector<32x128xf32>
    %321 = arith.negf %320 : vector<32x128xf32>
    %322 = math.exp %321 : vector<32x128xf32>
    %cst_116 = arith.constant 1.000000e+00 : f32
    %323 = vector.broadcast %cst_116 : f32 to vector<32x128xf32>
    %324 = arith.addf %323, %322 : vector<32x128xf32>
    %325 = arith.divf %323, %324 : vector<32x128xf32>
    %326 = vector.extract_strided_slice %319 {offsets = [0, 128], sizes = [32, 128], strides = [1, 1]} : vector<32x256xf32> to vector<32x128xf32>
    %327 = arith.negf %326 : vector<32x128xf32>
    %328 = math.exp %327 : vector<32x128xf32>
    %cst_117 = arith.constant 1.000000e+00 : f32
    %329 = vector.broadcast %cst_117 : f32 to vector<32x128xf32>
    %330 = arith.addf %329, %328 : vector<32x128xf32>
    %331 = arith.divf %329, %330 : vector<32x128xf32>
    %332 = vector.extract_strided_slice %309 {offsets = [0, 256], sizes = [32, 128], strides = [1, 1]} : vector<32x384xf32> to vector<32x128xf32>
    %333 = arith.mulf %325, %302 : vector<32x128xf32>
    %c1_i32_118 = arith.constant 1 : i32
    %334 = tpu.dynamic_rotate %333 by %c1_i32_118 dim 0 : vector<32x128xf32>, i32 -> vector<32x128xf32>
    %335 = vector.broadcast %19 : vector<32x1xf32> to vector<32x128xf32>
    %336 = arith.mulf %334, %335 : vector<32x128xf32>
    %c31_i32_119 = arith.constant 31 : i32
    %337 = tpu.dynamic_rotate %333 by %c31_i32_119 dim 0 : vector<32x128xf32>, i32 -> vector<32x128xf32>
    %338 = vector.broadcast %20 : vector<32x1xf32> to vector<32x128xf32>
    %339 = arith.mulf %337, %338 : vector<32x128xf32>
    %340 = tpu.concatenate %336, %333, %339 in 1 : vector<32x128xf32>, vector<32x128xf32>, vector<32x128xf32> -> vector<32x384xf32>
    %cst_120 = arith.constant dense<0.000000e+00> : vector<32x128xf32>
    %341 = tpu.matmul %340, %22, %cst_120 {dimension_numbers = #tpu.dot_dimension_numbers<[1], [0], [0], [1], [0, 0, 1, 1], [], []>} : vector<32x384xf32>, vector<384x128xf32>, vector<32x128xf32> -> vector<32x128xf32>
    %342 = arith.addf %332, %341 : vector<32x128xf32>
    %cst_121 = arith.constant 0.000000e+00 : f32
    %343 = vector.broadcast %cst_121 : f32 to vector<32x128xf32>
    %344 = arith.maximumf %342, %343 : vector<32x128xf32>
    %345 = arith.mulf %331, %302 : vector<32x128xf32>
    %cst_122 = arith.constant 1.000000e+00 : f32
    %346 = vector.broadcast %cst_122 : f32 to vector<32x128xf32>
    %347 = arith.subf %346, %331 : vector<32x128xf32>
    %348 = arith.mulf %347, %344 : vector<32x128xf32>
    %349 = arith.addf %345, %348 : vector<32x128xf32>
    %c0_123 = arith.constant 0 : index
    %350 = arith.index_cast %c6_i32 : i32 to index
    %c0_124 = arith.constant 0 : index
    %c0_125 = arith.constant 0 : index
    %351 = vector.load %arg9[%c0_123, %350, %c0_124, %c0_125] : memref<1x8x32x128xf32, #tpu.memory_space<vmem>>, vector<1x1x32x128xf32>
    %352 = vector.shape_cast %351 : vector<1x1x32x128xf32> to vector<32x128xf32>
    %353 = vector.shape_cast %349 : vector<32x128xf32> to vector<1x1x32x128xf32>
    tpu.vector_store %arg9[%c0_123, %350, %c0_124, %c0_125], %353 {strides = array<i32>} : memref<1x8x32x128xf32, #tpu.memory_space<vmem>>, vector<1x1x32x128xf32>,
    %c7_i32 = arith.constant 7 : i32
    %354 = arith.index_cast %c7_i32 : i32 to index
    %c0_126 = arith.constant 0 : index
    %c0_127 = arith.constant 0 : index
    %355 = vector.load %arg10[%354, %c0_126, %c0_127] : memref<8x32x384xf32, #tpu.memory_space<vmem>>, vector<1x32x384xf32>
    %356 = vector.shape_cast %355 : vector<1x32x384xf32> to vector<32x384xf32>
    %357 = vector.extract_strided_slice %356 {offsets = [0, 0], sizes = [32, 256], strides = [1, 1]} : vector<32x384xf32> to vector<32x256xf32>
    %c1_i32_128 = arith.constant 1 : i32
    %358 = tpu.dynamic_rotate %349 by %c1_i32_128 dim 0 : vector<32x128xf32>, i32 -> vector<32x128xf32>
    %359 = vector.broadcast %19 : vector<32x1xf32> to vector<32x128xf32>
    %360 = arith.mulf %358, %359 : vector<32x128xf32>
    %c31_i32_129 = arith.constant 31 : i32
    %361 = tpu.dynamic_rotate %349 by %c31_i32_129 dim 0 : vector<32x128xf32>, i32 -> vector<32x128xf32>
    %362 = vector.broadcast %20 : vector<32x1xf32> to vector<32x128xf32>
    %363 = arith.mulf %361, %362 : vector<32x128xf32>
    %364 = tpu.concatenate %360, %349, %363 in 1 : vector<32x128xf32>, vector<32x128xf32>, vector<32x128xf32> -> vector<32x384xf32>
    %cst_130 = arith.constant dense<0.000000e+00> : vector<32x256xf32>
    %365 = tpu.matmul %364, %21, %cst_130 {dimension_numbers = #tpu.dot_dimension_numbers<[1], [0], [0], [1], [0, 0, 1, 1], [], []>} : vector<32x384xf32>, vector<384x256xf32>, vector<32x256xf32> -> vector<32x256xf32>
    %366 = arith.addf %357, %365 : vector<32x256xf32>
    %367 = vector.extract_strided_slice %366 {offsets = [0, 0], sizes = [32, 128], strides = [1, 1]} : vector<32x256xf32> to vector<32x128xf32>
    %368 = arith.negf %367 : vector<32x128xf32>
    %369 = math.exp %368 : vector<32x128xf32>
    %cst_131 = arith.constant 1.000000e+00 : f32
    %370 = vector.broadcast %cst_131 : f32 to vector<32x128xf32>
    %371 = arith.addf %370, %369 : vector<32x128xf32>
    %372 = arith.divf %370, %371 : vector<32x128xf32>
    %373 = vector.extract_strided_slice %366 {offsets = [0, 128], sizes = [32, 128], strides = [1, 1]} : vector<32x256xf32> to vector<32x128xf32>
    %374 = arith.negf %373 : vector<32x128xf32>
    %375 = math.exp %374 : vector<32x128xf32>
    %cst_132 = arith.constant 1.000000e+00 : f32
    %376 = vector.broadcast %cst_132 : f32 to vector<32x128xf32>
    %377 = arith.addf %376, %375 : vector<32x128xf32>
    %378 = arith.divf %376, %377 : vector<32x128xf32>
    %379 = vector.extract_strided_slice %356 {offsets = [0, 256], sizes = [32, 128], strides = [1, 1]} : vector<32x384xf32> to vector<32x128xf32>
    %380 = arith.mulf %372, %349 : vector<32x128xf32>
    %c1_i32_133 = arith.constant 1 : i32
    %381 = tpu.dynamic_rotate %380 by %c1_i32_133 dim 0 : vector<32x128xf32>, i32 -> vector<32x128xf32>
    %382 = vector.broadcast %19 : vector<32x1xf32> to vector<32x128xf32>
    %383 = arith.mulf %381, %382 : vector<32x128xf32>
    %c31_i32_134 = arith.constant 31 : i32
    %384 = tpu.dynamic_rotate %380 by %c31_i32_134 dim 0 : vector<32x128xf32>, i32 -> vector<32x128xf32>
    %385 = vector.broadcast %20 : vector<32x1xf32> to vector<32x128xf32>
    %386 = arith.mulf %384, %385 : vector<32x128xf32>
    %387 = tpu.concatenate %383, %380, %386 in 1 : vector<32x128xf32>, vector<32x128xf32>, vector<32x128xf32> -> vector<32x384xf32>
    %cst_135 = arith.constant dense<0.000000e+00> : vector<32x128xf32>
    %388 = tpu.matmul %387, %22, %cst_135 {dimension_numbers = #tpu.dot_dimension_numbers<[1], [0], [0], [1], [0, 0, 1, 1], [], []>} : vector<32x384xf32>, vector<384x128xf32>, vector<32x128xf32> -> vector<32x128xf32>
    %389 = arith.addf %379, %388 : vector<32x128xf32>
    %cst_136 = arith.constant 0.000000e+00 : f32
    %390 = vector.broadcast %cst_136 : f32 to vector<32x128xf32>
    %391 = arith.maximumf %389, %390 : vector<32x128xf32>
    %392 = arith.mulf %378, %349 : vector<32x128xf32>
    %cst_137 = arith.constant 1.000000e+00 : f32
    %393 = vector.broadcast %cst_137 : f32 to vector<32x128xf32>
    %394 = arith.subf %393, %378 : vector<32x128xf32>
    %395 = arith.mulf %394, %391 : vector<32x128xf32>
    %396 = arith.addf %392, %395 : vector<32x128xf32>
    %c0_138 = arith.constant 0 : index
    %397 = arith.index_cast %c7_i32 : i32 to index
    %c0_139 = arith.constant 0 : index
    %c0_140 = arith.constant 0 : index
    %398 = vector.load %arg9[%c0_138, %397, %c0_139, %c0_140] : memref<1x8x32x128xf32, #tpu.memory_space<vmem>>, vector<1x1x32x128xf32>
    %399 = vector.shape_cast %398 : vector<1x1x32x128xf32> to vector<32x128xf32>
    %400 = vector.shape_cast %396 : vector<32x128xf32> to vector<1x1x32x128xf32>
    tpu.vector_store %arg9[%c0_138, %397, %c0_139, %c0_140], %400 {strides = array<i32>} : memref<1x8x32x128xf32, #tpu.memory_space<vmem>>, vector<1x1x32x128xf32>,
    %c8_i32 = arith.constant 8 : i32
    return
  }
  func.func @transform_0(%arg0: i32) -> (i32, i32, i32, i32) {
    %c0_i32 = arith.constant 0 : i32
    %c0_i32_0 = arith.constant 0 : i32
    %c0_i32_1 = arith.constant 0 : i32
    %c0_i32_2 = arith.constant 0 : i32
    return %arg0, %c0_i32, %c0_i32_0, %c0_i32_1 : i32, i32, i32, i32
  }
  func.func @transform_1(%arg0: i32) -> (i32, i32, i32) {
    %c0_i32 = arith.constant 0 : i32
    %c0_i32_0 = arith.constant 0 : i32
    %c0_i32_1 = arith.constant 0 : i32
    return %arg0, %c0_i32, %c0_i32_0 : i32, i32, i32
  }
  func.func @transform_2(%arg0: i32) -> (i32, i32) {
    %c0_i32 = arith.constant 0 : i32
    %c0_i32_0 = arith.constant 0 : i32
    %c0_i32_1 = arith.constant 0 : i32
    return %c0_i32, %c0_i32_0 : i32, i32
  }
  func.func @transform_3(%arg0: i32) -> (i32, i32) {
    %c0_i32 = arith.constant 0 : i32
    %c0_i32_0 = arith.constant 0 : i32
    %c0_i32_1 = arith.constant 0 : i32
    return %c0_i32, %c0_i32_0 : i32, i32
  }
  func.func @transform_4(%arg0: i32) -> (i32, i32) {
    %c0_i32 = arith.constant 0 : i32
    %c0_i32_0 = arith.constant 0 : i32
    %c0_i32_1 = arith.constant 0 : i32
    return %c0_i32, %c0_i32_0 : i32, i32
  }
  func.func @transform_5(%arg0: i32) -> (i32, i32) {
    %c0_i32 = arith.constant 0 : i32
    %c0_i32_0 = arith.constant 0 : i32
    %c0_i32_1 = arith.constant 0 : i32
    return %c0_i32, %c0_i32_0 : i32, i32
  }
  func.func @transform_6(%arg0: i32) -> (i32, i32) {
    %c0_i32 = arith.constant 0 : i32
    %c0_i32_0 = arith.constant 0 : i32
    %c0_i32_1 = arith.constant 0 : i32
    return %c0_i32, %c0_i32_0 : i32, i32
  }
  func.func @transform_7(%arg0: i32) -> (i32, i32) {
    %c0_i32 = arith.constant 0 : i32
    %c0_i32_0 = arith.constant 0 : i32
    %c0_i32_1 = arith.constant 0 : i32
    return %c0_i32, %c0_i32_0 : i32, i32
  }
  func.func @transform_8(%arg0: i32) -> (i32, i32, i32, i32) {
    %c0_i32 = arith.constant 0 : i32
    %c0_i32_0 = arith.constant 0 : i32
    %c0_i32_1 = arith.constant 0 : i32
    %c0_i32_2 = arith.constant 0 : i32
    return %arg0, %c0_i32, %c0_i32_0, %c0_i32_1 : i32, i32, i32, i32
  }
}

</mosaic_0001>

<bundles_post_ra>
// kernel: tpu_custom_call.1
= control target key start
LH: loop header
LB: loop body
LE: loop exit
PB: predicated region body
PF: predicated region fallthrough
CT: control target
= control target key end

     0   :  { %13 = vsyncpa [#allocation4], 0  ;;  %s12381_s0 = inlined_call_operand.hbm [shape: f32[1,8,32,64], index: 0, kind: input, shape index: {}]   ;;  %s12382_s1 = inlined_call_operand.vmem [shape: f32[1,32,128], index: 1, kind: input, shape index: {}]   ;;  %s12383_s2 = inlined_call_operand.hbm [shape: f32[192,384], index: 2, kind: input, shape index: {}]   ;;  %s12384_s3 = inlined_call_operand.vmem [shape: f32[1,384], index: 3, kind: input, shape index: {}]   ;;  %s12385_s4 = inlined_call_operand.hbm [shape: f32[384,256], index: 4, kind: input, shape index: {}]   ;;  %s12386_s5 = inlined_call_operand.vmem [shape: f32[384,128], index: 5, kind: input, shape index: {}]   ;;  %s12387_s6 = inlined_call_operand.vmem [shape: f32[256,1], index: 6, kind: input, shape index: {}]   ;;  %s12388_s7 = inlined_call_operand.vmem [shape: f32[256,1], index: 7, kind: input, shape index: {}]   ;;  %s12389_s8 = inlined_call_operand.hbm [shape: f32[1,8,32,128], index: 8, kind: output, shape index: {}]  }
   0x1   :  { %14 = vsyncpa [#allocation7], 0 }
   0x2   :  { %15 = vsyncpa [#allocation5], 0  ;;  %s7709_s27 = smov [#allocation6]  }
   0x3   :  { %s35_s28 = sshll.u32 %s7709_s27, 4  ;;  %s36_s28 = int_to_ptr.vmem [resolvable:$true] %s35_s28 }
   0x4   :  { %s7631_s29 = scalar_lea.vmem %s36_s28, 9216  ;;  %p7636_p1 = scmp.lt.s32.totalorder %s36_s28, %s36_s28 }
   0x5   :  { %p7632_p0 = scmp.ne.s32.totalorder %s36_s28, %s7631_s29  ;;  %p7637_p2 = scmp.lt.s32.totalorder %s7631_s29, %s7631_s29 }
   0x7   :  { %p7638_p3 = por %p7637_p2, %p7636_p1 }
   0x9   :  { %p7639_p4 = pnand %p7638_p3, %p7632_p0 }
   0xb   :  { %7642 = shalt.err (!%p7639_p4)
}
   0xc   :  { %s7710_s30 = smov 384   ;;  %s7711_s9 = smov 24  }
   0xd   :  { %41 = dma.hbm_to_vmem [thread:$0]  %s12383_s2, 9216, %s36_s28, [#allocation7], %s7710_s30, %s7710_s30, %s7711_s9  }
   0xe   :  { %s7712_s12 = smov [#allocation3]  }
   0xf   :  { %s21_s13 = sshll.u32 %s7712_s12, 4  ;;  %s22_s13 = int_to_ptr.vmem [resolvable:$true] %s21_s13 }
  0x10   :  { %s7651_s14 = scalar_lea.vmem %s22_s13, 4096  ;;  %p7656_p6 = scmp.lt.s32.totalorder %s22_s13, %s22_s13 }
  0x11   :  { %p7652_p5 = scmp.ne.s32.totalorder %s22_s13, %s7651_s14  ;;  %p7657_p7 = scmp.lt.s32.totalorder %s7651_s14, %s7651_s14 }
  0x13   :  { %p7658_p8 = por %p7657_p7, %p7656_p6 }
  0x15   :  { %p7659_p9 = pnand %p7658_p8, %p7652_p5 }
  0x17   :  { %7662 = shalt.err (!%p7659_p9)
}
  0x18   :  { %s7713_s15 = smov 128   ;;  %s7714_s16 = smov 8  }
  0x19   :  { %27 = dma.hbm_to_vmem [thread:$0]  %s12381_s0, 4096, %s22_s13, [#allocation4], %s7713_s15, %s7713_s15, %s7714_s16  }
  0x1a   :  { %s7715_s2 = smov [#allocation8]  }
  0x1b   :  { %s49_s19 = sshll.u32 %s7715_s2, 4  ;;  %s50_s19 = int_to_ptr.vmem [resolvable:$true] %s49_s19 }
  0x1c   :  { %s7671_s20 = scalar_lea.vmem %s50_s19, 12288  ;;  %p7676_p11 = scmp.lt.s32.totalorder %s50_s19, %s50_s19 }
  0x1d   :  { %p7672_p10 = scmp.ne.s32.totalorder %s50_s19, %s7671_s20  ;;  %p7677_p12 = scmp.lt.s32.totalorder %s7671_s20, %s7671_s20 }
  0x1f   :  { %p7678_p13 = por %p7677_p12, %p7676_p11 }
  0x21   :  { %p7679_p0 = pnand %p7678_p13, %p7672_p10 }
  0x23   :  { %7682 = shalt.err (!%p7679_p0)
}
  0x24   :  { %s7716_s21 = smov 256   ;;  %s7717_s22 = smov 16  }
  0x25   :  { %55 = dma.hbm_to_vmem [thread:$0]  %s12385_s4, 12288, %s50_s19, [#allocation7], %s7716_s21, %s7716_s21, %s7717_s22  }
  0x26   :  { %7703 = dma.done.wait [#allocation4], 4096  }
  0x27   :  { %7704 = vsyncadd [#allocation4], 4294963200 }
  0x28   :  { %7705 = dma.done.wait [#allocation7], 21504  }
  0x29   :  { %7706 = vsyncadd [#allocation7], 4294945792  ;;  %v7718_v0 = vmov 0   ;;  %v12390_v1 = vmov 0.0   ;;  %v199_v2 = vlaneseq  ;;  %v72_v3 = vld [vmem:[%s12387_s6 + $0x8] sm:$0xff]  ;;  %v71_v4 = vld [vmem:[%s12387_s6] sm:$0xff] }
  0x2a   :  { %6745 = vset.pattern.permute.xlu1 %v7718_v0  ;;  %6744 = vset.pattern.permute.xlu0 %v7718_v0  ;;  %v104_v6 = vld [vmem:[%s12388_s7 + $0x8] sm:$0xff]  ;;  %v103_v7 = vld [vmem:[%s12388_s7] sm:$0xff]  ;;  %v137_v12 = vld [vmem:[#allocation3 + $0x10] sm:$0xff]  ;;  %s7720_s11 = smov 64   ;;  %vm811_vm2 = vcmask 523264  }
  0x2b   :  { %1286 = vmatprep.subr.mxu1 %v12390_v1  ;;  %v7786_v5 = vshrl.u32 %v199_v2, 7  ;;  %241 = vperm.xlu1 %6745, %v72_v3   ;;  %v7794_v8 = vld [vmem:[#allocation3] sm:$0xff]  ;;  %v7796_v9 = vld [vmem:[#allocation3 + $0x8] sm:$0xff]  ;;  %v138_v14 = vld [vmem:[#allocation3 + $0x18] sm:$0xff]  ;;  %v169_v15 = vrot.slane %v137_v12, 7  ;;  %v428_v16 = vrot.slane %v137_v12, 1 }
  0x2c   :  { %236 = vperm.xlu0 %6744, %v71_v4   ;;  %12810 = vst [vmem:[#allocation13_spill] sm:$0xff] %v7794_v8  ;;  %v168_v10 = vrot.slane %v7796_v9, 7  ;;  %v167_v11 = vrot.slane %v7794_v8, 7  ;;  %v427_v13 = vrot.slane %v7796_v9, 1  ;;  %v6746_v17 = vpack.i.bf16 %v7796_v9, %v7794_v8  ;;  %v73_v20 = vld [vmem:[%s12387_s6 + $0x10] sm:$0xff]  ;;  %v74_v26 = vld [vmem:[%s12387_s6 + $0x18] sm:$0xff] }
  0x2d   :  { %vm458_vm0 = vcmp.lt.s32.totalorder %v7786_v5, 7  ;;  %vm201_vm1 = vcmp.lt.s32.totalorder %v7786_v5, 1  ;;  %v429_v18 = vrot.slane %v138_v14, 1  ;;  %v170_v23 = vrot.slane %v138_v14, 7  ;;  %v105_v27 = vld [vmem:[%s12388_s7 + $0x10] sm:$0xff]  ;;  %v7839_v28 = vld [vmem:[#allocation3 + $0x20] sm:$0xff] }
  0x2e   :  { %v7809_v19 = vsel %vm201_vm1, %v167_v11, %v168_v10  ;;  %v7818_v21 = vsel %vm458_vm0, %v427_v13, %v428_v16  ;;  %v7822_v22 = vsel %vm201_vm1, %v168_v10, %v169_v15  ;;  %v430_v29 = vrot.slane %v7839_v28, 1  ;;  %v7842_v31 = vld [vmem:[#allocation3 + $0x28] sm:$0xff]  ;;  %v106_v33 = vld [vmem:[%s12388_s7 + $0x18] sm:$0xff]  ;;  %v7858_v37 = vld [vmem:[#allocation3 + $0x30] sm:$0xff] }
  0x2f   :  { %498 = vperm.xlu1 %6745, %v104_v6   ;;  %v7827_v24 = vsel %vm458_vm0, %v428_v16, %v429_v18  ;;  %v7831_v25 = vsel %vm201_vm1, %v169_v15, %v170_v23  ;;  %v6751_v30 = vpack.i.bf16 %v138_v14, %v137_v12  ;;  %v431_v34 = vrot.slane %v7842_v31, 1  ;;  %v890_v38 = vld [vmem:[#allocation6 + $0x170] sm:$0xff]  ;;  %v889_v39 = vld [vmem:[#allocation6 + $0x168] sm:$0xff]  ;;  %v107_v41 = vld [vmem:[%s12388_s7 + $0x20] sm:$0xff] }
  0x30   :  { %493 = vperm.xlu0 %6744, %v103_v7   ;;  %v7846_v32 = vsel %vm458_vm0, %v429_v18, %v430_v29  ;;  %v171_v35 = vrot.slane %v7839_v28, 7  ;;  %v75_v42 = vld [vmem:[%s12387_s6 + $0x20] sm:$0xff]  ;;  %1029 = vmatprep.subr.mxu0 %v890_v38  ;;  %v891_v43 = vld [vmem:[#allocation6 + $0x178] sm:$0xff]  ;;  %v432_v44 = vrot.slane %v7858_v37, 1  ;;  %v886_v46 = vld [vmem:[#allocation6 + $0x150] sm:$0xff]  ;;  %v172_v47 = vrot.slane %v7842_v31, 7 }
  0x31   :  { %v7855_v36 = vsel %vm458_vm0, %v430_v29, %v431_v34  ;;  %1030 = vmatpush1.msra.mxu0 %v889_v39  ;;  %1287 = vmatpush1.msra.mxu1 %v891_v43  ;;  %v887_v45 = vld [vmem:[#allocation6 + $0x158] sm:$0xff]  ;;  %v888_v48 = vld [vmem:[#allocation6 + $0x160] sm:$0xff]  ;;  %v885_v52 = vld [vmem:[#allocation6 + $0x148] sm:$0xff]  ;;  %v173_v56 = vrot.slane %v7858_v37, 7  ;;  %v6756_v62 = vpack.i.bf16 %v7842_v31, %v7839_v28 }
  0x32   :  { %v7862_v40 = vsel %vm201_vm1, %v170_v23, %v171_v35  ;;  %1031 = vmatprep.subr.mxu0 %v887_v45  ;;  %1288 = vmatprep.subr.mxu1 %v12390_v1  ;;  %v884_v49 = vld [vmem:[#allocation6 + $0x140] sm:$0xff]  ;;  %v7875_v50 = vsel %vm458_vm0, %v431_v34, %v432_v44  ;;  %v883_v51 = vld [vmem:[#allocation6 + $0x138] sm:$0xff]  ;;  %v7879_v53 = vsel %vm201_vm1, %v171_v35, %v172_v47  ;;  %v108_v54 = vld [vmem:[%s12388_s7 + $0x28] sm:$0xff] }
  0x33   :  { %246 = vperm.xlu1 %6745, %v73_v20   ;;  %v76_v55 = vld [vmem:[%s12387_s6 + $0x28] sm:$0xff]  ;;  %1032 = vmatpush1.msra.mxu0 %v886_v46  ;;  %v7889_v58 = vld [vmem:[#allocation3 + $0x38] sm:$0xff]  ;;  %v880_v59 = vld [vmem:[#allocation6 + $0x120] sm:$0xff]  ;;  %v7893_v61 = vsel %vm201_vm1, %v172_v47, %v173_v56 }
  0x34   :  { %6747 = vrot.lane.b32.xlu0 %v6746_v17, %s7720_s11  ;;  %1289 = vmatpush1.msra.mxu1 %v888_v48  ;;  %v881_v57 = vld [vmem:[#allocation6 + $0x128] sm:$0xff]  ;;  %v882_v60 = vld [vmem:[#allocation6 + $0x130] sm:$0xff]  ;;  %v174_v0 = vrot.slane %v7889_v58, 7  ;;  %v879_v4 = vld [vmem:[#allocation6 + $0x118] sm:$0xff]  ;;  %v433_v7 = vrot.slane %v7889_v58, 1  ;;  %v6761_v29 = vpack.i.bf16 %v7889_v58, %v7858_v37 }
  0x35   :  { %1033 = vmatprep.subr.mxu0 %v884_v49  ;;  %1290 = vmatprep.subr.mxu1 %v12390_v1  ;;  %v878_v63 = vld [vmem:[#allocation6 + $0x110] sm:$0xff]  ;;  %v877_v3 = vld [vmem:[#allocation6 + $0x108] sm:$0xff]  ;;  %v875_v10 = vld [vmem:[#allocation6 + $0xf8] sm:$0xff] }
  0x36   :  { %1034 = vmatpush1.msra.mxu0 %v883_v51  ;;  %1291 = vmatpush1.msra.mxu1 %v885_v52  ;;  %v77_v2 = vld [vmem:[%s12387_s6 + $0x30] sm:$0xff]  ;;  %v7904_v6 = vsel %vm201_vm1, %v173_v56, %v174_v0  ;;  %v876_v14 = vld [vmem:[#allocation6 + $0x100] sm:$0xff]  ;;  %v7911_v15 = vsel %vm458_vm0, %v432_v44, %v433_v7  ;;  %v78_v16 = vld [vmem:[%s12387_s6 + $0x38] sm:$0xff] }
  0x37   :  { %251 = vperm.xlu1 %6745, %v74_v26   ;;  %1035 = vmatprep.subr.mxu0 %v881_v57  ;;  %v874_v12 = vld [vmem:[#allocation6 + $0xf0] sm:$0xff]  ;;  %v7919_v18 = vld [vmem:[#allocation3 + $0x40] sm:$0xff]  ;;  %v7923_v26 = vld [vmem:[#allocation3 + $0x48] sm:$0xff] }
  0x38   :  { %503 = vperm.xlu0 %6744, %v105_v27   ;;  %1292 = vmatprep.subr.mxu1 %v12390_v1  ;;  %v109_v17 = vld [vmem:[%s12388_s7 + $0x30] sm:$0xff]  ;;  %v872_v20 = vld [vmem:[#allocation6 + $0xe0] sm:$0xff]  ;;  %v434_v23 = vrot.slane %v7919_v18, 1  ;;  %v871_v27 = vld [vmem:[#allocation6 + $0xd8] sm:$0xff]  ;;  %v175_v39 = vrot.slane %v7919_v18, 7  ;;  %v176_v52 = vrot.slane %v7923_v26, 7 }
  0x39   :  { %1036 = vmatpush1.msra.mxu0 %v880_v59  ;;  %1293 = vmatpush1.msra.mxu1 %v882_v60  ;;  %v873_v28 = vld [vmem:[#allocation6 + $0xe8] sm:$0xff]  ;;  %v110_v34 = vld [vmem:[%s12388_s7 + $0x38] sm:$0xff]  ;;  %v868_v35 = vld [vmem:[#allocation6 + $0xc0] sm:$0xff] }
  0x3a   :  { %1037 = vmatprep.subr.mxu0 %v878_v63  ;;  %1294 = vmatprep.subr.mxu1 %v12390_v1  ;;  %v7929_v31 = vsel %vm458_vm0, %v433_v7, %v434_v23  ;;  %v870_v38 = vld [vmem:[#allocation6 + $0xd0] sm:$0xff]  ;;  %v865_v43 = vld [vmem:[#allocation6 + $0xa8] sm:$0xff]  ;;  %v867_v44 = vld [vmem:[#allocation6 + $0xb8] sm:$0xff]  ;;  %v7947_v45 = vsel %vm201_vm1, %v174_v0, %v175_v39  ;;  %v7964_v57 = vsel %vm201_vm1, %v175_v39, %v176_v52 }
  0x3b   :  { %6752 = vrot.lane.b32.xlu1 %v6751_v30, %s7720_s11  ;;  %1038 = vmatpush1.msra.mxu0 %v877_v3  ;;  %v869_v30 = vld [vmem:[#allocation6 + $0xc8] sm:$0xff]  ;;  %v111_v47 = vld [vmem:[%s12388_s7 + $0x40] sm:$0xff]  ;;  %v863_v49 = vld [vmem:[#allocation6 + $0x98] sm:$0xff] }
  0x3c   :  { %508 = vperm.xlu0 %6744, %v106_v33   ;;  %1295 = vmatpush1.msra.mxu1 %v879_v4  ;;  %v435_v33 = vrot.slane %v7923_v26, 1  ;;  %v79_v48 = vld [vmem:[%s12387_s6 + $0x40] sm:$0xff]  ;;  %v112_v59 = vld [vmem:[%s12388_s7 + $0x48] sm:$0xff]  ;;  %v6766_v4 = vpack.i.bf16 %v7923_v26, %v7919_v18  ;;  %v851_v26 = vld [vmem:[#allocation6 + $0x38] sm:$0xff] }
  0x3d   :  { %1039 = vmatprep.subr.mxu0 %v875_v10  ;;  %1296 = vmatprep.subr.mxu1 %v12390_v1  ;;  %v860_v56 = vld [vmem:[#allocation6 + $0x80] sm:$0xff]  ;;  %v80_v60 = vld [vmem:[%s12387_s6 + $0x48] sm:$0xff]  ;;  %v858_v10 = vld [vmem:[#allocation6 + $0x70] sm:$0xff] }
  0x3e   :  { %1040 = vmatpush1.msra.mxu0 %v874_v12  ;;  %1297 = vmatpush1.msra.mxu1 %v876_v14  ;;  %v7938_v37 = vsel %vm458_vm0, %v434_v23, %v435_v33  ;;  %v861_v63 = vld [vmem:[#allocation6 + $0x88] sm:$0xff]  ;;  %v856_v7 = vld [vmem:[#allocation6 + $0x60] sm:$0xff]  ;;  %v81_v14 = vld [vmem:[%s12387_s6 + $0x50] sm:$0xff] }
  0x3f   :  { %513 = vperm.xlu1 %6745, %v107_v41   ;;  %1041 = vmatprep.subr.mxu0 %v872_v20  ;;  %v7941_v41 = vld [vmem:[#allocation3 + $0x50] sm:$0xff]  ;;  %v857_v3 = vld [vmem:[#allocation6 + $0x68] sm:$0xff]  ;;  %v855_v23 = vld [vmem:[#allocation6 + $0x58] sm:$0xff] }
  0x40   :  { %256 = vperm.xlu0 %6744, %v75_v42   ;;  %1298 = vmatprep.subr.mxu1 %v12390_v1  ;;  %v866_v42 = vld [vmem:[#allocation6 + $0xb0] sm:$0xff]  ;;  %v436_v46 = vrot.slane %v7941_v41, 1  ;;  %v177_v58 = vrot.slane %v7941_v41, 7  ;;  %v853_v20 = vld [vmem:[#allocation6 + $0x48] sm:$0xff]  ;;  %v848_v39 = vld [vmem:[#allocation6 + $0x20] sm:$0xff] }
  0x41   :  { %1042 = vmatpush1.msra.mxu0 %v871_v27  ;;  %1299 = vmatpush1.msra.mxu1 %v873_v28  ;;  %v82_v28 = vld [vmem:[%s12387_s6 + $0x58] sm:$0xff] }
  0x42   :  { %1043 = vmatprep.subr.mxu0 %v869_v30  ;;  %1300 = vmatprep.subr.mxu1 %v12390_v1  ;;  %v7959_v51 = vsel %vm458_vm0, %v435_v33, %v436_v46  ;;  %v7976_v0 = vsel %vm201_vm1, %v176_v52, %v177_v58  ;;  %v8004_v30 = vld [vmem:[#allocation3 + $0x60] sm:$0xff]  ;;  %v850_v33 = vld [vmem:[#allocation6 + $0x30] sm:$0xff]  ;;  %v98_v9 = vld [vmem:[%s12387_s6 + $0xd8] sm:$0xff] }
  0x43   :  { %518 = vperm.xlu1 %6745, %v108_v54   ;;  %1044 = vmatpush1.msra.mxu0 %v868_v35  ;;  %v862_v54 = vld [vmem:[#allocation6 + $0x90] sm:$0xff]  ;;  %v438_v35 = vrot.slane %v8004_v30, 1  ;;  %v179_v52 = vrot.slane %v8004_v30, 7 }
  0x44   :  { %261 = vperm.xlu0 %6744, %v76_v55   ;;  %1301 = vmatpush1.msra.mxu1 %v870_v38  ;;  %v864_v55 = vld [vmem:[#allocation6 + $0xa0] sm:$0xff]  ;;  %v8008_v38 = vld [vmem:[#allocation3 + $0x68] sm:$0xff] }
  0x45   :  { %1045 = vmatprep.subr.mxu0 %v866_v42  ;;  %1302 = vmatprep.subr.mxu1 %v12390_v1 }
  0x46   :  { %1046 = vmatpush1.msra.mxu0 %v865_v43  ;;  %1303 = vmatpush1.msra.mxu1 %v867_v44  ;;  %v847_v43 = vld [vmem:[#allocation6 + $0x18] sm:$0xff]  ;;  %v849_v44 = vld [vmem:[#allocation6 + $0x28] sm:$0xff] }
  0x47   :  { %266 = vperm.xlu1 %6745, %v77_v2   ;;  %1047 = vmatprep.subr.mxu0 %v863_v49  ;;  %v7978_v2 = vld [vmem:[#allocation3 + $0x58] sm:$0xff]  ;;  %v845_v49 = vld [vmem:[#allocation6 + $0x8] sm:$0xff] }
  0x48   :  { %6757 = vrot.lane.b32.xlu0 %v6756_v62, %s7720_s11  ;;  %1304 = vmatprep.subr.mxu1 %v12390_v1  ;;  %v859_v62 = vld [vmem:[#allocation6 + $0x78] sm:$0xff]  ;;  %v178_v12 = vrot.slane %v7978_v2, 7  ;;  %v437_v18 = vrot.slane %v7978_v2, 1  ;;  %v6771_v42 = vpack.i.bf16 %v7978_v2, %v7941_v41  ;;  %v913_v2 = vld [vmem:[#allocation6 + $0x228] sm:$0xff] }
  0x49   :  { %1048 = vmatpush1.msra.mxu0 %v862_v54  ;;  %1305 = vmatpush1.msra.mxu1 %v864_v55  ;;  %v8027_v54 = vld [vmem:[#allocation3 + $0x70] sm:$0xff]  ;;  %v844_v55 = vld [vmem:[#allocation6] sm:$0xff] }
  0x4a   :  { %1049 = vmatprep.subr.mxu0 %v860_v56  ;;  %1306 = vmatprep.subr.mxu1 %v12390_v1  ;;  %v7996_v27 = vsel %vm458_vm0, %v436_v46, %v437_v18  ;;  %v8015_v46 = vsel %vm458_vm0, %v437_v18, %v438_v35  ;;  %v846_v56 = vld [vmem:[#allocation6 + $0x10] sm:$0xff]  ;;  %v181_v18 = vrot.slane %v8027_v54, 7 }
  0x4b   :  { %271 = vperm.xlu1 %6745, %v78_v16   ;;  %1050 = vmatpush1.msra.mxu0 %v859_v62  ;;  %v854_v16 = vld [vmem:[#allocation6 + $0x50] sm:$0xff]  ;;  %v115_v62 = vld [vmem:[%s12388_s7 + $0x60] sm:$0xff] }
  0x4c   :  { %523 = vperm.xlu0 %6744, %v109_v17   ;;  %1307 = vmatpush1.msra.mxu1 %v861_v63  ;;  %v7990_v17 = vsel %vm201_vm1, %v177_v58, %v178_v12  ;;  %v914_v58 = vld [vmem:[#allocation6 + $0x230] sm:$0xff]  ;;  %v83_v63 = vld [vmem:[%s12387_s6 + $0x60] sm:$0xff] }
  0x4d   :  { %1051 = vmatprep.subr.mxu0 %v857_v3  ;;  %1308 = vmatprep.subr.mxu1 %v12390_v1  ;;  %v915_v3 = vld [vmem:[#allocation6 + $0x238] sm:$0xff] }
  0x4e   :  { %1052 = vmatpush1.msra.mxu0 %v856_v7  ;;  %1309 = vmatpush1.msra.mxu1 %v858_v10  ;;  %v180_v7 = vrot.slane %v8008_v38, 7  ;;  %v911_v10 = vld [vmem:[#allocation6 + $0x218] sm:$0xff] }
  0x4f   :  { %6762 = vrot.lane.b32.xlu1 %v6761_v29, %s7720_s11  ;;  %v113_v29 = vld [vmem:[%s12388_s7 + $0x50] sm:$0xff]  ;;  %1053 = vmatprep.subr.mxu0 %v854_v16 }
  0x50   :  { %528 = vperm.xlu0 %6744, %v110_v34   ;;  %1310 = vmatprep.subr.mxu1 %v12390_v1  ;;  %v852_v34 = vld [vmem:[#allocation6 + $0x40] sm:$0xff]  ;;  %v8050_v16 = vsel %vm201_vm1, %v179_v52, %v180_v7 }
  0x51   :  { %1054 = vmatpush1.msra.mxu0 %v853_v20  ;;  %1311 = vmatpush1.msra.mxu1 %v855_v23  ;;  %v116_v20 = vld [vmem:[%s12388_s7 + $0x68] sm:$0xff] }
  0x52   :  { %1055 = vmatprep.subr.mxu0 %v851_v26  ;;  %1312 = vmatprep.subr.mxu1 %v12390_v1  ;;  %v84_v23 = vld [vmem:[%s12387_s6 + $0x68] sm:$0xff]  ;;  %v908_v26 = vld [vmem:[#allocation6 + $0x200] sm:$0xff] }
  0x53   :  { %533 = vperm.xlu1 %6745, %v111_v47   ;;  %v439_v47 = vrot.slane %v8008_v38, 1  ;;  %1056 = vmatpush1.msra.mxu0 %v850_v33  ;;  %v907_v33 = vld [vmem:[#allocation6 + $0x1f8] sm:$0xff] }
  0x54   :  { %276 = vperm.xlu0 %6744, %v79_v48   ;;  %v114_v48 = vld [vmem:[%s12388_s7 + $0x58] sm:$0xff]  ;;  %1313 = vmatpush1.msra.mxu1 %v852_v34  ;;  %v909_v34 = vld [vmem:[#allocation6 + $0x208] sm:$0xff] }
  0x55   :  { %1057 = vmatprep.subr.mxu0 %v848_v39  ;;  %1314 = vmatprep.subr.mxu1 %v12390_v1  ;;  %v8024_v41 = vsel %vm458_vm0, %v438_v35, %v439_v47  ;;  %v6776_v35 = vpack.i.bf16 %v8008_v38, %v8004_v30  ;;  %v905_v39 = vld [vmem:[#allocation6 + $0x1e8] sm:$0xff]  ;;  %v902_v38 = vld [vmem:[#allocation6 + $0x1d0] sm:$0xff] }
  0x56   :  { %1058 = vmatpush1.msra.mxu0 %v847_v43  ;;  %1315 = vmatpush1.msra.mxu1 %v849_v44  ;;  %v85_v43 = vld [vmem:[%s12387_s6 + $0x70] sm:$0xff]  ;;  %v904_v44 = vld [vmem:[#allocation6 + $0x1e0] sm:$0xff] }
  0x57   :  { %538 = vperm.xlu1 %6745, %v112_v59   ;;  %v8032_v59 = vsel %vm201_vm1, %v178_v12, %v179_v52  ;;  %1059 = vmatprep.subr.mxu0 %v845_v49  ;;  %v910_v12 = vld [vmem:[#allocation6 + $0x210] sm:$0xff]  ;;  %v901_v49 = vld [vmem:[#allocation6 + $0x1c8] sm:$0xff]  ;;  %v903_v52 = vld [vmem:[#allocation6 + $0x1d8] sm:$0xff] }
  0x58   :  { %281 = vperm.xlu0 %6744, %v80_v60   ;;  %v440_v60 = vrot.slane %v8027_v54, 1  ;;  %1316 = vmatprep.subr.mxu1 %v12390_v1 }
  0x59   :  { %1060 = vmatpush1.msra.mxu0 %v844_v55  ;;  %1317 = vmatpush1.msra.mxu1 %v846_v56  ;;  %v86_v56 = vld [vmem:[%s12387_s6 + $0x78] sm:$0xff] }
  0x5a   :  { %1077 = vmatprep.subr.mxu0 %v914_v58  ;;  %1334 = vmatprep.subr.mxu1 %v12390_v1  ;;  %v117_v58 = vld [vmem:[%s12388_s7 + $0x70] sm:$0xff] }
  0x5b   :  { %286 = vperm.xlu1 %6745, %v81_v14   ;;  %v912_v14 = vld [vmem:[#allocation6 + $0x220] sm:$0xff]  ;;  %1078 = vmatpush2.msra.mxu0 %v913_v2 }
  0x5c   :  { %6767 = vrot.lane.b32.xlu0 %v6766_v4, %s7720_s11  ;;  %v8044_v4 = vsel %vm458_vm0, %v439_v47, %v440_v60  ;;  %1335 = vmatpush2.msra.mxu1 %v915_v3  ;;  %v906_v47 = vld [vmem:[#allocation6 + $0x1f0] sm:$0xff] }
  0x5d   :  { %1079 = vmatprep.subr.mxu0 %v911_v10  ;;  %1336 = vmatprep.subr.mxu1 %v12390_v1  ;;  %v898_v3 = vld [vmem:[#allocation6 + $0x1b0] sm:$0xff] }
  0x5e   :  { %1080 = vmatpush2.msra.mxu0 %v910_v12  ;;  %1337 = vmatpush2.msra.mxu1 %v912_v14  ;;  %v896_v12 = vld [vmem:[#allocation6 + $0x1a0] sm:$0xff] }
  0x5f   :  { %291 = vperm.xlu1 %6745, %v82_v28   ;;  %v8062_v28 = vsel %vm201_vm1, %v180_v7, %v181_v18  ;;  %1081 = vmatprep.subr.mxu0 %v908_v26  ;;  %v900_v7 = vld [vmem:[#allocation6 + $0x1c0] sm:$0xff]  ;;  %v897_v26 = vld [vmem:[#allocation6 + $0x1a8] sm:$0xff] }
  0x60   :  { %543 = vperm.xlu0 %6744, %v113_v29   ;;  %v8064_v29 = vld [vmem:[#allocation3 + $0x78] sm:$0xff]  ;;  %1338 = vmatprep.subr.mxu1 %v12390_v1 }
  0x61   :  { %1082 = vmatpush2.msra.mxu0 %v907_v33  ;;  %1339 = vmatpush2.msra.mxu1 %v909_v34  ;;  %v441_v30 = vrot.slane %v8064_v29, 1  ;;  %v6781_v10 = vpack.i.bf16 %v8064_v29, %v8027_v54  ;;  %v153_v33 = vld [vmem:[#allocation3 + $0x90] sm:$0xff]  ;;  %v893_v34 = vld [vmem:[#allocation6 + $0x188] sm:$0xff] }
  0x62   :  { %1083 = vmatprep.subr.mxu0 %v905_v39  ;;  %1340 = vmatprep.subr.mxu1 %v12390_v1  ;;  %v894_v39 = vld [vmem:[#allocation6 + $0x190] sm:$0xff] }
  0x63   :  { %6772 = vrot.lane.b32.xlu1 %v6771_v42, %s7720_s11  ;;  %v182_v42 = vrot.slane %v8064_v29, 7  ;;  %v8082_v55 = vsel %vm458_vm0, %v440_v60, %v441_v30  ;;  %1084 = vmatpush2.msra.mxu0 %v904_v44  ;;  %v152_v60 = vld [vmem:[#allocation3 + $0x88] sm:$0xff]  ;;  %v444_v44 = vrot.slane %v153_v33, 1 }
  0x64   :  { %548 = vperm.xlu0 %6744, %v114_v48   ;;  %1341 = vmatpush2.msra.mxu1 %v906_v47  ;;  %v119_v47 = vld [vmem:[%s12388_s7 + $0x80] sm:$0xff] }
  0x65   :  { %v8075_v48 = vsel %vm201_vm1, %v181_v18, %v182_v42  ;;  %1085 = vmatprep.subr.mxu0 %v902_v38  ;;  %1342 = vmatprep.subr.mxu1 %v12390_v1  ;;  %v443_v18 = vrot.slane %v152_v60, 1  ;;  %v1638_v38 = vld [vmem:[#allocation8 + $0xf8] sm:$0xff] }
  0x66   :  { %1086 = vmatpush2.msra.mxu0 %v901_v49  ;;  %1343 = vmatpush2.msra.mxu1 %v903_v52  ;;  %v1702_v49 = vld [vmem:[#allocation8 + $0x2f8] sm:$0xff]  ;;  %v184_v52 = vrot.slane %v152_v60, 7 }
  0x67   :  { %553 = vperm.xlu1 %6745, %v115_v62   ;;  %v8090_v62 = vld [vmem:[#allocation3 + $0x80] sm:$0xff]  ;;  %1344 = vmatprep.subr.mxu1 %v12390_v1 }
  0x68   :  { %296 = vperm.xlu0 %6744, %v83_v63   ;;  %v899_v63 = vld [vmem:[#allocation6 + $0x1b8] sm:$0xff]  ;;  %v442_v2 = vrot.slane %v8090_v62, 1  ;;  %1345 = vmatpush2.msra.mxu1 %v900_v7  ;;  %v183_v29 = vrot.slane %v8090_v62, 7 }
  0x69   :  { %1087 = vmatprep.subr.mxu0 %v899_v63  ;;  %1346 = vmatprep.subr.mxu1 %v12390_v1  ;;  %v120_v63 = vld [vmem:[%s12388_s7 + $0x88] sm:$0xff]  ;;  %v154_v7 = vld [vmem:[#allocation3 + $0x98] sm:$0xff] }
  0x6a   :  { %v8098_v14 = vsel %vm458_vm0, %v441_v30, %v442_v2  ;;  %1088 = vmatpush2.msra.mxu0 %v898_v3  ;;  %v8106_v54 = vsel %vm458_vm0, %v442_v2, %v443_v18  ;;  %v87_v30 = vld [vmem:[%s12387_s6 + $0x80] sm:$0xff]  ;;  %1347 = vmatpush2.msra.mxu1 %v897_v26  ;;  %v88_v2 = vld [vmem:[%s12387_s6 + $0x88] sm:$0xff] }
  0x6b   :  { %558 = vperm.xlu1 %6745, %v116_v20   ;;  %v118_v20 = vld [vmem:[%s12388_s7 + $0x78] sm:$0xff]  ;;  %1089 = vmatprep.subr.mxu0 %v896_v12  ;;  %v186_v12 = vrot.slane %v154_v7, 7 }
  0x6c   :  { %301 = vperm.xlu0 %6744, %v84_v23   ;;  %v895_v23 = vld [vmem:[#allocation6 + $0x198] sm:$0xff]  ;;  %1348 = vmatprep.subr.mxu1 %v12390_v1 }
  0x6d   :  { %1090 = vmatpush2.msra.mxu0 %v895_v23  ;;  %1349 = vmatpush2.msra.mxu1 %v894_v39  ;;  %v445_v23 = vrot.slane %v154_v7, 1 }
  0x6e   :  { %1091 = vmatprep.subr.mxu0 %v893_v34  ;;  %1880 = vmatprep.subr.mxu1 %v1702_v49  ;;  %v124_v49 = vld [vmem:[%s12388_s7 + $0xa8] sm:$0xff] }
  0x6f   :  { %306 = vperm.xlu1 %6745, %v85_v43   ;;  %v8113_v43 = vsel %vm201_vm1, %v182_v42, %v183_v29  ;;  %v8124_v42 = vsel %vm458_vm0, %v443_v18, %v444_v44  ;;  %v89_v18 = vld [vmem:[%s12387_s6 + $0x90] sm:$0xff]  ;;  %v8151_v26 = vsel %vm458_vm0, %v444_v44, %v445_v23  ;;  %v122_v44 = vld [vmem:[%s12388_s7 + $0x98] sm:$0xff] }
  0x70   :  { %6777 = vrot.lane.b32.xlu0 %v6776_v35, %s7720_s11  ;;  %v892_v35 = vld [vmem:[#allocation6 + $0x180] sm:$0xff] }
  0x71   :  { %1092 = vmatpush2.msra.mxu0 %v892_v35  ;;  %v6791_v35 = vpack.i.bf16 %v154_v7, %v153_v33  ;;  %v94_v7 = vld [vmem:[%s12387_s6 + $0xb8] sm:$0xff] }
  0x72   :  { %1791 = vmatprep.subr.mxu0 %v1638_v38  ;;  %v91_v38 = vld [vmem:[%s12387_s6 + $0xa0] sm:$0xff] }
  0x73   :  { %311 = vperm.xlu1 %6745, %v86_v56   ;;  %v8128_v56 = vsel %vm201_vm1, %v183_v29, %v184_v52  ;;  %v8159_v29 = vld [vmem:[#allocation3 + $0xa0] sm:$0xff] }
  0x74   :  { %563 = vperm.xlu0 %6744, %v117_v58   ;;  %v185_v58 = vrot.slane %v153_v33, 7  ;;  %v12394_v34 = vrot.slane %v8159_v29, 1 }
  0x76   :  { %v8138_v3 = vsel %vm201_vm1, %v184_v52, %v185_v58  ;;  %v8166_v39 = vsel %vm458_vm0, %v445_v23, %v12394_v34  ;;  %v92_v52 = vld [vmem:[%s12387_s6 + $0xa8] sm:$0xff] }
  0x77   :  { %6782 = vrot.lane.b32.xlu1 %v6781_v10, %s7720_s11  ;;  %v6786_v10 = vpack.i.bf16 %v152_v60, %v8090_v62  ;;  %v90_v62 = vld [vmem:[%s12387_s6 + $0x98] sm:$0xff]  ;;  %v121_v60 = vld [vmem:[%s12388_s7 + $0x90] sm:$0xff] }
  0x78   :  { %568 = vperm.xlu0 %6744, %v118_v20   ;;  %v8146_v20 = vsel %vm201_vm1, %v185_v58, %v186_v12  ;;  %v8191_v58 = vld [vmem:[#allocation3 + $0xa8] sm:$0xff] }
  0x7b   :  { %573 = vperm.xlu1 %6745, %v119_v47   ;;  %v12393_v47 = vrot.slane %v8159_v29, 7 }
  0x7c   :  { %316 = vperm.xlu0 %6744, %v87_v30   ;;  %v123_v30 = vld [vmem:[%s12388_s7 + $0xa0] sm:$0xff] }
  0x7d   :  { %v8177_v33 = vsel %vm201_vm1, %v186_v12, %v12393_v47  ;;  %v8205_v12 = vld [vmem:[#allocation3 + $0xb0] sm:$0xff] }
  0x7f   :  { %578 = vperm.xlu1 %6745, %v120_v63   ;;  %v6796_v63 = vpack.i.bf16 %v8191_v58, %v8159_v29 }
  0x80   :  { %321 = vperm.xlu0 %6744, %v88_v2   ;;  %v93_v2 = vld [vmem:[%s12387_s6 + $0xb0] sm:$0xff] }
  0x83   :  { %326 = vperm.xlu1 %6745, %v89_v18   ;;  %v8207_v18 = vld [vmem:[#allocation3 + $0xb8] sm:$0xff] }
  0x84   :  { %6787 = vrot.lane.b32.xlu0 %v6786_v10, %s7720_s11  ;;  %v125_v10 = vld [vmem:[%s12388_s7 + $0xb0] sm:$0xff]  ;;  %v6801_v23 = vpack.i.bf16 %v8207_v18, %v8205_v12 }
  0x87   :  { %331 = vperm.xlu1 %6745, %v90_v62   ;;  %v126_v62 = vld [vmem:[%s12388_s7 + $0xb8] sm:$0xff] }
  0x88   :  { %583 = vperm.xlu0 %6744, %v121_v60   ;;  %v127_v60 = vld [vmem:[%s12388_s7 + $0xc0] sm:$0xff] }
  0x8b   :  { %6792 = vrot.lane.b32.xlu1 %v6791_v35, %s7720_s11  ;;  %v95_v35 = vld [vmem:[%s12387_s6 + $0xc0] sm:$0xff] }
  0x8c   :  { %588 = vperm.xlu0 %6744, %v122_v44   ;;  %v128_v44 = vld [vmem:[%s12388_s7 + $0xc8] sm:$0xff] }
  0x8f   :  { %593 = vperm.xlu1 %6745, %v123_v30   ;;  %v96_v30 = vld [vmem:[%s12387_s6 + $0xc8] sm:$0xff] }
  0x90   :  { %336 = vperm.xlu0 %6744, %v91_v38   ;;  %v8227_v38 = vld [vmem:[#allocation3 + $0xc0] sm:$0xff] }
  0x93   :  { %598 = vperm.xlu1 %6745, %v124_v49   ;;  %v8229_v49 = vld [vmem:[#allocation3 + $0xc8] sm:$0xff] }
  0x94   :  { %341 = vperm.xlu0 %6744, %v92_v52   ;;  %12811 = vst [vmem:[#allocation14_spill] sm:$0xff] %v8229_v49  ;;  %v12392_v52 = vrot.slane %v7794_v8, 1 }
  0x97   :  { %346 = vperm.xlu1 %6745, %v93_v2  }
  0x98   :  { %6797 = vrot.lane.b32.xlu0 %v6796_v63, %s7720_s11  ;;  %v8232_v63 = vld [vmem:[#allocation3 + $0xf8] sm:$0xff] }
  0x9b   :  { %351 = vperm.xlu1 %6745, %v94_v7  }
  0x9c   :  { %603 = vperm.xlu0 %6744, %v125_v10   ;;  %v6806_v10 = vpack.i.bf16 %v8229_v49, %v8227_v38 }
  0x9f   :  { %6802 = vrot.lane.b32.xlu1 %v6801_v23, %s7720_s11  ;;  %v97_v23 = vld [vmem:[%s12387_s6 + $0xd0] sm:$0xff] }
  0xa0   :  { %608 = vperm.xlu0 %6744, %v126_v62   ;;  %v489_v62 = vsel %vm458_vm0, %v12392_v52, %v427_v13  ;;  %v129_v13 = vld [vmem:[%s12388_s7 + $0xd0] sm:$0xff] }
  0xa3   :  { %613 = vperm.xlu1 %6745, %v127_v60   ;;  %v12397_v60 = vrot.slane %v8232_v63, 7 }
  0xa4   :  { %356 = vperm.xlu0 %6744, %v95_v35  }
  0xa5   :  { %v233_v1 = vsel %vm201_vm1, %v12397_v60, %v167_v11  ;;  %v130_v11 = vld [vmem:[%s12388_s7 + $0xd8] sm:$0xff] }
  0xa6   :  { %v8234_v2 = vpop.permute.xlu1 %241 }
  0xa7   :  { %v8236_v7 = vpop.permute.xlu0 %236  ;;  %618 = vperm.xlu1 %6745, %v128_v44  }
  0xa8   :  { %12812 = vst [vmem:[#allocation15_spill] sm:$0xff] %v8236_v7  ;;  %361 = vperm.xlu0 %6744, %v96_v30   ;;  %v394_v34 = vmul.f32 %v8236_v7, %v233_v1  ;;  %v1637_v1 = vld [vmem:[#allocation8 + $0xf0] sm:$0xff]  ;;  %v395_v7 = vmul.f32 %v8234_v2, %v7809_v19 }
  0xaa   :  { %v8250_v35 = vpop.permute.xlu1 %498 }
  0xab   :  { %12813 = vst [vmem:[#allocation16_spill] sm:$0xff] %v8250_v35  ;;  %v8252_v44 = vpop.permute.xlu0 %493  ;;  %366 = vperm.xlu1 %6745, %v97_v23   ;;  %v8268_v23 = vld [vmem:[#allocation3 + $0xd0] sm:$0xff] }
  0xac   :  { %12814 = vst [vmem:[#allocation17_spill] sm:$0xff] %v8252_v44  ;;  %6807 = vrot.lane.b32.xlu0 %v6806_v10, %s7720_s11  ;;  %v651_v30 = vmul.f32 %v8252_v44, %v489_v62  ;;  %v8270_v10 = vld [vmem:[#allocation3 + $0xd8] sm:$0xff] }
  0xad   :  { %v6811_v44 = vpack.i.bf16 %v8270_v10, %v8268_v23 }
  0xae   :  { %5755 = vmatprep.mubr.msk.f32.mxu0 %vm811_vm2, %v651_v30  ;;  %5787 = vmatprep.mubr.msk.f32.mxu1 %vm811_vm2, %v651_v30  ;;  %v8274_v62 = vpop.permute.xlu1 %246 }
  0xaf   :  { %12815 = vst [vmem:[#allocation18_spill] sm:$0xff] %v8274_v62  ;;  %v6748_v52 = vpop.permute.xlu0 %6747  ;;  %371 = vperm.xlu1 %6745, %v98_v9   ;;  %v652_v9 = vmul.f32 %v8250_v35, %v7818_v21  ;;  %v396_v35 = vmul.f32 %v8274_v62, %v7822_v22 }
  0xb0   :  { %v6749_v47 = vunpack.i.l.bf16 %v6748_v52  ;;  %623 = vperm.xlu0 %6744, %v129_v13   ;;  %v6750_v60 = vunpack.i.h.bf16 %v6748_v52  ;;  %v1701_v13 = vld [vmem:[#allocation8 + $0x2f0] sm:$0xff] }
  0xb2   :  { %v812_v8 = vsel %vm811_vm2, %v394_v34, %v6749_v47  ;;  %v8283_v49 = vpop.permute.xlu1 %251  ;;  %v131_v34 = vld [vmem:[%s12388_s7 + $0xe0] sm:$0xff]  ;;  %v813_v21 = vsel %vm811_vm2, %v395_v7, %v6750_v60  ;;  %v132_v7 = vld [vmem:[%s12388_s7 + $0xe8] sm:$0xff] }
  0xb3   :  { %v8285_v30 = vpop.permute.xlu0 %503  ;;  %1094 = vmatmul.mubr.f32.vlgmr.msra.gmra.mxu0 %v812_v8  ;;  %1351 = vmatmul.mubr.f32.vlgmr.msra.gmra.mxu1 %v812_v8  ;;  %v99_v8 = vld [vmem:[%s12387_s6 + $0xe0] sm:$0xff]  ;;  %v397_v62 = vmul.f32 %v8283_v49, %v7831_v25  ;;  %v1634_v25 = vld [vmem:[#allocation8 + $0xd8] sm:$0xff] }
  0xb4   :  { %12816 = vst [vmem:[#allocation19_spill] sm:$0xff] %v8285_v30  ;;  %6812 = vrot.lane.b32.xlu1 %v6811_v44, %s7720_s11  ;;  %628 = vperm.xlu0 %6744, %v130_v11   ;;  %v653_v19 = vmul.f32 %v8285_v30, %v7827_v24  ;;  %v1636_v44 = vld [vmem:[#allocation8 + $0xe8] sm:$0xff]  ;;  %v8315_v60 = vld [vmem:[#allocation3 + $0xe0] sm:$0xff] }
  0xb5   :  { %5756 = vmatprep.mubr.msk.f32.mxu0 %vm811_vm2, %v652_v9  ;;  %5788 = vmatprep.mubr.msk.f32.mxu1 %vm811_vm2, %v652_v9  ;;  %v1700_v11 = vld [vmem:[#allocation8 + $0x2e8] sm:$0xff]  ;;  %v1699_v30 = vld [vmem:[#allocation8 + $0x2e0] sm:$0xff] }
  0xb6   :  { %1792 = vmatpush1.msra.mxu0 %v1637_v1  ;;  %1881 = vmatpush1.msra.mxu1 %v1701_v13  ;;  %v6753_v47 = vpop.permute.xlu1 %6752  ;;  %v100_v24 = vld [vmem:[%s12387_s6 + $0xe8] sm:$0xff] }
  0xb7   :  { %v8301_v52 = vpop.permute.xlu0 %508  ;;  %1100 = vmatmul.mubr.f32.gmra.mxu0 %v813_v21  ;;  %1356 = vmatmul.mubr.f32.gmra.mxu1 %v813_v21  ;;  %v6754_v9 = vunpack.i.l.bf16 %v6753_v47  ;;  %v8317_v1 = vld [vmem:[#allocation3 + $0xe8] sm:$0xff]  ;;  %v6755_v13 = vunpack.i.h.bf16 %v6753_v47 }
  0xb8   :  { %12817 = vst [vmem:[#allocation20_spill] sm:$0xff] %v8301_v52  ;;  %633 = vperm.xlu1 %6745, %v131_v34   ;;  %376 = vperm.xlu0 %6744, %v99_v8   ;;  %v654_v21 = vmul.f32 %v8301_v52, %v7846_v32  ;;  %v6816_v47 = vpack.i.bf16 %v8317_v1, %v8315_v60 }
  0xb9   :  { %5757 = vmatprep.mubr.msk.f32.mxu0 %vm811_vm2, %v653_v19  ;;  %5789 = vmatprep.mubr.msk.f32.mxu1 %vm811_vm2, %v653_v19  ;;  %v814_v34 = vsel %vm811_vm2, %v396_v35, %v6754_v9  ;;  %v1635_v19 = vld [vmem:[#allocation8 + $0xe0] sm:$0xff]  ;;  %v101_v35 = vld [vmem:[%s12387_s6 + $0xf0] sm:$0xff]  ;;  %v815_v32 = vsel %vm811_vm2, %v397_v62, %v6755_v13  ;;  %v102_v62 = vld [vmem:[%s12387_s6 + $0xf8] sm:$0xff] }
  0xba   :  { %1793 = vmatprep.subr.mxu0 %v1636_v44  ;;  %1882 = vmatprep.subr.mxu1 %v1700_v11  ;;  %v514_v22 = vpop.permute.xlu1 %513  ;;  %v1696_v13 = vld [vmem:[#allocation8 + $0x2c8] sm:$0xff] }
  0xbb   :  { %v257_v8 = vpop.permute.xlu0 %256  ;;  %1106 = vmatmul.mubr.f32.gmra.mxu0 %v814_v34  ;;  %1361 = vmatmul.mubr.f32.gmra.mxu1 %v814_v34  ;;  %v655_v44 = vmul.f32 %v514_v22, %v7855_v36  ;;  %v1697_v34 = vld [vmem:[#allocation8 + $0x2d0] sm:$0xff] }
  0xbc   :  { %638 = vperm.xlu1 %6745, %v132_v7   ;;  %381 = vperm.xlu0 %6744, %v100_v24   ;;  %v1698_v7 = vld [vmem:[#allocation8 + $0x2d8] sm:$0xff]  ;;  %v1633_v24 = vld [vmem:[#allocation8 + $0xd0] sm:$0xff] }
  0xbd   :  { %5758 = vmatprep.mubr.msk.f32.mxu0 %vm811_vm2, %v654_v21  ;;  %5790 = vmatprep.mubr.msk.f32.mxu1 %vm811_vm2, %v654_v21  ;;  %v133_v36 = vld [vmem:[%s12388_s7 + $0xf0] sm:$0xff] }
  0xbe   :  { %1794 = vmatpush1.msra.mxu0 %v1635_v19  ;;  %1883 = vmatpush1.msra.mxu1 %v1699_v30  ;;  %v519_v11 = vpop.permute.xlu1 %518  ;;  %v1632_v30 = vld [vmem:[#allocation8 + $0xc8] sm:$0xff]  ;;  %v1631_v19 = vld [vmem:[#allocation8 + $0xc0] sm:$0xff] }
  0xbf   :  { %v262_v9 = vpop.permute.xlu0 %261  ;;  %1112 = vmatmul.mubr.f32.gmra.mxu0 %v815_v32  ;;  %1366 = vmatmul.mubr.f32.gmra.mxu1 %v815_v32 }
  0xc0   :  { %386 = vperm.xlu1 %6745, %v101_v35   ;;  %6817 = vrot.lane.b32.xlu0 %v6816_v47, %s7720_s11  ;;  %v1695_v47 = vld [vmem:[#allocation8 + $0x2c0] sm:$0xff]  ;;  %v398_v35 = vmul.f32 %v257_v8, %v7862_v40  ;;  %v1630_v8 = vld [vmem:[#allocation8 + $0xb8] sm:$0xff] }
  0xc1   :  { %5759 = vmatprep.mubr.msk.f32.mxu0 %vm811_vm2, %v655_v44  ;;  %5791 = vmatprep.mubr.msk.f32.mxu1 %vm811_vm2, %v655_v44  ;;  %v134_v44 = vld [vmem:[%s12388_s7 + $0xf8] sm:$0xff] }
  0xc2   :  { %1795 = vmatprep.subr.mxu0 %v1634_v25  ;;  %1884 = vmatprep.subr.mxu1 %v1698_v7  ;;  %v267_v22 = vpop.permute.xlu1 %266  ;;  %v656_v25 = vmul.f32 %v519_v11, %v7875_v50 }
  0xc3   :  { %v6758_v21 = vpop.permute.xlu0 %6757  ;;  %1796 = vmatpush1.msra.mxu0 %v1633_v24  ;;  %1885 = vmatpush1.msra.mxu1 %v1697_v34  ;;  %v8348_v24 = vld [vmem:[#allocation3 + $0xf0] sm:$0xff] }
  0xc4   :  { %v6759_v32 = vunpack.i.l.bf16 %v6758_v21  ;;  %391 = vperm.xlu1 %6745, %v102_v62   ;;  %643 = vperm.xlu0 %6744, %v133_v36   ;;  %v6760_v7 = vunpack.i.h.bf16 %v6758_v21  ;;  %v1694_v62 = vld [vmem:[#allocation8 + $0x2b8] sm:$0xff]  ;;  %v399_v36 = vmul.f32 %v262_v9, %v7879_v53  ;;  %v1628_v53 = vld [vmem:[#allocation8 + $0xa8] sm:$0xff]  ;;  %v1693_v9 = vld [vmem:[#allocation8 + $0x2b0] sm:$0xff]  ;;  %v400_v21 = vmul.f32 %v267_v22, %v7893_v61 }
  0xc5   :  { %1797 = vmatprep.subr.mxu0 %v1632_v30  ;;  %1886 = vmatprep.subr.mxu1 %v1696_v13  ;;  %v1629_v30 = vld [vmem:[#allocation8 + $0xb0] sm:$0xff]  ;;  %v1626_v22 = vld [vmem:[#allocation8 + $0x98] sm:$0xff] }
  0xc6   :  { %v816_v52 = vsel %vm811_vm2, %v398_v35, %v6759_v32  ;;  %1798 = vmatpush1.msra.mxu0 %v1631_v19  ;;  %1887 = vmatpush1.msra.mxu1 %v1695_v47  ;;  %v272_v34 = vpop.permute.xlu1 %271  ;;  %v817_v11 = vsel %vm811_vm2, %v399_v36, %v6760_v7  ;;  %v1627_v32 = vld [vmem:[#allocation8 + $0xa0] sm:$0xff]  ;;  %v1690_v36 = vld [vmem:[#allocation8 + $0x298] sm:$0xff] }
  0xc7   :  { %v524_v40 = vpop.permute.xlu0 %523  ;;  %1118 = vmatmul.mubr.f32.gmra.mxu0 %v816_v52  ;;  %1371 = vmatmul.mubr.f32.gmra.mxu1 %v816_v52  ;;  %v1691_v7 = vld [vmem:[#allocation8 + $0x2a0] sm:$0xff] }
  0xc8   :  { %648 = vperm.xlu0 %6744, %v134_v44   ;;  %5760 = vmatprep.mubr.msk.f32.mxu0 %vm811_vm2, %v656_v25  ;;  %v657_v50 = vmul.f32 %v524_v40, %v7911_v15  ;;  %v1692_v44 = vld [vmem:[#allocation8 + $0x2a8] sm:$0xff]  ;;  %v401_v40 = vmul.f32 %v272_v34, %v7904_v6  ;;  %v1689_v6 = vld [vmem:[#allocation8 + $0x290] sm:$0xff]  ;;  %v1623_v34 = vld [vmem:[#allocation8 + $0x80] sm:$0xff] }
  0xc9   :  { %5792 = vmatprep.mubr.msk.f32.mxu1 %vm811_vm2, %v656_v25  ;;  %775 = vrot.lane.b32.xlu1 %v8348_v24, %s7720_s11 }
  0xca   :  { %1799 = vmatprep.subr.mxu0 %v1630_v8  ;;  %1888 = vmatprep.subr.mxu1 %v1694_v62  ;;  %v6763_v52 = vpop.permute.xlu1 %6762  ;;  %v1625_v62 = vld [vmem:[#allocation8 + $0x90] sm:$0xff] }
  0xcb   :  { %v529_v13 = vpop.permute.xlu0 %528  ;;  %1124 = vmatmul.mubr.f32.gmra.mxu0 %v817_v11  ;;  %1376 = vmatmul.mubr.f32.gmra.mxu1 %v817_v11  ;;  %v6764_v19 = vunpack.i.l.bf16 %v6763_v52  ;;  %v6765_v15 = vunpack.i.h.bf16 %v6763_v52  ;;  %v1688_v52 = vld [vmem:[#allocation8 + $0x288] sm:$0xff] }
  0xcc   :  { %5761 = vmatprep.mubr.msk.f32.mxu0 %vm811_vm2, %v657_v50  ;;  %5793 = vmatprep.mubr.msk.f32.mxu1 %vm811_vm2, %v657_v50  ;;  %v658_v47 = vmul.f32 %v529_v13, %v7929_v31  ;;  %v1687_v13 = vld [vmem:[#allocation8 + $0x280] sm:$0xff] }
  0xcd   :  { %777 = vrot.lane.b32.xlu0 %v8232_v63, %s7720_s11  ;;  %1800 = vmatpush1.msra.mxu0 %v1629_v30  ;;  %v818_v35 = vsel %vm811_vm2, %v400_v21, %v6764_v19  ;;  %v819_v8 = vsel %vm811_vm2, %v401_v40, %v6765_v15  ;;  %v1624_v30 = vld [vmem:[#allocation8 + $0x88] sm:$0xff] }
  0xce   :  { %1801 = vmatprep.subr.mxu0 %v1628_v53  ;;  %1889 = vmatpush1.msra.mxu1 %v1693_v9  ;;  %v534_v25 = vpop.permute.xlu1 %533  ;;  %v1621_v53 = vld [vmem:[#allocation8 + $0x70] sm:$0xff]  ;;  %v1686_v9 = vld [vmem:[#allocation8 + $0x278] sm:$0xff]  ;;  %v1620_v15 = vld [vmem:[#allocation8 + $0x68] sm:$0xff] }
  0xcf   :  { %v277_v61 = vpop.permute.xlu0 %276  ;;  %1130 = vmatmul.mubr.f32.gmra.mxu0 %v818_v35  ;;  %1381 = vmatmul.mubr.f32.gmra.mxu1 %v818_v35  ;;  %v659_v31 = vmul.f32 %v534_v25, %v7938_v37  ;;  %v1622_v37 = vld [vmem:[#allocation8 + $0x78] sm:$0xff]  ;;  %v1684_v40 = vld [vmem:[#allocation8 + $0x268] sm:$0xff] }
  0xd0   :  { %5762 = vmatprep.mubr.msk.f32.mxu0 %vm811_vm2, %v658_v47  ;;  %5794 = vmatprep.mubr.msk.f32.mxu1 %vm811_vm2, %v658_v47  ;;  %v1685_v47 = vld [vmem:[#allocation8 + $0x270] sm:$0xff]  ;;  %v402_v35 = vmul.f32 %v277_v61, %v7947_v45  ;;  %v1683_v45 = vld [vmem:[#allocation8 + $0x260] sm:$0xff] }
  0xd1   :  { %1802 = vmatpush1.msra.mxu0 %v1627_v32  ;;  %1890 = vmatprep.subr.mxu1 %v1692_v44 }
  0xd2   :  { %1803 = vmatprep.subr.mxu0 %v1626_v22  ;;  %1891 = vmatpush1.msra.mxu1 %v1691_v7  ;;  %v539_v50 = vpop.permute.xlu1 %538  ;;  %v1619_v7 = vld [vmem:[#allocation8 + $0x60] sm:$0xff] }
  0xd3   :  { %v282_v11 = vpop.permute.xlu0 %281  ;;  %1136 = vmatmul.mubr.f32.gmra.mxu0 %v819_v8  ;;  %1386 = vmatmul.mubr.f32.gmra.mxu1 %v819_v8  ;;  %v660_v44 = vmul.f32 %v539_v50, %v7959_v51  ;;  %v1617_v50 = vld [vmem:[#allocation8 + $0x50] sm:$0xff] }
  0xd4   :  { %5763 = vmatprep.mubr.msk.f32.mxu0 %vm811_vm2, %v659_v31  ;;  %5795 = vmatprep.mubr.msk.f32.mxu1 %vm811_vm2, %v659_v31  ;;  %v403_v61 = vmul.f32 %v282_v11, %v7964_v57  ;;  %v1681_v57 = vld [vmem:[#allocation8 + $0x250] sm:$0xff] }
  0xd5   :  { %1804 = vmatpush1.msra.mxu0 %v1625_v62  ;;  %1892 = vmatprep.subr.mxu1 %v1690_v36  ;;  %v1618_v62 = vld [vmem:[#allocation8 + $0x58] sm:$0xff] }
  0xd6   :  { %1805 = vmatprep.subr.mxu0 %v1624_v30  ;;  %1893 = vmatpush1.msra.mxu1 %v1689_v6  ;;  %v287_v21 = vpop.permute.xlu1 %286  ;;  %v1682_v30 = vld [vmem:[#allocation8 + $0x258] sm:$0xff] }
  0xd7   :  { %v6768_v19 = vpop.permute.xlu0 %6767  ;;  %1806 = vmatpush1.msra.mxu0 %v1623_v34  ;;  %1894 = vmatprep.subr.mxu1 %v1688_v52  ;;  %v1616_v52 = vld [vmem:[#allocation8 + $0x48] sm:$0xff]  ;;  %v404_v11 = vmul.f32 %v287_v21, %v7976_v0  ;;  %v1614_v0 = vld [vmem:[#allocation8 + $0x38] sm:$0xff]  ;;  %v1679_v21 = vld [vmem:[#allocation8 + $0x240] sm:$0xff] }
  0xd8   :  { %v6769_v32 = vunpack.i.l.bf16 %v6768_v19  ;;  %1807 = vmatprep.subr.mxu0 %v1622_v37  ;;  %1895 = vmatpush1.msra.mxu1 %v1687_v13  ;;  %v6770_v25 = vunpack.i.h.bf16 %v6768_v19  ;;  %v1680_v19 = vld [vmem:[#allocation8 + $0x248] sm:$0xff] }
  0xd9   :  { %1808 = vmatpush1.msra.mxu0 %v1621_v53  ;;  %1896 = vmatprep.subr.mxu1 %v1686_v9  ;;  %v1615_v9 = vld [vmem:[#allocation8 + $0x40] sm:$0xff] }
  0xda   :  { %v820_v22 = vsel %vm811_vm2, %v402_v35, %v6769_v32  ;;  %1809 = vmatprep.subr.mxu0 %v1620_v15  ;;  %1897 = vmatpush1.msra.mxu1 %v1685_v47  ;;  %v292_v31 = vpop.permute.xlu1 %291  ;;  %v821_v36 = vsel %vm811_vm2, %v403_v61, %v6770_v25  ;;  %v1678_v25 = vld [vmem:[#allocation8 + $0x238] sm:$0xff] }
  0xdb   :  { %v544_v8 = vpop.permute.xlu0 %543  ;;  %1142 = vmatmul.mubr.f32.gmra.mxu0 %v820_v22  ;;  %1391 = vmatmul.mubr.f32.gmra.mxu1 %v820_v22  ;;  %v405_v35 = vmul.f32 %v292_v31, %v7990_v17  ;;  %v1677_v17 = vld [vmem:[#allocation8 + $0x230] sm:$0xff]  ;;  %v1611_v31 = vld [vmem:[#allocation8 + $0x20] sm:$0xff]  ;;  %v1674_v61 = vld [vmem:[#allocation8 + $0x218] sm:$0xff] }
  0xdc   :  { %5764 = vmatprep.mubr.msk.f32.mxu0 %vm811_vm2, %v660_v44  ;;  %5796 = vmatprep.mubr.msk.f32.mxu1 %vm811_vm2, %v660_v44  ;;  %v661_v51 = vmul.f32 %v544_v8, %v7996_v27  ;;  %v1613_v44 = vld [vmem:[#allocation8 + $0x30] sm:$0xff]  ;;  %v1676_v8 = vld [vmem:[#allocation8 + $0x228] sm:$0xff] }
  0xdd   :  { %1810 = vmatpush1.msra.mxu0 %v1619_v7  ;;  %1898 = vmatprep.subr.mxu1 %v1684_v40  ;;  %v1612_v40 = vld [vmem:[#allocation8 + $0x28] sm:$0xff] }
  0xde   :  { %1811 = vmatprep.subr.mxu0 %v1618_v62  ;;  %1899 = vmatpush1.msra.mxu1 %v1683_v45  ;;  %v6773_v6 = vpop.permute.xlu1 %6772  ;;  %v1675_v62 = vld [vmem:[#allocation8 + $0x220] sm:$0xff]  ;;  %v1609_v45 = vld [vmem:[#allocation8 + $0x10] sm:$0xff] }
  0xdf   :  { %v549_v34 = vpop.permute.xlu0 %548  ;;  %1148 = vmatmul.mubr.f32.gmra.mxu0 %v821_v36  ;;  %1396 = vmatmul.mubr.f32.gmra.mxu1 %v821_v36  ;;  %v6774_v37 = vunpack.i.l.bf16 %v6773_v6  ;;  %v6775_v27 = vunpack.i.h.bf16 %v6773_v6 }
  0xe0   :  { %5765 = vmatprep.mubr.msk.f32.mxu0 %vm811_vm2, %v661_v51  ;;  %5797 = vmatprep.mubr.msk.f32.mxu1 %vm811_vm2, %v661_v51  ;;  %v662_v13 = vmul.f32 %v549_v34, %v8015_v46 }
  0xe1   :  { %1812 = vmatpush1.msra.mxu0 %v1617_v50  ;;  %1900 = vmatprep.subr.mxu1 %v1682_v30  ;;  %v822_v53 = vsel %vm811_vm2, %v404_v11, %v6774_v37  ;;  %v823_v32 = vsel %vm811_vm2, %v405_v35, %v6775_v27  ;;  %v1608_v50 = vld [vmem:[#allocation8 + $0x8] sm:$0xff]  ;;  %v1673_v30 = vld [vmem:[#allocation8 + $0x210] sm:$0xff]  ;;  %v1607_v37 = vld [vmem:[#allocation8] sm:$0xff] }
  0xe2   :  { %1813 = vmatprep.subr.mxu0 %v1616_v52  ;;  %1901 = vmatpush1.msra.mxu1 %v1681_v57  ;;  %v554_v15 = vpop.permute.xlu1 %553  ;;  %v1672_v27 = vld [vmem:[#allocation8 + $0x208] sm:$0xff] }
  0xe3   :  { %v297_v47 = vpop.permute.xlu0 %296  ;;  %1154 = vmatmul.mubr.f32.gmra.mxu0 %v822_v53  ;;  %1401 = vmatmul.mubr.f32.gmra.mxu1 %v822_v53  ;;  %v663_v46 = vmul.f32 %v554_v15, %v8024_v41  ;;  %v1610_v41 = vld [vmem:[#allocation8 + $0x18] sm:$0xff]  ;;  %v1668_v35 = vld [vmem:[#allocation8 + $0x1e8] sm:$0xff] }
  0xe4   :  { %5766 = vmatprep.mubr.msk.f32.mxu0 %vm811_vm2, %v662_v13  ;;  %5798 = vmatprep.mubr.msk.f32.mxu1 %vm811_vm2, %v662_v13  ;;  %v406_v6 = vmul.f32 %v297_v47, %v8032_v59  ;;  %v1671_v59 = vld [vmem:[#allocation8 + $0x200] sm:$0xff]  ;;  %v1669_v47 = vld [vmem:[#allocation8 + $0x1f0] sm:$0xff] }
  0xe5   :  { %1814 = vmatpush1.msra.mxu0 %v1615_v9  ;;  %1902 = vmatprep.subr.mxu1 %v1680_v19  ;;  %v1670_v9 = vld [vmem:[#allocation8 + $0x1f8] sm:$0xff] }
  0xe6   :  { %1815 = vmatprep.subr.mxu0 %v1614_v0  ;;  %1903 = vmatpush1.msra.mxu1 %v1679_v21  ;;  %v559_v22 = vpop.permute.xlu1 %558 }
  0xe7   :  { %v302_v7 = vpop.permute.xlu0 %301  ;;  %1160 = vmatmul.mubr.f32.gmra.mxu0 %v823_v32  ;;  %1406 = vmatmul.mubr.f32.gmra.mxu1 %v823_v32  ;;  %v664_v52 = vmul.f32 %v559_v22, %v8044_v4 }
  0xe8   :  { %5767 = vmatprep.mubr.msk.f32.mxu0 %vm811_vm2, %v663_v46  ;;  %5799 = vmatprep.mubr.msk.f32.mxu1 %vm811_vm2, %v663_v46  ;;  %v407_v19 = vmul.f32 %v302_v7, %v8050_v16 }
  0xe9   :  { %1816 = vmatpush1.msra.mxu0 %v1613_v44  ;;  %1904 = vmatprep.subr.mxu1 %v1678_v25  ;;  %v1667_v25 = vld [vmem:[#allocation8 + $0x1e0] sm:$0xff] }
  0xea   :  { %1817 = vmatprep.subr.mxu0 %v1612_v40  ;;  %1905 = vmatpush1.msra.mxu1 %v1677_v17  ;;  %v307_v51 = vpop.permute.xlu1 %306  ;;  %v1666_v40 = vld [vmem:[#allocation8 + $0x1d8] sm:$0xff] }
  0xeb   :  { %v6778_v36 = vpop.permute.xlu0 %6777  ;;  %1818 = vmatpush1.msra.mxu0 %v1611_v31  ;;  %1906 = vmatprep.subr.mxu1 %v1676_v8  ;;  %v408_v16 = vmul.f32 %v307_v51, %v8062_v28  ;;  %v1665_v31 = vld [vmem:[#allocation8 + $0x1d0] sm:$0xff] }
  0xec   :  { %v6779_v34 = vunpack.i.l.bf16 %v6778_v36  ;;  %1819 = vmatprep.subr.mxu0 %v1610_v41  ;;  %1907 = vmatpush1.msra.mxu1 %v1675_v62  ;;  %v6780_v57 = vunpack.i.h.bf16 %v6778_v36  ;;  %v1664_v62 = vld [vmem:[#allocation8 + $0x1c8] sm:$0xff] }
  0xed   :  { %1820 = vmatpush1.msra.mxu0 %v1609_v45  ;;  %1908 = vmatprep.subr.mxu1 %v1674_v61  ;;  %v1662_v45 = vld [vmem:[#allocation8 + $0x1b8] sm:$0xff]  ;;  %v1661_v61 = vld [vmem:[#allocation8 + $0x1b0] sm:$0xff]  ;;  %v1660_v36 = vld [vmem:[#allocation8 + $0x1a8] sm:$0xff] }
  0xee   :  { %v824_v11 = vsel %vm811_vm2, %v406_v6, %v6779_v34  ;;  %1821 = vmatprep.subr.mxu0 %v1608_v50  ;;  %1909 = vmatpush1.msra.mxu1 %v1673_v30  ;;  %v312_v13 = vpop.permute.xlu1 %311  ;;  %v825_v15 = vsel %vm811_vm2, %v407_v19, %v6780_v57  ;;  %v1659_v57 = vld [vmem:[#allocation8 + $0x1a0] sm:$0xff]  ;;  %v447_v19 = vrot.slane %v8191_v58, 1 }
  0xef   :  { %v564_v53 = vpop.permute.xlu0 %563  ;;  %1166 = vmatmul.mubr.f32.gmra.mxu0 %v824_v11  ;;  %1411 = vmatmul.mubr.f32.gmra.mxu1 %v824_v11  ;;  %v409_v28 = vmul.f32 %v312_v13, %v8075_v48  ;;  %v1663_v48 = vld [vmem:[#allocation8 + $0x1c0] sm:$0xff] }
  0xf0   :  { %5768 = vmatprep.mubr.msk.f32.mxu0 %vm811_vm2, %v664_v52  ;;  %5800 = vmatprep.mubr.msk.f32.mxu1 %vm811_vm2, %v664_v52  ;;  %v665_v4 = vmul.f32 %v564_v53, %v8082_v55  ;;  %v1657_v53 = vld [vmem:[#allocation8 + $0x190] sm:$0xff] }
  0xf1   :  { %1822 = vmatpush1.msra.mxu0 %v1607_v37  ;;  %1910 = vmatprep.subr.mxu1 %v1672_v27  ;;  %v1658_v27 = vld [vmem:[#allocation8 + $0x198] sm:$0xff] }
  0xf2   :  { %1823 = vmatprep.subr.mxu0 %v1670_v9  ;;  %1911 = vmatpush1.msra.mxu1 %v1671_v59  ;;  %v6783_v0 = vpop.permute.xlu1 %6782 }
  0xf3   :  { %v569_v21 = vpop.permute.xlu0 %568  ;;  %1172 = vmatmul.mubr.f32.gmra.mxu0 %v825_v15  ;;  %1416 = vmatmul.mubr.f32.gmra.mxu1 %v825_v15  ;;  %v6784_v46 = vunpack.i.l.bf16 %v6783_v0  ;;  %v6785_v32 = vunpack.i.h.bf16 %v6783_v0 }
  0xf4   :  { %5769 = vmatprep.mubr.msk.f32.mxu0 %vm811_vm2, %v665_v4  ;;  %5801 = vmatprep.mubr.msk.f32.mxu1 %vm811_vm2, %v665_v4  ;;  %v666_v55 = vmul.f32 %v569_v21, %v8098_v14  ;;  %v1656_v4 = vld [vmem:[#allocation8 + $0x188] sm:$0xff]  ;;  %v1655_v21 = vld [vmem:[#allocation8 + $0x180] sm:$0xff] }
  0xf5   :  { %1824 = vmatpush2.msra.mxu0 %v1669_v47  ;;  %v826_v44 = vsel %vm811_vm2, %v408_v16, %v6784_v46  ;;  %v827_v14 = vsel %vm811_vm2, %v409_v28, %v6785_v32  ;;  %v1654_v32 = vld [vmem:[#allocation8 + $0x178] sm:$0xff]  ;;  %v1652_v28 = vld [vmem:[#allocation8 + $0x168] sm:$0xff] }
  0xf6   :  { %1825 = vmatprep.subr.mxu0 %v1668_v35  ;;  %v574_v22 = vpop.permute.xlu1 %573  ;;  %v12818_v35 = vrot.slane %v8159_v29, 1 }
  0xf7   :  { %v317_v7 = vpop.permute.xlu0 %316  ;;  %1178 = vmatmul.mubr.f32.gmra.mxu0 %v826_v44  ;;  %1421 = vmatmul.mubr.f32.gmra.mxu1 %v826_v44  ;;  %v667_v17 = vmul.f32 %v574_v22, %v8106_v54  ;;  %v448_v22 = vrot.slane %v8205_v12, 1 }
  0xf8   :  { %5770 = vmatprep.mubr.msk.f32.mxu0 %vm811_vm2, %v666_v55  ;;  %5802 = vmatprep.mubr.msk.f32.mxu1 %vm811_vm2, %v666_v55  ;;  %v410_v50 = vmul.f32 %v317_v7, %v8113_v43  ;;  %v469_v16 = vsel %vm458_vm0, %v12818_v35, %v447_v19  ;;  %v1643_v35 = vld [vmem:[#allocation8 + $0x120] sm:$0xff] }
  0xf9   :  { %1826 = vmatpush2.msra.mxu0 %v1667_v25  ;;  %v1653_v25 = vld [vmem:[#allocation8 + $0x170] sm:$0xff] }
  0xfa   :  { %1827 = vmatprep.subr.mxu0 %v1666_v40  ;;  %v579_v8 = vpop.permute.xlu1 %578 }
  0xfb   :  { %v322_v41 = vpop.permute.xlu0 %321  ;;  %1184 = vmatmul.mubr.f32.gmra.mxu0 %v827_v14  ;;  %1426 = vmatmul.mubr.f32.gmra.mxu1 %v827_v14  ;;  %v668_v6 = vmul.f32 %v579_v8, %v8124_v42  ;;  %v1650_v14 = vld [vmem:[#allocation8 + $0x158] sm:$0xff]  ;;  %v468_v8 = vsel %vm458_vm0, %v447_v19, %v448_v22  ;;  %v12820_v19 = vld [vmem:[#allocation14_spill] sm:$0xff] }
  0xfc   :  { %5771 = vmatprep.mubr.msk.f32.mxu0 %vm811_vm2, %v667_v17  ;;  %5803 = vmatprep.mubr.msk.f32.mxu1 %vm811_vm2, %v667_v17  ;;  %v411_v13 = vmul.f32 %v322_v41, %v8128_v56  ;;  %v188_v17 = vrot.slane %v8191_v58, 7 }
  0xfd   :  { %1828 = vmatpush2.msra.mxu0 %v1665_v31  ;;  %v1649_v31 = vld [vmem:[#allocation8 + $0x150] sm:$0xff] }
  0xfe   :  { %1829 = vmatprep.subr.mxu0 %v1664_v62  ;;  %v327_v51 = vpop.permute.xlu1 %326 }
  0xff   :  { %v6788_v54 = vpop.permute.xlu0 %6787  ;;  %1830 = vmatpush2.msra.mxu0 %v1663_v48  ;;  %v412_v56 = vmul.f32 %v327_v51, %v8138_v3  ;;  %v449_v48 = vrot.slane %v8207_v18, 1 }
 0x100   :  { %v6789_v30 = vunpack.i.l.bf16 %v6788_v54  ;;  %1831 = vmatprep.subr.mxu0 %v1662_v45  ;;  %v6790_v34 = vunpack.i.h.bf16 %v6788_v54  ;;  %v1648_v45 = vld [vmem:[#allocation8 + $0x148] sm:$0xff]  ;;  %v12819_v54 = vrot.slane %v8159_v29, 7  ;;  %v450_v29 = vrot.slane %v8227_v38, 1 }
 0x101   :  { %1832 = vmatpush2.msra.mxu0 %v1661_v61 }
 0x102   :  { %v828_v52 = vsel %vm811_vm2, %v410_v50, %v6789_v30  ;;  %1833 = vmatprep.subr.mxu0 %v1660_v36  ;;  %v332_v11 = vpop.permute.xlu1 %331  ;;  %v829_v42 = vsel %vm811_vm2, %v411_v13, %v6790_v34  ;;  %v212_v58 = vsel %vm201_vm1, %v12819_v54, %v188_v17  ;;  %v189_v36 = vrot.slane %v8205_v12, 7  ;;  %v1647_v34 = vld [vmem:[#allocation8 + $0x140] sm:$0xff] }
 0x103   :  { %v584_v37 = vpop.permute.xlu0 %583  ;;  %1190 = vmatmul.mubr.f32.gmra.mxu0 %v828_v52  ;;  %1431 = vmatmul.mubr.f32.gmra.mxu1 %v828_v52  ;;  %v413_v55 = vmul.f32 %v332_v11, %v8146_v20  ;;  %v1651_v20 = vld [vmem:[#allocation8 + $0x160] sm:$0xff]  ;;  %v1646_v11 = vld [vmem:[#allocation8 + $0x138] sm:$0xff] }
 0x104   :  { %5772 = vmatprep.mubr.msk.f32.mxu0 %vm811_vm2, %v668_v6  ;;  %5804 = vmatprep.mubr.msk.f32.mxu1 %vm811_vm2, %v668_v6  ;;  %v669_v43 = vmul.f32 %v584_v37, %v8151_v26  ;;  %v211_v12 = vsel %vm201_vm1, %v188_v17, %v189_v36  ;;  %v1639_v17 = vld [vmem:[#allocation8 + $0x100] sm:$0xff] }
 0x105   :  { %1834 = vmatpush2.msra.mxu0 %v1659_v57 }
 0x106   :  { %1835 = vmatprep.subr.mxu0 %v1658_v27  ;;  %v6793_v9 = vpop.permute.xlu1 %6792  ;;  %v190_v27 = vrot.slane %v8207_v18, 7 }
 0x107   :  { %v589_v59 = vpop.permute.xlu0 %588  ;;  %1196 = vmatmul.mubr.f32.gmra.mxu0 %v829_v42  ;;  %1436 = vmatmul.mubr.f32.gmra.mxu1 %v829_v42  ;;  %v6794_v15 = vunpack.i.l.bf16 %v6793_v9  ;;  %v6795_v26 = vunpack.i.h.bf16 %v6793_v9  ;;  %v1645_v42 = vld [vmem:[#allocation8 + $0x130] sm:$0xff]  ;;  %v466_v9 = vsel %vm458_vm0, %v449_v48, %v450_v29 }
 0x108   :  { %5773 = vmatprep.mubr.msk.f32.mxu0 %vm811_vm2, %v669_v43  ;;  %5805 = vmatprep.mubr.msk.f32.mxu1 %vm811_vm2, %v669_v43  ;;  %v670_v47 = vmul.f32 %v589_v59, %v8166_v39  ;;  %v210_v18 = vsel %vm201_vm1, %v189_v36, %v190_v27 }
 0x109   :  { %1836 = vmatpush2.msra.mxu0 %v1657_v53  ;;  %v830_v0 = vsel %vm811_vm2, %v412_v56, %v6794_v15  ;;  %v831_v44 = vsel %vm811_vm2, %v413_v55, %v6795_v26  ;;  %v1644_v56 = vld [vmem:[#allocation8 + $0x128] sm:$0xff] }
 0x10a   :  { %1837 = vmatprep.subr.mxu0 %v1656_v4  ;;  %v594_v46 = vpop.permute.xlu1 %593  ;;  %v451_v4 = vrot.slane %v12820_v19, 1 }
 0x10b   :  { %v337_v3 = vpop.permute.xlu0 %336  ;;  %1202 = vmatmul.mubr.f32.gmra.mxu0 %v830_v0  ;;  %1441 = vmatmul.mubr.f32.gmra.mxu1 %v830_v0  ;;  %v671_v39 = vmul.f32 %v594_v46, %v469_v16 }
 0x10c   :  { %5774 = vmatprep.mubr.msk.f32.mxu0 %vm811_vm2, %v670_v47  ;;  %5806 = vmatprep.mubr.msk.f32.mxu1 %vm811_vm2, %v670_v47  ;;  %v414_v61 = vmul.f32 %v337_v3, %v8177_v33  ;;  %v467_v33 = vsel %vm458_vm0, %v448_v22, %v449_v48  ;;  %v465_v16 = vsel %vm458_vm0, %v450_v29, %v451_v4  ;;  %v1641_v22 = vld [vmem:[#allocation8 + $0x110] sm:$0xff] }
 0x10d   :  { %1838 = vmatpush2.msra.mxu0 %v1655_v21 }
 0x10e   :  { %1839 = vmatprep.subr.mxu0 %v1654_v32  ;;  %v599_v7 = vpop.permute.xlu1 %598  ;;  %v1642_v32 = vld [vmem:[#allocation8 + $0x118] sm:$0xff] }
 0x10f   :  { %v342_v40 = vpop.permute.xlu0 %341  ;;  %1208 = vmatmul.mubr.f32.gmra.mxu0 %v831_v44  ;;  %1446 = vmatmul.mubr.f32.gmra.mxu1 %v831_v44  ;;  %v672_v50 = vmul.f32 %v599_v7, %v468_v8  ;;  %v452_v7 = vrot.slane %v8268_v23, 1 }
 0x110   :  { %5775 = vmatprep.mubr.msk.f32.mxu0 %vm811_vm2, %v671_v39  ;;  %5807 = vmatprep.mubr.msk.f32.mxu1 %vm811_vm2, %v671_v39  ;;  %v415_v37 = vmul.f32 %v342_v40, %v212_v58  ;;  %v191_v39 = vrot.slane %v8227_v38, 7 }
 0x111   :  { %1840 = vmatpush2.msra.mxu0 %v1653_v25 }
 0x112   :  { %1841 = vmatprep.subr.mxu0 %v1652_v28  ;;  %v347_v41 = vpop.permute.xlu1 %346  ;;  %v209_v38 = vsel %vm201_vm1, %v190_v27, %v191_v39  ;;  %v455_v27 = vrot.slane %v8317_v1, 1 }
 0x113   :  { %v6798_v62 = vpop.permute.xlu0 %6797  ;;  %1842 = vmatpush2.msra.mxu0 %v1651_v20  ;;  %v416_v15 = vmul.f32 %v347_v41, %v211_v12  ;;  %v1640_v20 = vld [vmem:[#allocation8 + $0x108] sm:$0xff] }
 0x114   :  { %v6799_v51 = vunpack.i.l.bf16 %v6798_v62  ;;  %1843 = vmatprep.subr.mxu0 %v1650_v14  ;;  %v6800_v30 = vunpack.i.h.bf16 %v6798_v62  ;;  %v192_v14 = vrot.slane %v12820_v19, 7  ;;  %v453_v62 = vrot.slane %v8270_v10, 1 }
 0x115   :  { %1844 = vmatpush2.msra.mxu0 %v1649_v31  ;;  %v464_v31 = vsel %vm458_vm0, %v451_v4, %v452_v7  ;;  %v454_v10 = vrot.slane %v8315_v60, 1 }
 0x116   :  { %v832_v6 = vsel %vm811_vm2, %v414_v61, %v6799_v51  ;;  %1845 = vmatprep.subr.mxu0 %v1648_v45  ;;  %v352_v52 = vpop.permute.xlu1 %351  ;;  %v833_v43 = vsel %vm811_vm2, %v415_v37, %v6800_v30  ;;  %v208_v61 = vsel %vm201_vm1, %v191_v39, %v192_v14  ;;  %v193_v51 = vrot.slane %v8268_v23, 7 }
 0x117   :  { %v604_v57 = vpop.permute.xlu0 %603  ;;  %1214 = vmatmul.mubr.f32.gmra.mxu0 %v832_v6  ;;  %1451 = vmatmul.mubr.f32.gmra.mxu1 %v832_v6  ;;  %v417_v55 = vmul.f32 %v352_v52, %v210_v18  ;;  %v463_v30 = vsel %vm458_vm0, %v452_v7, %v453_v62  ;;  %v7077_v52 = vld [vmem:[#allocation3 + $0xd8] sm:$0xff]  ;;  %v462_v37 = vsel %vm458_vm0, %v453_v62, %v454_v10 }
 0x118   :  { %5776 = vmatprep.mubr.msk.f32.mxu0 %vm811_vm2, %v672_v50  ;;  %5808 = vmatprep.mubr.msk.f32.mxu1 %vm811_vm2, %v672_v50  ;;  %v673_v13 = vmul.f32 %v604_v57, %v467_v33  ;;  %v207_v23 = vsel %vm201_vm1, %v192_v14, %v193_v51  ;;  %v194_v33 = vrot.slane %v7077_v52, 7  ;;  %v461_v19 = vsel %vm458_vm0, %v454_v10, %v455_v27  ;;  %v8549_v10 = vld [vmem:[%s12382_s1 + $0x8] sm:$0xff] }
 0x119   :  { %1846 = vmatpush2.msra.mxu0 %v1647_v34 }
 0x11a   :  { %1847 = vmatprep.subr.mxu0 %v1646_v11  ;;  %v6803_v53 = vpop.permute.xlu1 %6802 }
 0x11b   :  { %v609_v59 = vpop.permute.xlu0 %608  ;;  %1220 = vmatmul.mubr.f32.gmra.mxu0 %v833_v43  ;;  %1456 = vmatmul.mubr.f32.gmra.mxu1 %v833_v43  ;;  %v6804_v26 = vunpack.i.l.bf16 %v6803_v53  ;;  %v6805_v47 = vunpack.i.h.bf16 %v6803_v53 }
 0x11c   :  { %5777 = vmatprep.mubr.msk.f32.mxu0 %vm811_vm2, %v673_v13  ;;  %5809 = vmatprep.mubr.msk.f32.mxu1 %vm811_vm2, %v673_v13  ;;  %v674_v0 = vmul.f32 %v609_v59, %v466_v9 }
 0x11d   :  { %1848 = vmatpush2.msra.mxu0 %v1645_v42  ;;  %v834_v21 = vsel %vm811_vm2, %v416_v15, %v6804_v26  ;;  %v835_v25 = vsel %vm811_vm2, %v417_v55, %v6805_v47  ;;  %v206_v42 = vsel %vm201_vm1, %v193_v51, %v194_v33  ;;  %v195_v26 = vrot.slane %v8315_v60, 7  ;;  %v7078_v55 = vld [vmem:[#allocation3 + $0xf8] sm:$0xff] }
 0x11e   :  { %1849 = vmatprep.subr.mxu0 %v1644_v56  ;;  %v614_v46 = vpop.permute.xlu1 %613  ;;  %v457_v39 = vrot.slane %v7078_v55, 1 }
 0x11f   :  { %v357_v3 = vpop.permute.xlu0 %356  ;;  %1226 = vmatmul.mubr.f32.gmra.mxu0 %v834_v21  ;;  %1461 = vmatmul.mubr.f32.gmra.mxu1 %v834_v21  ;;  %v675_v44 = vmul.f32 %v614_v46, %v465_v16  ;;  %v205_v16 = vsel %vm201_vm1, %v194_v33, %v195_v26  ;;  %v196_v46 = vrot.slane %v8317_v1, 7  ;;  %v1780_v33 = vrot.slane %v8549_v10, 1 }
 0x120   :  { %5778 = vmatprep.mubr.msk.f32.mxu0 %vm811_vm2, %v674_v0  ;;  %5810 = vmatprep.mubr.msk.f32.mxu1 %vm811_vm2, %v674_v0  ;;  %v418_v48 = vmul.f32 %v357_v3, %v209_v38  ;;  %v456_v0 = vrot.slane %v8348_v24, 1 }
 0x121   :  { %1850 = vmatpush2.msra.mxu0 %v1643_v35  ;;  %v204_v7 = vsel %vm201_vm1, %v195_v26, %v196_v46 }
 0x122   :  { %1851 = vmatprep.subr.mxu0 %v1642_v32  ;;  %v619_v40 = vpop.permute.xlu1 %618  ;;  %v460_v60 = vsel %vm458_vm0, %v455_v27, %v456_v0  ;;  %v459_v1 = vsel %vm458_vm0, %v456_v0, %v457_v39 }
 0x123   :  { %v362_v28 = vpop.permute.xlu0 %361  ;;  %1232 = vmatmul.mubr.f32.gmra.mxu0 %v835_v25  ;;  %1466 = vmatmul.mubr.f32.gmra.mxu1 %v835_v25  ;;  %v676_v54 = vmul.f32 %v619_v40, %v464_v31 }
 0x124   :  { %5779 = vmatprep.mubr.msk.f32.mxu0 %vm811_vm2, %v675_v44  ;;  %5811 = vmatprep.mubr.msk.f32.mxu1 %vm811_vm2, %v675_v44  ;;  %v419_v34 = vmul.f32 %v362_v28, %v208_v61 }
 0x125   :  { %1852 = vmatpush2.msra.mxu0 %v1641_v22  ;;  %v197_v22 = vrot.slane %v8348_v24, 7 }
 0x126   :  { %1853 = vmatprep.subr.mxu0 %v1640_v20  ;;  %v367_v8 = vpop.permute.xlu1 %366 }
 0x127   :  { %v6808_v41 = vpop.permute.xlu0 %6807  ;;  %1854 = vmatpush2.msra.mxu0 %v1639_v17  ;;  %v420_v13 = vmul.f32 %v367_v8, %v207_v23  ;;  %v203_v24 = vsel %vm201_vm1, %v196_v46, %v197_v22  ;;  %v12829_v46 = vld [vmem:[#allocation19_spill] sm:$0xff] }
 0x128   :  { %v6809_v45 = vunpack.i.l.bf16 %v6808_v41  ;;  %v6810_v58 = vunpack.i.h.bf16 %v6808_v41  ;;  %v8527_v41 = vld [vmem:[%s12382_s1] sm:$0xff] }
 0x12a   :  { %v836_v36 = vsel %vm811_vm2, %v418_v48, %v6809_v45  ;;  %v372_v50 = vpop.permute.xlu1 %371  ;;  %v837_v29 = vsel %vm811_vm2, %v419_v34, %v6810_v58  ;;  %v12821_v48 = vld [vmem:[#allocation13_spill] sm:$0xff] }
 0x12b   :  { %v624_v6 = vpop.permute.xlu0 %623  ;;  %1238 = vmatmul.mubr.f32.gmra.mxu0 %v836_v36  ;;  %1471 = vmatmul.mubr.f32.gmra.mxu1 %v836_v36  ;;  %v421_v15 = vmul.f32 %v372_v50, %v206_v42  ;;  %v12822_v45 = vrot.slane %v12821_v48, 1  ;;  %v12823_v36 = vrot.slane %v8232_v63, 7  ;;  %v12825_v42 = vld [vmem:[#allocation15_spill] sm:$0xff] }
 0x12c   :  { %5780 = vmatprep.mubr.msk.f32.mxu0 %vm811_vm2, %v676_v54  ;;  %5812 = vmatprep.mubr.msk.f32.mxu1 %vm811_vm2, %v676_v54  ;;  %v677_v57 = vmul.f32 %v624_v6, %v463_v30  ;;  %v8536_v54 = vld [vmem:[%s12382_s1 + $0x18] sm:$0xff]  ;;  %v1767_v30 = vrot.slane %v8527_v41, 7  ;;  %v1779_v6 = vrot.slane %v8527_v41, 1 }
 0x12d   :  { %v490_v61 = vsel %vm458_vm0, %v457_v39, %v12822_v45  ;;  %v202_v50 = vsel %vm201_vm1, %v197_v22, %v12823_v36  ;;  %v1770_v52 = vrot.slane %v8536_v54, 7  ;;  %v12830_v39 = vld [vmem:[#allocation20_spill] sm:$0xff] }
 0x12e   :  { %v6813_v11 = vpop.permute.xlu1 %6812  ;;  %v1785_v27 = vsel %vm458_vm0, %v1779_v6, %v1780_v33 }
 0x12f   :  { %v629_v12 = vpop.permute.xlu0 %628  ;;  %1244 = vmatmul.mubr.f32.gmra.mxu0 %v837_v29  ;;  %1476 = vmatmul.mubr.f32.gmra.mxu1 %v837_v29  ;;  %v6814_v43 = vunpack.i.l.bf16 %v6813_v11  ;;  %v6815_v53 = vunpack.i.h.bf16 %v6813_v11  ;;  %v1768_v11 = vrot.slane %v8549_v10, 7 }
 0x130   :  { %5781 = vmatprep.mubr.msk.f32.mxu0 %vm811_vm2, %v677_v57  ;;  %5813 = vmatprep.mubr.msk.f32.mxu1 %vm811_vm2, %v677_v57  ;;  %v678_v9 = vmul.f32 %v629_v12, %v462_v37  ;;  %v8557_v57 = vld [vmem:[%s12382_s1 + $0x10] sm:$0xff]  ;;  %v1774_v12 = vsel %vm201_vm1, %v1770_v52, %v1767_v30 }
 0x131   :  { %v838_v59 = vsel %vm811_vm2, %v420_v13, %v6814_v43  ;;  %v839_v47 = vsel %vm811_vm2, %v421_v15, %v6815_v53  ;;  %v1781_v13 = vrot.slane %v8557_v57, 1  ;;  %v12824_v43 = vmov 0.0  }
 0x132   :  { %v1775_v53 = vmul.f32 %v1774_v12, %v12825_v42  ;;  %v1782_v15 = vrot.slane %v8536_v54, 1 }
 0x133   :  { %v634_v4 = vpop.permute.xlu1 %633  ;;  %v377_v56 = vpop.permute.xlu0 %376  ;;  %1250 = vmatmul.mubr.f32.gmra.mxu0 %v838_v59  ;;  %1481 = vmatmul.mubr.f32.gmra.mxu1 %v838_v59 }
 0x134   :  { %5782 = vmatprep.mubr.msk.f32.mxu0 %vm811_vm2, %v678_v9  ;;  %5814 = vmatprep.mubr.msk.f32.mxu1 %vm811_vm2, %v678_v9  ;;  %v679_v18 = vmul.f32 %v634_v4, %v461_v19  ;;  %v422_v44 = vmul.f32 %v377_v56, %v205_v16  ;;  %v12826_v9 = vld [vmem:[#allocation17_spill] sm:$0xff]  ;;  %v1773_v19 = vsel %vm201_vm1, %v1767_v30, %v1768_v11  ;;  %v1769_v56 = vrot.slane %v8557_v57, 7 }
 0x135   :  { %v1787_v59 = vmul.f32 %v1785_v27, %v12826_v9  ;;  %v1784_v4 = vsel %vm458_vm0, %v1780_v33, %v1781_v13  ;;  %v1776_v26 = vmul.f32 %v1773_v19, %v8234_v2 }
 0x136   :  { %v1772_v0 = vsel %vm201_vm1, %v1768_v11, %v1769_v56 }
 0x137   :  { %v639_v21 = vpop.permute.xlu1 %638  ;;  %v382_v35 = vpop.permute.xlu0 %381  ;;  %1256 = vmatmul.mubr.f32.gmra.mxu0 %v839_v47  ;;  %1486 = vmatmul.mubr.f32.gmra.mxu1 %v839_v47 }
 0x138   :  { %5783 = vmatprep.mubr.msk.f32.mxu0 %vm811_vm2, %v679_v18  ;;  %5815 = vmatprep.mubr.msk.f32.mxu1 %vm811_vm2, %v679_v18  ;;  %v680_v40 = vmul.f32 %v639_v21, %v460_v60  ;;  %v423_v14 = vmul.f32 %v382_v35, %v204_v7  ;;  %v12827_v18 = vld [vmem:[#allocation16_spill] sm:$0xff]  ;;  %v1783_v21 = vsel %vm458_vm0, %v1781_v13, %v1782_v15  ;;  %v12828_v35 = vld [vmem:[#allocation18_spill] sm:$0xff] }
 0x139   :  { %v1788_v47 = vmul.f32 %v1784_v4, %v12827_v18  ;;  %v1777_v16 = vmul.f32 %v1772_v0, %v12828_v35  ;;  %v1789_v60 = vmul.f32 %v1783_v21, %v12829_v46  ;;  %v8665_v0 = vld [vmem:[%s12386_s5 + $0x178] sm:$0xff] }
 0x13a   :  { %6395 = vmatprep.subr.mxu1 %v8665_v0 }
 0x13b   :  { %v387_v3 = vpop.permute.xlu1 %386  ;;  %v6818_v32 = vpop.permute.xlu0 %6817 }
 0x13c   :  { %v6819_v25 = vunpack.i.l.bf16 %v6818_v32  ;;  %v6820_v28 = vunpack.i.h.bf16 %v6818_v32  ;;  %v424_v58 = vmul.f32 %v387_v3, %v203_v24  ;;  %v1771_v3 = vsel %vm201_vm1, %v1769_v56, %v1770_v52 }
 0x13d   :  { %v1786_v32 = vsel %vm458_vm0, %v1782_v15, %v1779_v6  ;;  %v1778_v55 = vmul.f32 %v1771_v3, %v8283_v49 }
 0x13e   :  { %v840_v20 = vsel %vm811_vm2, %v422_v44, %v6819_v25  ;;  %v841_v8 = vsel %vm811_vm2, %v423_v14, %v6820_v28  ;;  %v1790_v44 = vmul.f32 %v1786_v32, %v12830_v39  ;;  %v8679_v32 = vld [vmem:[%s12386_s5 + $0xf8] sm:$0xff] }
 0x13f   :  { %v392_v17 = vpop.permute.xlu1 %391  ;;  %v644_v38 = vpop.permute.xlu0 %643  ;;  %1262 = vmatmul.mubr.f32.gmra.mxu0 %v840_v20  ;;  %1491 = vmatmul.mubr.f32.gmra.mxu1 %v840_v20 }
 0x140   :  { %5784 = vmatprep.mubr.msk.f32.mxu0 %vm811_vm2, %v680_v40  ;;  %5816 = vmatprep.mubr.msk.f32.mxu1 %vm811_vm2, %v680_v40  ;;  %v681_v31 = vmul.f32 %v644_v38, %v459_v1  ;;  %v425_v29 = vmul.f32 %v392_v17, %v202_v50 }
 0x141   :  { %5883 = vmatprep.subr.mxu0 %v8679_v32 }
 0x143   :  { %v776_v62 = vpop.permute.xlu1 %775  ;;  %v649_v51 = vpop.permute.xlu0 %648  ;;  %1268 = vmatmul.mubr.f32.gmra.mxu0 %v841_v8  ;;  %1496 = vmatmul.mubr.f32.gmra.mxu1 %v841_v8 }
 0x144   :  { %5785 = vmatprep.mubr.msk.f32.mxu0 %vm811_vm2, %v681_v31  ;;  %5817 = vmatprep.mubr.msk.f32.mxu1 %vm811_vm2, %v681_v31  ;;  %v682_v34 = vmul.f32 %v649_v51, %v490_v61  ;;  %v842_v23 = vsel %vm811_vm2, %v424_v58, %v776_v62 }
 0x147   :  { %v778_v63 = vpop.permute.xlu0 %777  ;;  %1274 = vmatmul.mubr.f32.gmra.mxu0 %v842_v23  ;;  %1501 = vmatmul.mubr.f32.gmra.mxu1 %v842_v23 }
 0x148   :  { %5786 = vmatprep.mubr.msk.f32.mxu0 %vm811_vm2, %v682_v34  ;;  %5818 = vmatprep.mubr.msk.f32.mxu1 %vm811_vm2, %v682_v34  ;;  %v843_v37 = vsel %vm811_vm2, %v425_v29, %v778_v63 }
 0x14b   :  { %1280 = vmatmul.mubr.f32.gmra.mxu0 %v843_v37  ;;  %1506 = vmatmul.mubr.f32.gmra.mxu1 %v843_v37 }
 0x14c   :  { %1855 = vmatprep.mubr.f32.mxu0 %v8527_v41  ;;  %1944 = vmatprep.mubr.f32.mxu1 %v12824_v43 }
 0x14f   :  { %1856 = vmatmul.mubr.f32.vlgmr.msra.gmra.mxu0 %v1775_v53  ;;  %1945 = vmatmul.mubr.f32.vlgmr.msra.gmra.mxu1 %v1787_v59 }
 0x150   :  { %1861 = vmatprep.mubr.f32.mxu0 %v8549_v10  ;;  %1950 = vmatprep.mubr.f32.mxu1 %v12824_v43 }
 0x151   :  { %6396 = vmatpush3.msra.mxu1 %v8665_v0 }
 0x153   :  { %1862 = vmatmul.mubr.f32.gmra.mxu0 %v1776_v26  ;;  %1951 = vmatmul.mubr.f32.gmra.mxu1 %v1788_v47 }
 0x154   :  { %1867 = vmatprep.mubr.f32.mxu0 %v8557_v57  ;;  %1956 = vmatprep.mubr.f32.mxu1 %v12824_v43 }
 0x157   :  { %1868 = vmatmul.mubr.f32.gmra.mxu0 %v1777_v16  ;;  %1957 = vmatmul.mubr.f32.gmra.mxu1 %v1789_v60  ;;  %v1749_v60 = vld [vmem:[%s12386_s5 + $0x170] sm:$0xff] }
 0x158   :  { %1873 = vmatprep.mubr.f32.mxu0 %v8536_v54  ;;  %1962 = vmatprep.mubr.f32.mxu1 %v12824_v43 }
 0x159   :  { %6397 = vmatprep.subr.mxu1 %v1749_v60 }
 0x15a   :  { %6398 = vmatpush3.msra.mxu1 %v1749_v60  ;;  %v8740_v60 = vld [vmem:[%s12386_s5 + $0x60] sm:$0xff] }
 0x15b   :  { %1874 = vmatmul.mubr.f32.gmra.mxu0 %v1778_v55  ;;  %1963 = vmatmul.mubr.f32.gmra.mxu1 %v1790_v44  ;;  %v1748_v55 = vld [vmem:[%s12386_s5 + $0x168] sm:$0xff]  ;;  %v8688_v44 = vld [vmem:[%s12386_s5 + $0x78] sm:$0xff] }
 0x15c   :  { %6399 = vmatprep.subr.mxu1 %v1748_v55  ;;  %5884 = vmatpush3.msra.mxu0 %v8688_v44 }
 0x15d   :  { %6400 = vmatpush3.msra.mxu1 %v1748_v55 }
 0x173   :  { %v8598_v25 = vpop.f32.mrf.mxu0  ;;  %v8600_v22 = vpop.f32.mrf.mxu1 }
 0x175   :  { %v8602_v7 = vpop.f32.mrf.mxu0  ;;  %v1354_v40 = vpop.f32.mrf.mxu1 }
 0x177   :  { %v8604_v28 = vpop.f32.mrf.mxu0  ;;  %v8606_v20 = vpop.f32.mrf.mxu1 }
 0x179   :  { %v8608_v17 = vpop.f32.mrf.mxu0  ;;  %v1359_v1 = vpop.f32.mrf.mxu1 }
 0x17b   :  { %v8610_v38 = vpop.f32.mrf.mxu0  ;;  %v8612_v14 = vpop.f32.mrf.mxu1 }
 0x17d   :  { %v8614_v24 = vpop.f32.mrf.mxu0  ;;  %v1364_v31 = vpop.f32.mrf.mxu1 }
 0x17e   :  { %v8696_v31 = vld [vmem:[%s12386_s5 + $0xf0] sm:$0xff] }
 0x17f   :  { %v8616_v8 = vpop.f32.mrf.mxu1  ;;  %v8618_v62 = vpop.f32.mrf.mxu0  ;;  %5885 = vmatprep.subr.mxu0 %v8696_v31 }
 0x181   :  { %v1369_v48 = vpop.f32.mrf.mxu1  ;;  %v8620_v45 = vpop.f32.mrf.mxu0 }
 0x182   :  { %v1747_v48 = vld [vmem:[%s12386_s5 + $0x160] sm:$0xff] }
 0x183   :  { %6401 = vmatprep.subr.mxu1 %v1747_v48 }
 0x184   :  { %6402 = vmatpush3.msra.mxu1 %v1747_v48  ;;  %v8751_v48 = vld [vmem:[%s12386_s5 + $0xd8] sm:$0xff] }
 0x187   :  { %v8622_v61 = vpop.f32.mrf.mxu0  ;;  %v8624_v51 = vpop.f32.mrf.mxu1 }
 0x188   :  { %12831 = vst [vmem:[#allocation14_spill] sm:$0xff] %v8622_v61  ;;  %12832 = vst [vmem:[#allocation13_spill] sm:$0xff] %v8624_v51  ;;  %v8881_v51 = vld [vmem:[%s12386_s5 + $0xa8] sm:$0xff]  ;;  %v8938_v61 = vld [vmem:[%s12386_s5 + $0x90] sm:$0xff] }
 0x189   :  { %v8626_v58 = vpop.f32.mrf.mxu0  ;;  %v1374_v36 = vpop.f32.mrf.mxu1  ;;  %12876 = vst [vmem:[#allocation58_spill] sm:$0xff] %v8881_v51  ;;  %12886 = vst [vmem:[#allocation68_spill] sm:$0xff] %v8938_v61 }
 0x18a   :  { %12833 = vst [vmem:[#allocation15_spill] sm:$0xff] %v8626_v58  ;;  %v8705_v36 = vld [vmem:[%s12386_s5 + $0x70] sm:$0xff]  ;;  %v8902_v58 = vld [vmem:[%s12386_s5 + $0xa0] sm:$0xff] }
 0x18b   :  { %v8628_v50 = vpop.f32.mrf.mxu0  ;;  %v8630_v30 = vpop.f32.mrf.mxu1  ;;  %5886 = vmatpush3.msra.mxu0 %v8705_v36  ;;  %12880 = vst [vmem:[#allocation62_spill] sm:$0xff] %v8902_v58 }
 0x18c   :  { %12834 = vst [vmem:[#allocation17_spill] sm:$0xff] %v8628_v50  ;;  %12835 = vst [vmem:[#allocation16_spill] sm:$0xff] %v8630_v30  ;;  %v8865_v30 = vld [vmem:[%s12386_s5 + $0x120] sm:$0xff]  ;;  %v8933_v50 = vld [vmem:[%s12386_s5 + $0x18] sm:$0xff] }
 0x18d   :  { %v8632_v6 = vpop.f32.mrf.mxu0  ;;  %v1379_v34 = vpop.f32.mrf.mxu1  ;;  %12873 = vst [vmem:[#allocation55_spill] sm:$0xff] %v8865_v30  ;;  %12885 = vst [vmem:[#allocation67_spill] sm:$0xff] %v8933_v50 }
 0x18e   :  { %12836 = vst [vmem:[#allocation18_spill] sm:$0xff] %v8632_v6  ;;  %v8711_v34 = vld [vmem:[%s12386_s5 + $0xe8] sm:$0xff] }
 0x18f   :  { %v8634_v23 = vpop.f32.mrf.mxu0  ;;  %v8636_v52 = vpop.f32.mrf.mxu1  ;;  %5887 = vmatprep.subr.mxu0 %v8711_v34 }
 0x190   :  { %12837 = vst [vmem:[#allocation19_spill] sm:$0xff] %v8634_v23  ;;  %12838 = vst [vmem:[#allocation20_spill] sm:$0xff] %v8636_v52  ;;  %v8860_v52 = vld [vmem:[%s12386_s5 + $0xb0] sm:$0xff]  ;;  %v8926_v23 = vld [vmem:[%s12386_s5 + $0x108] sm:$0xff] }
 0x191   :  { %v8638_v33 = vpop.f32.mrf.mxu0  ;;  %v1384_v63 = vpop.f32.mrf.mxu1  ;;  %12872 = vst [vmem:[#allocation54_spill] sm:$0xff] %v8860_v52  ;;  %12884 = vst [vmem:[#allocation66_spill] sm:$0xff] %v8926_v23 }
 0x192   :  { %12839 = vst [vmem:[#allocation21_spill] sm:$0xff] %v8638_v33  ;;  %v1746_v63 = vld [vmem:[%s12386_s5 + $0x158] sm:$0xff] }
 0x193   :  { %v8640_v29 = vpop.f32.mrf.mxu1  ;;  %v8642_v11 = vpop.f32.mrf.mxu0  ;;  %6403 = vmatprep.subr.mxu1 %v1746_v63 }
 0x194   :  { %12840 = vst [vmem:[#allocation22_spill] sm:$0xff] %v8640_v29  ;;  %12841 = vst [vmem:[#allocation23_spill] sm:$0xff] %v8642_v11  ;;  %6404 = vmatpush3.msra.mxu1 %v1746_v63  ;;  %v8756_v63 = vld [vmem:[%s12386_s5 + $0x148] sm:$0xff]  ;;  %v8907_v11 = vld [vmem:[%s12386_s5 + $0x110] sm:$0xff] }
 0x195   :  { %v1389_v37 = vpop.f32.mrf.mxu1  ;;  %v8644_v12 = vpop.f32.mrf.mxu0  ;;  %12881 = vst [vmem:[#allocation63_spill] sm:$0xff] %v8907_v11 }
 0x196   :  { %12842 = vst [vmem:[#allocation24_spill] sm:$0xff] %v8644_v12  ;;  %v8720_v37 = vld [vmem:[%s12386_s5 + $0x68] sm:$0xff]  ;;  %v8886_v12 = vld [vmem:[%s12386_s5 + $0x118] sm:$0xff] }
 0x197   :  { %5888 = vmatpush3.msra.mxu0 %v8720_v37  ;;  %12877 = vst [vmem:[#allocation59_spill] sm:$0xff] %v8886_v12 }
 0x19b   :  { %v8646_v27 = vpop.f32.mrf.mxu0  ;;  %v8648_v13 = vpop.f32.mrf.mxu1 }
 0x19c   :  { %12843 = vst [vmem:[#allocation25_spill] sm:$0xff] %v8646_v27  ;;  %12844 = vst [vmem:[#allocation26_spill] sm:$0xff] %v8648_v13  ;;  %v8844_v27 = vld [vmem:[%s12386_s5 + $0x128] sm:$0xff] }
 0x19d   :  { %v8650_v53 = vpop.f32.mrf.mxu0  ;;  %v1394_v59 = vpop.f32.mrf.mxu1  ;;  %12869 = vst [vmem:[#allocation51_spill] sm:$0xff] %v8844_v27 }
 0x19e   :  { %12845 = vst [vmem:[#allocation27_spill] sm:$0xff] %v8650_v53  ;;  %v8816_v53 = vld [vmem:[%s12386_s5 + $0xc0] sm:$0xff] }
 0x19f   :  { %v8652_v19 = vpop.f32.mrf.mxu0  ;;  %v8654_v4 = vpop.f32.mrf.mxu1  ;;  %12863 = vst [vmem:[#allocation45_spill] sm:$0xff] %v8816_v53 }
 0x1a0   :  { %12846 = vst [vmem:[#allocation28_spill] sm:$0xff] %v8652_v19  ;;  %12847 = vst [vmem:[#allocation29_spill] sm:$0xff] %v8654_v4  ;;  %v8777_v4 = vld [vmem:[%s12386_s5 + $0x140] sm:$0xff]  ;;  %v8839_v19 = vld [vmem:[%s12386_s5 + $0xb8] sm:$0xff] }
 0x1a1   :  { %v8656_v56 = vpop.f32.mrf.mxu0  ;;  %v1399_v15 = vpop.f32.mrf.mxu1  ;;  %12858 = vst [vmem:[#allocation40_spill] sm:$0xff] %v8777_v4  ;;  %12868 = vst [vmem:[#allocation50_spill] sm:$0xff] %v8839_v19 }
 0x1a2   :  { %12848 = vst [vmem:[#allocation30_spill] sm:$0xff] %v8656_v56  ;;  %v8728_v15 = vld [vmem:[%s12386_s5 + $0xe0] sm:$0xff] }
 0x1a3   :  { %v8658_v26 = vpop.f32.mrf.mxu0  ;;  %v8660_v47 = vpop.f32.mrf.mxu1  ;;  %5889 = vmatprep.subr.mxu0 %v8728_v15 }
 0x1a4   :  { %12849 = vst [vmem:[#allocation31_spill] sm:$0xff] %v8658_v26  ;;  %12850 = vst [vmem:[#allocation32_spill] sm:$0xff] %v8660_v47  ;;  %5890 = vmatpush3.msra.mxu0 %v8740_v60  ;;  %v8772_v47 = vld [vmem:[%s12386_s5 + $0xd0] sm:$0xff] }
 0x1a5   :  { %v8668_v21 = vpop.f32.mrf.mxu0  ;;  %v1404_v16 = vpop.f32.mrf.mxu1  ;;  %5891 = vmatprep.subr.mxu0 %v8751_v48 }
 0x1a6   :  { %12851 = vst [vmem:[#allocation33_spill] sm:$0xff] %v8668_v21  ;;  %v8733_v16 = vld [vmem:[%s12386_s5 + $0x150] sm:$0xff]  ;;  %v8800_v21 = vld [vmem:[%s12386_s5 + $0x138] sm:$0xff] }
 0x1a7   :  { %v8674_v3 = vpop.f32.mrf.mxu1  ;;  %v8690_v40 = vpop.f32.mrf.mxu0  ;;  %6405 = vmatprep.subr.mxu1 %v8733_v16  ;;  %12861 = vst [vmem:[#allocation43_spill] sm:$0xff] %v8800_v21 }
 0x1a8   :  { %12852 = vst [vmem:[#allocation34_spill] sm:$0xff] %v8674_v3  ;;  %12853 = vst [vmem:[#allocation35_spill] sm:$0xff] %v8690_v40  ;;  %6406 = vmatpush3.msra.mxu1 %v8733_v16  ;;  %v8821_v40 = vld [vmem:[%s12386_s5 + $0x130] sm:$0xff] }
 0x1a9   :  { %v1409_v1 = vpop.f32.mrf.mxu1  ;;  %v8722_v59 = vpop.f32.mrf.mxu0  ;;  %6407 = vmatprep.subr.mxu1 %v8756_v63  ;;  %12864 = vst [vmem:[#allocation46_spill] sm:$0xff] %v8821_v40 }
 0x1aa   :  { %12854 = vst [vmem:[#allocation36_spill] sm:$0xff] %v8722_v59  ;;  %6408 = vmatpush3.msra.mxu1 %v8756_v63  ;;  %v8795_v59 = vld [vmem:[%s12386_s5 + $0xc8] sm:$0xff] }
 0x1ab   :  { %6409 = vmatprep.subr.mxu1 %v8777_v4 }
 0x1ac   :  { %6410 = vmatpush3.msra.mxu1 %v8777_v4 }
 0x1ad   :  { %6411 = vmatprep.subr.mxu1 %v8800_v21 }
 0x1ae   :  { %6412 = vmatpush3.msra.mxu1 %v8800_v21 }
 0x1af   :  { %v8742_v55 = vpop.f32.mrf.mxu0  ;;  %v8744_v1 = vpop.f32.mrf.mxu1  ;;  %6413 = vmatprep.subr.mxu1 %v8821_v40 }
 0x1b0   :  { %12855 = vst [vmem:[#allocation37_spill] sm:$0xff] %v8742_v55  ;;  %12856 = vst [vmem:[#allocation38_spill] sm:$0xff] %v8744_v1  ;;  %v8763_v1 = vld [vmem:[%s12386_s5 + $0x58] sm:$0xff]  ;;  %6414 = vmatpush3.msra.mxu1 %v8821_v40 }
 0x1b1   :  { %v8765_v55 = vpop.f32.mrf.mxu0  ;;  %v1414_v3 = vpop.f32.mrf.mxu1  ;;  %5892 = vmatpush3.msra.mxu0 %v8763_v1  ;;  %6415 = vmatprep.subr.mxu1 %v8844_v27 }
 0x1b2   :  { %12857 = vst [vmem:[#allocation39_spill] sm:$0xff] %v8765_v55  ;;  %5893 = vmatprep.subr.mxu0 %v8772_v47  ;;  %v8784_v3 = vld [vmem:[%s12386_s5 + $0x50] sm:$0xff]  ;;  %6416 = vmatpush3.msra.mxu1 %v8844_v27 }
 0x1b3   :  { %v8786_v55 = vpop.f32.mrf.mxu0  ;;  %v8788_v13 = vpop.f32.mrf.mxu1  ;;  %5894 = vmatpush3.msra.mxu0 %v8784_v3  ;;  %6417 = vmatprep.subr.mxu1 %v8865_v30 }
 0x1b4   :  { %12859 = vst [vmem:[#allocation41_spill] sm:$0xff] %v8786_v55  ;;  %12860 = vst [vmem:[#allocation42_spill] sm:$0xff] %v8788_v13  ;;  %5895 = vmatprep.subr.mxu0 %v8795_v59  ;;  %v8807_v13 = vld [vmem:[%s12386_s5 + $0x48] sm:$0xff]  ;;  %6418 = vmatpush3.msra.mxu1 %v8865_v30 }
 0x1b5   :  { %v8809_v55 = vpop.f32.mrf.mxu0  ;;  %v1419_v56 = vpop.f32.mrf.mxu1  ;;  %5896 = vmatpush3.msra.mxu0 %v8807_v13  ;;  %6419 = vmatprep.subr.mxu1 %v8886_v12  ;;  %v8957_v30 = vld [vmem:[%s12386_s5 + $0x88] sm:$0xff] }
 0x1b6   :  { %12862 = vst [vmem:[#allocation44_spill] sm:$0xff] %v8809_v55  ;;  %5897 = vmatprep.subr.mxu0 %v8816_v53  ;;  %v8828_v56 = vld [vmem:[%s12386_s5 + $0x40] sm:$0xff]  ;;  %6420 = vmatpush3.msra.mxu1 %v8886_v12  ;;  %12890 = vst [vmem:[#allocation72_spill] sm:$0xff] %v8957_v30 }
 0x1b7   :  { %12865 = vst [vmem:[#allocation47_spill] sm:$0xff] %v8828_v56  ;;  %v8830_v55 = vpop.f32.mrf.mxu0  ;;  %v8832_v26 = vpop.f32.mrf.mxu1  ;;  %5898 = vmatpush3.msra.mxu0 %v8828_v56  ;;  %6421 = vmatprep.subr.mxu1 %v8907_v11 }
 0x1b8   :  { %12866 = vst [vmem:[#allocation48_spill] sm:$0xff] %v8830_v55  ;;  %12867 = vst [vmem:[#allocation49_spill] sm:$0xff] %v8832_v26  ;;  %5899 = vmatprep.subr.mxu0 %v8839_v19  ;;  %v8851_v26 = vld [vmem:[%s12386_s5 + $0x38] sm:$0xff]  ;;  %6422 = vmatpush3.msra.mxu1 %v8907_v11  ;;  %v8943_v11 = vld [vmem:[%s12386_s5 + $0x100] sm:$0xff] }
 0x1b9   :  { %12870 = vst [vmem:[#allocation52_spill] sm:$0xff] %v8851_v26  ;;  %v8853_v55 = vpop.f32.mrf.mxu0  ;;  %v1424_v29 = vpop.f32.mrf.mxu1  ;;  %5900 = vmatpush3.msra.mxu0 %v8851_v26  ;;  %6423 = vmatprep.subr.mxu1 %v8926_v23  ;;  %12887 = vst [vmem:[#allocation69_spill] sm:$0xff] %v8943_v11 }
 0x1ba   :  { %12871 = vst [vmem:[#allocation53_spill] sm:$0xff] %v8853_v55  ;;  %5901 = vmatprep.subr.mxu0 %v8860_v52  ;;  %v8872_v29 = vld [vmem:[%s12386_s5 + $0x30] sm:$0xff]  ;;  %6424 = vmatpush3.msra.mxu1 %v8926_v23  ;;  %v8970_v23 = vld [vmem:[%s12386_s5 + $0x8] sm:$0xff] }
 0x1bb   :  { %12874 = vst [vmem:[#allocation56_spill] sm:$0xff] %v8872_v29  ;;  %v8874_v55 = vpop.f32.mrf.mxu1  ;;  %5902 = vmatpush3.msra.mxu0 %v8872_v29  ;;  %v8895_v33 = vpop.f32.mrf.mxu0  ;;  %6425 = vmatprep.subr.mxu1 %v8943_v11  ;;  %12893 = vst [vmem:[#allocation75_spill] sm:$0xff] %v8970_v23 }
 0x1bc   :  { %12875 = vst [vmem:[#allocation57_spill] sm:$0xff] %v8874_v55  ;;  %5903 = vmatprep.subr.mxu0 %v8881_v51  ;;  %v8893_v55 = vld [vmem:[%s12386_s5 + $0x28] sm:$0xff]  ;;  %12879 = vst [vmem:[#allocation61_spill] sm:$0xff] %v8895_v33  ;;  %v8921_v33 = vld [vmem:[%s12386_s5 + $0x98] sm:$0xff]  ;;  %6426 = vmatpush3.msra.mxu1 %v8943_v11 }
 0x1bd   :  { %12878 = vst [vmem:[#allocation60_spill] sm:$0xff] %v8893_v55  ;;  %v1429_v6 = vpop.f32.mrf.mxu1  ;;  %5904 = vmatpush3.msra.mxu0 %v8893_v55  ;;  %12883 = vst [vmem:[#allocation65_spill] sm:$0xff] %v8921_v33  ;;  %v8945_v12 = vpop.f32.mrf.mxu0 }
 0x1be   :  { %5905 = vmatprep.subr.mxu0 %v8902_v58  ;;  %v8914_v6 = vld [vmem:[%s12386_s5 + $0x20] sm:$0xff]  ;;  %12888 = vst [vmem:[#allocation70_spill] sm:$0xff] %v8945_v12 }
 0x1bf   :  { %12882 = vst [vmem:[#allocation64_spill] sm:$0xff] %v8914_v6  ;;  %5906 = vmatpush3.msra.mxu0 %v8914_v6 }
 0x1c0   :  { %5907 = vmatprep.subr.mxu0 %v8921_v33  ;;  %v8952_v33 = vld [vmem:[%s12386_s5 + $0x10] sm:$0xff] }
 0x1c1   :  { %5908 = vmatpush3.msra.mxu0 %v8933_v50  ;;  %12889 = vst [vmem:[#allocation71_spill] sm:$0xff] %v8952_v33  ;;  %v8975_v50 = vld [vmem:[%s12386_s5 + $0x80] sm:$0xff] }
 0x1c2   :  { %5909 = vmatprep.subr.mxu0 %v8938_v61  ;;  %12894 = vst [vmem:[#allocation76_spill] sm:$0xff] %v8975_v50 }
 0x1c3   :  { %v8961_v6 = vpop.f32.mrf.mxu0  ;;  %v8963_v12 = vpop.f32.mrf.mxu1  ;;  %5910 = vmatpush3.msra.mxu0 %v8952_v33 }
 0x1c4   :  { %12891 = vst [vmem:[#allocation73_spill] sm:$0xff] %v8961_v6  ;;  %12892 = vst [vmem:[#allocation74_spill] sm:$0xff] %v8963_v12  ;;  %5911 = vmatprep.subr.mxu0 %v8957_v30  ;;  %v8981_v12 = vld [vmem:[%s12386_s5] sm:$0xff]  ;;  %v8983_v6 = vld [vmem:[#allocation8 + $0x2f8] sm:$0xff] }
 0x1c5   :  { %12895 = vst [vmem:[#allocation77_spill] sm:$0xff] %v8981_v12  ;;  %12896 = vst [vmem:[#allocation78_spill] sm:$0xff] %v8983_v6  ;;  %2377 = vmatprep.subr.mxu1 %v8983_v6  ;;  %v8986_v11 = vpop.f32.mrf.mxu0  ;;  %v1434_v33 = vpop.f32.mrf.mxu1  ;;  %5912 = vmatpush3.msra.mxu0 %v8970_v23  ;;  %v8995_v30 = vld [vmem:[#allocation8 + $0xf8] sm:$0xff] }
 0x1c6   :  { %12897 = vst [vmem:[#allocation79_spill] sm:$0xff] %v8986_v11  ;;  %5913 = vmatprep.subr.mxu0 %v8975_v50  ;;  %12900 = vst [vmem:[#allocation82_spill] sm:$0xff] %v8995_v30 }
 0x1c7   :  { %v8990_v61 = vpop.f32.mrf.mxu0  ;;  %v8992_v58 = vpop.f32.mrf.mxu1  ;;  %5914 = vmatpush3.msra.mxu0 %v8981_v12 }
 0x1c8   :  { %12898 = vst [vmem:[#allocation80_spill] sm:$0xff] %v8990_v61  ;;  %12899 = vst [vmem:[#allocation81_spill] sm:$0xff] %v8992_v58  ;;  %2288 = vmatprep.subr.mxu0 %v8995_v30 }
 0x1c9   :  { %v8998_v27 = vpop.f32.mrf.mxu0  ;;  %v1439_v6 = vpop.f32.mrf.mxu1 }
 0x1ca   :  { %12901 = vst [vmem:[#allocation83_spill] sm:$0xff] %v8998_v27 }
 0x1cb   :  { %v9000_v55 = vpop.f32.mrf.mxu0  ;;  %v9002_v33 = vpop.f32.mrf.mxu1 }
 0x1cc   :  { %12902 = vst [vmem:[#allocation84_spill] sm:$0xff] %v9000_v55  ;;  %12903 = vst [vmem:[#allocation85_spill] sm:$0xff] %v9002_v33 }
 0x1cd   :  { %v9004_v11 = vpop.f32.mrf.mxu0  ;;  %v1444_v50 = vpop.f32.mrf.mxu1 }
 0x1ce   :  { %12904 = vst [vmem:[#allocation86_spill] sm:$0xff] %v9004_v11 }
 0x1cf   :  { %v9006_v23 = vpop.f32.mrf.mxu1  ;;  %v9008_v61 = vpop.f32.mrf.mxu0 }
 0x1d0   :  { %12905 = vst [vmem:[#allocation87_spill] sm:$0xff] %v9006_v23  ;;  %12906 = vst [vmem:[#allocation88_spill] sm:$0xff] %v9008_v61 }
 0x1d1   :  { %v1449_v58 = vpop.f32.mrf.mxu1  ;;  %v9010_v12 = vpop.f32.mrf.mxu0 }
 0x1d2   :  { %12907 = vst [vmem:[#allocation89_spill] sm:$0xff] %v9010_v12 }
 0x1d7   :  { %v9012_v51 = vpop.f32.mrf.mxu0  ;;  %v9014_v30 = vpop.f32.mrf.mxu1 }
 0x1d8   :  { %12908 = vst [vmem:[#allocation90_spill] sm:$0xff] %v9012_v51  ;;  %12909 = vst [vmem:[#allocation91_spill] sm:$0xff] %v9014_v30 }
 0x1d9   :  { %v9016_v27 = vpop.f32.mrf.mxu0  ;;  %v1454_v6 = vpop.f32.mrf.mxu1 }
 0x1da   :  { %12910 = vst [vmem:[#allocation92_spill] sm:$0xff] %v9016_v27 }
 0x1db   :  { %v9018_v55 = vpop.f32.mrf.mxu0  ;;  %v9020_v33 = vpop.f32.mrf.mxu1 }
 0x1dc   :  { %12911 = vst [vmem:[#allocation93_spill] sm:$0xff] %v9018_v55  ;;  %12912 = vst [vmem:[#allocation94_spill] sm:$0xff] %v9020_v33 }
 0x1dd   :  { %v9022_v11 = vpop.f32.mrf.mxu0  ;;  %v1459_v50 = vpop.f32.mrf.mxu1 }
 0x1de   :  { %12913 = vst [vmem:[#allocation95_spill] sm:$0xff] %v9022_v11 }
 0x1df   :  { %v9024_v23 = vpop.f32.mrf.mxu0  ;;  %v9026_v61 = vpop.f32.mrf.mxu1 }
 0x1e0   :  { %12914 = vst [vmem:[#allocation96_spill] sm:$0xff] %v9024_v23  ;;  %12915 = vst [vmem:[#allocation97_spill] sm:$0xff] %v9026_v61 }
 0x1e1   :  { %v9028_v58 = vpop.f32.mrf.mxu0  ;;  %v1464_v12 = vpop.f32.mrf.mxu1 }
 0x1e2   :  { %12916 = vst [vmem:[#allocation98_spill] sm:$0xff] %v9028_v58 }
 0x1e3   :  { %v9030_v51 = vpop.f32.mrf.mxu1  ;;  %v9032_v30 = vpop.f32.mrf.mxu0 }
 0x1e4   :  { %12917 = vst [vmem:[#allocation99_spill] sm:$0xff] %v9030_v51  ;;  %12918 = vst [vmem:[#allocation100_spill] sm:$0xff] %v9032_v30 }
 0x1e5   :  { %v1469_v27 = vpop.f32.mrf.mxu1  ;;  %v9034_v6 = vpop.f32.mrf.mxu0 }
 0x1e6   :  { %12919 = vst [vmem:[#allocation101_spill] sm:$0xff] %v9034_v6 }
 0x1eb   :  { %v9036_v55 = vpop.f32.mrf.mxu0  ;;  %v9038_v33 = vpop.f32.mrf.mxu1 }
 0x1ec   :  { %12920 = vst [vmem:[#allocation102_spill] sm:$0xff] %v9036_v55  ;;  %12921 = vst [vmem:[#allocation103_spill] sm:$0xff] %v9038_v33 }
 0x1ed   :  { %v9040_v11 = vpop.f32.mrf.mxu0  ;;  %v1474_v50 = vpop.f32.mrf.mxu1 }
 0x1ee   :  { %12922 = vst [vmem:[#allocation104_spill] sm:$0xff] %v9040_v11 }
 0x1ef   :  { %v9042_v23 = vpop.f32.mrf.mxu0  ;;  %v9044_v61 = vpop.f32.mrf.mxu1 }
 0x1f0   :  { %12923 = vst [vmem:[#allocation105_spill] sm:$0xff] %v9042_v23  ;;  %12924 = vst [vmem:[#allocation106_spill] sm:$0xff] %v9044_v61 }
 0x1f1   :  { %v9046_v58 = vpop.f32.mrf.mxu0  ;;  %v1479_v12 = vpop.f32.mrf.mxu1 }
 0x1f2   :  { %12925 = vst [vmem:[#allocation107_spill] sm:$0xff] %v9046_v58 }
 0x1f3   :  { %v9048_v51 = vpop.f32.mrf.mxu0  ;;  %v9050_v30 = vpop.f32.mrf.mxu1 }
 0x1f4   :  { %12926 = vst [vmem:[#allocation108_spill] sm:$0xff] %v9048_v51  ;;  %12927 = vst [vmem:[#allocation109_spill] sm:$0xff] %v9050_v30 }
 0x1f5   :  { %v9052_v27 = vpop.f32.mrf.mxu0  ;;  %v1484_v6 = vpop.f32.mrf.mxu1 }
 0x1f6   :  { %12928 = vst [vmem:[#allocation110_spill] sm:$0xff] %v9052_v27 }
 0x1f7   :  { %v9054_v55 = vpop.f32.mrf.mxu1  ;;  %v9056_v33 = vpop.f32.mrf.mxu0 }
 0x1f8   :  { %12929 = vst [vmem:[#allocation111_spill] sm:$0xff] %v9054_v55  ;;  %12930 = vst [vmem:[#allocation112_spill] sm:$0xff] %v9056_v33 }
 0x1f9   :  { %v1489_v11 = vpop.f32.mrf.mxu1  ;;  %v9058_v50 = vpop.f32.mrf.mxu0 }
 0x1fa   :  { %12931 = vst [vmem:[#allocation113_spill] sm:$0xff] %v9058_v50  ;;  %v920_v11 = vsub.s32 0, %v7786_v5 }
 0x1ff   :  { %v9060_v23 = vpop.f32.mrf.mxu0  ;;  %v9062_v61 = vpop.f32.mrf.mxu1 }
 0x200   :  { %12932 = vst [vmem:[#allocation114_spill] sm:$0xff] %v9060_v23  ;;  %12933 = vst [vmem:[#allocation115_spill] sm:$0xff] %v9062_v61  ;;  %v9080_v61 = vld [vmem:[%s12384_s3] sm:$0x7] }
 0x201   :  { %v9064_v58 = vpop.f32.mrf.mxu0  ;;  %v1494_v12 = vpop.f32.mrf.mxu1 }
 0x202   :  { %12934 = vst [vmem:[#allocation116_spill] sm:$0xff] %v9064_v58 }
 0x203   :  { %v9066_v51 = vpop.f32.mrf.mxu0  ;;  %v9068_v30 = vpop.f32.mrf.mxu1 }
 0x204   :  { %12935 = vst [vmem:[#allocation117_spill] sm:$0xff] %v9066_v51  ;;  %12936 = vst [vmem:[#allocation118_spill] sm:$0xff] %v9068_v30 }
 0x205   :  { %v9070_v27 = vpop.f32.mrf.mxu0  ;;  %v1499_v6 = vpop.f32.mrf.mxu1 }
 0x206   :  { %12937 = vst [vmem:[#allocation119_spill] sm:$0xff] %v9070_v27  ;;  %v9089_v6 = vrot.slane %v9080_v61, %v920_v11 }
 0x207   :  { %v9072_v55 = vpop.f32.mrf.mxu0  ;;  %v9074_v33 = vpop.f32.mrf.mxu1 }
 0x208   :  { %12938 = vst [vmem:[#allocation120_spill] sm:$0xff] %v9072_v55  ;;  %12939 = vst [vmem:[#allocation121_spill] sm:$0xff] %v9074_v33  ;;  %v1096_v50 = vadd.f32 %v8598_v25, %v9089_v6  ;;  %v1102_v11 = vadd.f32 %v8604_v28, %v9089_v6 }
 0x209   :  { %v9082_v58 = vpop.f32.mrf.mxu0  ;;  %v1504_v12 = vpop.f32.mrf.mxu1  ;;  %12943 = vst [vmem:[#allocation125_spill] sm:$0xff] %v9089_v6 }
 0x20a   :  { %12940 = vst [vmem:[#allocation122_spill] sm:$0xff] %v9082_v58 }
 0x20b   :  { %v9084_v51 = vpop.f32.mrf.mxu0  ;;  %v9086_v30 = vpop.f32.mrf.mxu1 }
 0x20c   :  { %12941 = vst [vmem:[#allocation123_spill] sm:$0xff] %v9084_v51  ;;  %12942 = vst [vmem:[#allocation124_spill] sm:$0xff] %v9086_v30 }
 0x20d   :  { %v9091_v27 = vpop.f32.mrf.mxu0  ;;  %v1509_v33 = vpop.f32.mrf.mxu1 }
 0x20e   :  { %12944 = vst [vmem:[#allocation126_spill] sm:$0xff] %v9091_v27 }
 0x20f   :  { %v1857_v55 = vpop.f32.mrf.mxu0  ;;  %v1946_v23 = vpop.f32.mrf.mxu1 }
 0x210   :  { %v1947_v40 = vadd.f32 %v1946_v23, %v1857_v55  ;;  %v1108_v55 = vadd.f32 %v8610_v38, %v9089_v6 }
 0x211   :  { %v9095_v29 = vpop.f32.mrf.mxu0  ;;  %v9097_v58 = vpop.f32.mrf.mxu1 }
 0x212   :  { %v1969_v12 = vadd.f32 %v1947_v40, %v1096_v50 }
 0x213   :  { %v1863_v51 = vpop.f32.mrf.mxu0  ;;  %v1952_v52 = vpop.f32.mrf.mxu1 }
 0x214   :  { %v5819_v30 = vmul.f32 -1.442695, %v1969_v12  ;;  %v1953_v21 = vadd.f32 %v1952_v52, %v1863_v51 }
 0x215   :  { %v1865_v27 = vpop.f32.mrf.mxu0  ;;  %v1954_v33 = vpop.f32.mrf.mxu1 }
 0x216   :  { %6821 = vpow2.f32 %v5819_v30  ;;  %v1971_v26 = vadd.f32 %v1953_v21, %v1102_v11  ;;  %v9101_v19 = vadd.f32 %v1954_v33, %v1865_v27  ;;  %v1114_v30 = vadd.f32 %v8618_v62, %v9089_v6 }
 0x217   :  { %v1869_v25 = vpop.f32.mrf.mxu0  ;;  %v1958_v23 = vpop.f32.mrf.mxu1 }
 0x218   :  { %v5820_v4 = vmul.f32 -1.442695, %v1971_v26  ;;  %v1959_v40 = vadd.f32 %v1958_v23, %v1869_v25 }
 0x219   :  { %v1871_v50 = vpop.f32.mrf.mxu0  ;;  %v1960_v56 = vpop.f32.mrf.mxu1 }
 0x21a   :  { %6823 = vpow2.f32 %v5820_v4  ;;  %v1973_v53 = vadd.f32 %v1959_v40, %v1108_v55  ;;  %v9105_v28 = vadd.f32 %v1960_v56, %v1871_v50 }
 0x21b   :  { %v1875_v51 = vpop.f32.mrf.mxu0  ;;  %v1964_v52 = vpop.f32.mrf.mxu1 }
 0x21c   :  { %v5821_v21 = vmul.f32 -1.442695, %v1973_v53  ;;  %v1965_v27 = vadd.f32 %v1964_v52, %v1875_v51 }
 0x21e   :  { %6825 = vpow2.f32 %v5821_v21  ;;  %v1975_v12 = vadd.f32 %v1965_v27, %v1114_v30 }
 0x220   :  { %v5822_v11 = vmul.f32 -1.442695, %v1975_v12 }
 0x222   :  { %6827 = vpow2.f32 %v5822_v11 }
 0x223   :  { %v6822_v38 = vpop.eup %6821 }
 0x224   :  { %v1989_v26 = vadd.f32 1.0, %v6822_v38 }
 0x226   :  { %6829 = vrcp.f32 %v1989_v26 }
 0x227   :  { %v6824_v33 = vpop.eup %6823 }
 0x228   :  { %v1990_v25 = vadd.f32 1.0, %v6824_v33 }
 0x22a   :  { %6831 = vrcp.f32 %v1990_v25 }
 0x22b   :  { %v6826_v4 = vpop.eup %6825 }
 0x22c   :  { %v1991_v56 = vadd.f32 1.0, %v6826_v4 }
 0x22e   :  { %6833 = vrcp.f32 %v1991_v56 }
 0x22f   :  { %v6828_v23 = vpop.eup %6827 }
 0x230   :  { %v1992_v55 = vadd.f32 1.0, %v6828_v23 }
 0x232   :  { %6835 = vrcp.f32 %v1992_v55 }
 0x233   :  { %v6830_v40 = vpop.eup %6829 }
 0x234   :  { %v2025_v62 = vmul.f32 %v6830_v40, %v8527_v41 }
 0x236   :  { %2117 = vmatprep.mubr.f32.mxu0 %v2025_v62  ;;  %v2029_v51 = vrot.slane %v2025_v62, 7  ;;  %v2041_v52 = vrot.slane %v2025_v62, 1 }
 0x237   :  { %v6832_v53 = vpop.eup %6831 }
 0x238   :  { %v2026_v50 = vmul.f32 %v6832_v53, %v8549_v10 }
 0x23a   :  { %v2042_v30 = vrot.slane %v2026_v50, 1  ;;  %v2030_v21 = vrot.slane %v2026_v50, 7 }
 0x23b   :  { %v6834_v27 = vpop.eup %6833 }
 0x23c   :  { %v2027_v12 = vmul.f32 %v6834_v27, %v8557_v57  ;;  %v2047_v11 = vsel %vm458_vm0, %v2041_v52, %v2042_v30  ;;  %v2035_v38 = vsel %vm201_vm1, %v2029_v51, %v2030_v21 }
 0x23d   :  { %v2049_v26 = vmul.f32 %v2047_v11, %v12826_v9 }
 0x23e   :  { %v2043_v41 = vrot.slane %v2027_v12, 1  ;;  %v2031_v33 = vrot.slane %v2027_v12, 7 }
 0x23f   :  { %v6836_v25 = vpop.eup %6835  ;;  %6427 = vmatprep.mubr.f32.mxu1 %v2049_v26  ;;  %v9140_v26 = vld [vmem:[#allocation8 + $0x2e0] sm:$0xff] }
 0x240   :  { %v2028_v10 = vmul.f32 %v6836_v25, %v8536_v54  ;;  %v2046_v4 = vsel %vm458_vm0, %v2042_v30, %v2043_v41  ;;  %v2034_v57 = vsel %vm201_vm1, %v2030_v21, %v2031_v33  ;;  %v9131_v30 = vld [vmem:[#allocation8 + $0x2f0] sm:$0xff]  ;;  %v9150_v25 = vld [vmem:[#allocation8 + $0xe8] sm:$0xff] }
 0x241   :  { %v2050_v56 = vmul.f32 %v2046_v4, %v12827_v18  ;;  %v9153_v4 = vld [vmem:[#allocation8 + $0x2d0] sm:$0xff] }
 0x242   :  { %v2032_v23 = vrot.slane %v2028_v10, 7  ;;  %v2044_v55 = vrot.slane %v2028_v10, 1 }
 0x243   :  { %6428 = vmatmul.mubr.f32.vlgmr.msra.gmra.mxu1 %v2050_v56  ;;  %v2039_v56 = vmul.f32 %v2034_v57, %v12828_v35  ;;  %v9178_v57 = vld [vmem:[#allocation8 + $0xc0] sm:$0xff] }
 0x244   :  { %v2036_v40 = vsel %vm201_vm1, %v2032_v23, %v2029_v51  ;;  %v2045_v62 = vsel %vm458_vm0, %v2043_v41, %v2044_v55  ;;  %v2048_v54 = vsel %vm458_vm0, %v2044_v55, %v2041_v52  ;;  %v2033_v53 = vsel %vm201_vm1, %v2031_v33, %v2032_v23  ;;  %2378 = vmatpush1.msra.mxu1 %v9131_v30  ;;  %v9137_v51 = vld [vmem:[#allocation8 + $0x2e8] sm:$0xff]  ;;  %v9144_v41 = vld [vmem:[#allocation8 + $0xf0] sm:$0xff]  ;;  %v9147_v33 = vld [vmem:[#allocation8 + $0x2d8] sm:$0xff] }
 0x245   :  { %v2037_v21 = vmul.f32 %v2036_v40, %v12825_v42  ;;  %v2051_v27 = vmul.f32 %v2045_v62, %v12829_v46  ;;  %v2052_v11 = vmul.f32 %v2048_v54, %v12830_v39  ;;  %2379 = vmatprep.subr.mxu1 %v9137_v51  ;;  %v2038_v52 = vmul.f32 %v2035_v38, %v8234_v2  ;;  %v9159_v38 = vld [vmem:[#allocation8 + $0xe0] sm:$0xff]  ;;  %v9163_v23 = vld [vmem:[#allocation8 + $0xd8] sm:$0xff]  ;;  %v9169_v40 = vld [vmem:[#allocation8 + $0xd0] sm:$0xff] }
 0x246   :  { %2380 = vmatpush1.msra.mxu1 %v9140_v26  ;;  %v9166_v55 = vld [vmem:[#allocation8 + $0x2c0] sm:$0xff]  ;;  %v9172_v62 = vld [vmem:[#allocation8 + $0x2b8] sm:$0xff]  ;;  %12947 = vst [vmem:[#allocation129_spill] sm:$0xff] %v9178_v57  ;;  %v2040_v54 = vmul.f32 %v2033_v53, %v8283_v49 }
 0x247   :  { %2118 = vmatmul.mubr.f32.vlgmr.msra.gmra.mxu0 %v2037_v21  ;;  %6430 = vmatprep.mubr.f32.mxu1 %v2051_v27  ;;  %12945 = vst [vmem:[#allocation127_spill] sm:$0xff] %v9172_v62  ;;  %v9182_v21 = vld [vmem:[#allocation8 + $0xb8] sm:$0xff]  ;;  %v9185_v27 = vld [vmem:[#allocation8 + $0x2b0] sm:$0xff]  ;;  %v9197_v53 = vld [vmem:[#allocation8 + $0xa0] sm:$0xff] }
 0x248   :  { %2122 = vmatprep.mubr.f32.mxu0 %v2026_v50  ;;  %6431 = vmatmul.mubr.f32.gmra.mxu1 %v2052_v11  ;;  %v9156_v50 = vld [vmem:[#allocation8 + $0x2c8] sm:$0xff]  ;;  %12948 = vst [vmem:[#allocation130_spill] sm:$0xff] %v9182_v21  ;;  %12949 = vst [vmem:[#allocation131_spill] sm:$0xff] %v9185_v27  ;;  %v9188_v11 = vld [vmem:[#allocation8 + $0xb0] sm:$0xff] }
 0x249   :  { %2289 = vmatpush1.msra.mxu0 %v9144_v41  ;;  %2381 = vmatprep.subr.mxu1 %v9147_v33  ;;  %12950 = vst [vmem:[#allocation132_spill] sm:$0xff] %v9188_v11  ;;  %12953 = vst [vmem:[#allocation135_spill] sm:$0xff] %v9197_v53 }
 0x24a   :  { %2290 = vmatprep.subr.mxu0 %v9150_v25  ;;  %2382 = vmatpush1.msra.mxu1 %v9153_v4 }
 0x24b   :  { %2123 = vmatmul.mubr.f32.gmra.mxu0 %v2038_v52  ;;  %2383 = vmatprep.subr.mxu1 %v9156_v50  ;;  %v9191_v52 = vld [vmem:[#allocation8 + $0x2a8] sm:$0xff] }
 0x24c   :  { %2127 = vmatprep.mubr.f32.mxu0 %v2027_v12  ;;  %2291 = vmatpush1.msra.mxu0 %v9159_v38  ;;  %v9175_v12 = vld [vmem:[#allocation8 + $0xc8] sm:$0xff]  ;;  %12951 = vst [vmem:[#allocation133_spill] sm:$0xff] %v9191_v52 }
 0x24d   :  { %2292 = vmatprep.subr.mxu0 %v9163_v23  ;;  %2384 = vmatpush1.msra.mxu1 %v9166_v55  ;;  %12946 = vst [vmem:[#allocation128_spill] sm:$0xff] %v9175_v12 }
 0x24e   :  { %2293 = vmatpush1.msra.mxu0 %v9169_v40  ;;  %2385 = vmatprep.subr.mxu1 %v9172_v62 }
 0x24f   :  { %2128 = vmatmul.mubr.f32.gmra.mxu0 %v2039_v56  ;;  %2294 = vmatprep.subr.mxu0 %v9175_v12  ;;  %v9200_v56 = vld [vmem:[#allocation8 + $0x2a0] sm:$0xff] }
 0x250   :  { %2132 = vmatprep.mubr.f32.mxu0 %v2028_v10  ;;  %2295 = vmatpush1.msra.mxu0 %v9178_v57  ;;  %v9194_v10 = vld [vmem:[#allocation8 + $0xa8] sm:$0xff]  ;;  %12954 = vst [vmem:[#allocation136_spill] sm:$0xff] %v9200_v56 }
 0x251   :  { %2296 = vmatprep.subr.mxu0 %v9182_v21  ;;  %2386 = vmatpush1.msra.mxu1 %v9185_v27  ;;  %12952 = vst [vmem:[#allocation134_spill] sm:$0xff] %v9194_v10  ;;  %v9203_v27 = vld [vmem:[#allocation8 + $0x98] sm:$0xff]  ;;  %v1877_v21 = vpop.f32.mrf.mxu0 }
 0x252   :  { %2297 = vmatpush1.msra.mxu0 %v9188_v11  ;;  %2387 = vmatprep.subr.mxu1 %v9191_v52  ;;  %12955 = vst [vmem:[#allocation137_spill] sm:$0xff] %v9203_v27  ;;  %v9206_v11 = vld [vmem:[#allocation8 + $0x298] sm:$0xff] }
 0x253   :  { %2133 = vmatmul.mubr.f32.gmra.mxu0 %v2040_v54  ;;  %2298 = vmatprep.subr.mxu0 %v9194_v10  ;;  %12956 = vst [vmem:[#allocation138_spill] sm:$0xff] %v9206_v11  ;;  %v9209_v54 = vld [vmem:[#allocation8 + $0x90] sm:$0xff] }
 0x254   :  { %2299 = vmatpush1.msra.mxu0 %v9197_v53  ;;  %2388 = vmatpush1.msra.mxu1 %v9200_v56  ;;  %12957 = vst [vmem:[#allocation139_spill] sm:$0xff] %v9209_v54  ;;  %v9212_v10 = vld [vmem:[#allocation8 + $0x290] sm:$0xff]  ;;  %v9215_v53 = vld [vmem:[#allocation8 + $0x88] sm:$0xff] }
 0x255   :  { %2300 = vmatprep.subr.mxu0 %v9203_v27  ;;  %2389 = vmatprep.subr.mxu1 %v9206_v11  ;;  %12958 = vst [vmem:[#allocation140_spill] sm:$0xff] %v9212_v10  ;;  %12959 = vst [vmem:[#allocation141_spill] sm:$0xff] %v9215_v53  ;;  %v9218_v56 = vld [vmem:[#allocation8 + $0x288] sm:$0xff]  ;;  %v9221_v27 = vld [vmem:[#allocation8 + $0x80] sm:$0xff] }
 0x256   :  { %2301 = vmatpush1.msra.mxu0 %v9209_v54  ;;  %2390 = vmatpush1.msra.mxu1 %v9212_v10  ;;  %12960 = vst [vmem:[#allocation142_spill] sm:$0xff] %v9218_v56  ;;  %12961 = vst [vmem:[#allocation143_spill] sm:$0xff] %v9221_v27  ;;  %v9224_v11 = vld [vmem:[#allocation8 + $0x280] sm:$0xff]  ;;  %v9227_v54 = vld [vmem:[#allocation8 + $0x78] sm:$0xff] }
 0x257   :  { %2302 = vmatprep.subr.mxu0 %v9215_v53  ;;  %2391 = vmatprep.subr.mxu1 %v9218_v56  ;;  %12962 = vst [vmem:[#allocation144_spill] sm:$0xff] %v9224_v11  ;;  %12963 = vst [vmem:[#allocation145_spill] sm:$0xff] %v9227_v54  ;;  %v9230_v10 = vld [vmem:[#allocation8 + $0x278] sm:$0xff]  ;;  %v9233_v53 = vld [vmem:[#allocation8 + $0x70] sm:$0xff] }
 0x258   :  { %2303 = vmatpush1.msra.mxu0 %v9221_v27  ;;  %2392 = vmatpush1.msra.mxu1 %v9224_v11  ;;  %12964 = vst [vmem:[#allocation146_spill] sm:$0xff] %v9230_v10  ;;  %12965 = vst [vmem:[#allocation147_spill] sm:$0xff] %v9233_v53  ;;  %v9236_v56 = vld [vmem:[#allocation8 + $0x270] sm:$0xff]  ;;  %v9239_v27 = vld [vmem:[#allocation8 + $0x68] sm:$0xff] }
 0x259   :  { %2304 = vmatprep.subr.mxu0 %v9227_v54  ;;  %2393 = vmatprep.subr.mxu1 %v9230_v10  ;;  %12966 = vst [vmem:[#allocation148_spill] sm:$0xff] %v9236_v56  ;;  %12967 = vst [vmem:[#allocation149_spill] sm:$0xff] %v9239_v27  ;;  %v9242_v11 = vld [vmem:[#allocation8 + $0x268] sm:$0xff]  ;;  %v9245_v54 = vld [vmem:[#allocation8 + $0x60] sm:$0xff] }
 0x25a   :  { %2305 = vmatpush1.msra.mxu0 %v9233_v53  ;;  %2394 = vmatpush1.msra.mxu1 %v9236_v56  ;;  %12968 = vst [vmem:[#allocation150_spill] sm:$0xff] %v9242_v11  ;;  %12969 = vst [vmem:[#allocation151_spill] sm:$0xff] %v9245_v54  ;;  %v9248_v10 = vld [vmem:[#allocation8 + $0x260] sm:$0xff]  ;;  %v9251_v53 = vld [vmem:[#allocation8 + $0x58] sm:$0xff] }
 0x25b   :  { %2306 = vmatprep.subr.mxu0 %v9239_v27  ;;  %2395 = vmatprep.subr.mxu1 %v9242_v11  ;;  %12970 = vst [vmem:[#allocation152_spill] sm:$0xff] %v9248_v10  ;;  %12971 = vst [vmem:[#allocation153_spill] sm:$0xff] %v9251_v53  ;;  %v9254_v56 = vld [vmem:[#allocation8 + $0x258] sm:$0xff]  ;;  %v9257_v27 = vld [vmem:[#allocation8 + $0x50] sm:$0xff] }
 0x25c   :  { %2307 = vmatpush1.msra.mxu0 %v9245_v54  ;;  %2396 = vmatpush1.msra.mxu1 %v9248_v10  ;;  %12972 = vst [vmem:[#allocation154_spill] sm:$0xff] %v9254_v56  ;;  %12973 = vst [vmem:[#allocation155_spill] sm:$0xff] %v9257_v27  ;;  %v9260_v11 = vld [vmem:[#allocation8 + $0x250] sm:$0xff]  ;;  %v9263_v54 = vld [vmem:[#allocation8 + $0x48] sm:$0xff] }
 0x25d   :  { %2308 = vmatprep.subr.mxu0 %v9251_v53  ;;  %2397 = vmatprep.subr.mxu1 %v9254_v56  ;;  %12974 = vst [vmem:[#allocation156_spill] sm:$0xff] %v9260_v11  ;;  %12975 = vst [vmem:[#allocation157_spill] sm:$0xff] %v9263_v54  ;;  %v9266_v10 = vld [vmem:[#allocation8 + $0x248] sm:$0xff]  ;;  %v9269_v53 = vld [vmem:[#allocation8 + $0x40] sm:$0xff] }
 0x25e   :  { %2309 = vmatpush1.msra.mxu0 %v9257_v27  ;;  %2398 = vmatpush1.msra.mxu1 %v9260_v11  ;;  %12976 = vst [vmem:[#allocation158_spill] sm:$0xff] %v9266_v10  ;;  %12977 = vst [vmem:[#allocation159_spill] sm:$0xff] %v9269_v53  ;;  %v9272_v56 = vld [vmem:[#allocation8 + $0x240] sm:$0xff]  ;;  %v9275_v27 = vld [vmem:[#allocation8 + $0x38] sm:$0xff] }
 0x25f   :  { %2310 = vmatprep.subr.mxu0 %v9263_v54  ;;  %2399 = vmatprep.subr.mxu1 %v9266_v10  ;;  %12978 = vst [vmem:[#allocation160_spill] sm:$0xff] %v9272_v56  ;;  %12979 = vst [vmem:[#allocation161_spill] sm:$0xff] %v9275_v27  ;;  %v9278_v11 = vld [vmem:[#allocation8 + $0x238] sm:$0xff]  ;;  %v9281_v54 = vld [vmem:[#allocation8 + $0x30] sm:$0xff] }
 0x260   :  { %2311 = vmatpush1.msra.mxu0 %v9269_v53  ;;  %2400 = vmatpush1.msra.mxu1 %v9272_v56  ;;  %12980 = vst [vmem:[#allocation162_spill] sm:$0xff] %v9278_v11  ;;  %12981 = vst [vmem:[#allocation163_spill] sm:$0xff] %v9281_v54  ;;  %v9284_v10 = vld [vmem:[#allocation8 + $0x230] sm:$0xff]  ;;  %v9287_v53 = vld [vmem:[#allocation8 + $0x28] sm:$0xff] }
 0x261   :  { %2312 = vmatprep.subr.mxu0 %v9275_v27  ;;  %2401 = vmatprep.subr.mxu1 %v9278_v11  ;;  %12982 = vst [vmem:[#allocation164_spill] sm:$0xff] %v9284_v10  ;;  %12983 = vst [vmem:[#allocation165_spill] sm:$0xff] %v9287_v53  ;;  %v9290_v56 = vld [vmem:[#allocation8 + $0x228] sm:$0xff]  ;;  %v9293_v27 = vld [vmem:[#allocation8 + $0x20] sm:$0xff] }
 0x262   :  { %2313 = vmatpush1.msra.mxu0 %v9281_v54  ;;  %2402 = vmatpush1.msra.mxu1 %v9284_v10  ;;  %12984 = vst [vmem:[#allocation166_spill] sm:$0xff] %v9290_v56  ;;  %12985 = vst [vmem:[#allocation167_spill] sm:$0xff] %v9293_v27  ;;  %v9296_v11 = vld [vmem:[#allocation8 + $0x220] sm:$0xff]  ;;  %v9299_v54 = vld [vmem:[#allocation8 + $0x18] sm:$0xff] }
 0x263   :  { %2314 = vmatprep.subr.mxu0 %v9287_v53  ;;  %2403 = vmatprep.subr.mxu1 %v9290_v56  ;;  %12986 = vst [vmem:[#allocation168_spill] sm:$0xff] %v9296_v11  ;;  %12987 = vst [vmem:[#allocation169_spill] sm:$0xff] %v9299_v54  ;;  %v9302_v10 = vld [vmem:[#allocation8 + $0x218] sm:$0xff]  ;;  %v9305_v53 = vld [vmem:[#allocation8 + $0x10] sm:$0xff] }
 0x264   :  { %2315 = vmatpush1.msra.mxu0 %v9293_v27  ;;  %2404 = vmatpush1.msra.mxu1 %v9296_v11  ;;  %12988 = vst [vmem:[#allocation170_spill] sm:$0xff] %v9302_v10  ;;  %12989 = vst [vmem:[#allocation171_spill] sm:$0xff] %v9305_v53  ;;  %v9308_v56 = vld [vmem:[#allocation8 + $0x210] sm:$0xff]  ;;  %v9311_v27 = vld [vmem:[#allocation8 + $0x8] sm:$0xff] }
 0x265   :  { %2316 = vmatprep.subr.mxu0 %v9299_v54  ;;  %2405 = vmatprep.subr.mxu1 %v9302_v10  ;;  %12990 = vst [vmem:[#allocation172_spill] sm:$0xff] %v9308_v56  ;;  %12991 = vst [vmem:[#allocation173_spill] sm:$0xff] %v9311_v27  ;;  %v9314_v11 = vld [vmem:[#allocation8 + $0x208] sm:$0xff]  ;;  %v9317_v54 = vld [vmem:[#allocation8] sm:$0xff] }
 0x266   :  { %2317 = vmatpush1.msra.mxu0 %v9305_v53  ;;  %2406 = vmatpush1.msra.mxu1 %v9308_v56  ;;  %12992 = vst [vmem:[#allocation174_spill] sm:$0xff] %v9314_v11  ;;  %12993 = vst [vmem:[#allocation175_spill] sm:$0xff] %v9317_v54  ;;  %v9320_v10 = vld [vmem:[#allocation8 + $0x200] sm:$0xff]  ;;  %v9323_v53 = vld [vmem:[#allocation8 + $0x1f8] sm:$0xff] }
 0x267   :  { %2318 = vmatprep.subr.mxu0 %v9311_v27  ;;  %2407 = vmatprep.subr.mxu1 %v9314_v11  ;;  %12994 = vst [vmem:[#allocation176_spill] sm:$0xff] %v9320_v10  ;;  %12995 = vst [vmem:[#allocation177_spill] sm:$0xff] %v9323_v53  ;;  %v9327_v56 = vld [vmem:[#allocation8 + $0x1f0] sm:$0xff]  ;;  %v9331_v11 = vld [vmem:[#allocation8 + $0x1e8] sm:$0xff] }
 0x268   :  { %2319 = vmatpush1.msra.mxu0 %v9317_v54  ;;  %2408 = vmatpush1.msra.mxu1 %v9320_v10  ;;  %12996 = vst [vmem:[#allocation178_spill] sm:$0xff] %v9327_v56  ;;  %12997 = vst [vmem:[#allocation179_spill] sm:$0xff] %v9331_v11  ;;  %v9334_v54 = vld [vmem:[#allocation8 + $0x1e0] sm:$0xff]  ;;  %v9337_v10 = vld [vmem:[#allocation8 + $0x1d8] sm:$0xff] }
 0x269   :  { %2320 = vmatprep.subr.mxu0 %v9323_v53  ;;  %2441 = vmatprep.mubr.f32.mxu1 %v12824_v43  ;;  %12998 = vst [vmem:[#allocation180_spill] sm:$0xff] %v9334_v54  ;;  %12999 = vst [vmem:[#allocation181_spill] sm:$0xff] %v9337_v10  ;;  %v9340_v53 = vld [vmem:[#allocation8 + $0x1d0] sm:$0xff]  ;;  %v9343_v27 = vld [vmem:[#allocation8 + $0x1c8] sm:$0xff] }
 0x26a   :  { %2321 = vmatpush2.msra.mxu0 %v9327_v56  ;;  %5947 = vmatprep.subr.mxu1 %v8679_v32  ;;  %13000 = vst [vmem:[#allocation182_spill] sm:$0xff] %v9340_v53  ;;  %13001 = vst [vmem:[#allocation183_spill] sm:$0xff] %v9343_v27  ;;  %v9346_v32 = vld [vmem:[#allocation8 + $0x1c0] sm:$0xff] }
 0x26b   :  { %2322 = vmatprep.subr.mxu0 %v9331_v11  ;;  %13002 = vst [vmem:[#allocation184_spill] sm:$0xff] %v9346_v32  ;;  %v9349_v11 = vld [vmem:[#allocation8 + $0x1b8] sm:$0xff] }
 0x26c   :  { %2323 = vmatpush2.msra.mxu0 %v9334_v54  ;;  %13003 = vst [vmem:[#allocation185_spill] sm:$0xff] %v9349_v11  ;;  %v9352_v54 = vld [vmem:[#allocation8 + $0x1b0] sm:$0xff] }
 0x26d   :  { %2324 = vmatprep.subr.mxu0 %v9337_v10  ;;  %13004 = vst [vmem:[#allocation186_spill] sm:$0xff] %v9352_v54  ;;  %v9355_v10 = vld [vmem:[#allocation8 + $0x1a8] sm:$0xff] }
 0x26e   :  { %2325 = vmatpush2.msra.mxu0 %v9340_v53  ;;  %13005 = vst [vmem:[#allocation187_spill] sm:$0xff] %v9355_v10  ;;  %v9358_v53 = vld [vmem:[#allocation8 + $0x1a0] sm:$0xff] }
 0x26f   :  { %2326 = vmatprep.subr.mxu0 %v9343_v27  ;;  %13006 = vst [vmem:[#allocation188_spill] sm:$0xff] %v9358_v53  ;;  %v9361_v27 = vld [vmem:[#allocation8 + $0x198] sm:$0xff] }
 0x270   :  { %2327 = vmatpush2.msra.mxu0 %v9346_v32  ;;  %13007 = vst [vmem:[#allocation189_spill] sm:$0xff] %v9361_v27  ;;  %v9364_v32 = vld [vmem:[#allocation8 + $0x190] sm:$0xff] }
 0x271   :  { %2328 = vmatprep.subr.mxu0 %v9349_v11  ;;  %13008 = vst [vmem:[#allocation190_spill] sm:$0xff] %v9364_v32  ;;  %v9367_v11 = vld [vmem:[#allocation8 + $0x188] sm:$0xff] }
 0x272   :  { %2329 = vmatpush2.msra.mxu0 %v9352_v54  ;;  %13009 = vst [vmem:[#allocation191_spill] sm:$0xff] %v9367_v11  ;;  %v9370_v54 = vld [vmem:[#allocation8 + $0x180] sm:$0xff] }
 0x273   :  { %2330 = vmatprep.subr.mxu0 %v9355_v10  ;;  %13010 = vst [vmem:[#allocation192_spill] sm:$0xff] %v9370_v54  ;;  %v9373_v10 = vld [vmem:[#allocation8 + $0x178] sm:$0xff] }
 0x274   :  { %2331 = vmatpush2.msra.mxu0 %v9358_v53  ;;  %13011 = vst [vmem:[#allocation193_spill] sm:$0xff] %v9373_v10  ;;  %v9376_v53 = vld [vmem:[#allocation8 + $0x170] sm:$0xff] }
 0x275   :  { %2332 = vmatprep.subr.mxu0 %v9361_v27  ;;  %13012 = vst [vmem:[#allocation194_spill] sm:$0xff] %v9376_v53  ;;  %v9379_v27 = vld [vmem:[#allocation8 + $0x168] sm:$0xff] }
 0x276   :  { %2333 = vmatpush2.msra.mxu0 %v9364_v32  ;;  %13013 = vst [vmem:[#allocation195_spill] sm:$0xff] %v9379_v27  ;;  %v9382_v32 = vld [vmem:[#allocation8 + $0x160] sm:$0xff] }
 0x277   :  { %2334 = vmatprep.subr.mxu0 %v9367_v11  ;;  %13014 = vst [vmem:[#allocation196_spill] sm:$0xff] %v9382_v32  ;;  %v9385_v11 = vld [vmem:[#allocation8 + $0x158] sm:$0xff] }
 0x278   :  { %2335 = vmatpush2.msra.mxu0 %v9370_v54  ;;  %13015 = vst [vmem:[#allocation197_spill] sm:$0xff] %v9385_v11  ;;  %v9388_v54 = vld [vmem:[#allocation8 + $0x150] sm:$0xff] }
 0x279   :  { %2336 = vmatprep.subr.mxu0 %v9373_v10  ;;  %13016 = vst [vmem:[#allocation198_spill] sm:$0xff] %v9388_v54  ;;  %v9391_v10 = vld [vmem:[#allocation8 + $0x148] sm:$0xff] }
 0x27a   :  { %2337 = vmatpush2.msra.mxu0 %v9376_v53  ;;  %13017 = vst [vmem:[#allocation199_spill] sm:$0xff] %v9391_v10  ;;  %v9394_v53 = vld [vmem:[#allocation8 + $0x140] sm:$0xff] }
 0x27b   :  { %2338 = vmatprep.subr.mxu0 %v9379_v27  ;;  %13018 = vst [vmem:[#allocation200_spill] sm:$0xff] %v9394_v53  ;;  %v9397_v27 = vld [vmem:[#allocation8 + $0x138] sm:$0xff] }
 0x27c   :  { %2339 = vmatpush2.msra.mxu0 %v9382_v32  ;;  %13019 = vst [vmem:[#allocation201_spill] sm:$0xff] %v9397_v27  ;;  %v9400_v32 = vld [vmem:[#allocation8 + $0x130] sm:$0xff] }
 0x27d   :  { %2340 = vmatprep.subr.mxu0 %v9385_v11  ;;  %13020 = vst [vmem:[#allocation202_spill] sm:$0xff] %v9400_v32  ;;  %v9403_v11 = vld [vmem:[#allocation8 + $0x128] sm:$0xff] }
 0x27e   :  { %2341 = vmatpush2.msra.mxu0 %v9388_v54  ;;  %13021 = vst [vmem:[#allocation203_spill] sm:$0xff] %v9403_v11  ;;  %v9406_v54 = vld [vmem:[#allocation8 + $0x120] sm:$0xff] }
 0x27f   :  { %2342 = vmatprep.subr.mxu0 %v9391_v10  ;;  %13022 = vst [vmem:[#allocation204_spill] sm:$0xff] %v9406_v54  ;;  %v9409_v10 = vld [vmem:[#allocation8 + $0x118] sm:$0xff] }
 0x280   :  { %2343 = vmatpush2.msra.mxu0 %v9394_v53  ;;  %13023 = vst [vmem:[#allocation205_spill] sm:$0xff] %v9409_v10  ;;  %v9412_v53 = vld [vmem:[#allocation8 + $0x110] sm:$0xff] }
 0x281   :  { %2344 = vmatprep.subr.mxu0 %v9397_v27  ;;  %13024 = vst [vmem:[#allocation206_spill] sm:$0xff] %v9412_v53  ;;  %v9415_v27 = vld [vmem:[#allocation8 + $0x108] sm:$0xff] }
 0x282   :  { %2345 = vmatpush2.msra.mxu0 %v9400_v32  ;;  %13025 = vst [vmem:[#allocation207_spill] sm:$0xff] %v9415_v27  ;;  %v9418_v32 = vld [vmem:[#allocation8 + $0x100] sm:$0xff] }
 0x283   :  { %2346 = vmatprep.subr.mxu0 %v9403_v11  ;;  %13026 = vst [vmem:[#allocation208_spill] sm:$0xff] %v9418_v32 }
 0x284   :  { %2347 = vmatpush2.msra.mxu0 %v9406_v54  ;;  %v924_v54 = vsub.s32 1, %v7786_v5 }
 0x285   :  { %2348 = vmatprep.subr.mxu0 %v9409_v10  ;;  %v1949_v10 = vadd.f32 %v9097_v58, %v9095_v29 }
 0x286   :  { %2349 = vmatpush2.msra.mxu0 %v9412_v53  ;;  %v9424_v11 = vrot.slane %v9080_v61, %v924_v54 }
 0x287   :  { %2350 = vmatprep.subr.mxu0 %v9415_v27 }
 0x288   :  { %2351 = vmatpush2.msra.mxu0 %v9418_v32  ;;  %13027 = vst [vmem:[#allocation209_spill] sm:$0xff] %v9424_v11  ;;  %v1098_v53 = vadd.f32 %v8602_v7, %v9424_v11  ;;  %v1104_v27 = vadd.f32 %v8608_v17, %v9424_v11  ;;  %v1110_v57 = vadd.f32 %v8614_v24, %v9424_v11 }
 0x289   :  { %6433 = vmatprep.subr.mxu0 %v8665_v0  ;;  %v1966_v0 = vpop.f32.mrf.mxu1  ;;  %v1116_v7 = vadd.f32 %v8620_v45, %v9424_v11 }
 0x28a   :  { %v1970_v56 = vadd.f32 %v1949_v10, %v1098_v53  ;;  %v1972_v32 = vadd.f32 %v9101_v19, %v1104_v27  ;;  %v1974_v12 = vadd.f32 %v9105_v28, %v1110_v57  ;;  %v1967_v29 = vadd.f32 %v1966_v0, %v1877_v21 }
 0x28c   :  { %v5823_v52 = vmul.f32 -1.442695, %v1970_v56  ;;  %v5824_v54 = vmul.f32 -1.442695, %v1972_v32  ;;  %v5825_v58 = vmul.f32 -1.442695, %v1974_v12  ;;  %v1976_v10 = vadd.f32 %v1967_v29, %v1116_v7 }
 0x28e   :  { %6837 = vpow2.f32 %v5823_v52  ;;  %v5826_v17 = vmul.f32 -1.442695, %v1976_v10  ;;  %v928_v52 = vsub.s32 2, %v7786_v5 }
 0x28f   :  { %6839 = vpow2.f32 %v5824_v54 }
 0x290   :  { %6841 = vpow2.f32 %v5825_v58  ;;  %v9440_v45 = vrot.slane %v9080_v61, %v928_v52 }
 0x291   :  { %6843 = vpow2.f32 %v5826_v17 }
 0x292   :  { %v1353_v58 = vadd.f32 %v8600_v22, %v9440_v45  ;;  %v1358_v61 = vadd.f32 %v8606_v20, %v9440_v45  ;;  %v7175_v22 = vld [vmem:[%s12382_s1] sm:$0xff] }
 0x29b   :  { %v6838_v19 = vpop.eup %6837 }
 0x29c   :  { %v2013_v27 = vadd.f32 1.0, %v6838_v19  ;;  %v6840_v53 = vpop.eup %6839 }
 0x29d   :  { %v2014_v56 = vadd.f32 1.0, %v6840_v53  ;;  %v6842_v24 = vpop.eup %6841 }
 0x29e   :  { %6845 = vrcp.f32 %v2013_v27  ;;  %v2015_v28 = vadd.f32 1.0, %v6842_v24  ;;  %v6844_v57 = vpop.eup %6843 }
 0x29f   :  { %6847 = vrcp.f32 %v2014_v56  ;;  %v2016_v12 = vadd.f32 1.0, %v6844_v57 }
 0x2a0   :  { %6849 = vrcp.f32 %v2015_v28 }
 0x2a1   :  { %6851 = vrcp.f32 %v2016_v12 }
 0x2ab   :  { %v6846_v17 = vpop.eup %6845 }
 0x2ac   :  { %v2235_v28 = vsub.f32 1.0, %v6846_v17  ;;  %v2231_v12 = vmul.f32 %v7175_v22, %v6846_v17  ;;  %v7176_v17 = vld [vmem:[%s12382_s1 + $0x8] sm:$0xff] }
 0x303   :  { %v6429_v21 = vpop.f32.mrf.mxu1 }
 0x305   :  { %v2204_v29 = vpop.f32.mrf.mxu1 }
 0x307   :  { %v5915_v32 = vpop.f32.mrf.mxu0 }
 0x308   :  { %v6432_v56 = vpop.f32.mrf.mxu1 }
 0x309   :  { %v5916_v0 = vpop.f32.mrf.mxu0 }
 0x30a   :  { %v5917_v54 = vadd.f32 %v5916_v0, %v5915_v32  ;;  %v6848_v32 = vpop.eup %6847 }
 0x30b   :  { %v5918_v7 = vpop.f32.mrf.mxu0 }
 0x30c   :  { %v2205_v10 = vadd.f32 %v5917_v54, %v2204_v29 }
 0x30d   :  { %v5919_v19 = vpop.f32.mrf.mxu0 }
 0x30e   :  { %v2223_v27 = vadd.f32 %v2205_v10, %v1353_v58  ;;  %v5920_v53 = vadd.f32 %v5919_v19, %v5918_v7  ;;  %v1363_v7 = vadd.f32 %v8612_v14, %v9440_v45  ;;  %v2214_v58 = vpop.f32.mrf.mxu1  ;;  %v1368_v14 = vadd.f32 %v8616_v8, %v9440_v45 }
 0x30f   :  { %v5921_v24 = vpop.f32.mrf.mxu0 }
 0x310   :  { %v2227_v52 = vmax.f32 %v2223_v27, 0.0  ;;  %v2210_v57 = vadd.f32 %v6429_v21, %v5920_v53  ;;  %v2236_v27 = vsub.f32 1.0, %v6848_v32  ;;  %v6850_v53 = vpop.eup %6849 }
 0x311   :  { %v5922_v0 = vpop.f32.mrf.mxu0 }
 0x312   :  { %v2239_v54 = vmul.f32 %v2235_v28, %v2227_v52  ;;  %v2224_v29 = vadd.f32 %v2210_v57, %v1358_v61  ;;  %v5923_v11 = vadd.f32 %v5922_v0, %v5921_v24  ;;  %v2232_v61 = vmul.f32 %v7176_v17, %v6848_v32 }
 0x313   :  { %v5924_v10 = vpop.f32.mrf.mxu0  ;;  %v2237_v0 = vsub.f32 1.0, %v6850_v53 }
 0x314   :  { %v9451_v19 = vadd.f32 %v2239_v54, %v2231_v12  ;;  %v2228_v20 = vmax.f32 %v2224_v29, 0.0  ;;  %v2215_v21 = vadd.f32 %v5923_v11, %v2214_v58  ;;  %v6852_v12 = vpop.eup %6851  ;;  %v7177_v54 = vld [vmem:[%s12382_s1 + $0x10] sm:$0xff] }
 0x315   :  { %v5925_v62 = vpop.f32.mrf.mxu0  ;;  %v2233_v29 = vmul.f32 %v7177_v54, %v6850_v53 }
 0x316   :  { %2247 = vst [vmem:[#allocation9] sm:$0xff] %v9451_v19  ;;  %v2240_v24 = vmul.f32 %v2236_v27, %v2228_v20  ;;  %v2225_v52 = vadd.f32 %v2215_v21, %v1363_v7  ;;  %v5926_v28 = vadd.f32 %v5925_v62, %v5924_v10  ;;  %2352 = vmatprep.mubr.f32.mxu0 %v9451_v19  ;;  %v2276_v7 = vrot.slane %v9451_v19, 1  ;;  %v7178_v21 = vld [vmem:[%s12382_s1 + $0x18] sm:$0xff] }
 0x317   :  { %v2238_v20 = vsub.f32 1.0, %v6852_v12  ;;  %v2234_v53 = vmul.f32 %v7178_v21, %v6852_v12  ;;  %v13033_v21 = vld [vmem:[#allocation43_spill] sm:$0xff] }
 0x318   :  { %v9460_v57 = vadd.f32 %v2240_v24, %v2232_v61  ;;  %v2229_v11 = vmax.f32 %v2225_v52, 0.0  ;;  %v2220_v22 = vadd.f32 %v6432_v56, %v5926_v28 }
 0x31a   :  { %2248 = vst [vmem:[#allocation9 + $0x8] sm:$0xff] %v9460_v57  ;;  %v2241_v32 = vmul.f32 %v2237_v0, %v2229_v11  ;;  %v2226_v62 = vadd.f32 %v2220_v22, %v1368_v14  ;;  %v2277_v58 = vrot.slane %v9460_v57, 1  ;;  %v2264_v14 = vrot.slane %v9451_v19, 7 }
 0x31b   :  { %v2265_v22 = vrot.slane %v9460_v57, 7 }
 0x31c   :  { %v9468_v8 = vadd.f32 %v2241_v32, %v2233_v29  ;;  %v2230_v10 = vmax.f32 %v2226_v62, 0.0  ;;  %v2282_v56 = vsel %vm458_vm0, %v2276_v7, %v2277_v58  ;;  %v9514_v62 = vld [vmem:[%s12386_s5 + $0x178] sm:$0xff] }
 0x31d   :  { %v2284_v27 = vmul.f32 %v2282_v56, %v12826_v9  ;;  %v13029_v56 = vld [vmem:[#allocation47_spill] sm:$0xff] }
 0x31e   :  { %2249 = vst [vmem:[#allocation9 + $0x10] sm:$0xff] %v9468_v8  ;;  %v2242_v17 = vmul.f32 %v2238_v20, %v2230_v10  ;;  %v2278_v61 = vrot.slane %v9468_v8, 1  ;;  %v2266_v29 = vrot.slane %v9468_v8, 7  ;;  %v9544_v10 = vld [vmem:[%s12386_s5 + $0x160] sm:$0xff]  ;;  %v9553_v20 = vld [vmem:[%s12386_s5 + $0x158] sm:$0xff] }
 0x31f   :  { %2442 = vmatmul.mubr.f32.vlgmr.msra.gmra.mxu1 %v2284_v27  ;;  %v13031_v27 = vld [vmem:[#allocation50_spill] sm:$0xff] }
 0x320   :  { %v9478_v24 = vadd.f32 %v2242_v17, %v2234_v53  ;;  %2447 = vmatprep.mubr.f32.mxu1 %v12824_v43  ;;  %v2281_v52 = vsel %vm458_vm0, %v2277_v58, %v2278_v61  ;;  %5948 = vmatpush3.msra.mxu1 %v8688_v44  ;;  %v9533_v58 = vld [vmem:[%s12386_s5 + $0x168] sm:$0xff]  ;;  %v13038_v17 = vld [vmem:[#allocation60_spill] sm:$0xff] }
 0x321   :  { %v2285_v28 = vmul.f32 %v2281_v52, %v12827_v18  ;;  %5949 = vmatprep.subr.mxu1 %v8696_v31  ;;  %v13036_v53 = vld [vmem:[#allocation46_spill] sm:$0xff] }
 0x322   :  { %2250 = vst [vmem:[#allocation9 + $0x18] sm:$0xff] %v9478_v24  ;;  %v2267_v11 = vrot.slane %v9478_v24, 7  ;;  %v2279_v0 = vrot.slane %v9478_v24, 1  ;;  %5950 = vmatpush3.msra.mxu1 %v8705_v36  ;;  %v2270_v36 = vsel %vm201_vm1, %v2264_v14, %v2265_v22  ;;  %v13040_v52 = vld [vmem:[#allocation62_spill] sm:$0xff] }
 0x323   :  { %2448 = vmatmul.mubr.f32.gmra.mxu1 %v2285_v28  ;;  %5951 = vmatprep.subr.mxu1 %v8711_v34  ;;  %v2273_v32 = vmul.f32 %v2270_v36, %v8234_v2  ;;  %v13041_v28 = vld [vmem:[#allocation64_spill] sm:$0xff]  ;;  %v13050_v36 = vld [vmem:[#allocation75_spill] sm:$0xff] }
 0x324   :  { %2453 = vmatprep.mubr.f32.mxu1 %v12824_v43  ;;  %v2271_v44 = vsel %vm201_vm1, %v2267_v11, %v2264_v14  ;;  %v2280_v31 = vsel %vm458_vm0, %v2278_v61, %v2279_v0  ;;  %5952 = vmatpush3.msra.mxu1 %v8720_v37  ;;  %v2283_v34 = vsel %vm458_vm0, %v2279_v0, %v2276_v7  ;;  %v9523_v7 = vld [vmem:[%s12386_s5 + $0x170] sm:$0xff] }
 0x325   :  { %v2272_v12 = vmul.f32 %v2271_v44, %v12825_v42  ;;  %v2286_v54 = vmul.f32 %v2280_v31, %v12829_v46  ;;  %5953 = vmatprep.subr.mxu1 %v8728_v15  ;;  %v2287_v37 = vmul.f32 %v2283_v34, %v12830_v39  ;;  %v2269_v15 = vsel %vm201_vm1, %v2265_v22, %v2266_v29  ;;  %v13039_v61 = vld [vmem:[#allocation51_spill] sm:$0xff]  ;;  %v13046_v44 = vld [vmem:[#allocation68_spill] sm:$0xff]  ;;  %v13051_v34 = vld [vmem:[#allocation66_spill] sm:$0xff] }
 0x326   :  { %5954 = vmatpush3.msra.mxu1 %v8740_v60  ;;  %v2274_v60 = vmul.f32 %v2269_v15, %v12828_v35  ;;  %v13042_v14 = vld [vmem:[#allocation55_spill] sm:$0xff]  ;;  %v13055_v15 = vld [vmem:[#allocation82_spill] sm:$0xff] }
 0x327   :  { %2353 = vmatmul.mubr.f32.vlgmr.msra.gmra.mxu0 %v2272_v12  ;;  %2454 = vmatmul.mubr.f32.gmra.mxu1 %v2286_v54  ;;  %v13044_v0 = vld [vmem:[#allocation67_spill] sm:$0xff]  ;;  %v13049_v54 = vld [vmem:[#allocation72_spill] sm:$0xff] }
 0x328   :  { %2358 = vmatprep.mubr.f32.mxu0 %v9460_v57  ;;  %2459 = vmatprep.mubr.f32.mxu1 %v12824_v43  ;;  %v13045_v22 = vld [vmem:[#allocation59_spill] sm:$0xff] }
 0x329   :  { %6434 = vmatpush3.msra.mxu0 %v9514_v62  ;;  %5955 = vmatprep.subr.mxu1 %v8751_v48  ;;  %v2268_v48 = vsel %vm201_vm1, %v2266_v29, %v2267_v11  ;;  %v13043_v11 = vld [vmem:[#allocation65_spill] sm:$0xff]  ;;  %v13047_v31 = vld [vmem:[#allocation71_spill] sm:$0xff]  ;;  %v13052_v29 = vld [vmem:[#allocation76_spill] sm:$0xff] }
 0x32a   :  { %6435 = vmatprep.subr.mxu0 %v9523_v7  ;;  %5956 = vmatpush3.msra.mxu1 %v8763_v1  ;;  %v2275_v1 = vmul.f32 %v2268_v48, %v8283_v49  ;;  %v13048_v12 = vld [vmem:[#allocation63_spill] sm:$0xff] }
 0x32b   :  { %2359 = vmatmul.mubr.f32.gmra.mxu0 %v2273_v32  ;;  %2460 = vmatmul.mubr.f32.gmra.mxu1 %v2287_v37  ;;  %v13053_v32 = vld [vmem:[#allocation77_spill] sm:$0xff] }
 0x32c   :  { %2364 = vmatprep.mubr.f32.mxu0 %v9468_v8  ;;  %6436 = vmatpush3.msra.mxu0 %v9523_v7  ;;  %v13054_v37 = vld [vmem:[#allocation69_spill] sm:$0xff] }
 0x32d   :  { %6437 = vmatprep.subr.mxu0 %v9533_v58  ;;  %5957 = vmatprep.subr.mxu1 %v8772_v47  ;;  %v13028_v47 = vld [vmem:[#allocation45_spill] sm:$0xff] }
 0x32e   :  { %6438 = vmatpush3.msra.mxu0 %v9533_v58  ;;  %5958 = vmatpush3.msra.mxu1 %v8784_v3  ;;  %v13030_v3 = vld [vmem:[#allocation40_spill] sm:$0xff] }
 0x32f   :  { %2365 = vmatmul.mubr.f32.gmra.mxu0 %v2274_v60  ;;  %6439 = vmatprep.subr.mxu0 %v9544_v10  ;;  %v13056_v60 = vld [vmem:[#allocation78_spill] sm:$0xff] }
 0x330   :  { %2370 = vmatprep.mubr.f32.mxu0 %v9478_v24  ;;  %6440 = vmatpush3.msra.mxu0 %v9544_v10 }
 0x331   :  { %6441 = vmatprep.subr.mxu0 %v9553_v20  ;;  %5959 = vmatprep.subr.mxu1 %v8795_v59  ;;  %v13032_v59 = vld [vmem:[#allocation52_spill] sm:$0xff] }
 0x332   :  { %6442 = vmatpush3.msra.mxu0 %v9553_v20  ;;  %5960 = vmatpush3.msra.mxu1 %v8807_v13  ;;  %v13035_v13 = vld [vmem:[#allocation56_spill] sm:$0xff] }
 0x333   :  { %2371 = vmatmul.mubr.f32.gmra.mxu0 %v2275_v1  ;;  %6443 = vmatprep.subr.mxu0 %v8733_v16 }
 0x334   :  { %6444 = vmatpush3.msra.mxu0 %v8733_v16  ;;  %5961 = vmatprep.subr.mxu1 %v13028_v47  ;;  %v13034_v16 = vld [vmem:[#allocation54_spill] sm:$0xff] }
 0x335   :  { %6445 = vmatprep.subr.mxu0 %v8756_v63  ;;  %5962 = vmatpush3.msra.mxu1 %v13029_v56 }
 0x336   :  { %6446 = vmatpush3.msra.mxu0 %v8756_v63  ;;  %5963 = vmatprep.subr.mxu1 %v13031_v27  ;;  %v13037_v63 = vld [vmem:[#allocation58_spill] sm:$0xff] }
 0x337   :  { %6447 = vmatprep.subr.mxu0 %v13030_v3  ;;  %5964 = vmatpush3.msra.mxu1 %v13032_v59  ;;  %v13057_v27 = vld [vmem:[#allocation14_spill] sm:$0xff] }
 0x338   :  { %6448 = vmatpush3.msra.mxu0 %v13030_v3  ;;  %5965 = vmatprep.subr.mxu1 %v13034_v16  ;;  %v1120_v59 = vadd.f32 %v13057_v27, %v9089_v6 }
 0x339   :  { %6449 = vmatprep.subr.mxu0 %v13033_v21  ;;  %5966 = vmatpush3.msra.mxu1 %v13035_v13 }
 0x33a   :  { %6450 = vmatpush3.msra.mxu0 %v13033_v21  ;;  %5967 = vmatprep.subr.mxu1 %v13037_v63 }
 0x33b   :  { %6451 = vmatprep.subr.mxu0 %v13036_v53  ;;  %5968 = vmatpush3.msra.mxu1 %v13038_v17 }
 0x33c   :  { %6452 = vmatpush3.msra.mxu0 %v13036_v53  ;;  %5969 = vmatprep.subr.mxu1 %v13040_v52 }
 0x33d   :  { %6453 = vmatprep.subr.mxu0 %v13039_v61  ;;  %5970 = vmatpush3.msra.mxu1 %v13041_v28 }
 0x33e   :  { %6454 = vmatpush3.msra.mxu0 %v13039_v61  ;;  %5971 = vmatprep.subr.mxu1 %v13043_v11  ;;  %v13058_v61 = vld [vmem:[#allocation17_spill] sm:$0xff] }
 0x33f   :  { %6455 = vmatprep.subr.mxu0 %v13042_v14  ;;  %5972 = vmatpush3.msra.mxu1 %v13044_v0  ;;  %v1126_v52 = vadd.f32 %v13058_v61, %v9089_v6 }
 0x340   :  { %6456 = vmatpush3.msra.mxu0 %v13042_v14  ;;  %5973 = vmatprep.subr.mxu1 %v13046_v44 }
 0x341   :  { %6457 = vmatprep.subr.mxu0 %v13045_v22  ;;  %5974 = vmatpush3.msra.mxu1 %v13047_v31 }
 0x342   :  { %6458 = vmatpush3.msra.mxu0 %v13045_v22  ;;  %5975 = vmatprep.subr.mxu1 %v13049_v54 }
 0x343   :  { %6459 = vmatprep.subr.mxu0 %v13048_v12  ;;  %5976 = vmatpush3.msra.mxu1 %v13050_v36 }
 0x344   :  { %6460 = vmatpush3.msra.mxu0 %v13048_v12  ;;  %5977 = vmatprep.subr.mxu1 %v13052_v29  ;;  %v13059_v12 = vld [vmem:[#allocation19_spill] sm:$0xff] }
 0x345   :  { %6461 = vmatprep.subr.mxu0 %v13051_v34  ;;  %5978 = vmatpush3.msra.mxu1 %v13053_v32  ;;  %v1132_v54 = vadd.f32 %v13059_v12, %v9089_v6 }
 0x346   :  { %6462 = vmatpush3.msra.mxu0 %v13051_v34  ;;  %2786 = vmatprep.subr.mxu1 %v13055_v15 }
 0x347   :  { %6463 = vmatprep.subr.mxu0 %v13054_v37 }
 0x348   :  { %6464 = vmatpush3.msra.mxu0 %v13054_v37 }
 0x349   :  { %2875 = vmatprep.subr.mxu0 %v13056_v60 }
 0x3df   :  { %v2443_v48 = vpop.f32.mrf.mxu1 }
 0x3e1   :  { %v2445_v1 = vpop.f32.mrf.mxu1 }
 0x3e3   :  { %v2449_v47 = vpop.f32.mrf.mxu1 }
 0x3e5   :  { %v2451_v56 = vpop.f32.mrf.mxu1 }
 0x3e7   :  { %v2354_v3 = vpop.f32.mrf.mxu0  ;;  %v2455_v63 = vpop.f32.mrf.mxu1 }
 0x3e8   :  { %v2444_v21 = vadd.f32 %v2443_v48, %v2354_v3  ;;  %v13060_v48 = vld [vmem:[#allocation23_spill] sm:$0xff] }
 0x3e9   :  { %v2356_v16 = vpop.f32.mrf.mxu0  ;;  %v2457_v44 = vpop.f32.mrf.mxu1 }
 0x3ea   :  { %v2466_v13 = vadd.f32 %v2444_v21, %v1120_v59  ;;  %v9604_v53 = vadd.f32 %v2445_v1, %v2356_v16  ;;  %v1138_v1 = vadd.f32 %v13060_v48, %v9089_v6 }
 0x3eb   :  { %v2360_v17 = vpop.f32.mrf.mxu0  ;;  %v2461_v15 = vpop.f32.mrf.mxu1 }
 0x3ec   :  { %v5827_v28 = vmul.f32 -1.442695, %v2466_v13  ;;  %v2450_v14 = vadd.f32 %v2449_v47, %v2360_v17 }
 0x3ed   :  { %v2362_v11 = vpop.f32.mrf.mxu0 }
 0x3ee   :  { %6853 = vpow2.f32 %v5827_v28  ;;  %v2468_v0 = vadd.f32 %v2450_v14, %v1126_v52  ;;  %v9608_v22 = vadd.f32 %v2451_v56, %v2362_v11 }
 0x3ef   :  { %v2366_v31 = vpop.f32.mrf.mxu0 }
 0x3f0   :  { %v5828_v36 = vmul.f32 -1.442695, %v2468_v0  ;;  %v2456_v34 = vadd.f32 %v2455_v63, %v2366_v31 }
 0x3f1   :  { %v2368_v29 = vpop.f32.mrf.mxu0 }
 0x3f2   :  { %6855 = vpow2.f32 %v5828_v36  ;;  %v2470_v32 = vadd.f32 %v2456_v34, %v1132_v54  ;;  %v9612_v37 = vadd.f32 %v2457_v44, %v2368_v29 }
 0x3f3   :  { %v2372_v60 = vpop.f32.mrf.mxu0 }
 0x3f4   :  { %v5829_v47 = vmul.f32 -1.442695, %v2470_v32  ;;  %v2462_v56 = vadd.f32 %v2461_v15, %v2372_v60 }
 0x3f6   :  { %6857 = vpow2.f32 %v5829_v47  ;;  %v2472_v3 = vadd.f32 %v2462_v56, %v1138_v1 }
 0x3f8   :  { %v5830_v27 = vmul.f32 -1.442695, %v2472_v3 }
 0x3fa   :  { %6859 = vpow2.f32 %v5830_v27 }
 0x3fb   :  { %v6854_v59 = vpop.eup %6853 }
 0x3fc   :  { %v2486_v21 = vadd.f32 1.0, %v6854_v59 }
 0x3fe   :  { %6861 = vrcp.f32 %v2486_v21 }
 0x3ff   :  { %v6856_v16 = vpop.eup %6855 }
 0x400   :  { %v2487_v13 = vadd.f32 1.0, %v6856_v16 }
 0x402   :  { %6863 = vrcp.f32 %v2487_v13 }
 0x403   :  { %v6858_v63 = vpop.eup %6857 }
 0x404   :  { %v2488_v17 = vadd.f32 1.0, %v6858_v63 }
 0x406   :  { %6865 = vrcp.f32 %v2488_v17 }
 0x407   :  { %v6860_v61 = vpop.eup %6859 }
 0x408   :  { %v2489_v52 = vadd.f32 1.0, %v6860_v61 }
 0x40a   :  { %6867 = vrcp.f32 %v2489_v52 }
 0x40b   :  { %v6862_v28 = vpop.eup %6861 }
 0x40c   :  { %v2522_v14 = vmul.f32 %v6862_v28, %v9451_v19 }
 0x40e   :  { %2614 = vmatprep.mubr.f32.mxu1 %v2522_v14  ;;  %v2526_v44 = vrot.slane %v2522_v14, 7  ;;  %v2538_v31 = vrot.slane %v2522_v14, 1 }
 0x40f   :  { %v6864_v11 = vpop.eup %6863 }
 0x410   :  { %v2523_v0 = vmul.f32 %v6864_v11, %v9460_v57  ;;  %v13071_v11 = vld [vmem:[#allocation137_spill] sm:$0xff] }
 0x412   :  { %v2539_v12 = vrot.slane %v2523_v0, 1  ;;  %v2527_v54 = vrot.slane %v2523_v0, 7 }
 0x413   :  { %v6866_v36 = vpop.eup %6865 }
 0x414   :  { %v2524_v34 = vmul.f32 %v6866_v36, %v9468_v8  ;;  %v2544_v29 = vsel %vm458_vm0, %v2538_v31, %v2539_v12  ;;  %v2532_v32 = vsel %vm201_vm1, %v2526_v44, %v2527_v54  ;;  %v13077_v36 = vld [vmem:[#allocation143_spill] sm:$0xff] }
 0x415   :  { %v2546_v15 = vmul.f32 %v2544_v29, %v12826_v9  ;;  %v2535_v14 = vmul.f32 %v2532_v32, %v8234_v2  ;;  %v13079_v29 = vld [vmem:[#allocation145_spill] sm:$0xff]  ;;  %v13080_v32 = vld [vmem:[#allocation146_spill] sm:$0xff] }
 0x416   :  { %v2540_v60 = vrot.slane %v2524_v34, 1  ;;  %v2528_v48 = vrot.slane %v2524_v34, 7 }
 0x417   :  { %v6868_v1 = vpop.eup %6867  ;;  %6465 = vmatprep.mubr.f32.mxu0 %v2546_v15  ;;  %v13081_v15 = vld [vmem:[#allocation147_spill] sm:$0xff] }
 0x418   :  { %v2525_v47 = vmul.f32 %v6868_v1, %v9478_v24  ;;  %v2543_v56 = vsel %vm458_vm0, %v2539_v12, %v2540_v60  ;;  %v2531_v3 = vsel %vm201_vm1, %v2527_v54, %v2528_v48  ;;  %v13075_v12 = vld [vmem:[#allocation141_spill] sm:$0xff]  ;;  %v13076_v54 = vld [vmem:[#allocation142_spill] sm:$0xff] }
 0x419   :  { %v2547_v27 = vmul.f32 %v2543_v56, %v12827_v18  ;;  %v13084_v1 = vld [vmem:[#allocation150_spill] sm:$0xff]  ;;  %v13086_v56 = vld [vmem:[#allocation152_spill] sm:$0xff] }
 0x41a   :  { %v2529_v59 = vrot.slane %v2525_v47, 7  ;;  %v2541_v21 = vrot.slane %v2525_v47, 1 }
 0x41b   :  { %6466 = vmatmul.mubr.f32.vlgmr.msra.gmra.mxu0 %v2547_v27  ;;  %v13088_v27 = vld [vmem:[#allocation154_spill] sm:$0xff] }
 0x41c   :  { %v2533_v16 = vsel %vm201_vm1, %v2529_v59, %v2526_v44  ;;  %v2542_v13 = vsel %vm458_vm0, %v2540_v60, %v2541_v21  ;;  %v2545_v63 = vsel %vm458_vm0, %v2541_v21, %v2538_v31  ;;  %v2530_v17 = vsel %vm201_vm1, %v2528_v48, %v2529_v59  ;;  %2876 = vmatpush1.msra.mxu0 %v9131_v30  ;;  %v13073_v44 = vld [vmem:[#allocation139_spill] sm:$0xff]  ;;  %v13074_v31 = vld [vmem:[#allocation140_spill] sm:$0xff]  ;;  %v13083_v48 = vld [vmem:[#allocation149_spill] sm:$0xff] }
 0x41d   :  { %v2534_v61 = vmul.f32 %v2533_v16, %v12825_v42  ;;  %v2548_v52 = vmul.f32 %v2542_v13, %v12829_v46  ;;  %v2549_v28 = vmul.f32 %v2545_v63, %v12830_v39  ;;  %2877 = vmatprep.subr.mxu0 %v9137_v51  ;;  %v2536_v30 = vmul.f32 %v2531_v3, %v12828_v35  ;;  %v13061_v51 = vld [vmem:[#allocation127_spill] sm:$0xff]  ;;  %v13082_v60 = vld [vmem:[#allocation148_spill] sm:$0xff]  ;;  %v13087_v3 = vld [vmem:[#allocation153_spill] sm:$0xff] }
 0x41e   :  { %2878 = vmatpush1.msra.mxu0 %v9140_v26  ;;  %v13062_v26 = vld [vmem:[#allocation128_spill] sm:$0xff]  ;;  %v13089_v59 = vld [vmem:[#allocation155_spill] sm:$0xff]  ;;  %v13091_v16 = vld [vmem:[#allocation157_spill] sm:$0xff] }
 0x41f   :  { %2615 = vmatmul.mubr.f32.vlgmr.msra.gmra.mxu1 %v2534_v61  ;;  %6468 = vmatprep.mubr.f32.mxu0 %v2548_v52  ;;  %v13090_v21 = vld [vmem:[#allocation156_spill] sm:$0xff]  ;;  %v13092_v13 = vld [vmem:[#allocation158_spill] sm:$0xff]  ;;  %v13093_v63 = vld [vmem:[#allocation159_spill] sm:$0xff] }
 0x420   :  { %2619 = vmatprep.mubr.f32.mxu1 %v2523_v0  ;;  %6469 = vmatmul.mubr.f32.gmra.mxu0 %v2549_v28  ;;  %v13072_v0 = vld [vmem:[#allocation138_spill] sm:$0xff]  ;;  %v13095_v61 = vld [vmem:[#allocation161_spill] sm:$0xff]  ;;  %v13097_v28 = vld [vmem:[#allocation163_spill] sm:$0xff] }
 0x421   :  { %2787 = vmatpush1.msra.mxu1 %v9144_v41  ;;  %2879 = vmatprep.subr.mxu0 %v9147_v33  ;;  %v13063_v41 = vld [vmem:[#allocation129_spill] sm:$0xff]  ;;  %v2537_v33 = vmul.f32 %v2530_v17, %v8283_v49  ;;  %v13094_v17 = vld [vmem:[#allocation160_spill] sm:$0xff]  ;;  %v13096_v52 = vld [vmem:[#allocation162_spill] sm:$0xff] }
 0x422   :  { %2788 = vmatprep.subr.mxu1 %v9150_v25  ;;  %2880 = vmatpush1.msra.mxu0 %v9153_v4  ;;  %v13064_v25 = vld [vmem:[#allocation130_spill] sm:$0xff]  ;;  %v13065_v4 = vld [vmem:[#allocation131_spill] sm:$0xff] }
 0x423   :  { %2620 = vmatmul.mubr.f32.gmra.mxu1 %v2535_v14  ;;  %2881 = vmatprep.subr.mxu0 %v9156_v50  ;;  %v13066_v50 = vld [vmem:[#allocation132_spill] sm:$0xff] }
 0x424   :  { %2624 = vmatprep.mubr.f32.mxu1 %v2524_v34  ;;  %2789 = vmatpush1.msra.mxu1 %v9159_v38  ;;  %v13067_v38 = vld [vmem:[#allocation133_spill] sm:$0xff]  ;;  %v13078_v34 = vld [vmem:[#allocation144_spill] sm:$0xff] }
 0x425   :  { %2790 = vmatprep.subr.mxu1 %v9163_v23  ;;  %2882 = vmatpush1.msra.mxu0 %v9166_v55  ;;  %v13068_v23 = vld [vmem:[#allocation134_spill] sm:$0xff]  ;;  %v13069_v55 = vld [vmem:[#allocation135_spill] sm:$0xff]  ;;  %v13098_v14 = vld [vmem:[#allocation164_spill] sm:$0xff] }
 0x426   :  { %2791 = vmatpush1.msra.mxu1 %v9169_v40  ;;  %2883 = vmatprep.subr.mxu0 %v13061_v51  ;;  %v13070_v40 = vld [vmem:[#allocation136_spill] sm:$0xff]  ;;  %v13100_v51 = vld [vmem:[#allocation166_spill] sm:$0xff] }
 0x427   :  { %2625 = vmatmul.mubr.f32.gmra.mxu1 %v2536_v30  ;;  %2792 = vmatprep.subr.mxu1 %v13062_v26  ;;  %v13099_v30 = vld [vmem:[#allocation165_spill] sm:$0xff]  ;;  %v13101_v26 = vld [vmem:[#allocation167_spill] sm:$0xff] }
 0x428   :  { %2629 = vmatprep.mubr.f32.mxu1 %v2525_v47  ;;  %2793 = vmatpush1.msra.mxu1 %v13063_v41  ;;  %v13085_v47 = vld [vmem:[#allocation151_spill] sm:$0xff]  ;;  %v13102_v41 = vld [vmem:[#allocation168_spill] sm:$0xff] }
 0x429   :  { %2794 = vmatprep.subr.mxu1 %v13064_v25  ;;  %2884 = vmatpush1.msra.mxu0 %v13065_v4  ;;  %v13104_v25 = vld [vmem:[#allocation170_spill] sm:$0xff]  ;;  %v13105_v4 = vld [vmem:[#allocation171_spill] sm:$0xff] }
 0x42a   :  { %2795 = vmatpush1.msra.mxu1 %v13066_v50  ;;  %2885 = vmatprep.subr.mxu0 %v13067_v38  ;;  %v13106_v50 = vld [vmem:[#allocation172_spill] sm:$0xff]  ;;  %v13107_v38 = vld [vmem:[#allocation173_spill] sm:$0xff] }
 0x42b   :  { %2630 = vmatmul.mubr.f32.gmra.mxu1 %v2537_v33  ;;  %2796 = vmatprep.subr.mxu1 %v13068_v23  ;;  %v13103_v33 = vld [vmem:[#allocation169_spill] sm:$0xff]  ;;  %v13108_v23 = vld [vmem:[#allocation174_spill] sm:$0xff] }
 0x42c   :  { %2797 = vmatpush1.msra.mxu1 %v13069_v55  ;;  %2886 = vmatpush1.msra.mxu0 %v13070_v40  ;;  %v13109_v55 = vld [vmem:[#allocation175_spill] sm:$0xff]  ;;  %v13110_v40 = vld [vmem:[#allocation176_spill] sm:$0xff] }
 0x42d   :  { %2798 = vmatprep.subr.mxu1 %v13071_v11  ;;  %2887 = vmatprep.subr.mxu0 %v13072_v0  ;;  %v13111_v11 = vld [vmem:[#allocation177_spill] sm:$0xff]  ;;  %v13112_v0 = vld [vmem:[#allocation178_spill] sm:$0xff] }
 0x42e   :  { %2799 = vmatpush1.msra.mxu1 %v13073_v44  ;;  %2888 = vmatpush1.msra.mxu0 %v13074_v31  ;;  %v9712_v44 = vld [vmem:[%s12386_s5 + $0xf8] sm:$0xff]  ;;  %v13113_v31 = vld [vmem:[#allocation179_spill] sm:$0xff] }
 0x42f   :  { %2800 = vmatprep.subr.mxu1 %v13075_v12  ;;  %2889 = vmatprep.subr.mxu0 %v13076_v54  ;;  %v13114_v12 = vld [vmem:[#allocation180_spill] sm:$0xff]  ;;  %v13115_v54 = vld [vmem:[#allocation181_spill] sm:$0xff] }
 0x430   :  { %2801 = vmatpush1.msra.mxu1 %v13077_v36  ;;  %2890 = vmatpush1.msra.mxu0 %v13078_v34  ;;  %v13116_v36 = vld [vmem:[#allocation182_spill] sm:$0xff]  ;;  %v13117_v34 = vld [vmem:[#allocation183_spill] sm:$0xff] }
 0x431   :  { %2802 = vmatprep.subr.mxu1 %v13079_v29  ;;  %2891 = vmatprep.subr.mxu0 %v13080_v32  ;;  %v13118_v29 = vld [vmem:[#allocation184_spill] sm:$0xff]  ;;  %v13119_v32 = vld [vmem:[#allocation185_spill] sm:$0xff] }
 0x432   :  { %2803 = vmatpush1.msra.mxu1 %v13081_v15  ;;  %2892 = vmatpush1.msra.mxu0 %v13082_v60  ;;  %v13120_v15 = vld [vmem:[#allocation186_spill] sm:$0xff]  ;;  %v13121_v60 = vld [vmem:[#allocation187_spill] sm:$0xff] }
 0x433   :  { %2804 = vmatprep.subr.mxu1 %v13083_v48  ;;  %2893 = vmatprep.subr.mxu0 %v13084_v1  ;;  %v13122_v48 = vld [vmem:[#allocation188_spill] sm:$0xff]  ;;  %v13123_v1 = vld [vmem:[#allocation189_spill] sm:$0xff] }
 0x434   :  { %2805 = vmatpush1.msra.mxu1 %v13085_v47  ;;  %2894 = vmatpush1.msra.mxu0 %v13086_v56  ;;  %v13124_v47 = vld [vmem:[#allocation190_spill] sm:$0xff]  ;;  %v13125_v56 = vld [vmem:[#allocation191_spill] sm:$0xff] }
 0x435   :  { %2806 = vmatprep.subr.mxu1 %v13087_v3  ;;  %2895 = vmatprep.subr.mxu0 %v13088_v27  ;;  %v13126_v3 = vld [vmem:[#allocation192_spill] sm:$0xff]  ;;  %v13127_v27 = vld [vmem:[#allocation193_spill] sm:$0xff] }
 0x436   :  { %2807 = vmatpush1.msra.mxu1 %v13089_v59  ;;  %2896 = vmatpush1.msra.mxu0 %v13090_v21  ;;  %v13128_v59 = vld [vmem:[#allocation194_spill] sm:$0xff]  ;;  %v13129_v21 = vld [vmem:[#allocation195_spill] sm:$0xff] }
 0x437   :  { %2808 = vmatprep.subr.mxu1 %v13091_v16  ;;  %2897 = vmatprep.subr.mxu0 %v13092_v13  ;;  %v13130_v16 = vld [vmem:[#allocation196_spill] sm:$0xff]  ;;  %v13131_v13 = vld [vmem:[#allocation197_spill] sm:$0xff] }
 0x438   :  { %2809 = vmatpush1.msra.mxu1 %v13093_v63  ;;  %2898 = vmatpush1.msra.mxu0 %v13094_v17  ;;  %v13132_v63 = vld [vmem:[#allocation198_spill] sm:$0xff]  ;;  %v13133_v17 = vld [vmem:[#allocation199_spill] sm:$0xff] }
 0x439   :  { %2810 = vmatprep.subr.mxu1 %v13095_v61  ;;  %2899 = vmatprep.subr.mxu0 %v13096_v52  ;;  %v13134_v61 = vld [vmem:[#allocation200_spill] sm:$0xff]  ;;  %v13135_v52 = vld [vmem:[#allocation201_spill] sm:$0xff] }
 0x43a   :  { %2811 = vmatpush1.msra.mxu1 %v13097_v28  ;;  %2900 = vmatpush1.msra.mxu0 %v13098_v14  ;;  %v13136_v28 = vld [vmem:[#allocation202_spill] sm:$0xff]  ;;  %v13137_v14 = vld [vmem:[#allocation203_spill] sm:$0xff] }
 0x43b   :  { %2812 = vmatprep.subr.mxu1 %v13099_v30  ;;  %2901 = vmatprep.subr.mxu0 %v13100_v51  ;;  %v13138_v30 = vld [vmem:[#allocation204_spill] sm:$0xff]  ;;  %v13139_v51 = vld [vmem:[#allocation205_spill] sm:$0xff] }
 0x43c   :  { %2813 = vmatpush1.msra.mxu1 %v13101_v26  ;;  %2902 = vmatpush1.msra.mxu0 %v13102_v41  ;;  %v13140_v26 = vld [vmem:[#allocation206_spill] sm:$0xff]  ;;  %v13141_v41 = vld [vmem:[#allocation207_spill] sm:$0xff] }
 0x43d   :  { %2814 = vmatprep.subr.mxu1 %v13103_v33  ;;  %2903 = vmatprep.subr.mxu0 %v13104_v25  ;;  %v13142_v33 = vld [vmem:[#allocation208_spill] sm:$0xff]  ;;  %v13143_v25 = vld [vmem:[#allocation209_spill] sm:$0xff] }
 0x43e   :  { %2815 = vmatpush1.msra.mxu1 %v13105_v4  ;;  %2904 = vmatpush1.msra.mxu0 %v13106_v50  ;;  %v13144_v4 = vld [vmem:[#allocation15_spill] sm:$0xff] }
 0x43f   :  { %2816 = vmatprep.subr.mxu1 %v13107_v38  ;;  %2905 = vmatprep.subr.mxu0 %v13108_v23  ;;  %v1122_v50 = vadd.f32 %v13144_v4, %v13143_v25  ;;  %v13145_v23 = vld [vmem:[#allocation18_spill] sm:$0xff] }
 0x440   :  { %2817 = vmatpush1.msra.mxu1 %v13109_v55  ;;  %2906 = vmatpush1.msra.mxu0 %v13110_v40  ;;  %v1128_v55 = vadd.f32 %v13145_v23, %v13143_v25 }
 0x441   :  { %2818 = vmatprep.subr.mxu1 %v13111_v11  ;;  %2939 = vmatprep.mubr.f32.mxu0 %v12824_v43  ;;  %v2467_v38 = vadd.f32 %v9604_v53, %v1122_v50  ;;  %v13149_v50 = vld [vmem:[#allocation16_spill] sm:$0xff] }
 0x442   :  { %2819 = vmatpush2.msra.mxu1 %v13112_v0  ;;  %6011 = vmatprep.subr.mxu0 %v9712_v44  ;;  %v2469_v11 = vadd.f32 %v9608_v22, %v1128_v55  ;;  %v2374_v0 = vpop.f32.mrf.mxu0 }
 0x443   :  { %2820 = vmatprep.subr.mxu1 %v13113_v31  ;;  %v5831_v40 = vmul.f32 -1.442695, %v2467_v38  ;;  %v13146_v31 = vld [vmem:[#allocation21_spill] sm:$0xff]  ;;  %v1378_v38 = vadd.f32 %v13149_v50, %v9440_v45 }
 0x444   :  { %2821 = vmatpush2.msra.mxu1 %v13114_v12  ;;  %v1134_v12 = vadd.f32 %v13146_v31, %v13143_v25 }
 0x445   :  { %2822 = vmatprep.subr.mxu1 %v13115_v54  ;;  %v2463_v54 = vpop.f32.mrf.mxu1  ;;  %6869 = vpow2.f32 %v5831_v40 }
 0x446   :  { %2823 = vmatpush2.msra.mxu1 %v13116_v36  ;;  %v5832_v36 = vmul.f32 -1.442695, %v2469_v11 }
 0x447   :  { %2824 = vmatprep.subr.mxu1 %v13117_v34  ;;  %v2471_v34 = vadd.f32 %v9612_v37, %v1134_v12 }
 0x448   :  { %2825 = vmatpush2.msra.mxu1 %v13118_v29  ;;  %v2464_v29 = vadd.f32 %v2463_v54, %v2374_v0  ;;  %6871 = vpow2.f32 %v5832_v36 }
 0x449   :  { %2826 = vmatprep.subr.mxu1 %v13119_v32  ;;  %v13147_v32 = vld [vmem:[#allocation24_spill] sm:$0xff]  ;;  %v5833_v53 = vmul.f32 -1.442695, %v2471_v34 }
 0x44a   :  { %2827 = vmatpush2.msra.mxu1 %v13120_v15  ;;  %v1140_v15 = vadd.f32 %v13147_v32, %v13143_v25  ;;  %v13150_v34 = vld [vmem:[#allocation20_spill] sm:$0xff] }
 0x44b   :  { %2828 = vmatprep.subr.mxu1 %v13121_v60  ;;  %6873 = vpow2.f32 %v5833_v53 }
 0x44c   :  { %2829 = vmatpush2.msra.mxu1 %v13122_v48  ;;  %v2473_v60 = vadd.f32 %v2464_v29, %v1140_v15  ;;  %v1383_v29 = vadd.f32 %v13150_v34, %v9440_v45 }
 0x44d   :  { %2830 = vmatprep.subr.mxu1 %v13123_v1 }
 0x44e   :  { %2831 = vmatpush2.msra.mxu1 %v13124_v47  ;;  %v5834_v48 = vmul.f32 -1.442695, %v2473_v60 }
 0x44f   :  { %2832 = vmatprep.subr.mxu1 %v13125_v56 }
 0x450   :  { %2833 = vmatpush2.msra.mxu1 %v13126_v3  ;;  %6875 = vpow2.f32 %v5834_v48 }
 0x451   :  { %2834 = vmatprep.subr.mxu1 %v13127_v27 }
 0x452   :  { %2835 = vmatpush2.msra.mxu1 %v13128_v59  ;;  %v6870_v22 = vpop.eup %6869 }
 0x453   :  { %2836 = vmatprep.subr.mxu1 %v13129_v21  ;;  %v2510_v1 = vadd.f32 1.0, %v6870_v22 }
 0x454   :  { %2837 = vmatpush2.msra.mxu1 %v13130_v16 }
 0x455   :  { %2838 = vmatprep.subr.mxu1 %v13131_v13  ;;  %v6872_v47 = vpop.eup %6871  ;;  %6877 = vrcp.f32 %v2510_v1 }
 0x456   :  { %2839 = vmatpush2.msra.mxu1 %v13132_v63  ;;  %v2511_v56 = vadd.f32 1.0, %v6872_v47 }
 0x457   :  { %2840 = vmatprep.subr.mxu1 %v13133_v17 }
 0x458   :  { %2841 = vmatpush2.msra.mxu1 %v13134_v61  ;;  %v6874_v3 = vpop.eup %6873  ;;  %6879 = vrcp.f32 %v2511_v56 }
 0x459   :  { %2842 = vmatprep.subr.mxu1 %v13135_v52  ;;  %v2512_v27 = vadd.f32 1.0, %v6874_v3  ;;  %v13148_v52 = vld [vmem:[#allocation13_spill] sm:$0xff] }
 0x45a   :  { %2843 = vmatpush2.msra.mxu1 %v13136_v28  ;;  %v1373_v28 = vadd.f32 %v13148_v52, %v9440_v45 }
 0x45b   :  { %2844 = vmatprep.subr.mxu1 %v13137_v14  ;;  %6881 = vrcp.f32 %v2512_v27 }
 0x45c   :  { %2845 = vmatpush2.msra.mxu1 %v13138_v30 }
 0x45d   :  { %2846 = vmatprep.subr.mxu1 %v13139_v51  ;;  %v6876_v59 = vpop.eup %6875 }
 0x45e   :  { %2847 = vmatpush2.msra.mxu1 %v13140_v26  ;;  %v2513_v16 = vadd.f32 1.0, %v6876_v59  ;;  %v13151_v59 = vld [vmem:[#allocation22_spill] sm:$0xff] }
 0x45f   :  { %2848 = vmatprep.subr.mxu1 %v13141_v41 }
 0x460   :  { %2849 = vmatpush2.msra.mxu1 %v13142_v33  ;;  %6883 = vrcp.f32 %v2513_v16 }
 0x461   :  { %6471 = vmatprep.subr.mxu1 %v9514_v62 }
 0x462   :  { %v6878_v30 = vpop.eup %6877 }
 0x463   :  { %v2732_v55 = vsub.f32 1.0, %v6878_v30  ;;  %v2728_v31 = vmul.f32 %v6878_v30, %v9451_v19 }
 0x465   :  { %v6880_v11 = vpop.eup %6879 }
 0x466   :  { %v2733_v48 = vsub.f32 1.0, %v6880_v11  ;;  %v2729_v56 = vmul.f32 %v6880_v11, %v9460_v57 }
 0x468   :  { %v6882_v1 = vpop.eup %6881 }
 0x4db   :  { %v6467_v37 = vpop.f32.mrf.mxu0 }
 0x4dd   :  { %v2701_v17 = vpop.f32.mrf.mxu0 }
 0x4df   :  { %v5979_v21 = vpop.f32.mrf.mxu1 }
 0x4e0   :  { %v6470_v33 = vpop.f32.mrf.mxu0 }
 0x4e1   :  { %v5980_v13 = vpop.f32.mrf.mxu1 }
 0x4e2   :  { %v5981_v63 = vadd.f32 %v5980_v13, %v5979_v21  ;;  %v2711_v32 = vpop.f32.mrf.mxu0  ;;  %v2734_v13 = vsub.f32 1.0, %v6882_v1 }
 0x4e3   :  { %v5982_v61 = vpop.f32.mrf.mxu1 }
 0x4e4   :  { %v2702_v14 = vadd.f32 %v5981_v63, %v2701_v17  ;;  %v6884_v17 = vpop.eup %6883 }
 0x4e5   :  { %v5983_v51 = vpop.f32.mrf.mxu1 }
 0x4e6   :  { %v2720_v26 = vadd.f32 %v2702_v14, %v1373_v28  ;;  %v5984_v41 = vadd.f32 %v5983_v51, %v5982_v61  ;;  %v2730_v61 = vmul.f32 %v6882_v1, %v9468_v8  ;;  %v2731_v8 = vmul.f32 %v6884_v17, %v9478_v24 }
 0x4e7   :  { %v5985_v4 = vpop.f32.mrf.mxu1 }
 0x4e8   :  { %v2724_v23 = vmax.f32 %v2720_v26, 0.0  ;;  %v2707_v40 = vadd.f32 %v6467_v37, %v5984_v41  ;;  %v1388_v37 = vadd.f32 %v13151_v59, %v9440_v45  ;;  %v2735_v26 = vsub.f32 1.0, %v6884_v17  ;;  %v9861_v59 = vld [vmem:[%s12386_s5 + $0xd8] sm:$0xff]  ;;  %v9917_v17 = vld [vmem:[%s12386_s5 + $0x148] sm:$0xff] }
 0x4e9   :  { %v5986_v0 = vpop.f32.mrf.mxu1 }
 0x4ea   :  { %v2736_v12 = vmul.f32 %v2732_v55, %v2724_v23  ;;  %v2721_v54 = vadd.f32 %v2707_v40, %v1378_v38  ;;  %v5987_v36 = vadd.f32 %v5986_v0, %v5985_v4  ;;  %v9793_v55 = vld [vmem:[%s12386_s5 + $0x78] sm:$0xff]  ;;  %v9800_v40 = vld [vmem:[%s12386_s5 + $0xf0] sm:$0xff] }
 0x4eb   :  { %v5988_v15 = vpop.f32.mrf.mxu1 }
 0x4ec   :  { %v9764_v53 = vadd.f32 %v2736_v12, %v2728_v31  ;;  %v2725_v60 = vmax.f32 %v2721_v54, 0.0  ;;  %v2712_v22 = vadd.f32 %v5987_v36, %v2711_v32  ;;  %v9811_v54 = vld [vmem:[%s12386_s5 + $0x70] sm:$0xff]  ;;  %v9817_v36 = vld [vmem:[%s12386_s5 + $0xe8] sm:$0xff] }
 0x4ed   :  { %v5989_v47 = vpop.f32.mrf.mxu1 }
 0x4ee   :  { %2745 = vst [vmem:[#allocation9 + $0x20] sm:$0xff] %v9764_v53  ;;  %v2737_v19 = vmul.f32 %v2733_v48, %v2725_v60  ;;  %v2722_v3 = vadd.f32 %v2712_v22, %v1383_v29  ;;  %v5990_v27 = vadd.f32 %v5989_v47, %v5988_v15  ;;  %2850 = vmatprep.mubr.f32.mxu1 %v9764_v53  ;;  %v2774_v28 = vrot.slane %v9764_v53, 1  ;;  %v9830_v60 = vld [vmem:[%s12386_s5 + $0x68] sm:$0xff]  ;;  %v9841_v47 = vld [vmem:[%s12386_s5 + $0xe0] sm:$0xff] }
 0x4ef   :  { %v2762_v11 = vrot.slane %v9764_v53, 7 }
 0x4f0   :  { %v9771_v21 = vadd.f32 %v2737_v19, %v2729_v56  ;;  %v2726_v16 = vmax.f32 %v2722_v3, 0.0  ;;  %v2717_v63 = vadd.f32 %v6470_v33, %v5990_v27  ;;  %v9852_v3 = vld [vmem:[%s12386_s5 + $0x60] sm:$0xff] }
 0x4f2   :  { %2746 = vst [vmem:[#allocation9 + $0x28] sm:$0xff] %v9771_v21  ;;  %v2738_v52 = vmul.f32 %v2734_v13, %v2726_v16  ;;  %v2723_v57 = vadd.f32 %v2717_v63, %v1388_v37  ;;  %v2775_v14 = vrot.slane %v9771_v21, 1  ;;  %v2763_v12 = vrot.slane %v9771_v21, 7  ;;  %v9871_v37 = vld [vmem:[%s12386_s5 + $0x58] sm:$0xff]  ;;  %v9898_v63 = vld [vmem:[%s12386_s5 + $0xc8] sm:$0xff] }
 0x4f4   :  { %v9777_v30 = vadd.f32 %v2738_v52, %v2730_v61  ;;  %v2727_v51 = vmax.f32 %v2723_v57, 0.0  ;;  %v2780_v41 = vsel %vm458_vm0, %v2774_v28, %v2775_v14  ;;  %v2768_v48 = vsel %vm201_vm1, %v2762_v11, %v2763_v12  ;;  %v9923_v61 = vld [vmem:[%s12386_s5 + $0xc0] sm:$0xff] }
 0x4f5   :  { %v2782_v33 = vmul.f32 %v2780_v41, %v12826_v9  ;;  %v2771_v56 = vmul.f32 %v2768_v48, %v8234_v2  ;;  %v9930_v52 = vld [vmem:[%s12386_s5 + $0x40] sm:$0xff]  ;;  %v9968_v41 = vld [vmem:[%s12386_s5 + $0x30] sm:$0xff]  ;;  %v10063_v48 = vld [vmem:[%s12386_s5 + $0x8] sm:$0xff] }
 0x4f6   :  { %2747 = vst [vmem:[#allocation9 + $0x30] sm:$0xff] %v9777_v30  ;;  %v2739_v4 = vmul.f32 %v2735_v26, %v2727_v51  ;;  %v2776_v50 = vrot.slane %v9777_v30, 1  ;;  %v2764_v1 = vrot.slane %v9777_v30, 7  ;;  %v9936_v57 = vld [vmem:[%s12386_s5 + $0x140] sm:$0xff]  ;;  %v9955_v51 = vld [vmem:[%s12386_s5 + $0x138] sm:$0xff]  ;;  %v9961_v26 = vld [vmem:[%s12386_s5 + $0xb0] sm:$0xff] }
 0x4f7   :  { %2940 = vmatmul.mubr.f32.vlgmr.msra.gmra.mxu0 %v2782_v33  ;;  %v9974_v33 = vld [vmem:[%s12386_s5 + $0x130] sm:$0xff]  ;;  %13166 = vst [vmem:[#allocation55_spill] sm:$0xff] %v10063_v48 }
 0x4f8   :  { %v9785_v38 = vadd.f32 %v2739_v4, %v2731_v8  ;;  %2945 = vmatprep.mubr.f32.mxu0 %v12824_v43  ;;  %v2779_v23 = vsel %vm458_vm0, %v2775_v14, %v2776_v50  ;;  %6012 = vmatpush3.msra.mxu0 %v9793_v55  ;;  %v2767_v27 = vsel %vm201_vm1, %v2763_v12, %v2764_v1  ;;  %v9949_v14 = vld [vmem:[%s12386_s5 + $0x38] sm:$0xff]  ;;  %v9980_v8 = vld [vmem:[%s12386_s5 + $0xa8] sm:$0xff] }
 0x4f9   :  { %v2783_v24 = vmul.f32 %v2779_v23, %v12827_v18  ;;  %6013 = vmatprep.subr.mxu0 %v9800_v40  ;;  %13152 = vst [vmem:[#allocation45_spill] sm:$0xff] %v9974_v33  ;;  %13153 = vst [vmem:[#allocation47_spill] sm:$0xff] %v9980_v8  ;;  %v9987_v4 = vld [vmem:[%s12386_s5 + $0x28] sm:$0xff]  ;;  %v9999_v23 = vld [vmem:[%s12386_s5 + $0xa0] sm:$0xff] }
 0x4fa   :  { %2748 = vst [vmem:[#allocation9 + $0x38] sm:$0xff] %v9785_v38  ;;  %v2765_v0 = vrot.slane %v9785_v38, 7  ;;  %v2777_v31 = vrot.slane %v9785_v38, 1  ;;  %6014 = vmatpush3.msra.mxu0 %v9811_v54  ;;  %13154 = vst [vmem:[#allocation40_spill] sm:$0xff] %v9987_v4  ;;  %v10031_v12 = vld [vmem:[%s12386_s5 + $0x118] sm:$0xff] }
 0x4fb   :  { %2946 = vmatmul.mubr.f32.gmra.mxu0 %v2783_v24  ;;  %6015 = vmatprep.subr.mxu0 %v9817_v36  ;;  %13156 = vst [vmem:[#allocation52_spill] sm:$0xff] %v9999_v23  ;;  %v10006_v24 = vld [vmem:[%s12386_s5 + $0x20] sm:$0xff]  ;;  %13161 = vst [vmem:[#allocation58_spill] sm:$0xff] %v10031_v12 }
 0x4fc   :  { %2951 = vmatprep.mubr.f32.mxu0 %v12824_v43  ;;  %v2769_v34 = vsel %vm201_vm1, %v2765_v0, %v2762_v11  ;;  %v2778_v29 = vsel %vm458_vm0, %v2776_v50, %v2777_v31  ;;  %6016 = vmatpush3.msra.mxu0 %v9830_v60  ;;  %v2781_v22 = vsel %vm458_vm0, %v2777_v31, %v2774_v28  ;;  %v9942_v28 = vld [vmem:[%s12386_s5 + $0xb8] sm:$0xff]  ;;  %v9993_v50 = vld [vmem:[%s12386_s5 + $0x128] sm:$0xff]  ;;  %v10012_v11 = vld [vmem:[%s12386_s5 + $0x120] sm:$0xff] }
 0x4fd   :  { %v2770_v32 = vmul.f32 %v2769_v34, %v12825_v42  ;;  %v2784_v15 = vmul.f32 %v2778_v29, %v12829_v46  ;;  %6017 = vmatprep.subr.mxu0 %v9841_v47  ;;  %v2785_v19 = vmul.f32 %v2781_v22, %v12830_v39  ;;  %v2766_v16 = vsel %vm201_vm1, %v2764_v1, %v2765_v0  ;;  %v10018_v0 = vld [vmem:[%s12386_s5 + $0x98] sm:$0xff]  ;;  %v10037_v34 = vld [vmem:[%s12386_s5 + $0x90] sm:$0xff]  ;;  %v10069_v22 = vld [vmem:[%s12386_s5 + $0x108] sm:$0xff] }
 0x4fe   :  { %6018 = vmatpush3.msra.mxu0 %v9852_v3  ;;  %v2773_v13 = vmul.f32 %v2766_v16, %v8283_v49  ;;  %13155 = vst [vmem:[#allocation50_spill] sm:$0xff] %v9993_v50  ;;  %13157 = vst [vmem:[#allocation43_spill] sm:$0xff] %v10006_v24  ;;  %v10025_v31 = vld [vmem:[%s12386_s5 + $0x18] sm:$0xff]  ;;  %v10044_v29 = vld [vmem:[%s12386_s5 + $0x10] sm:$0xff] }
 0x4ff   :  { %2851 = vmatmul.mubr.f32.vlgmr.msra.gmra.mxu1 %v2770_v32  ;;  %2952 = vmatmul.mubr.f32.gmra.mxu0 %v2784_v15  ;;  %13158 = vst [vmem:[#allocation54_spill] sm:$0xff] %v10012_v11  ;;  %13159 = vst [vmem:[#allocation56_spill] sm:$0xff] %v10018_v0  ;;  %v10050_v32 = vld [vmem:[%s12386_s5 + $0x110] sm:$0xff]  ;;  %v10056_v15 = vld [vmem:[%s12386_s5 + $0x88] sm:$0xff] }
 0x500   :  { %2856 = vmatprep.mubr.f32.mxu1 %v9771_v21  ;;  %2957 = vmatprep.mubr.f32.mxu0 %v12824_v43  ;;  %13160 = vst [vmem:[#allocation46_spill] sm:$0xff] %v10025_v31  ;;  %13162 = vst [vmem:[#allocation60_spill] sm:$0xff] %v10037_v34  ;;  %v10075_v1 = vld [vmem:[%s12386_s5 + $0x80] sm:$0xff] }
 0x501   :  { %6472 = vmatpush3.msra.mxu1 %v9514_v62  ;;  %6019 = vmatprep.subr.mxu0 %v9861_v59  ;;  %v2772_v62 = vmul.f32 %v2767_v27, %v12828_v35  ;;  %13163 = vst [vmem:[#allocation51_spill] sm:$0xff] %v10044_v29  ;;  %13164 = vst [vmem:[#allocation62_spill] sm:$0xff] %v10050_v32  ;;  %v10091_v27 = vld [vmem:[#allocation8 + $0xf8] sm:$0xff] }
 0x502   :  { %6473 = vmatprep.subr.mxu1 %v9523_v7  ;;  %6020 = vmatpush3.msra.mxu0 %v9871_v37  ;;  %13165 = vst [vmem:[#allocation64_spill] sm:$0xff] %v10056_v15  ;;  %13167 = vst [vmem:[#allocation65_spill] sm:$0xff] %v10069_v22 }
 0x503   :  { %2857 = vmatmul.mubr.f32.gmra.mxu1 %v2771_v56  ;;  %2958 = vmatmul.mubr.f32.gmra.mxu0 %v2785_v19  ;;  %13168 = vst [vmem:[#allocation67_spill] sm:$0xff] %v10075_v1  ;;  %v10082_v56 = vld [vmem:[%s12386_s5] sm:$0xff]  ;;  %13171 = vst [vmem:[#allocation71_spill] sm:$0xff] %v10091_v27 }
 0x504   :  { %2862 = vmatprep.mubr.f32.mxu1 %v9777_v30  ;;  %6474 = vmatpush3.msra.mxu1 %v9523_v7  ;;  %v9880_v7 = vld [vmem:[%s12386_s5 + $0xd0] sm:$0xff]  ;;  %13169 = vst [vmem:[#allocation59_spill] sm:$0xff] %v10082_v56  ;;  %v10088_v19 = vld [vmem:[%s12386_s5 + $0x100] sm:$0xff] }
 0x505   :  { %6475 = vmatprep.subr.mxu1 %v9533_v58  ;;  %6021 = vmatprep.subr.mxu0 %v9880_v7  ;;  %13170 = vst [vmem:[#allocation68_spill] sm:$0xff] %v10088_v19 }
 0x506   :  { %6476 = vmatpush3.msra.mxu1 %v9533_v58  ;;  %v9891_v58 = vld [vmem:[%s12386_s5 + $0x50] sm:$0xff] }
 0x507   :  { %2863 = vmatmul.mubr.f32.gmra.mxu1 %v2772_v62  ;;  %6477 = vmatprep.subr.mxu1 %v9544_v10  ;;  %v10095_v62 = vld [vmem:[#allocation8 + $0x2f8] sm:$0xff] }
 0x508   :  { %2868 = vmatprep.mubr.f32.mxu1 %v9785_v38  ;;  %6478 = vmatpush3.msra.mxu1 %v9544_v10  ;;  %v9904_v10 = vld [vmem:[%s12386_s5 + $0x150] sm:$0xff]  ;;  %13172 = vst [vmem:[#allocation63_spill] sm:$0xff] %v10095_v62 }
 0x509   :  { %6479 = vmatprep.subr.mxu1 %v9553_v20  ;;  %6022 = vmatpush3.msra.mxu0 %v9891_v58 }
 0x50a   :  { %6480 = vmatpush3.msra.mxu1 %v9553_v20  ;;  %6023 = vmatprep.subr.mxu0 %v9898_v63  ;;  %v9911_v20 = vld [vmem:[%s12386_s5 + $0x48] sm:$0xff] }
 0x50b   :  { %2869 = vmatmul.mubr.f32.gmra.mxu1 %v2773_v13  ;;  %6481 = vmatprep.subr.mxu1 %v9904_v10 }
 0x50c   :  { %6482 = vmatpush3.msra.mxu1 %v9904_v10  ;;  %6024 = vmatpush3.msra.mxu0 %v9911_v20 }
 0x50d   :  { %6483 = vmatprep.subr.mxu1 %v9917_v17  ;;  %6025 = vmatprep.subr.mxu0 %v9923_v61 }
 0x50e   :  { %6484 = vmatpush3.msra.mxu1 %v9917_v17  ;;  %6026 = vmatpush3.msra.mxu0 %v9930_v52 }
 0x50f   :  { %6485 = vmatprep.subr.mxu1 %v9936_v57  ;;  %6027 = vmatprep.subr.mxu0 %v9942_v28 }
 0x510   :  { %6486 = vmatpush3.msra.mxu1 %v9936_v57  ;;  %6028 = vmatpush3.msra.mxu0 %v9949_v14 }
 0x511   :  { %6487 = vmatprep.subr.mxu1 %v9955_v51  ;;  %6029 = vmatprep.subr.mxu0 %v9961_v26 }
 0x512   :  { %6488 = vmatpush3.msra.mxu1 %v9955_v51  ;;  %6030 = vmatpush3.msra.mxu0 %v9968_v41 }
 0x513   :  { %6489 = vmatprep.subr.mxu1 %v9974_v33  ;;  %6031 = vmatprep.subr.mxu0 %v9980_v8 }
 0x514   :  { %6490 = vmatpush3.msra.mxu1 %v9974_v33  ;;  %6032 = vmatpush3.msra.mxu0 %v9987_v4 }
 0x515   :  { %6491 = vmatprep.subr.mxu1 %v9993_v50  ;;  %6033 = vmatprep.subr.mxu0 %v9999_v23 }
 0x516   :  { %6492 = vmatpush3.msra.mxu1 %v9993_v50  ;;  %6034 = vmatpush3.msra.mxu0 %v10006_v24 }
 0x517   :  { %6493 = vmatprep.subr.mxu1 %v10012_v11  ;;  %6035 = vmatprep.subr.mxu0 %v10018_v0 }
 0x518   :  { %6494 = vmatpush3.msra.mxu1 %v10012_v11  ;;  %6036 = vmatpush3.msra.mxu0 %v10025_v31 }
 0x519   :  { %6495 = vmatprep.subr.mxu1 %v10031_v12  ;;  %6037 = vmatprep.subr.mxu0 %v10037_v34 }
 0x51a   :  { %6496 = vmatpush3.msra.mxu1 %v10031_v12  ;;  %6038 = vmatpush3.msra.mxu0 %v10044_v29 }
 0x51b   :  { %6497 = vmatprep.subr.mxu1 %v10050_v32  ;;  %6039 = vmatprep.subr.mxu0 %v10056_v15 }
 0x51c   :  { %6498 = vmatpush3.msra.mxu1 %v10050_v32  ;;  %6040 = vmatpush3.msra.mxu0 %v10063_v48  ;;  %v13173_v48 = vld [vmem:[#allocation25_spill] sm:$0xff] }
 0x51d   :  { %6499 = vmatprep.subr.mxu1 %v10069_v22  ;;  %6041 = vmatprep.subr.mxu0 %v10075_v1  ;;  %v1144_v15 = vadd.f32 %v13173_v48, %v9089_v6  ;;  %v13175_v48 = vld [vmem:[#allocation31_spill] sm:$0xff] }
 0x51e   :  { %6500 = vmatpush3.msra.mxu1 %v10069_v22  ;;  %6042 = vmatpush3.msra.mxu0 %v10082_v56 }
 0x51f   :  { %6501 = vmatprep.subr.mxu1 %v10088_v19  ;;  %3284 = vmatprep.subr.mxu0 %v10091_v27 }
 0x520   :  { %6502 = vmatpush3.msra.mxu1 %v10088_v19  ;;  %v13174_v19 = vld [vmem:[#allocation28_spill] sm:$0xff] }
 0x521   :  { %3373 = vmatprep.subr.mxu1 %v10095_v62  ;;  %v1150_v0 = vadd.f32 %v13174_v19, %v9089_v6 }
 0x5b7   :  { %v2941_v16 = vpop.f32.mrf.mxu0 }
 0x5b9   :  { %v2943_v13 = vpop.f32.mrf.mxu0 }
 0x5bb   :  { %v2947_v56 = vpop.f32.mrf.mxu0 }
 0x5bd   :  { %v2949_v1 = vpop.f32.mrf.mxu0 }
 0x5bf   :  { %v2852_v22 = vpop.f32.mrf.mxu1  ;;  %v2953_v27 = vpop.f32.mrf.mxu0 }
 0x5c0   :  { %v2942_v32 = vadd.f32 %v2941_v16, %v2852_v22  ;;  %v1156_v22 = vadd.f32 %v13175_v48, %v9089_v6 }
 0x5c1   :  { %v2854_v29 = vpop.f32.mrf.mxu1  ;;  %v2955_v4 = vpop.f32.mrf.mxu0 }
 0x5c2   :  { %v2964_v34 = vadd.f32 %v2942_v32, %v1144_v15  ;;  %v10100_v12 = vadd.f32 %v2943_v13, %v2854_v29 }
 0x5c3   :  { %v2858_v31 = vpop.f32.mrf.mxu1  ;;  %v2959_v19 = vpop.f32.mrf.mxu0 }
 0x5c4   :  { %v5835_v11 = vmul.f32 -1.442695, %v2964_v34  ;;  %v2948_v62 = vadd.f32 %v2947_v56, %v2858_v31  ;;  %v13176_v31 = vld [vmem:[#allocation35_spill] sm:$0xff] }
 0x5c5   :  { %v2860_v24 = vpop.f32.mrf.mxu1 }
 0x5c6   :  { %6885 = vpow2.f32 %v5835_v11  ;;  %v2966_v23 = vadd.f32 %v2948_v62, %v1150_v0  ;;  %v10104_v50 = vadd.f32 %v2949_v1, %v2860_v24  ;;  %v1162_v11 = vadd.f32 %v13176_v31, %v9089_v6 }
 0x5c7   :  { %v2864_v8 = vpop.f32.mrf.mxu1 }
 0x5c8   :  { %v5836_v32 = vmul.f32 -1.442695, %v2966_v23  ;;  %v2954_v29 = vadd.f32 %v2953_v27, %v2864_v8 }
 0x5c9   :  { %v2866_v15 = vpop.f32.mrf.mxu1 }
 0x5ca   :  { %6887 = vpow2.f32 %v5836_v32  ;;  %v2968_v16 = vadd.f32 %v2954_v29, %v1156_v22  ;;  %v10108_v13 = vadd.f32 %v2955_v4, %v2866_v15 }
 0x5cb   :  { %v2870_v34 = vpop.f32.mrf.mxu1 }
 0x5cc   :  { %v5837_v0 = vmul.f32 -1.442695, %v2968_v16  ;;  %v2960_v24 = vadd.f32 %v2959_v19, %v2870_v34 }
 0x5ce   :  { %6889 = vpow2.f32 %v5837_v0  ;;  %v2970_v1 = vadd.f32 %v2960_v24, %v1162_v11 }
 0x5d0   :  { %v5838_v56 = vmul.f32 -1.442695, %v2970_v1 }
 0x5d2   :  { %6891 = vpow2.f32 %v5838_v56 }
 0x5d3   :  { %v6886_v62 = vpop.eup %6885 }
 0x5d4   :  { %v2984_v48 = vadd.f32 1.0, %v6886_v62 }
 0x5d6   :  { %6893 = vrcp.f32 %v2984_v48 }
 0x5d7   :  { %v6888_v8 = vpop.eup %6887 }
 0x5d8   :  { %v2985_v23 = vadd.f32 1.0, %v6888_v8 }
 0x5da   :  { %6895 = vrcp.f32 %v2985_v23 }
 0x5db   :  { %v6890_v27 = vpop.eup %6889 }
 0x5dc   :  { %v2986_v4 = vadd.f32 1.0, %v6890_v27 }
 0x5de   :  { %6897 = vrcp.f32 %v2986_v4 }
 0x5df   :  { %v6892_v22 = vpop.eup %6891 }
 0x5e0   :  { %v2987_v32 = vadd.f32 1.0, %v6892_v22 }
 0x5e2   :  { %6899 = vrcp.f32 %v2987_v32 }
 0x5e3   :  { %v6894_v29 = vpop.eup %6893 }
 0x5e4   :  { %v3020_v15 = vmul.f32 %v6894_v29, %v9764_v53 }
 0x5e6   :  { %3112 = vmatprep.mubr.f32.mxu0 %v3020_v15  ;;  %v3024_v34 = vrot.slane %v3020_v15, 7  ;;  %v3036_v31 = vrot.slane %v3020_v15, 1 }
 0x5e7   :  { %v6896_v16 = vpop.eup %6895 }
 0x5e8   :  { %v3021_v19 = vmul.f32 %v6896_v16, %v9771_v21 }
 0x5ea   :  { %v3037_v11 = vrot.slane %v3021_v19, 1  ;;  %v3025_v0 = vrot.slane %v3021_v19, 7 }
 0x5eb   :  { %v6898_v24 = vpop.eup %6897 }
 0x5ec   :  { %v3022_v1 = vmul.f32 %v6898_v24, %v9777_v30  ;;  %v3042_v56 = vsel %vm458_vm0, %v3036_v31, %v3037_v11  ;;  %v3030_v62 = vsel %vm201_vm1, %v3024_v34, %v3025_v0 }
 0x5ed   :  { %v3044_v48 = vmul.f32 %v3042_v56, %v12826_v9 }
 0x5ee   :  { %v3038_v8 = vrot.slane %v3022_v1, 1  ;;  %v3026_v23 = vrot.slane %v3022_v1, 7 }
 0x5ef   :  { %v6900_v27 = vpop.eup %6899  ;;  %6503 = vmatprep.mubr.f32.mxu1 %v3044_v48 }
 0x5f0   :  { %v3023_v4 = vmul.f32 %v6900_v27, %v9785_v38  ;;  %v3041_v22 = vsel %vm458_vm0, %v3037_v11, %v3038_v8  ;;  %v3029_v32 = vsel %vm201_vm1, %v3025_v0, %v3026_v23  ;;  %v10134_v27 = vld [vmem:[#allocation8 + $0x2f0] sm:$0xff] }
 0x5f1   :  { %v3045_v29 = vmul.f32 %v3041_v22, %v12827_v18  ;;  %13177 = vst [vmem:[#allocation72_spill] sm:$0xff] %v10134_v27 }
 0x5f2   :  { %v3027_v15 = vrot.slane %v3023_v4, 7  ;;  %v3039_v16 = vrot.slane %v3023_v4, 1 }
 0x5f3   :  { %6504 = vmatmul.mubr.f32.vlgmr.msra.gmra.mxu1 %v3045_v29 }
 0x5f4   :  { %v3031_v24 = vsel %vm201_vm1, %v3027_v15, %v3024_v34  ;;  %v3040_v56 = vsel %vm458_vm0, %v3038_v8, %v3039_v16  ;;  %v3043_v48 = vsel %vm458_vm0, %v3039_v16, %v3036_v31  ;;  %v3028_v11 = vsel %vm201_vm1, %v3026_v23, %v3027_v15  ;;  %3374 = vmatpush1.msra.mxu1 %v10134_v27  ;;  %v10140_v34 = vld [vmem:[#allocation8 + $0x2e8] sm:$0xff]  ;;  %v10143_v8 = vld [vmem:[#allocation8 + $0x2e0] sm:$0xff]  ;;  %v10147_v23 = vld [vmem:[#allocation8 + $0xf0] sm:$0xff] }
 0x5f5   :  { %v3032_v0 = vmul.f32 %v3031_v24, %v12825_v42  ;;  %v3046_v22 = vmul.f32 %v3040_v56, %v12829_v46  ;;  %v3047_v29 = vmul.f32 %v3043_v48, %v12830_v39  ;;  %13178 = vst [vmem:[#allocation75_spill] sm:$0xff] %v10140_v34  ;;  %3375 = vmatprep.subr.mxu1 %v10140_v34  ;;  %13179 = vst [vmem:[#allocation66_spill] sm:$0xff] %v10143_v8  ;;  %v10150_v15 = vld [vmem:[#allocation8 + $0x2d8] sm:$0xff]  ;;  %v10153_v16 = vld [vmem:[#allocation8 + $0xe8] sm:$0xff] }
 0x5f6   :  { %3376 = vmatpush1.msra.mxu1 %v10143_v8  ;;  %v3033_v31 = vmul.f32 %v3030_v62, %v8234_v2  ;;  %13180 = vst [vmem:[#allocation76_spill] sm:$0xff] %v10147_v23  ;;  %13181 = vst [vmem:[#allocation77_spill] sm:$0xff] %v10150_v15  ;;  %v10156_v24 = vld [vmem:[#allocation8 + $0x2d0] sm:$0xff]  ;;  %v10162_v62 = vld [vmem:[#allocation8 + $0xe0] sm:$0xff]  ;;  %v3034_v56 = vmul.f32 %v3029_v32, %v12828_v35 }
 0x5f7   :  { %3113 = vmatmul.mubr.f32.vlgmr.msra.gmra.mxu0 %v3032_v0  ;;  %6506 = vmatprep.mubr.f32.mxu1 %v3046_v22  ;;  %13182 = vst [vmem:[#allocation69_spill] sm:$0xff] %v10153_v16  ;;  %13183 = vst [vmem:[#allocation82_spill] sm:$0xff] %v10156_v24  ;;  %v10166_v48 = vld [vmem:[#allocation8 + $0xd8] sm:$0xff]  ;;  %v10169_v0 = vld [vmem:[#allocation8 + $0x2c0] sm:$0xff] }
 0x5f8   :  { %3117 = vmatprep.mubr.f32.mxu0 %v3021_v19  ;;  %6507 = vmatmul.mubr.f32.gmra.mxu1 %v3047_v29  ;;  %v10159_v19 = vld [vmem:[#allocation8 + $0x2c8] sm:$0xff]  ;;  %13185 = vst [vmem:[#allocation14_spill] sm:$0xff] %v10162_v62  ;;  %13186 = vst [vmem:[#allocation17_spill] sm:$0xff] %v10166_v48  ;;  %v10172_v22 = vld [vmem:[#allocation8 + $0xd0] sm:$0xff] }
 0x5f9   :  { %3285 = vmatpush1.msra.mxu0 %v10147_v23  ;;  %3377 = vmatprep.subr.mxu1 %v10150_v15  ;;  %13184 = vst [vmem:[#allocation78_spill] sm:$0xff] %v10159_v19  ;;  %13187 = vst [vmem:[#allocation19_spill] sm:$0xff] %v10169_v0  ;;  %v10175_v29 = vld [vmem:[#allocation8 + $0x2b8] sm:$0xff]  ;;  %v10181_v32 = vld [vmem:[#allocation8 + $0xc0] sm:$0xff] }
 0x5fa   :  { %3286 = vmatprep.subr.mxu0 %v10153_v16  ;;  %3378 = vmatpush1.msra.mxu1 %v10156_v24  ;;  %13188 = vst [vmem:[#allocation23_spill] sm:$0xff] %v10172_v22  ;;  %13189 = vst [vmem:[#allocation127_spill] sm:$0xff] %v10175_v29 }
 0x5fb   :  { %3118 = vmatmul.mubr.f32.gmra.mxu0 %v3033_v31  ;;  %3379 = vmatprep.subr.mxu1 %v10159_v19  ;;  %13191 = vst [vmem:[#allocation129_spill] sm:$0xff] %v10181_v32  ;;  %v3035_v31 = vmul.f32 %v3028_v11, %v8283_v49  ;;  %v10200_v11 = vld [vmem:[#allocation8 + $0xa0] sm:$0xff] }
 0x5fc   :  { %3122 = vmatprep.mubr.f32.mxu0 %v3022_v1  ;;  %3287 = vmatpush1.msra.mxu0 %v10162_v62  ;;  %v10178_v1 = vld [vmem:[#allocation8 + $0xc8] sm:$0xff]  ;;  %13197 = vst [vmem:[#allocation135_spill] sm:$0xff] %v10200_v11  ;;  %v2961_v62 = vpop.f32.mrf.mxu0 }
 0x5fd   :  { %3288 = vmatprep.subr.mxu0 %v10166_v48  ;;  %3380 = vmatpush1.msra.mxu1 %v10169_v0  ;;  %13190 = vst [vmem:[#allocation128_spill] sm:$0xff] %v10178_v1  ;;  %v10185_v0 = vld [vmem:[#allocation8 + $0xb8] sm:$0xff] }
 0x5fe   :  { %3289 = vmatpush1.msra.mxu0 %v10172_v22  ;;  %3381 = vmatprep.subr.mxu1 %v10175_v29  ;;  %13192 = vst [vmem:[#allocation130_spill] sm:$0xff] %v10185_v0  ;;  %v10188_v22 = vld [vmem:[#allocation8 + $0x2b0] sm:$0xff]  ;;  %v2872_v29 = vpop.f32.mrf.mxu1 }
 0x5ff   :  { %3123 = vmatmul.mubr.f32.gmra.mxu0 %v3034_v56  ;;  %3290 = vmatprep.subr.mxu0 %v10178_v1  ;;  %13193 = vst [vmem:[#allocation131_spill] sm:$0xff] %v10188_v22  ;;  %v10191_v56 = vld [vmem:[#allocation8 + $0xb0] sm:$0xff]  ;;  %v10194_v1 = vld [vmem:[#allocation8 + $0x2a8] sm:$0xff]  ;;  %v2962_v16 = vadd.f32 %v2961_v62, %v2872_v29 }
 0x600   :  { %3127 = vmatprep.mubr.f32.mxu0 %v3023_v4  ;;  %3291 = vmatpush1.msra.mxu0 %v10181_v32  ;;  %13194 = vst [vmem:[#allocation132_spill] sm:$0xff] %v10191_v56  ;;  %13195 = vst [vmem:[#allocation133_spill] sm:$0xff] %v10194_v1  ;;  %v10197_v4 = vld [vmem:[#allocation8 + $0xa8] sm:$0xff] }
 0x601   :  { %3292 = vmatprep.subr.mxu0 %v10185_v0  ;;  %3382 = vmatpush1.msra.mxu1 %v10188_v22  ;;  %13196 = vst [vmem:[#allocation134_spill] sm:$0xff] %v10197_v4  ;;  %v10203_v0 = vld [vmem:[#allocation8 + $0x2a0] sm:$0xff]  ;;  %v10206_v22 = vld [vmem:[#allocation8 + $0x98] sm:$0xff] }
 0x602   :  { %3293 = vmatpush1.msra.mxu0 %v10191_v56  ;;  %3383 = vmatprep.subr.mxu1 %v10194_v1  ;;  %13198 = vst [vmem:[#allocation136_spill] sm:$0xff] %v10203_v0  ;;  %13199 = vst [vmem:[#allocation137_spill] sm:$0xff] %v10206_v22  ;;  %v10209_v56 = vld [vmem:[#allocation8 + $0x298] sm:$0xff] }
 0x603   :  { %3128 = vmatmul.mubr.f32.gmra.mxu0 %v3035_v31  ;;  %3294 = vmatprep.subr.mxu0 %v10197_v4  ;;  %13200 = vst [vmem:[#allocation138_spill] sm:$0xff] %v10209_v56  ;;  %v10212_v31 = vld [vmem:[#allocation8 + $0x90] sm:$0xff] }
 0x604   :  { %3295 = vmatpush1.msra.mxu0 %v10200_v11  ;;  %3384 = vmatpush1.msra.mxu1 %v10203_v0  ;;  %13201 = vst [vmem:[#allocation139_spill] sm:$0xff] %v10212_v31  ;;  %v10215_v4 = vld [vmem:[#allocation8 + $0x290] sm:$0xff]  ;;  %v10218_v11 = vld [vmem:[#allocation8 + $0x88] sm:$0xff] }
 0x605   :  { %3296 = vmatprep.subr.mxu0 %v10206_v22  ;;  %3385 = vmatprep.subr.mxu1 %v10209_v56  ;;  %13202 = vst [vmem:[#allocation140_spill] sm:$0xff] %v10215_v4  ;;  %13203 = vst [vmem:[#allocation141_spill] sm:$0xff] %v10218_v11  ;;  %v10221_v0 = vld [vmem:[#allocation8 + $0x288] sm:$0xff]  ;;  %v10224_v22 = vld [vmem:[#allocation8 + $0x80] sm:$0xff] }
 0x606   :  { %3297 = vmatpush1.msra.mxu0 %v10212_v31  ;;  %3386 = vmatpush1.msra.mxu1 %v10215_v4  ;;  %13204 = vst [vmem:[#allocation142_spill] sm:$0xff] %v10221_v0  ;;  %13205 = vst [vmem:[#allocation143_spill] sm:$0xff] %v10224_v22  ;;  %v10227_v56 = vld [vmem:[#allocation8 + $0x280] sm:$0xff]  ;;  %v10230_v31 = vld [vmem:[#allocation8 + $0x78] sm:$0xff] }
 0x607   :  { %3298 = vmatprep.subr.mxu0 %v10218_v11  ;;  %3387 = vmatprep.subr.mxu1 %v10221_v0  ;;  %13206 = vst [vmem:[#allocation144_spill] sm:$0xff] %v10227_v56  ;;  %13207 = vst [vmem:[#allocation145_spill] sm:$0xff] %v10230_v31  ;;  %v10233_v4 = vld [vmem:[#allocation8 + $0x278] sm:$0xff]  ;;  %v10236_v11 = vld [vmem:[#allocation8 + $0x70] sm:$0xff] }
 0x608   :  { %3299 = vmatpush1.msra.mxu0 %v10224_v22  ;;  %3388 = vmatpush1.msra.mxu1 %v10227_v56  ;;  %13208 = vst [vmem:[#allocation146_spill] sm:$0xff] %v10233_v4  ;;  %13209 = vst [vmem:[#allocation147_spill] sm:$0xff] %v10236_v11  ;;  %v10239_v0 = vld [vmem:[#allocation8 + $0x270] sm:$0xff]  ;;  %v10242_v22 = vld [vmem:[#allocation8 + $0x68] sm:$0xff] }
 0x609   :  { %3300 = vmatprep.subr.mxu0 %v10230_v31  ;;  %3389 = vmatprep.subr.mxu1 %v10233_v4  ;;  %13210 = vst [vmem:[#allocation148_spill] sm:$0xff] %v10239_v0  ;;  %13211 = vst [vmem:[#allocation149_spill] sm:$0xff] %v10242_v22  ;;  %v10245_v56 = vld [vmem:[#allocation8 + $0x268] sm:$0xff]  ;;  %v10248_v31 = vld [vmem:[#allocation8 + $0x60] sm:$0xff] }
 0x60a   :  { %3301 = vmatpush1.msra.mxu0 %v10236_v11  ;;  %3390 = vmatpush1.msra.mxu1 %v10239_v0  ;;  %13212 = vst [vmem:[#allocation150_spill] sm:$0xff] %v10245_v56  ;;  %13213 = vst [vmem:[#allocation151_spill] sm:$0xff] %v10248_v31  ;;  %v10251_v4 = vld [vmem:[#allocation8 + $0x260] sm:$0xff]  ;;  %v10254_v11 = vld [vmem:[#allocation8 + $0x58] sm:$0xff] }
 0x60b   :  { %3302 = vmatprep.subr.mxu0 %v10242_v22  ;;  %3391 = vmatprep.subr.mxu1 %v10245_v56  ;;  %13214 = vst [vmem:[#allocation152_spill] sm:$0xff] %v10251_v4  ;;  %13215 = vst [vmem:[#allocation153_spill] sm:$0xff] %v10254_v11  ;;  %v10257_v0 = vld [vmem:[#allocation8 + $0x258] sm:$0xff]  ;;  %v10260_v22 = vld [vmem:[#allocation8 + $0x50] sm:$0xff] }
 0x60c   :  { %3303 = vmatpush1.msra.mxu0 %v10248_v31  ;;  %3392 = vmatpush1.msra.mxu1 %v10251_v4  ;;  %13216 = vst [vmem:[#allocation154_spill] sm:$0xff] %v10257_v0  ;;  %13217 = vst [vmem:[#allocation155_spill] sm:$0xff] %v10260_v22  ;;  %v10263_v56 = vld [vmem:[#allocation8 + $0x250] sm:$0xff]  ;;  %v10266_v31 = vld [vmem:[#allocation8 + $0x48] sm:$0xff] }
 0x60d   :  { %3304 = vmatprep.subr.mxu0 %v10254_v11  ;;  %3393 = vmatprep.subr.mxu1 %v10257_v0  ;;  %13218 = vst [vmem:[#allocation156_spill] sm:$0xff] %v10263_v56  ;;  %13219 = vst [vmem:[#allocation157_spill] sm:$0xff] %v10266_v31  ;;  %v10269_v4 = vld [vmem:[#allocation8 + $0x248] sm:$0xff]  ;;  %v10272_v11 = vld [vmem:[#allocation8 + $0x40] sm:$0xff] }
 0x60e   :  { %3305 = vmatpush1.msra.mxu0 %v10260_v22  ;;  %3394 = vmatpush1.msra.mxu1 %v10263_v56  ;;  %13220 = vst [vmem:[#allocation158_spill] sm:$0xff] %v10269_v4  ;;  %13221 = vst [vmem:[#allocation159_spill] sm:$0xff] %v10272_v11  ;;  %v10275_v0 = vld [vmem:[#allocation8 + $0x240] sm:$0xff]  ;;  %v10278_v22 = vld [vmem:[#allocation8 + $0x38] sm:$0xff] }
 0x60f   :  { %3306 = vmatprep.subr.mxu0 %v10266_v31  ;;  %3395 = vmatprep.subr.mxu1 %v10269_v4  ;;  %13222 = vst [vmem:[#allocation160_spill] sm:$0xff] %v10275_v0  ;;  %13223 = vst [vmem:[#allocation161_spill] sm:$0xff] %v10278_v22  ;;  %v10281_v56 = vld [vmem:[#allocation8 + $0x238] sm:$0xff]  ;;  %v10284_v31 = vld [vmem:[#allocation8 + $0x30] sm:$0xff] }
 0x610   :  { %3307 = vmatpush1.msra.mxu0 %v10272_v11  ;;  %3396 = vmatpush1.msra.mxu1 %v10275_v0  ;;  %13224 = vst [vmem:[#allocation162_spill] sm:$0xff] %v10281_v56  ;;  %13225 = vst [vmem:[#allocation163_spill] sm:$0xff] %v10284_v31  ;;  %v10287_v4 = vld [vmem:[#allocation8 + $0x230] sm:$0xff]  ;;  %v10290_v11 = vld [vmem:[#allocation8 + $0x28] sm:$0xff] }
 0x611   :  { %3308 = vmatprep.subr.mxu0 %v10278_v22  ;;  %3397 = vmatprep.subr.mxu1 %v10281_v56  ;;  %13226 = vst [vmem:[#allocation164_spill] sm:$0xff] %v10287_v4  ;;  %13227 = vst [vmem:[#allocation165_spill] sm:$0xff] %v10290_v11  ;;  %v10293_v0 = vld [vmem:[#allocation8 + $0x228] sm:$0xff]  ;;  %v10296_v22 = vld [vmem:[#allocation8 + $0x20] sm:$0xff] }
 0x612   :  { %3309 = vmatpush1.msra.mxu0 %v10284_v31  ;;  %3398 = vmatpush1.msra.mxu1 %v10287_v4  ;;  %13228 = vst [vmem:[#allocation166_spill] sm:$0xff] %v10293_v0  ;;  %13229 = vst [vmem:[#allocation167_spill] sm:$0xff] %v10296_v22  ;;  %v10299_v56 = vld [vmem:[#allocation8 + $0x220] sm:$0xff]  ;;  %v10302_v31 = vld [vmem:[#allocation8 + $0x18] sm:$0xff] }
 0x613   :  { %3310 = vmatprep.subr.mxu0 %v10290_v11  ;;  %3399 = vmatprep.subr.mxu1 %v10293_v0  ;;  %13230 = vst [vmem:[#allocation168_spill] sm:$0xff] %v10299_v56  ;;  %13231 = vst [vmem:[#allocation169_spill] sm:$0xff] %v10302_v31  ;;  %v10305_v4 = vld [vmem:[#allocation8 + $0x218] sm:$0xff]  ;;  %v10308_v11 = vld [vmem:[#allocation8 + $0x10] sm:$0xff] }
 0x614   :  { %3311 = vmatpush1.msra.mxu0 %v10296_v22  ;;  %3400 = vmatpush1.msra.mxu1 %v10299_v56  ;;  %13232 = vst [vmem:[#allocation170_spill] sm:$0xff] %v10305_v4  ;;  %13233 = vst [vmem:[#allocation171_spill] sm:$0xff] %v10308_v11  ;;  %v10311_v0 = vld [vmem:[#allocation8 + $0x210] sm:$0xff]  ;;  %v10314_v22 = vld [vmem:[#allocation8 + $0x8] sm:$0xff] }
 0x615   :  { %3312 = vmatprep.subr.mxu0 %v10302_v31  ;;  %3401 = vmatprep.subr.mxu1 %v10305_v4  ;;  %13234 = vst [vmem:[#allocation172_spill] sm:$0xff] %v10311_v0  ;;  %13235 = vst [vmem:[#allocation173_spill] sm:$0xff] %v10314_v22  ;;  %v10317_v56 = vld [vmem:[#allocation8 + $0x208] sm:$0xff]  ;;  %v10320_v31 = vld [vmem:[#allocation8] sm:$0xff] }
 0x616   :  { %3313 = vmatpush1.msra.mxu0 %v10308_v11  ;;  %3402 = vmatpush1.msra.mxu1 %v10311_v0  ;;  %13236 = vst [vmem:[#allocation174_spill] sm:$0xff] %v10317_v56  ;;  %13237 = vst [vmem:[#allocation175_spill] sm:$0xff] %v10320_v31  ;;  %v10323_v4 = vld [vmem:[#allocation8 + $0x200] sm:$0xff]  ;;  %v10326_v11 = vld [vmem:[#allocation8 + $0x1f8] sm:$0xff] }
 0x617   :  { %3314 = vmatprep.subr.mxu0 %v10314_v22  ;;  %3403 = vmatprep.subr.mxu1 %v10317_v56  ;;  %13238 = vst [vmem:[#allocation176_spill] sm:$0xff] %v10323_v4  ;;  %13239 = vst [vmem:[#allocation177_spill] sm:$0xff] %v10326_v11  ;;  %v10330_v0 = vld [vmem:[#allocation8 + $0x1f0] sm:$0xff]  ;;  %v10334_v56 = vld [vmem:[#allocation8 + $0x1e8] sm:$0xff] }
 0x618   :  { %3315 = vmatpush1.msra.mxu0 %v10320_v31  ;;  %3404 = vmatpush1.msra.mxu1 %v10323_v4  ;;  %13240 = vst [vmem:[#allocation178_spill] sm:$0xff] %v10330_v0  ;;  %13241 = vst [vmem:[#allocation179_spill] sm:$0xff] %v10334_v56  ;;  %v10337_v31 = vld [vmem:[#allocation8 + $0x1e0] sm:$0xff]  ;;  %v10340_v4 = vld [vmem:[#allocation8 + $0x1d8] sm:$0xff] }
 0x619   :  { %3316 = vmatprep.subr.mxu0 %v10326_v11  ;;  %3437 = vmatprep.mubr.f32.mxu1 %v12824_v43  ;;  %13242 = vst [vmem:[#allocation180_spill] sm:$0xff] %v10337_v31  ;;  %13243 = vst [vmem:[#allocation181_spill] sm:$0xff] %v10340_v4  ;;  %v10343_v11 = vld [vmem:[#allocation8 + $0x1d0] sm:$0xff]  ;;  %v10346_v22 = vld [vmem:[#allocation8 + $0x1c8] sm:$0xff] }
 0x61a   :  { %3317 = vmatpush2.msra.mxu0 %v10330_v0  ;;  %6075 = vmatprep.subr.mxu1 %v9712_v44  ;;  %13244 = vst [vmem:[#allocation182_spill] sm:$0xff] %v10343_v11  ;;  %13245 = vst [vmem:[#allocation183_spill] sm:$0xff] %v10346_v22  ;;  %v10349_v44 = vld [vmem:[#allocation8 + $0x1c0] sm:$0xff]  ;;  %v13272_v0 = vld [vmem:[#allocation30_spill] sm:$0xff] }
 0x61b   :  { %3318 = vmatprep.subr.mxu0 %v10334_v56  ;;  %13246 = vst [vmem:[#allocation184_spill] sm:$0xff] %v10349_v44  ;;  %v10352_v56 = vld [vmem:[#allocation8 + $0x1b8] sm:$0xff]  ;;  %v1152_v1 = vadd.f32 %v13272_v0, %v13143_v25 }
 0x61c   :  { %3319 = vmatpush2.msra.mxu0 %v10337_v31  ;;  %13247 = vst [vmem:[#allocation185_spill] sm:$0xff] %v10352_v56  ;;  %v10355_v31 = vld [vmem:[#allocation8 + $0x1b0] sm:$0xff] }
 0x61d   :  { %3320 = vmatprep.subr.mxu0 %v10340_v4  ;;  %13248 = vst [vmem:[#allocation186_spill] sm:$0xff] %v10355_v31  ;;  %v10358_v4 = vld [vmem:[#allocation8 + $0x1a8] sm:$0xff]  ;;  %v2967_v32 = vadd.f32 %v10104_v50, %v1152_v1 }
 0x61e   :  { %3321 = vmatpush2.msra.mxu0 %v10343_v11  ;;  %13249 = vst [vmem:[#allocation187_spill] sm:$0xff] %v10358_v4  ;;  %v10361_v11 = vld [vmem:[#allocation8 + $0x1a0] sm:$0xff] }
 0x61f   :  { %3322 = vmatprep.subr.mxu0 %v10346_v22  ;;  %13250 = vst [vmem:[#allocation188_spill] sm:$0xff] %v10361_v11  ;;  %v10364_v22 = vld [vmem:[#allocation8 + $0x198] sm:$0xff]  ;;  %v5840_v19 = vmul.f32 -1.442695, %v2967_v32 }
 0x620   :  { %3323 = vmatpush2.msra.mxu0 %v10349_v44  ;;  %13251 = vst [vmem:[#allocation189_spill] sm:$0xff] %v10364_v22  ;;  %v10367_v44 = vld [vmem:[#allocation8 + $0x190] sm:$0xff] }
 0x621   :  { %3324 = vmatprep.subr.mxu0 %v10352_v56  ;;  %13252 = vst [vmem:[#allocation190_spill] sm:$0xff] %v10367_v44  ;;  %v10370_v56 = vld [vmem:[#allocation8 + $0x188] sm:$0xff] }
 0x622   :  { %3325 = vmatpush2.msra.mxu0 %v10355_v31  ;;  %13253 = vst [vmem:[#allocation191_spill] sm:$0xff] %v10370_v56  ;;  %v10373_v31 = vld [vmem:[#allocation8 + $0x180] sm:$0xff] }
 0x623   :  { %3326 = vmatprep.subr.mxu0 %v10358_v4  ;;  %13254 = vst [vmem:[#allocation192_spill] sm:$0xff] %v10373_v31  ;;  %v10376_v4 = vld [vmem:[#allocation8 + $0x178] sm:$0xff] }
 0x624   :  { %3327 = vmatpush2.msra.mxu0 %v10361_v11  ;;  %13255 = vst [vmem:[#allocation193_spill] sm:$0xff] %v10376_v4  ;;  %v10379_v11 = vld [vmem:[#allocation8 + $0x170] sm:$0xff] }
 0x625   :  { %3328 = vmatprep.subr.mxu0 %v10364_v22  ;;  %13256 = vst [vmem:[#allocation194_spill] sm:$0xff] %v10379_v11  ;;  %v10382_v22 = vld [vmem:[#allocation8 + $0x168] sm:$0xff] }
 0x626   :  { %3329 = vmatpush2.msra.mxu0 %v10367_v44  ;;  %13257 = vst [vmem:[#allocation195_spill] sm:$0xff] %v10382_v22  ;;  %v10385_v44 = vld [vmem:[#allocation8 + $0x160] sm:$0xff] }
 0x627   :  { %3330 = vmatprep.subr.mxu0 %v10370_v56  ;;  %13258 = vst [vmem:[#allocation196_spill] sm:$0xff] %v10385_v44  ;;  %v10388_v56 = vld [vmem:[#allocation8 + $0x158] sm:$0xff] }
 0x628   :  { %3331 = vmatpush2.msra.mxu0 %v10373_v31  ;;  %13259 = vst [vmem:[#allocation197_spill] sm:$0xff] %v10388_v56  ;;  %v10391_v31 = vld [vmem:[#allocation8 + $0x150] sm:$0xff] }
 0x629   :  { %3332 = vmatprep.subr.mxu0 %v10376_v4  ;;  %13260 = vst [vmem:[#allocation198_spill] sm:$0xff] %v10391_v31  ;;  %v10394_v4 = vld [vmem:[#allocation8 + $0x148] sm:$0xff] }
 0x62a   :  { %3333 = vmatpush2.msra.mxu0 %v10379_v11  ;;  %13261 = vst [vmem:[#allocation199_spill] sm:$0xff] %v10394_v4  ;;  %v10397_v11 = vld [vmem:[#allocation8 + $0x140] sm:$0xff] }
 0x62b   :  { %3334 = vmatprep.subr.mxu0 %v10382_v22  ;;  %13262 = vst [vmem:[#allocation200_spill] sm:$0xff] %v10397_v11  ;;  %v10400_v22 = vld [vmem:[#allocation8 + $0x138] sm:$0xff] }
 0x62c   :  { %3335 = vmatpush2.msra.mxu0 %v10385_v44  ;;  %13263 = vst [vmem:[#allocation201_spill] sm:$0xff] %v10400_v22  ;;  %v10403_v44 = vld [vmem:[#allocation8 + $0x130] sm:$0xff] }
 0x62d   :  { %3336 = vmatprep.subr.mxu0 %v10388_v56  ;;  %13264 = vst [vmem:[#allocation202_spill] sm:$0xff] %v10403_v44  ;;  %v10406_v56 = vld [vmem:[#allocation8 + $0x128] sm:$0xff] }
 0x62e   :  { %3337 = vmatpush2.msra.mxu0 %v10391_v31  ;;  %13265 = vst [vmem:[#allocation203_spill] sm:$0xff] %v10406_v56  ;;  %v10409_v31 = vld [vmem:[#allocation8 + $0x120] sm:$0xff] }
 0x62f   :  { %3338 = vmatprep.subr.mxu0 %v10394_v4  ;;  %13266 = vst [vmem:[#allocation204_spill] sm:$0xff] %v10409_v31  ;;  %v10412_v4 = vld [vmem:[#allocation8 + $0x118] sm:$0xff] }
 0x630   :  { %3339 = vmatpush2.msra.mxu0 %v10397_v11  ;;  %13267 = vst [vmem:[#allocation205_spill] sm:$0xff] %v10412_v4  ;;  %v10415_v11 = vld [vmem:[#allocation8 + $0x110] sm:$0xff] }
 0x631   :  { %3340 = vmatprep.subr.mxu0 %v10400_v22  ;;  %13268 = vst [vmem:[#allocation206_spill] sm:$0xff] %v10415_v11  ;;  %v10418_v22 = vld [vmem:[#allocation8 + $0x108] sm:$0xff] }
 0x632   :  { %3341 = vmatpush2.msra.mxu0 %v10403_v44  ;;  %13269 = vst [vmem:[#allocation207_spill] sm:$0xff] %v10418_v22  ;;  %v10421_v44 = vld [vmem:[#allocation8 + $0x100] sm:$0xff] }
 0x633   :  { %3342 = vmatprep.subr.mxu0 %v10406_v56  ;;  %13270 = vst [vmem:[#allocation208_spill] sm:$0xff] %v10421_v44 }
 0x634   :  { %3343 = vmatpush2.msra.mxu0 %v10409_v31  ;;  %v10427_v31 = vld [vmem:[%s12386_s5 + $0x178] sm:$0xff] }
 0x635   :  { %3344 = vmatprep.subr.mxu0 %v10412_v4  ;;  %v13271_v4 = vld [vmem:[#allocation27_spill] sm:$0xff] }
 0x636   :  { %3345 = vmatpush2.msra.mxu0 %v10415_v11  ;;  %v1146_v56 = vadd.f32 %v13271_v4, %v13143_v25  ;;  %v13274_v4 = vld [vmem:[#allocation36_spill] sm:$0xff] }
 0x637   :  { %3346 = vmatprep.subr.mxu0 %v10418_v22  ;;  %v1164_v15 = vadd.f32 %v13274_v4, %v13143_v25 }
 0x638   :  { %3347 = vmatpush2.msra.mxu0 %v10421_v44  ;;  %v2965_v11 = vadd.f32 %v10100_v12, %v1146_v56  ;;  %v13273_v44 = vld [vmem:[#allocation33_spill] sm:$0xff] }
 0x639   :  { %6509 = vmatprep.subr.mxu0 %v10427_v31  ;;  %v1158_v48 = vadd.f32 %v13273_v44, %v13143_v25  ;;  %v2971_v56 = vadd.f32 %v2962_v16, %v1164_v15  ;;  %v13275_v16 = vld [vmem:[#allocation26_spill] sm:$0xff] }
 0x63a   :  { %v5839_v22 = vmul.f32 -1.442695, %v2965_v11  ;;  %v1393_v4 = vadd.f32 %v13275_v16, %v9440_v45 }
 0x63b   :  { %v2969_v24 = vadd.f32 %v10108_v13, %v1158_v48  ;;  %v5842_v0 = vmul.f32 -1.442695, %v2971_v56 }
 0x63c   :  { %6901 = vpow2.f32 %v5839_v22 }
 0x63d   :  { %6903 = vpow2.f32 %v5840_v19  ;;  %v5841_v12 = vmul.f32 -1.442695, %v2969_v24 }
 0x63f   :  { %6905 = vpow2.f32 %v5841_v12 }
 0x640   :  { %6907 = vpow2.f32 %v5842_v0 }
 0x649   :  { %v6902_v50 = vpop.eup %6901 }
 0x64a   :  { %v3008_v1 = vadd.f32 1.0, %v6902_v50  ;;  %v6904_v11 = vpop.eup %6903 }
 0x64b   :  { %v3009_v44 = vadd.f32 1.0, %v6904_v11 }
 0x64c   :  { %6909 = vrcp.f32 %v3008_v1  ;;  %v6906_v23 = vpop.eup %6905 }
 0x64d   :  { %6911 = vrcp.f32 %v3009_v44  ;;  %v3010_v22 = vadd.f32 1.0, %v6906_v23  ;;  %v6908_v32 = vpop.eup %6907  ;;  %v13276_v44 = vld [vmem:[#allocation29_spill] sm:$0xff] }
 0x64e   :  { %v3011_v48 = vadd.f32 1.0, %v6908_v32  ;;  %v1398_v25 = vadd.f32 %v13276_v44, %v9440_v45 }
 0x64f   :  { %6913 = vrcp.f32 %v3010_v22 }
 0x650   :  { %6915 = vrcp.f32 %v3011_v48 }
 0x659   :  { %v6910_v56 = vpop.eup %6909 }
 0x65a   :  { %v3230_v32 = vsub.f32 1.0, %v6910_v56  ;;  %v3226_v34 = vmul.f32 %v6910_v56, %v9764_v53 }
 0x6b3   :  { %v6505_v13 = vpop.f32.mrf.mxu1 }
 0x6b5   :  { %v3199_v24 = vpop.f32.mrf.mxu1 }
 0x6b7   :  { %v6043_v62 = vpop.f32.mrf.mxu0 }
 0x6b8   :  { %v6508_v11 = vpop.f32.mrf.mxu1 }
 0x6b9   :  { %v6044_v29 = vpop.f32.mrf.mxu0 }
 0x6ba   :  { %v6045_v19 = vadd.f32 %v6044_v29, %v6043_v62  ;;  %v6912_v62 = vpop.eup %6911 }
 0x6bb   :  { %v6046_v15 = vpop.f32.mrf.mxu0  ;;  %v3231_v6 = vsub.f32 1.0, %v6912_v62 }
 0x6bc   :  { %v3200_v12 = vadd.f32 %v6045_v19, %v3199_v24  ;;  %v13277_v19 = vld [vmem:[#allocation32_spill] sm:$0xff] }
 0x6bd   :  { %v6047_v0 = vpop.f32.mrf.mxu0  ;;  %v1403_v24 = vadd.f32 %v13277_v19, %v9440_v45 }
 0x6be   :  { %v3218_v50 = vadd.f32 %v3200_v12, %v1393_v4  ;;  %v6048_v1 = vadd.f32 %v6047_v0, %v6046_v15  ;;  %v3209_v4 = vpop.f32.mrf.mxu1 }
 0x6bf   :  { %v6049_v23 = vpop.f32.mrf.mxu0 }
 0x6c0   :  { %v3222_v22 = vmax.f32 %v3218_v50, 0.0  ;;  %v3205_v8 = vadd.f32 %v6505_v13, %v6048_v1  ;;  %v6914_v50 = vpop.eup %6913  ;;  %v3227_v13 = vmul.f32 %v6912_v62, %v9771_v21 }
 0x6c1   :  { %v6050_v29 = vpop.f32.mrf.mxu0 }
 0x6c2   :  { %v3234_v27 = vmul.f32 %v3230_v32, %v3222_v22  ;;  %v3219_v16 = vadd.f32 %v3205_v8, %v1398_v25  ;;  %v6051_v48 = vadd.f32 %v6050_v29, %v6049_v23  ;;  %v13278_v8 = vld [vmem:[#allocation34_spill] sm:$0xff]  ;;  %v6916_v32 = vpop.eup %6915  ;;  %v3228_v29 = vmul.f32 %v6914_v50, %v9777_v30 }
 0x6c3   :  { %v6052_v15 = vpop.f32.mrf.mxu0  ;;  %v1408_v1 = vadd.f32 %v13278_v8, %v9440_v45  ;;  %v3233_v19 = vsub.f32 1.0, %v6916_v32  ;;  %v3229_v30 = vmul.f32 %v6916_v32, %v9785_v38  ;;  %v10530_v32 = vld [vmem:[%s12386_s5 + $0x160] sm:$0xff] }
 0x6c4   :  { %v10448_v12 = vadd.f32 %v3234_v27, %v3226_v34  ;;  %v3223_v0 = vmax.f32 %v3219_v16, 0.0  ;;  %v3210_v44 = vadd.f32 %v6051_v48, %v3209_v4  ;;  %v3232_v34 = vsub.f32 1.0, %v6914_v50 }
 0x6c5   :  { %v6053_v33 = vpop.f32.mrf.mxu0 }
 0x6c6   :  { %3243 = vst [vmem:[#allocation9 + $0x40] sm:$0xff] %v10448_v12  ;;  %v3235_v53 = vmul.f32 %v3231_v6, %v3223_v0  ;;  %v3220_v56 = vadd.f32 %v3210_v44, %v1403_v24  ;;  %v6054_v25 = vadd.f32 %v6053_v33, %v6052_v15  ;;  %3348 = vmatprep.mubr.f32.mxu0 %v10448_v12  ;;  %v3272_v6 = vrot.slane %v10448_v12, 1 }
 0x6c7   :  { %v3260_v38 = vrot.slane %v10448_v12, 7 }
 0x6c8   :  { %v10455_v23 = vadd.f32 %v3235_v53, %v3227_v13  ;;  %v3224_v27 = vmax.f32 %v3220_v56, 0.0  ;;  %v3215_v22 = vadd.f32 %v6508_v11, %v6054_v25 }
 0x6ca   :  { %3244 = vst [vmem:[#allocation9 + $0x48] sm:$0xff] %v10455_v23  ;;  %v3236_v16 = vmul.f32 %v3232_v34, %v3224_v27  ;;  %v3221_v21 = vadd.f32 %v3215_v22, %v1408_v1  ;;  %v3273_v33 = vrot.slane %v10455_v23, 1  ;;  %v3261_v56 = vrot.slane %v10455_v23, 7  ;;  %v10519_v22 = vld [vmem:[%s12386_s5 + $0x168] sm:$0xff] }
 0x6cc   :  { %v10461_v62 = vadd.f32 %v3236_v16, %v3228_v29  ;;  %v3225_v48 = vmax.f32 %v3221_v21, 0.0  ;;  %v3278_v24 = vsel %vm458_vm0, %v3272_v6, %v3273_v33  ;;  %v10539_v29 = vld [vmem:[%s12386_s5 + $0x158] sm:$0xff]  ;;  %v13293_v16 = vld [vmem:[#allocation55_spill] sm:$0xff]  ;;  %v13294_v21 = vld [vmem:[#allocation65_spill] sm:$0xff] }
 0x6cd   :  { %v3280_v11 = vmul.f32 %v3278_v24, %v12826_v9  ;;  %v13299_v24 = vld [vmem:[#allocation63_spill] sm:$0xff] }
 0x6ce   :  { %3245 = vst [vmem:[#allocation9 + $0x50] sm:$0xff] %v10461_v62  ;;  %v3237_v4 = vmul.f32 %v3233_v19, %v3225_v48  ;;  %v3274_v15 = vrot.slane %v10461_v62, 1  ;;  %v3262_v1 = vrot.slane %v10461_v62, 7  ;;  %v13297_v48 = vld [vmem:[#allocation68_spill] sm:$0xff]  ;;  %v13298_v19 = vld [vmem:[#allocation71_spill] sm:$0xff] }
 0x6cf   :  { %3438 = vmatmul.mubr.f32.vlgmr.msra.gmra.mxu1 %v3280_v11 }
 0x6d0   :  { %v10469_v0 = vadd.f32 %v3237_v4, %v3229_v30  ;;  %3443 = vmatprep.mubr.f32.mxu1 %v12824_v43  ;;  %v3277_v44 = vsel %vm458_vm0, %v3273_v33, %v3274_v15  ;;  %6076 = vmatpush3.msra.mxu1 %v9793_v55  ;;  %v3265_v34 = vsel %vm201_vm1, %v3261_v56, %v3262_v1  ;;  %v13296_v33 = vld [vmem:[#allocation59_spill] sm:$0xff] }
 0x6d1   :  { %v3281_v50 = vmul.f32 %v3277_v44, %v12827_v18  ;;  %6077 = vmatprep.subr.mxu1 %v9800_v40 }
 0x6d2   :  { %3246 = vst [vmem:[#allocation9 + $0x58] sm:$0xff] %v10469_v0  ;;  %v3263_v13 = vrot.slane %v10469_v0, 7  ;;  %v3275_v53 = vrot.slane %v10469_v0, 1  ;;  %6078 = vmatpush3.msra.mxu1 %v9811_v54  ;;  %v3266_v54 = vsel %vm201_vm1, %v3260_v38, %v3261_v56 }
 0x6d3   :  { %3444 = vmatmul.mubr.f32.gmra.mxu1 %v3281_v50  ;;  %6079 = vmatprep.subr.mxu1 %v9817_v36  ;;  %v3269_v27 = vmul.f32 %v3266_v54, %v8234_v2  ;;  %v13300_v50 = vld [vmem:[#allocation125_spill] sm:$0xff] }
 0x6d4   :  { %3449 = vmatprep.mubr.f32.mxu1 %v12824_v43  ;;  %v3267_v55 = vsel %vm201_vm1, %v3263_v13, %v3260_v38  ;;  %v3276_v40 = vsel %vm458_vm0, %v3274_v15, %v3275_v53  ;;  %6080 = vmatpush3.msra.mxu1 %v9830_v60  ;;  %v3279_v36 = vsel %vm458_vm0, %v3275_v53, %v3272_v6  ;;  %v13295_v6 = vld [vmem:[#allocation67_spill] sm:$0xff]  ;;  %v13301_v38 = vld [vmem:[#allocation37_spill] sm:$0xff] }
 0x6d5   :  { %v3268_v25 = vmul.f32 %v3267_v55, %v12825_v42  ;;  %v3282_v8 = vmul.f32 %v3276_v40, %v12829_v46  ;;  %6081 = vmatprep.subr.mxu1 %v9841_v47  ;;  %v3283_v60 = vmul.f32 %v3279_v36, %v12830_v39  ;;  %v10509_v47 = vld [vmem:[%s12386_s5 + $0x170] sm:$0xff]  ;;  %v13302_v54 = vld [vmem:[#allocation41_spill] sm:$0xff] }
 0x6d6   :  { %6082 = vmatpush3.msra.mxu1 %v9852_v3  ;;  %v3270_v3 = vmul.f32 %v3265_v34, %v12828_v35  ;;  %v1174_v36 = vadd.f32 %v13302_v54, %v13300_v50 }
 0x6d7   :  { %3349 = vmatmul.mubr.f32.vlgmr.msra.gmra.mxu0 %v3268_v25  ;;  %3450 = vmatmul.mubr.f32.gmra.mxu1 %v3282_v8 }
 0x6d8   :  { %3354 = vmatprep.mubr.f32.mxu0 %v10455_v23  ;;  %3455 = vmatprep.mubr.f32.mxu1 %v12824_v43 }
 0x6d9   :  { %6510 = vmatpush3.msra.mxu0 %v10427_v31  ;;  %6083 = vmatprep.subr.mxu1 %v9861_v59  ;;  %v3264_v59 = vsel %vm201_vm1, %v3262_v1, %v3263_v13  ;;  %v1168_v13 = vadd.f32 %v13301_v38, %v13300_v50 }
 0x6da   :  { %6511 = vmatprep.subr.mxu0 %v10509_v47  ;;  %6084 = vmatpush3.msra.mxu1 %v9871_v37  ;;  %v3271_v37 = vmul.f32 %v3264_v59, %v8283_v49 }
 0x6db   :  { %3355 = vmatmul.mubr.f32.gmra.mxu0 %v3269_v27  ;;  %3456 = vmatmul.mubr.f32.gmra.mxu1 %v3283_v60 }
 0x6dc   :  { %3360 = vmatprep.mubr.f32.mxu0 %v10461_v62  ;;  %6512 = vmatpush3.msra.mxu0 %v10509_v47 }
 0x6dd   :  { %6513 = vmatprep.subr.mxu0 %v10519_v22  ;;  %6085 = vmatprep.subr.mxu1 %v9880_v7  ;;  %v13279_v7 = vld [vmem:[#allocation45_spill] sm:$0xff] }
 0x6de   :  { %6514 = vmatpush3.msra.mxu0 %v10519_v22  ;;  %6086 = vmatpush3.msra.mxu1 %v9891_v58  ;;  %v13280_v58 = vld [vmem:[#allocation47_spill] sm:$0xff] }
 0x6df   :  { %3361 = vmatmul.mubr.f32.gmra.mxu0 %v3270_v3  ;;  %6515 = vmatprep.subr.mxu0 %v10530_v32 }
 0x6e0   :  { %3366 = vmatprep.mubr.f32.mxu0 %v10469_v0  ;;  %6516 = vmatpush3.msra.mxu0 %v10530_v32 }
 0x6e1   :  { %6517 = vmatprep.subr.mxu0 %v10539_v29  ;;  %6087 = vmatprep.subr.mxu1 %v9898_v63  ;;  %v13281_v63 = vld [vmem:[#allocation40_spill] sm:$0xff] }
 0x6e2   :  { %6518 = vmatpush3.msra.mxu0 %v10539_v29  ;;  %6088 = vmatpush3.msra.mxu1 %v9911_v20  ;;  %v13283_v20 = vld [vmem:[#allocation52_spill] sm:$0xff] }
 0x6e3   :  { %3367 = vmatmul.mubr.f32.gmra.mxu0 %v3271_v37  ;;  %6519 = vmatprep.subr.mxu0 %v9904_v10 }
 0x6e4   :  { %6520 = vmatpush3.msra.mxu0 %v9904_v10  ;;  %6089 = vmatprep.subr.mxu1 %v9923_v61  ;;  %v13282_v10 = vld [vmem:[#allocation50_spill] sm:$0xff] }
 0x6e5   :  { %6521 = vmatprep.subr.mxu0 %v9917_v17  ;;  %6090 = vmatpush3.msra.mxu1 %v9930_v52  ;;  %v13285_v61 = vld [vmem:[#allocation54_spill] sm:$0xff]  ;;  %v13286_v52 = vld [vmem:[#allocation56_spill] sm:$0xff] }
 0x6e6   :  { %6522 = vmatpush3.msra.mxu0 %v9917_v17  ;;  %6091 = vmatprep.subr.mxu1 %v9942_v28  ;;  %v13284_v17 = vld [vmem:[#allocation43_spill] sm:$0xff]  ;;  %v13288_v28 = vld [vmem:[#allocation58_spill] sm:$0xff] }
 0x6e7   :  { %6523 = vmatprep.subr.mxu0 %v9936_v57  ;;  %6092 = vmatpush3.msra.mxu1 %v9949_v14  ;;  %v13289_v14 = vld [vmem:[#allocation60_spill] sm:$0xff] }
 0x6e8   :  { %6524 = vmatpush3.msra.mxu0 %v9936_v57  ;;  %6093 = vmatprep.subr.mxu1 %v9961_v26  ;;  %v13287_v57 = vld [vmem:[#allocation46_spill] sm:$0xff] }
 0x6e9   :  { %6525 = vmatprep.subr.mxu0 %v9955_v51  ;;  %6094 = vmatpush3.msra.mxu1 %v9968_v41  ;;  %v13291_v26 = vld [vmem:[#allocation62_spill] sm:$0xff]  ;;  %v13292_v41 = vld [vmem:[#allocation64_spill] sm:$0xff] }
 0x6ea   :  { %6526 = vmatpush3.msra.mxu0 %v9955_v51  ;;  %6095 = vmatprep.subr.mxu1 %v13280_v58  ;;  %v13290_v51 = vld [vmem:[#allocation51_spill] sm:$0xff] }
 0x6eb   :  { %6527 = vmatprep.subr.mxu0 %v13279_v7  ;;  %6096 = vmatpush3.msra.mxu1 %v13281_v63 }
 0x6ec   :  { %6528 = vmatpush3.msra.mxu0 %v13279_v7  ;;  %6097 = vmatprep.subr.mxu1 %v13283_v20  ;;  %v13303_v7 = vld [vmem:[#allocation48_spill] sm:$0xff] }
 0x6ed   :  { %6529 = vmatprep.subr.mxu0 %v13282_v10  ;;  %6098 = vmatpush3.msra.mxu1 %v13284_v17  ;;  %v1180_v58 = vadd.f32 %v13303_v7, %v13300_v50 }
 0x6ee   :  { %6530 = vmatpush3.msra.mxu0 %v13282_v10  ;;  %6099 = vmatprep.subr.mxu1 %v13286_v52 }
 0x6ef   :  { %6531 = vmatprep.subr.mxu0 %v13285_v61  ;;  %6100 = vmatpush3.msra.mxu1 %v13287_v57 }
 0x6f0   :  { %6532 = vmatpush3.msra.mxu0 %v13285_v61  ;;  %6101 = vmatprep.subr.mxu1 %v13289_v14 }
 0x6f1   :  { %6533 = vmatprep.subr.mxu0 %v13288_v28  ;;  %6102 = vmatpush3.msra.mxu1 %v13290_v51 }
 0x6f2   :  { %6534 = vmatpush3.msra.mxu0 %v13288_v28  ;;  %6103 = vmatprep.subr.mxu1 %v13292_v41  ;;  %v13304_v28 = vld [vmem:[#allocation61_spill] sm:$0xff] }
 0x6f3   :  { %6535 = vmatprep.subr.mxu0 %v13291_v26  ;;  %6104 = vmatpush3.msra.mxu1 %v13293_v16  ;;  %v1186_v14 = vadd.f32 %v13304_v28, %v13300_v50  ;;  %v13305_v28 = vld [vmem:[#allocation72_spill] sm:$0xff] }
 0x6f4   :  { %6536 = vmatpush3.msra.mxu0 %v13291_v26  ;;  %6105 = vmatprep.subr.mxu1 %v13295_v6 }
 0x6f5   :  { %6537 = vmatprep.subr.mxu0 %v13294_v21  ;;  %6106 = vmatpush3.msra.mxu1 %v13296_v33 }
 0x6f6   :  { %6538 = vmatpush3.msra.mxu0 %v13294_v21  ;;  %3782 = vmatprep.subr.mxu1 %v13298_v19 }
 0x6f7   :  { %6539 = vmatprep.subr.mxu0 %v13297_v48 }
 0x6f8   :  { %6540 = vmatpush3.msra.mxu0 %v13297_v48 }
 0x6f9   :  { %3871 = vmatprep.subr.mxu0 %v13299_v24 }
 0x78f   :  { %v3439_v11 = vpop.f32.mrf.mxu1 }
 0x791   :  { %v3441_v30 = vpop.f32.mrf.mxu1 }
 0x793   :  { %v3445_v4 = vpop.f32.mrf.mxu1 }
 0x795   :  { %v3447_v15 = vpop.f32.mrf.mxu1 }
 0x797   :  { %v3350_v44 = vpop.f32.mrf.mxu0  ;;  %v3451_v25 = vpop.f32.mrf.mxu1 }
 0x798   :  { %v3440_v53 = vadd.f32 %v3439_v11, %v3350_v44 }
 0x799   :  { %v3352_v56 = vpop.f32.mrf.mxu0  ;;  %v3453_v59 = vpop.f32.mrf.mxu1 }
 0x79a   :  { %v3462_v55 = vadd.f32 %v3440_v53, %v1168_v13  ;;  %v10590_v40 = vadd.f32 %v3441_v30, %v3352_v56 }
 0x79b   :  { %v3356_v8 = vpop.f32.mrf.mxu0  ;;  %v3457_v52 = vpop.f32.mrf.mxu1 }
 0x79c   :  { %v5843_v1 = vmul.f32 -1.442695, %v3462_v55  ;;  %v3446_v27 = vadd.f32 %v3445_v4, %v3356_v8 }
 0x79d   :  { %v3358_v60 = vpop.f32.mrf.mxu0 }
 0x79e   :  { %6917 = vpow2.f32 %v5843_v1  ;;  %v3464_v34 = vadd.f32 %v3446_v27, %v1174_v36  ;;  %v10594_v3 = vadd.f32 %v3447_v15, %v3358_v60 }
 0x79f   :  { %v3362_v37 = vpop.f32.mrf.mxu0 }
 0x7a0   :  { %v5844_v63 = vmul.f32 -1.442695, %v3464_v34  ;;  %v3452_v10 = vadd.f32 %v3451_v25, %v3362_v37 }
 0x7a1   :  { %v3364_v20 = vpop.f32.mrf.mxu0 }
 0x7a2   :  { %6919 = vpow2.f32 %v5844_v63  ;;  %v3466_v17 = vadd.f32 %v3452_v10, %v1180_v58  ;;  %v10598_v61 = vadd.f32 %v3453_v59, %v3364_v20 }
 0x7a3   :  { %v3368_v57 = vpop.f32.mrf.mxu0 }
 0x7a4   :  { %v5845_v51 = vmul.f32 -1.442695, %v3466_v17  ;;  %v3458_v26 = vadd.f32 %v3457_v52, %v3368_v57 }
 0x7a6   :  { %6921 = vpow2.f32 %v5845_v51  ;;  %v3468_v41 = vadd.f32 %v3458_v26, %v1186_v14 }
 0x7a8   :  { %v5846_v16 = vmul.f32 -1.442695, %v3468_v41  ;;  %v13306_v41 = vld [vmem:[#allocation75_spill] sm:$0xff] }
 0x7aa   :  { %6923 = vpow2.f32 %v5846_v16  ;;  %v13307_v16 = vld [vmem:[#allocation66_spill] sm:$0xff] }
 0x7ab   :  { %v6918_v21 = vpop.eup %6917 }
 0x7ac   :  { %v3482_v6 = vadd.f32 1.0, %v6918_v21 }
 0x7ae   :  { %6925 = vrcp.f32 %v3482_v6  ;;  %v13308_v6 = vld [vmem:[#allocation76_spill] sm:$0xff] }
 0x7af   :  { %v6920_v33 = vpop.eup %6919 }
 0x7b0   :  { %v3483_v48 = vadd.f32 1.0, %v6920_v33  ;;  %v13309_v33 = vld [vmem:[#allocation77_spill] sm:$0xff] }
 0x7b2   :  { %6927 = vrcp.f32 %v3483_v48  ;;  %v13310_v48 = vld [vmem:[#allocation69_spill] sm:$0xff] }
 0x7b3   :  { %v6922_v19 = vpop.eup %6921 }
 0x7b4   :  { %v3484_v24 = vadd.f32 1.0, %v6922_v19  ;;  %v13311_v19 = vld [vmem:[#allocation82_spill] sm:$0xff] }
 0x7b6   :  { %6929 = vrcp.f32 %v3484_v24  ;;  %v13312_v24 = vld [vmem:[#allocation78_spill] sm:$0xff] }
 0x7b7   :  { %v6924_v11 = vpop.eup %6923 }
 0x7b8   :  { %v3485_v30 = vadd.f32 1.0, %v6924_v11  ;;  %v13313_v11 = vld [vmem:[#allocation14_spill] sm:$0xff] }
 0x7ba   :  { %6931 = vrcp.f32 %v3485_v30 }
 0x7bb   :  { %v6926_v4 = vpop.eup %6925 }
 0x7bc   :  { %v3518_v15 = vmul.f32 %v6926_v4, %v10448_v12  ;;  %v13314_v4 = vld [vmem:[#allocation17_spill] sm:$0xff] }
 0x7be   :  { %3610 = vmatprep.mubr.f32.mxu1 %v3518_v15  ;;  %v3522_v13 = vrot.slane %v3518_v15, 7  ;;  %v3534_v53 = vrot.slane %v3518_v15, 1  ;;  %v13315_v15 = vld [vmem:[#allocation19_spill] sm:$0xff] }
 0x7bf   :  { %v6928_v44 = vpop.eup %6927 }
 0x7c0   :  { %v3519_v38 = vmul.f32 %v6928_v44, %v10455_v23  ;;  %v13316_v44 = vld [vmem:[#allocation23_spill] sm:$0xff] }
 0x7c2   :  { %v3535_v56 = vrot.slane %v3519_v38, 1  ;;  %v3523_v55 = vrot.slane %v3519_v38, 7 }
 0x7c3   :  { %v6930_v25 = vpop.eup %6929 }
 0x7c4   :  { %v3520_v8 = vmul.f32 %v6930_v25, %v10461_v62  ;;  %v3540_v54 = vsel %vm458_vm0, %v3534_v53, %v3535_v56  ;;  %v3528_v36 = vsel %vm201_vm1, %v3522_v13, %v3523_v55  ;;  %v13321_v25 = vld [vmem:[#allocation131_spill] sm:$0xff] }
 0x7c5   :  { %v3542_v1 = vmul.f32 %v3540_v54, %v12826_v9  ;;  %v3531_v21 = vmul.f32 %v3528_v36, %v8234_v2  ;;  %v13323_v54 = vld [vmem:[#allocation133_spill] sm:$0xff]  ;;  %v13324_v36 = vld [vmem:[#allocation134_spill] sm:$0xff] }
 0x7c6   :  { %v3536_v27 = vrot.slane %v3520_v8, 1  ;;  %v3524_v60 = vrot.slane %v3520_v8, 7 }
 0x7c7   :  { %v6932_v34 = vpop.eup %6931  ;;  %6541 = vmatprep.mubr.f32.mxu0 %v3542_v1  ;;  %v13325_v1 = vld [vmem:[#allocation135_spill] sm:$0xff] }
 0x7c8   :  { %v3521_v59 = vmul.f32 %v6932_v34, %v10469_v0  ;;  %v3539_v37 = vsel %vm458_vm0, %v3535_v56, %v3536_v27  ;;  %v3527_v7 = vsel %vm201_vm1, %v3523_v55, %v3524_v60  ;;  %v13320_v55 = vld [vmem:[#allocation130_spill] sm:$0xff] }
 0x7c9   :  { %v3543_v58 = vmul.f32 %v3539_v37, %v12827_v18  ;;  %v3532_v30 = vmul.f32 %v3527_v7, %v12828_v35  ;;  %v13328_v34 = vld [vmem:[#allocation138_spill] sm:$0xff]  ;;  %v13330_v37 = vld [vmem:[#allocation140_spill] sm:$0xff]  ;;  %v13331_v7 = vld [vmem:[#allocation141_spill] sm:$0xff] }
 0x7ca   :  { %v3525_v63 = vrot.slane %v3521_v59, 7  ;;  %v3537_v10 = vrot.slane %v3521_v59, 1 }
 0x7cb   :  { %6542 = vmatmul.mubr.f32.vlgmr.msra.gmra.mxu0 %v3543_v58  ;;  %v13332_v58 = vld [vmem:[#allocation142_spill] sm:$0xff] }
 0x7cc   :  { %v3529_v20 = vsel %vm201_vm1, %v3525_v63, %v3522_v13  ;;  %v3538_v17 = vsel %vm458_vm0, %v3536_v27, %v3537_v10  ;;  %v3541_v52 = vsel %vm458_vm0, %v3537_v10, %v3534_v53  ;;  %v3526_v57 = vsel %vm201_vm1, %v3524_v60, %v3525_v63  ;;  %3872 = vmatpush1.msra.mxu0 %v13305_v28  ;;  %v13318_v13 = vld [vmem:[#allocation128_spill] sm:$0xff]  ;;  %v13319_v53 = vld [vmem:[#allocation129_spill] sm:$0xff]  ;;  %v13333_v63 = vld [vmem:[#allocation143_spill] sm:$0xff] }
 0x7cd   :  { %v3530_v14 = vmul.f32 %v3529_v20, %v12825_v42  ;;  %v3544_v51 = vmul.f32 %v3538_v17, %v12829_v46  ;;  %v3545_v26 = vmul.f32 %v3541_v52, %v12830_v39  ;;  %3873 = vmatprep.subr.mxu0 %v13306_v41  ;;  %v3533_v56 = vmul.f32 %v3526_v57, %v8283_v49  ;;  %v13326_v27 = vld [vmem:[#allocation136_spill] sm:$0xff]  ;;  %v13327_v60 = vld [vmem:[#allocation137_spill] sm:$0xff]  ;;  %v13336_v17 = vld [vmem:[#allocation146_spill] sm:$0xff] }
 0x7ce   :  { %3874 = vmatpush1.msra.mxu0 %v13307_v16  ;;  %v13334_v10 = vld [vmem:[#allocation144_spill] sm:$0xff]  ;;  %v13335_v20 = vld [vmem:[#allocation145_spill] sm:$0xff]  ;;  %v13337_v52 = vld [vmem:[#allocation147_spill] sm:$0xff] }
 0x7cf   :  { %3611 = vmatmul.mubr.f32.vlgmr.msra.gmra.mxu1 %v3530_v14  ;;  %6544 = vmatprep.mubr.f32.mxu0 %v3544_v51  ;;  %v13338_v57 = vld [vmem:[#allocation148_spill] sm:$0xff]  ;;  %v13339_v28 = vld [vmem:[#allocation149_spill] sm:$0xff]  ;;  %v13340_v14 = vld [vmem:[#allocation150_spill] sm:$0xff] }
 0x7d0   :  { %3615 = vmatprep.mubr.f32.mxu1 %v3519_v38  ;;  %6545 = vmatmul.mubr.f32.gmra.mxu0 %v3545_v26  ;;  %v13317_v38 = vld [vmem:[#allocation127_spill] sm:$0xff]  ;;  %v13342_v26 = vld [vmem:[#allocation152_spill] sm:$0xff]  ;;  %v13343_v41 = vld [vmem:[#allocation153_spill] sm:$0xff] }
 0x7d1   :  { %3783 = vmatpush1.msra.mxu1 %v13308_v6  ;;  %3875 = vmatprep.subr.mxu0 %v13309_v33  ;;  %v13341_v51 = vld [vmem:[#allocation151_spill] sm:$0xff]  ;;  %v13344_v16 = vld [vmem:[#allocation154_spill] sm:$0xff]  ;;  %v13346_v6 = vld [vmem:[#allocation156_spill] sm:$0xff] }
 0x7d2   :  { %3784 = vmatprep.subr.mxu1 %v13310_v48  ;;  %3876 = vmatpush1.msra.mxu0 %v13311_v19  ;;  %v13347_v33 = vld [vmem:[#allocation157_spill] sm:$0xff]  ;;  %v13348_v48 = vld [vmem:[#allocation158_spill] sm:$0xff]  ;;  %v13349_v19 = vld [vmem:[#allocation159_spill] sm:$0xff] }
 0x7d3   :  { %3616 = vmatmul.mubr.f32.gmra.mxu1 %v3531_v21  ;;  %3877 = vmatprep.subr.mxu0 %v13312_v24  ;;  %v13345_v21 = vld [vmem:[#allocation155_spill] sm:$0xff]  ;;  %v13350_v24 = vld [vmem:[#allocation160_spill] sm:$0xff] }
 0x7d4   :  { %3620 = vmatprep.mubr.f32.mxu1 %v3520_v8  ;;  %3785 = vmatpush1.msra.mxu1 %v13313_v11  ;;  %v13322_v8 = vld [vmem:[#allocation132_spill] sm:$0xff]  ;;  %v13351_v11 = vld [vmem:[#allocation161_spill] sm:$0xff] }
 0x7d5   :  { %3786 = vmatprep.subr.mxu1 %v13314_v4  ;;  %3878 = vmatpush1.msra.mxu0 %v13315_v15  ;;  %v13353_v4 = vld [vmem:[#allocation163_spill] sm:$0xff]  ;;  %v13354_v15 = vld [vmem:[#allocation164_spill] sm:$0xff] }
 0x7d6   :  { %3787 = vmatpush1.msra.mxu1 %v13316_v44  ;;  %3879 = vmatprep.subr.mxu0 %v13317_v38  ;;  %v13355_v44 = vld [vmem:[#allocation165_spill] sm:$0xff]  ;;  %v13356_v38 = vld [vmem:[#allocation166_spill] sm:$0xff] }
 0x7d7   :  { %3621 = vmatmul.mubr.f32.gmra.mxu1 %v3532_v30  ;;  %3788 = vmatprep.subr.mxu1 %v13318_v13  ;;  %v13352_v30 = vld [vmem:[#allocation162_spill] sm:$0xff]  ;;  %v13357_v13 = vld [vmem:[#allocation167_spill] sm:$0xff] }
 0x7d8   :  { %3625 = vmatprep.mubr.f32.mxu1 %v3521_v59  ;;  %3789 = vmatpush1.msra.mxu1 %v13319_v53  ;;  %v13329_v59 = vld [vmem:[#allocation139_spill] sm:$0xff]  ;;  %v13358_v53 = vld [vmem:[#allocation168_spill] sm:$0xff] }
 0x7d9   :  { %3790 = vmatprep.subr.mxu1 %v13320_v55  ;;  %3880 = vmatpush1.msra.mxu0 %v13321_v25  ;;  %v13360_v55 = vld [vmem:[#allocation170_spill] sm:$0xff]  ;;  %v13361_v25 = vld [vmem:[#allocation171_spill] sm:$0xff] }
 0x7da   :  { %3791 = vmatpush1.msra.mxu1 %v13322_v8  ;;  %3881 = vmatprep.subr.mxu0 %v13323_v54  ;;  %v13362_v8 = vld [vmem:[#allocation172_spill] sm:$0xff]  ;;  %v13363_v54 = vld [vmem:[#allocation173_spill] sm:$0xff] }
 0x7db   :  { %3626 = vmatmul.mubr.f32.gmra.mxu1 %v3533_v56  ;;  %3792 = vmatprep.subr.mxu1 %v13324_v36  ;;  %v13359_v56 = vld [vmem:[#allocation169_spill] sm:$0xff]  ;;  %v13364_v36 = vld [vmem:[#allocation174_spill] sm:$0xff] }
 0x7dc   :  { %3793 = vmatpush1.msra.mxu1 %v13325_v1  ;;  %3882 = vmatpush1.msra.mxu0 %v13326_v27  ;;  %v13365_v1 = vld [vmem:[#allocation175_spill] sm:$0xff]  ;;  %v13366_v27 = vld [vmem:[#allocation176_spill] sm:$0xff] }
 0x7dd   :  { %3794 = vmatprep.subr.mxu1 %v13327_v60  ;;  %3883 = vmatprep.subr.mxu0 %v13328_v34  ;;  %v13367_v60 = vld [vmem:[#allocation177_spill] sm:$0xff]  ;;  %v13368_v34 = vld [vmem:[#allocation178_spill] sm:$0xff] }
 0x7de   :  { %3795 = vmatpush1.msra.mxu1 %v13329_v59  ;;  %3884 = vmatpush1.msra.mxu0 %v13330_v37  ;;  %v10698_v59 = vld [vmem:[%s12386_s5 + $0xf8] sm:$0xff]  ;;  %v13369_v37 = vld [vmem:[#allocation179_spill] sm:$0xff] }
 0x7df   :  { %3796 = vmatprep.subr.mxu1 %v13331_v7  ;;  %3885 = vmatprep.subr.mxu0 %v13332_v58  ;;  %v13370_v7 = vld [vmem:[#allocation180_spill] sm:$0xff]  ;;  %v13371_v58 = vld [vmem:[#allocation181_spill] sm:$0xff] }
 0x7e0   :  { %3797 = vmatpush1.msra.mxu1 %v13333_v63  ;;  %3886 = vmatpush1.msra.mxu0 %v13334_v10  ;;  %v13372_v63 = vld [vmem:[#allocation182_spill] sm:$0xff]  ;;  %v13373_v10 = vld [vmem:[#allocation183_spill] sm:$0xff] }
 0x7e1   :  { %3798 = vmatprep.subr.mxu1 %v13335_v20  ;;  %3887 = vmatprep.subr.mxu0 %v13336_v17  ;;  %v13374_v20 = vld [vmem:[#allocation184_spill] sm:$0xff]  ;;  %v13375_v17 = vld [vmem:[#allocation185_spill] sm:$0xff] }
 0x7e2   :  { %3799 = vmatpush1.msra.mxu1 %v13337_v52  ;;  %3888 = vmatpush1.msra.mxu0 %v13338_v57  ;;  %v13376_v52 = vld [vmem:[#allocation186_spill] sm:$0xff]  ;;  %v13377_v57 = vld [vmem:[#allocation187_spill] sm:$0xff] }
 0x7e3   :  { %3800 = vmatprep.subr.mxu1 %v13339_v28  ;;  %3889 = vmatprep.subr.mxu0 %v13340_v14  ;;  %v13378_v28 = vld [vmem:[#allocation188_spill] sm:$0xff]  ;;  %v13379_v14 = vld [vmem:[#allocation189_spill] sm:$0xff] }
 0x7e4   :  { %3801 = vmatpush1.msra.mxu1 %v13341_v51  ;;  %3890 = vmatpush1.msra.mxu0 %v13342_v26  ;;  %v13380_v51 = vld [vmem:[#allocation190_spill] sm:$0xff]  ;;  %v13381_v26 = vld [vmem:[#allocation191_spill] sm:$0xff] }
 0x7e5   :  { %3802 = vmatprep.subr.mxu1 %v13343_v41  ;;  %3891 = vmatprep.subr.mxu0 %v13344_v16  ;;  %v13382_v41 = vld [vmem:[#allocation192_spill] sm:$0xff]  ;;  %v13383_v16 = vld [vmem:[#allocation193_spill] sm:$0xff] }
 0x7e6   :  { %3803 = vmatpush1.msra.mxu1 %v13345_v21  ;;  %3892 = vmatpush1.msra.mxu0 %v13346_v6  ;;  %v13384_v21 = vld [vmem:[#allocation194_spill] sm:$0xff]  ;;  %v13385_v6 = vld [vmem:[#allocation195_spill] sm:$0xff] }
 0x7e7   :  { %3804 = vmatprep.subr.mxu1 %v13347_v33  ;;  %3893 = vmatprep.subr.mxu0 %v13348_v48  ;;  %v13386_v33 = vld [vmem:[#allocation196_spill] sm:$0xff]  ;;  %v13387_v48 = vld [vmem:[#allocation197_spill] sm:$0xff] }
 0x7e8   :  { %3805 = vmatpush1.msra.mxu1 %v13349_v19  ;;  %3894 = vmatpush1.msra.mxu0 %v13350_v24  ;;  %v13388_v19 = vld [vmem:[#allocation198_spill] sm:$0xff]  ;;  %v13389_v24 = vld [vmem:[#allocation199_spill] sm:$0xff] }
 0x7e9   :  { %3806 = vmatprep.subr.mxu1 %v13351_v11  ;;  %3895 = vmatprep.subr.mxu0 %v13352_v30  ;;  %v13390_v11 = vld [vmem:[#allocation200_spill] sm:$0xff]  ;;  %v13391_v30 = vld [vmem:[#allocation201_spill] sm:$0xff] }
 0x7ea   :  { %3807 = vmatpush1.msra.mxu1 %v13353_v4  ;;  %3896 = vmatpush1.msra.mxu0 %v13354_v15  ;;  %v13392_v4 = vld [vmem:[#allocation202_spill] sm:$0xff]  ;;  %v13393_v15 = vld [vmem:[#allocation203_spill] sm:$0xff] }
 0x7eb   :  { %3808 = vmatprep.subr.mxu1 %v13355_v44  ;;  %3897 = vmatprep.subr.mxu0 %v13356_v38  ;;  %v13394_v44 = vld [vmem:[#allocation204_spill] sm:$0xff]  ;;  %v13395_v38 = vld [vmem:[#allocation205_spill] sm:$0xff] }
 0x7ec   :  { %3809 = vmatpush1.msra.mxu1 %v13357_v13  ;;  %3898 = vmatpush1.msra.mxu0 %v13358_v53  ;;  %v13396_v13 = vld [vmem:[#allocation206_spill] sm:$0xff]  ;;  %v13397_v53 = vld [vmem:[#allocation207_spill] sm:$0xff] }
 0x7ed   :  { %3810 = vmatprep.subr.mxu1 %v13359_v56  ;;  %3899 = vmatprep.subr.mxu0 %v13360_v55  ;;  %v13398_v56 = vld [vmem:[#allocation208_spill] sm:$0xff]  ;;  %v13399_v55 = vld [vmem:[#allocation209_spill] sm:$0xff] }
 0x7ee   :  { %3811 = vmatpush1.msra.mxu1 %v13361_v25  ;;  %3900 = vmatpush1.msra.mxu0 %v13362_v8  ;;  %v13400_v25 = vld [vmem:[#allocation39_spill] sm:$0xff] }
 0x7ef   :  { %3812 = vmatprep.subr.mxu1 %v13363_v54  ;;  %3901 = vmatprep.subr.mxu0 %v13364_v36  ;;  %v1170_v8 = vadd.f32 %v13400_v25, %v13399_v55  ;;  %v13401_v36 = vld [vmem:[#allocation44_spill] sm:$0xff] }
 0x7f0   :  { %3813 = vmatpush1.msra.mxu1 %v13365_v1  ;;  %3902 = vmatpush1.msra.mxu0 %v13366_v27  ;;  %v1176_v1 = vadd.f32 %v13401_v36, %v13399_v55 }
 0x7f1   :  { %3814 = vmatprep.subr.mxu1 %v13367_v60  ;;  %3935 = vmatprep.mubr.f32.mxu0 %v12824_v43  ;;  %v3463_v54 = vadd.f32 %v10590_v40, %v1170_v8  ;;  %v13405_v8 = vld [vmem:[#allocation42_spill] sm:$0xff] }
 0x7f2   :  { %3815 = vmatpush2.msra.mxu1 %v13368_v34  ;;  %6139 = vmatprep.subr.mxu0 %v10698_v59  ;;  %v3465_v60 = vadd.f32 %v10594_v3, %v1176_v1  ;;  %v3370_v34 = vpop.f32.mrf.mxu0 }
 0x7f3   :  { %3816 = vmatprep.subr.mxu1 %v13369_v37  ;;  %v5847_v27 = vmul.f32 -1.442695, %v3463_v54  ;;  %v13402_v37 = vld [vmem:[#allocation53_spill] sm:$0xff]  ;;  %v1418_v54 = vadd.f32 %v13405_v8, %v9440_v45 }
 0x7f4   :  { %3817 = vmatpush2.msra.mxu1 %v13370_v7  ;;  %v1182_v7 = vadd.f32 %v13402_v37, %v13399_v55 }
 0x7f5   :  { %3818 = vmatprep.subr.mxu1 %v13371_v58  ;;  %v3459_v58 = vpop.f32.mrf.mxu1  ;;  %6933 = vpow2.f32 %v5847_v27 }
 0x7f6   :  { %3819 = vmatpush2.msra.mxu1 %v13372_v63  ;;  %v5848_v63 = vmul.f32 -1.442695, %v3465_v60 }
 0x7f7   :  { %3820 = vmatprep.subr.mxu1 %v13373_v10  ;;  %v3467_v10 = vadd.f32 %v10598_v61, %v1182_v7 }
 0x7f8   :  { %3821 = vmatpush2.msra.mxu1 %v13374_v20  ;;  %v3460_v20 = vadd.f32 %v3459_v58, %v3370_v34  ;;  %6935 = vpow2.f32 %v5848_v63 }
 0x7f9   :  { %3822 = vmatprep.subr.mxu1 %v13375_v17  ;;  %v13403_v17 = vld [vmem:[#allocation70_spill] sm:$0xff]  ;;  %v5849_v40 = vmul.f32 -1.442695, %v3467_v10  ;;  %v13406_v10 = vld [vmem:[#allocation49_spill] sm:$0xff] }
 0x7fa   :  { %3823 = vmatpush2.msra.mxu1 %v13376_v52  ;;  %v1188_v52 = vadd.f32 %v13403_v17, %v13399_v55 }
 0x7fb   :  { %3824 = vmatprep.subr.mxu1 %v13377_v57  ;;  %6937 = vpow2.f32 %v5849_v40 }
 0x7fc   :  { %3825 = vmatpush2.msra.mxu1 %v13378_v28  ;;  %v3469_v57 = vadd.f32 %v3460_v20, %v1188_v52  ;;  %v1423_v20 = vadd.f32 %v13406_v10, %v9440_v45 }
 0x7fd   :  { %3826 = vmatprep.subr.mxu1 %v13379_v14 }
 0x7fe   :  { %3827 = vmatpush2.msra.mxu1 %v13380_v51  ;;  %v5850_v28 = vmul.f32 -1.442695, %v3469_v57 }
 0x7ff   :  { %3828 = vmatprep.subr.mxu1 %v13381_v26 }
 0x800   :  { %3829 = vmatpush2.msra.mxu1 %v13382_v41  ;;  %6939 = vpow2.f32 %v5850_v28 }
 0x801   :  { %3830 = vmatprep.subr.mxu1 %v13383_v16 }
 0x802   :  { %3831 = vmatpush2.msra.mxu1 %v13384_v21  ;;  %v6934_v3 = vpop.eup %6933 }
 0x803   :  { %3832 = vmatprep.subr.mxu1 %v13385_v6  ;;  %v3506_v14 = vadd.f32 1.0, %v6934_v3 }
 0x804   :  { %3833 = vmatpush2.msra.mxu1 %v13386_v33 }
 0x805   :  { %3834 = vmatprep.subr.mxu1 %v13387_v48  ;;  %v6936_v51 = vpop.eup %6935  ;;  %6941 = vrcp.f32 %v3506_v14 }
 0x806   :  { %3835 = vmatpush2.msra.mxu1 %v13388_v19  ;;  %v3507_v26 = vadd.f32 1.0, %v6936_v51 }
 0x807   :  { %3836 = vmatprep.subr.mxu1 %v13389_v24 }
 0x808   :  { %3837 = vmatpush2.msra.mxu1 %v13390_v11  ;;  %v6938_v41 = vpop.eup %6937  ;;  %6943 = vrcp.f32 %v3507_v26 }
 0x809   :  { %3838 = vmatprep.subr.mxu1 %v13391_v30  ;;  %v3508_v16 = vadd.f32 1.0, %v6938_v41  ;;  %v13404_v30 = vld [vmem:[#allocation38_spill] sm:$0xff] }
 0x80a   :  { %3839 = vmatpush2.msra.mxu1 %v13392_v4  ;;  %v1413_v4 = vadd.f32 %v13404_v30, %v9440_v45 }
 0x80b   :  { %3840 = vmatprep.subr.mxu1 %v13393_v15  ;;  %6945 = vrcp.f32 %v3508_v16 }
 0x80c   :  { %3841 = vmatpush2.msra.mxu1 %v13394_v44 }
 0x80d   :  { %3842 = vmatprep.subr.mxu1 %v13395_v38  ;;  %v6940_v21 = vpop.eup %6939 }
 0x80e   :  { %3843 = vmatpush2.msra.mxu1 %v13396_v13  ;;  %v3509_v33 = vadd.f32 1.0, %v6940_v21  ;;  %v13407_v21 = vld [vmem:[#allocation57_spill] sm:$0xff] }
 0x80f   :  { %3844 = vmatprep.subr.mxu1 %v13397_v53 }
 0x810   :  { %3845 = vmatpush2.msra.mxu1 %v13398_v56  ;;  %6947 = vrcp.f32 %v3509_v33 }
 0x811   :  { %6547 = vmatprep.subr.mxu1 %v10427_v31 }
 0x812   :  { %v6942_v44 = vpop.eup %6941 }
 0x813   :  { %v3728_v1 = vsub.f32 1.0, %v6942_v44  ;;  %v3724_v37 = vmul.f32 %v6942_v44, %v10448_v12 }
 0x815   :  { %v6944_v60 = vpop.eup %6943 }
 0x816   :  { %v3729_v28 = vsub.f32 1.0, %v6944_v60  ;;  %v3725_v26 = vmul.f32 %v6944_v60, %v10455_v23 }
 0x818   :  { %v6946_v14 = vpop.eup %6945 }
 0x88b   :  { %v6543_v61 = vpop.f32.mrf.mxu0 }
 0x88d   :  { %v3697_v24 = vpop.f32.mrf.mxu0 }
 0x88f   :  { %v6107_v6 = vpop.f32.mrf.mxu1 }
 0x890   :  { %v6546_v56 = vpop.f32.mrf.mxu0 }
 0x891   :  { %v6108_v48 = vpop.f32.mrf.mxu1 }
 0x892   :  { %v6109_v19 = vadd.f32 %v6108_v48, %v6107_v6  ;;  %v3707_v17 = vpop.f32.mrf.mxu0  ;;  %v3730_v48 = vsub.f32 1.0, %v6946_v14 }
 0x893   :  { %v6110_v11 = vpop.f32.mrf.mxu1 }
 0x894   :  { %v3698_v15 = vadd.f32 %v6109_v19, %v3697_v24  ;;  %v6948_v24 = vpop.eup %6947 }
 0x895   :  { %v6111_v38 = vpop.f32.mrf.mxu1 }
 0x896   :  { %v3716_v13 = vadd.f32 %v3698_v15, %v1413_v4  ;;  %v6112_v53 = vadd.f32 %v6111_v38, %v6110_v11  ;;  %v3726_v11 = vmul.f32 %v6946_v14, %v10461_v62  ;;  %v3727_v62 = vmul.f32 %v6948_v24, %v10469_v0 }
 0x897   :  { %v6113_v25 = vpop.f32.mrf.mxu1 }
 0x898   :  { %v3720_v36 = vmax.f32 %v3716_v13, 0.0  ;;  %v3703_v27 = vadd.f32 %v6543_v61, %v6112_v53  ;;  %v1428_v61 = vadd.f32 %v13407_v21, %v9440_v45  ;;  %v3731_v13 = vsub.f32 1.0, %v6948_v24  ;;  %v10847_v21 = vld [vmem:[%s12386_s5 + $0xd8] sm:$0xff]  ;;  %v10903_v24 = vld [vmem:[%s12386_s5 + $0x148] sm:$0xff] }
 0x899   :  { %v6114_v34 = vpop.f32.mrf.mxu1 }
 0x89a   :  { %v3732_v7 = vmul.f32 %v3728_v1, %v3720_v36  ;;  %v3717_v58 = vadd.f32 %v3703_v27, %v1418_v54  ;;  %v6115_v63 = vadd.f32 %v6114_v34, %v6113_v25  ;;  %v10779_v1 = vld [vmem:[%s12386_s5 + $0x78] sm:$0xff]  ;;  %v10786_v27 = vld [vmem:[%s12386_s5 + $0xf0] sm:$0xff] }
 0x89b   :  { %v6116_v52 = vpop.f32.mrf.mxu1 }
 0x89c   :  { %v10750_v40 = vadd.f32 %v3732_v7, %v3724_v37  ;;  %v3721_v57 = vmax.f32 %v3717_v58, 0.0  ;;  %v3708_v3 = vadd.f32 %v6115_v63, %v3707_v17  ;;  %v10797_v58 = vld [vmem:[%s12386_s5 + $0x70] sm:$0xff]  ;;  %v10803_v63 = vld [vmem:[%s12386_s5 + $0xe8] sm:$0xff] }
 0x89d   :  { %v6117_v51 = vpop.f32.mrf.mxu1 }
 0x89e   :  { %3741 = vst [vmem:[#allocation9 + $0x60] sm:$0xff] %v10750_v40  ;;  %v3733_v12 = vmul.f32 %v3729_v28, %v3721_v57  ;;  %v3718_v41 = vadd.f32 %v3708_v3, %v1423_v20  ;;  %v6118_v16 = vadd.f32 %v6117_v51, %v6116_v52  ;;  %3846 = vmatprep.mubr.f32.mxu1 %v10750_v40  ;;  %v3770_v4 = vrot.slane %v10750_v40, 1  ;;  %v10816_v57 = vld [vmem:[%s12386_s5 + $0x68] sm:$0xff]  ;;  %v10827_v51 = vld [vmem:[%s12386_s5 + $0xe0] sm:$0xff] }
 0x89f   :  { %v3758_v60 = vrot.slane %v10750_v40, 7 }
 0x8a0   :  { %v10757_v6 = vadd.f32 %v3733_v12, %v3725_v26  ;;  %v3722_v33 = vmax.f32 %v3718_v41, 0.0  ;;  %v3713_v19 = vadd.f32 %v6546_v56, %v6118_v16  ;;  %v10838_v41 = vld [vmem:[%s12386_s5 + $0x60] sm:$0xff] }
 0x8a2   :  { %3742 = vst [vmem:[#allocation9 + $0x68] sm:$0xff] %v10757_v6  ;;  %v3734_v30 = vmul.f32 %v3730_v48, %v3722_v33  ;;  %v3719_v23 = vadd.f32 %v3713_v19, %v1428_v61  ;;  %v3771_v15 = vrot.slane %v10757_v6, 1  ;;  %v3759_v7 = vrot.slane %v10757_v6, 7  ;;  %v10857_v61 = vld [vmem:[%s12386_s5 + $0x58] sm:$0xff]  ;;  %v10884_v19 = vld [vmem:[%s12386_s5 + $0xc8] sm:$0xff] }
 0x8a4   :  { %v10763_v44 = vadd.f32 %v3734_v30, %v3726_v11  ;;  %v3723_v38 = vmax.f32 %v3719_v23, 0.0  ;;  %v3776_v53 = vsel %vm458_vm0, %v3770_v4, %v3771_v15  ;;  %v3764_v28 = vsel %vm201_vm1, %v3758_v60, %v3759_v7  ;;  %v10909_v11 = vld [vmem:[%s12386_s5 + $0xc0] sm:$0xff] }
 0x8a5   :  { %v3778_v56 = vmul.f32 %v3776_v53, %v12826_v9  ;;  %v3767_v26 = vmul.f32 %v3764_v28, %v8234_v2  ;;  %v10916_v30 = vld [vmem:[%s12386_s5 + $0x40] sm:$0xff]  ;;  %v10954_v53 = vld [vmem:[%s12386_s5 + $0x30] sm:$0xff]  ;;  %v11049_v28 = vld [vmem:[%s12386_s5 + $0x8] sm:$0xff] }
 0x8a6   :  { %3743 = vst [vmem:[#allocation9 + $0x70] sm:$0xff] %v10763_v44  ;;  %v3735_v25 = vmul.f32 %v3731_v13, %v3723_v38  ;;  %v3772_v8 = vrot.slane %v10763_v44, 1  ;;  %v3760_v14 = vrot.slane %v10763_v44, 7  ;;  %v10922_v23 = vld [vmem:[%s12386_s5 + $0x140] sm:$0xff]  ;;  %v10941_v38 = vld [vmem:[%s12386_s5 + $0x138] sm:$0xff]  ;;  %v10947_v13 = vld [vmem:[%s12386_s5 + $0xb0] sm:$0xff] }
 0x8a7   :  { %3936 = vmatmul.mubr.f32.vlgmr.msra.gmra.mxu0 %v3778_v56  ;;  %v10960_v56 = vld [vmem:[%s12386_s5 + $0x130] sm:$0xff]  ;;  %13422 = vst [vmem:[#allocation33_spill] sm:$0xff] %v11049_v28 }
 0x8a8   :  { %v10771_v54 = vadd.f32 %v3735_v25, %v3727_v62  ;;  %3941 = vmatprep.mubr.f32.mxu0 %v12824_v43  ;;  %v3775_v36 = vsel %vm458_vm0, %v3771_v15, %v3772_v8  ;;  %6140 = vmatpush3.msra.mxu0 %v10779_v1  ;;  %v3763_v16 = vsel %vm201_vm1, %v3759_v7, %v3760_v14  ;;  %v10935_v15 = vld [vmem:[%s12386_s5 + $0x38] sm:$0xff]  ;;  %v10966_v62 = vld [vmem:[%s12386_s5 + $0xa8] sm:$0xff] }
 0x8a9   :  { %v3779_v0 = vmul.f32 %v3775_v36, %v12827_v18  ;;  %6141 = vmatprep.subr.mxu0 %v10786_v27  ;;  %13408 = vst [vmem:[#allocation15_spill] sm:$0xff] %v10960_v56  ;;  %13409 = vst [vmem:[#allocation18_spill] sm:$0xff] %v10966_v62  ;;  %v10973_v25 = vld [vmem:[%s12386_s5 + $0x28] sm:$0xff]  ;;  %v10985_v36 = vld [vmem:[%s12386_s5 + $0xa0] sm:$0xff] }
 0x8aa   :  { %3744 = vst [vmem:[#allocation9 + $0x78] sm:$0xff] %v10771_v54  ;;  %v3761_v34 = vrot.slane %v10771_v54, 7  ;;  %v3773_v37 = vrot.slane %v10771_v54, 1  ;;  %6142 = vmatpush3.msra.mxu0 %v10797_v58  ;;  %13410 = vst [vmem:[#allocation21_spill] sm:$0xff] %v10973_v25  ;;  %v11017_v7 = vld [vmem:[%s12386_s5 + $0x118] sm:$0xff] }
 0x8ab   :  { %3942 = vmatmul.mubr.f32.gmra.mxu0 %v3779_v0  ;;  %6143 = vmatprep.subr.mxu0 %v10803_v63  ;;  %13412 = vst [vmem:[#allocation13_spill] sm:$0xff] %v10985_v36  ;;  %v10992_v0 = vld [vmem:[%s12386_s5 + $0x20] sm:$0xff]  ;;  %13417 = vst [vmem:[#allocation28_spill] sm:$0xff] %v11017_v7 }
 0x8ac   :  { %3947 = vmatprep.mubr.f32.mxu0 %v12824_v43  ;;  %v3765_v10 = vsel %vm201_vm1, %v3761_v34, %v3758_v60  ;;  %v3774_v20 = vsel %vm458_vm0, %v3772_v8, %v3773_v37  ;;  %6144 = vmatpush3.msra.mxu0 %v10816_v57  ;;  %v3777_v3 = vsel %vm458_vm0, %v3773_v37, %v3770_v4  ;;  %v10928_v4 = vld [vmem:[%s12386_s5 + $0xb8] sm:$0xff]  ;;  %v10979_v8 = vld [vmem:[%s12386_s5 + $0x128] sm:$0xff]  ;;  %v10998_v60 = vld [vmem:[%s12386_s5 + $0x120] sm:$0xff] }
 0x8ad   :  { %v3766_v17 = vmul.f32 %v3765_v10, %v12825_v42  ;;  %v3780_v52 = vmul.f32 %v3774_v20, %v12829_v46  ;;  %6145 = vmatprep.subr.mxu0 %v10827_v51  ;;  %v3781_v12 = vmul.f32 %v3777_v3, %v12830_v39  ;;  %v3762_v33 = vsel %vm201_vm1, %v3760_v14, %v3761_v34  ;;  %v11004_v34 = vld [vmem:[%s12386_s5 + $0x98] sm:$0xff]  ;;  %v11023_v10 = vld [vmem:[%s12386_s5 + $0x90] sm:$0xff]  ;;  %v11055_v3 = vld [vmem:[%s12386_s5 + $0x108] sm:$0xff] }
 0x8ae   :  { %6146 = vmatpush3.msra.mxu0 %v10838_v41  ;;  %v3769_v48 = vmul.f32 %v3762_v33, %v8283_v49  ;;  %13411 = vst [vmem:[#allocation24_spill] sm:$0xff] %v10979_v8  ;;  %13413 = vst [vmem:[#allocation16_spill] sm:$0xff] %v10992_v0  ;;  %v11011_v37 = vld [vmem:[%s12386_s5 + $0x18] sm:$0xff]  ;;  %v11030_v20 = vld [vmem:[%s12386_s5 + $0x10] sm:$0xff] }
 0x8af   :  { %3847 = vmatmul.mubr.f32.vlgmr.msra.gmra.mxu1 %v3766_v17  ;;  %3948 = vmatmul.mubr.f32.gmra.mxu0 %v3780_v52  ;;  %13414 = vst [vmem:[#allocation20_spill] sm:$0xff] %v10998_v60  ;;  %13415 = vst [vmem:[#allocation22_spill] sm:$0xff] %v11004_v34  ;;  %v11036_v17 = vld [vmem:[%s12386_s5 + $0x110] sm:$0xff]  ;;  %v11042_v52 = vld [vmem:[%s12386_s5 + $0x88] sm:$0xff] }
 0x8b0   :  { %3852 = vmatprep.mubr.f32.mxu1 %v10757_v6  ;;  %3953 = vmatprep.mubr.f32.mxu0 %v12824_v43  ;;  %13416 = vst [vmem:[#allocation25_spill] sm:$0xff] %v11011_v37  ;;  %13418 = vst [vmem:[#allocation31_spill] sm:$0xff] %v11023_v10  ;;  %v11061_v14 = vld [vmem:[%s12386_s5 + $0x80] sm:$0xff] }
 0x8b1   :  { %6548 = vmatpush3.msra.mxu1 %v10427_v31  ;;  %6147 = vmatprep.subr.mxu0 %v10847_v21  ;;  %v3768_v31 = vmul.f32 %v3763_v16, %v12828_v35  ;;  %13419 = vst [vmem:[#allocation35_spill] sm:$0xff] %v11030_v20  ;;  %13420 = vst [vmem:[#allocation27_spill] sm:$0xff] %v11036_v17  ;;  %v11077_v16 = vld [vmem:[#allocation8 + $0xf8] sm:$0xff] }
 0x8b2   :  { %6549 = vmatprep.subr.mxu1 %v10509_v47  ;;  %6148 = vmatpush3.msra.mxu0 %v10857_v61  ;;  %13421 = vst [vmem:[#allocation30_spill] sm:$0xff] %v11042_v52  ;;  %13423 = vst [vmem:[#allocation36_spill] sm:$0xff] %v11055_v3 }
 0x8b3   :  { %3853 = vmatmul.mubr.f32.gmra.mxu1 %v3767_v26  ;;  %3954 = vmatmul.mubr.f32.gmra.mxu0 %v3781_v12  ;;  %13424 = vst [vmem:[#allocation26_spill] sm:$0xff] %v11061_v14  ;;  %v11068_v26 = vld [vmem:[%s12386_s5] sm:$0xff]  ;;  %13427 = vst [vmem:[#allocation34_spill] sm:$0xff] %v11077_v16 }
 0x8b4   :  { %3858 = vmatprep.mubr.f32.mxu1 %v10763_v44  ;;  %6550 = vmatpush3.msra.mxu1 %v10509_v47  ;;  %v10866_v47 = vld [vmem:[%s12386_s5 + $0xd0] sm:$0xff]  ;;  %13425 = vst [vmem:[#allocation29_spill] sm:$0xff] %v11068_v26  ;;  %v11074_v12 = vld [vmem:[%s12386_s5 + $0x100] sm:$0xff] }
 0x8b5   :  { %6551 = vmatprep.subr.mxu1 %v10519_v22  ;;  %6149 = vmatprep.subr.mxu0 %v10866_v47  ;;  %13426 = vst [vmem:[#allocation32_spill] sm:$0xff] %v11074_v12 }
 0x8b6   :  { %6552 = vmatpush3.msra.mxu1 %v10519_v22  ;;  %v10877_v22 = vld [vmem:[%s12386_s5 + $0x50] sm:$0xff] }
 0x8b7   :  { %3859 = vmatmul.mubr.f32.gmra.mxu1 %v3768_v31  ;;  %6553 = vmatprep.subr.mxu1 %v10530_v32  ;;  %v11081_v31 = vld [vmem:[#allocation8 + $0x2f8] sm:$0xff] }
 0x8b8   :  { %3864 = vmatprep.mubr.f32.mxu1 %v10771_v54  ;;  %6554 = vmatpush3.msra.mxu1 %v10530_v32  ;;  %v10890_v32 = vld [vmem:[%s12386_s5 + $0x150] sm:$0xff]  ;;  %13428 = vst [vmem:[#allocation45_spill] sm:$0xff] %v11081_v31 }
 0x8b9   :  { %6555 = vmatprep.subr.mxu1 %v10539_v29  ;;  %6150 = vmatpush3.msra.mxu0 %v10877_v22 }
 0x8ba   :  { %6556 = vmatpush3.msra.mxu1 %v10539_v29  ;;  %6151 = vmatprep.subr.mxu0 %v10884_v19  ;;  %v10897_v29 = vld [vmem:[%s12386_s5 + $0x48] sm:$0xff] }
 0x8bb   :  { %3865 = vmatmul.mubr.f32.gmra.mxu1 %v3769_v48  ;;  %6557 = vmatprep.subr.mxu1 %v10890_v32 }
 0x8bc   :  { %6558 = vmatpush3.msra.mxu1 %v10890_v32  ;;  %6152 = vmatpush3.msra.mxu0 %v10897_v29 }
 0x8bd   :  { %6559 = vmatprep.subr.mxu1 %v10903_v24  ;;  %6153 = vmatprep.subr.mxu0 %v10909_v11 }
 0x8be   :  { %6560 = vmatpush3.msra.mxu1 %v10903_v24  ;;  %6154 = vmatpush3.msra.mxu0 %v10916_v30 }
 0x8bf   :  { %6561 = vmatprep.subr.mxu1 %v10922_v23  ;;  %6155 = vmatprep.subr.mxu0 %v10928_v4 }
 0x8c0   :  { %6562 = vmatpush3.msra.mxu1 %v10922_v23  ;;  %6156 = vmatpush3.msra.mxu0 %v10935_v15 }
 0x8c1   :  { %6563 = vmatprep.subr.mxu1 %v10941_v38  ;;  %6157 = vmatprep.subr.mxu0 %v10947_v13 }
 0x8c2   :  { %6564 = vmatpush3.msra.mxu1 %v10941_v38  ;;  %6158 = vmatpush3.msra.mxu0 %v10954_v53 }
 0x8c3   :  { %6565 = vmatprep.subr.mxu1 %v10960_v56  ;;  %6159 = vmatprep.subr.mxu0 %v10966_v62 }
 0x8c4   :  { %6566 = vmatpush3.msra.mxu1 %v10960_v56  ;;  %6160 = vmatpush3.msra.mxu0 %v10973_v25 }
 0x8c5   :  { %6567 = vmatprep.subr.mxu1 %v10979_v8  ;;  %6161 = vmatprep.subr.mxu0 %v10985_v36 }
 0x8c6   :  { %6568 = vmatpush3.msra.mxu1 %v10979_v8  ;;  %6162 = vmatpush3.msra.mxu0 %v10992_v0 }
 0x8c7   :  { %6569 = vmatprep.subr.mxu1 %v10998_v60  ;;  %6163 = vmatprep.subr.mxu0 %v11004_v34 }
 0x8c8   :  { %6570 = vmatpush3.msra.mxu1 %v10998_v60  ;;  %6164 = vmatpush3.msra.mxu0 %v11011_v37 }
 0x8c9   :  { %6571 = vmatprep.subr.mxu1 %v11017_v7  ;;  %6165 = vmatprep.subr.mxu0 %v11023_v10 }
 0x8ca   :  { %6572 = vmatpush3.msra.mxu1 %v11017_v7  ;;  %6166 = vmatpush3.msra.mxu0 %v11030_v20 }
 0x8cb   :  { %6573 = vmatprep.subr.mxu1 %v11036_v17  ;;  %6167 = vmatprep.subr.mxu0 %v11042_v52 }
 0x8cc   :  { %6574 = vmatpush3.msra.mxu1 %v11036_v17  ;;  %6168 = vmatpush3.msra.mxu0 %v11049_v28  ;;  %v13429_v28 = vld [vmem:[#allocation73_spill] sm:$0xff] }
 0x8cd   :  { %6575 = vmatprep.subr.mxu1 %v11055_v3  ;;  %6169 = vmatprep.subr.mxu0 %v11061_v14  ;;  %v1192_v52 = vadd.f32 %v13429_v28, %v13300_v50  ;;  %v13431_v28 = vld [vmem:[#allocation84_spill] sm:$0xff] }
 0x8ce   :  { %6576 = vmatpush3.msra.mxu1 %v11055_v3  ;;  %6170 = vmatpush3.msra.mxu0 %v11068_v26 }
 0x8cf   :  { %6577 = vmatprep.subr.mxu1 %v11074_v12  ;;  %4280 = vmatprep.subr.mxu0 %v11077_v16 }
 0x8d0   :  { %6578 = vmatpush3.msra.mxu1 %v11074_v12  ;;  %v13430_v12 = vld [vmem:[#allocation80_spill] sm:$0xff] }
 0x8d1   :  { %4369 = vmatprep.subr.mxu1 %v11081_v31  ;;  %v1198_v34 = vadd.f32 %v13430_v12, %v13300_v50 }
 0x967   :  { %v3937_v33 = vpop.f32.mrf.mxu0 }
 0x969   :  { %v3939_v48 = vpop.f32.mrf.mxu0 }
 0x96b   :  { %v3943_v26 = vpop.f32.mrf.mxu0 }
 0x96d   :  { %v3945_v14 = vpop.f32.mrf.mxu0 }
 0x96f   :  { %v3848_v3 = vpop.f32.mrf.mxu1  ;;  %v3949_v16 = vpop.f32.mrf.mxu0 }
 0x970   :  { %v3938_v17 = vadd.f32 %v3937_v33, %v3848_v3  ;;  %v1204_v3 = vadd.f32 %v13431_v28, %v13300_v50 }
 0x971   :  { %v3850_v20 = vpop.f32.mrf.mxu1  ;;  %v3951_v25 = vpop.f32.mrf.mxu0 }
 0x972   :  { %v3960_v10 = vadd.f32 %v3938_v17, %v1192_v52  ;;  %v11086_v7 = vadd.f32 %v3939_v48, %v3850_v20 }
 0x973   :  { %v3854_v37 = vpop.f32.mrf.mxu1  ;;  %v3955_v12 = vpop.f32.mrf.mxu0 }
 0x974   :  { %v5851_v60 = vmul.f32 -1.442695, %v3960_v10  ;;  %v3944_v31 = vadd.f32 %v3943_v26, %v3854_v37  ;;  %v13432_v37 = vld [vmem:[#allocation88_spill] sm:$0xff] }
 0x975   :  { %v3856_v0 = vpop.f32.mrf.mxu1 }
 0x976   :  { %6949 = vpow2.f32 %v5851_v60  ;;  %v3962_v36 = vadd.f32 %v3944_v31, %v1198_v34  ;;  %v11090_v8 = vadd.f32 %v3945_v14, %v3856_v0  ;;  %v1210_v60 = vadd.f32 %v13432_v37, %v13300_v50 }
 0x977   :  { %v3860_v62 = vpop.f32.mrf.mxu1 }
 0x978   :  { %v5852_v17 = vmul.f32 -1.442695, %v3962_v36  ;;  %v3950_v20 = vadd.f32 %v3949_v16, %v3860_v62 }
 0x979   :  { %v3862_v52 = vpop.f32.mrf.mxu1 }
 0x97a   :  { %6951 = vpow2.f32 %v5852_v17  ;;  %v3964_v33 = vadd.f32 %v3950_v20, %v1204_v3  ;;  %v11094_v48 = vadd.f32 %v3951_v25, %v3862_v52 }
 0x97b   :  { %v3866_v10 = vpop.f32.mrf.mxu1 }
 0x97c   :  { %v5853_v34 = vmul.f32 -1.442695, %v3964_v33  ;;  %v3956_v0 = vadd.f32 %v3955_v12, %v3866_v10 }
 0x97e   :  { %6953 = vpow2.f32 %v5853_v34  ;;  %v3966_v14 = vadd.f32 %v3956_v0, %v1210_v60 }
 0x980   :  { %v5854_v26 = vmul.f32 -1.442695, %v3966_v14 }
 0x982   :  { %6955 = vpow2.f32 %v5854_v26 }
 0x983   :  { %v6950_v31 = vpop.eup %6949 }
 0x984   :  { %v3980_v28 = vadd.f32 1.0, %v6950_v31 }
 0x986   :  { %6957 = vrcp.f32 %v3980_v28 }
 0x987   :  { %v6952_v62 = vpop.eup %6951 }
 0x988   :  { %v3981_v36 = vadd.f32 1.0, %v6952_v62 }
 0x98a   :  { %6959 = vrcp.f32 %v3981_v36 }
 0x98b   :  { %v6954_v16 = vpop.eup %6953 }
 0x98c   :  { %v3982_v25 = vadd.f32 1.0, %v6954_v16 }
 0x98e   :  { %6961 = vrcp.f32 %v3982_v25 }
 0x98f   :  { %v6956_v3 = vpop.eup %6955 }
 0x990   :  { %v3983_v17 = vadd.f32 1.0, %v6956_v3 }
 0x992   :  { %6963 = vrcp.f32 %v3983_v17 }
 0x993   :  { %v6958_v20 = vpop.eup %6957 }
 0x994   :  { %v4016_v52 = vmul.f32 %v6958_v20, %v10750_v40 }
 0x996   :  { %4108 = vmatprep.mubr.f32.mxu0 %v4016_v52  ;;  %v4020_v10 = vrot.slane %v4016_v52, 7  ;;  %v4032_v37 = vrot.slane %v4016_v52, 1 }
 0x997   :  { %v6960_v33 = vpop.eup %6959 }
 0x998   :  { %v4017_v12 = vmul.f32 %v6960_v33, %v10757_v6 }
 0x99a   :  { %v4033_v60 = vrot.slane %v4017_v12, 1  ;;  %v4021_v34 = vrot.slane %v4017_v12, 7 }
 0x99b   :  { %v6962_v0 = vpop.eup %6961 }
 0x99c   :  { %v4018_v14 = vmul.f32 %v6962_v0, %v10763_v44  ;;  %v4038_v26 = vsel %vm458_vm0, %v4032_v37, %v4033_v60  ;;  %v4026_v31 = vsel %vm201_vm1, %v4020_v10, %v4021_v34 }
 0x99d   :  { %v4040_v28 = vmul.f32 %v4038_v26, %v12826_v9 }
 0x99e   :  { %v4034_v62 = vrot.slane %v4018_v14, 1  ;;  %v4022_v36 = vrot.slane %v4018_v14, 7 }
 0x99f   :  { %v6964_v16 = vpop.eup %6963  ;;  %6579 = vmatprep.mubr.f32.mxu1 %v4040_v28 }
 0x9a0   :  { %v4019_v25 = vmul.f32 %v6964_v16, %v10771_v54  ;;  %v4037_v3 = vsel %vm458_vm0, %v4033_v60, %v4034_v62  ;;  %v4025_v17 = vsel %vm201_vm1, %v4021_v34, %v4022_v36  ;;  %v11120_v16 = vld [vmem:[#allocation8 + $0x2f0] sm:$0xff] }
 0x9a1   :  { %v4041_v20 = vmul.f32 %v4037_v3, %v12827_v18  ;;  %13433 = vst [vmem:[#allocation47_spill] sm:$0xff] %v11120_v16 }
 0x9a2   :  { %v4023_v52 = vrot.slane %v4019_v25, 7  ;;  %v4035_v33 = vrot.slane %v4019_v25, 1 }
 0x9a3   :  { %6580 = vmatmul.mubr.f32.vlgmr.msra.gmra.mxu1 %v4041_v20 }
 0x9a4   :  { %v4027_v0 = vsel %vm201_vm1, %v4023_v52, %v4020_v10  ;;  %v4036_v26 = vsel %vm458_vm0, %v4034_v62, %v4035_v33  ;;  %v4039_v28 = vsel %vm458_vm0, %v4035_v33, %v4032_v37  ;;  %v4024_v60 = vsel %vm201_vm1, %v4022_v36, %v4023_v52  ;;  %4370 = vmatpush1.msra.mxu1 %v11120_v16  ;;  %v11126_v10 = vld [vmem:[#allocation8 + $0x2e8] sm:$0xff]  ;;  %v11129_v62 = vld [vmem:[#allocation8 + $0x2e0] sm:$0xff]  ;;  %v11133_v36 = vld [vmem:[#allocation8 + $0xf0] sm:$0xff] }
 0x9a5   :  { %v4028_v34 = vmul.f32 %v4027_v0, %v12825_v42  ;;  %v4042_v3 = vmul.f32 %v4036_v26, %v12829_v46  ;;  %v4043_v20 = vmul.f32 %v4039_v28, %v12830_v39  ;;  %13434 = vst [vmem:[#allocation40_spill] sm:$0xff] %v11126_v10  ;;  %4371 = vmatprep.subr.mxu1 %v11126_v10  ;;  %13435 = vst [vmem:[#allocation50_spill] sm:$0xff] %v11129_v62  ;;  %v11136_v52 = vld [vmem:[#allocation8 + $0x2d8] sm:$0xff]  ;;  %v11139_v33 = vld [vmem:[#allocation8 + $0xe8] sm:$0xff] }
 0x9a6   :  { %4372 = vmatpush1.msra.mxu1 %v11129_v62  ;;  %v4029_v37 = vmul.f32 %v4026_v31, %v8234_v2  ;;  %13436 = vst [vmem:[#allocation52_spill] sm:$0xff] %v11133_v36  ;;  %13437 = vst [vmem:[#allocation43_spill] sm:$0xff] %v11136_v52  ;;  %v11142_v0 = vld [vmem:[#allocation8 + $0x2d0] sm:$0xff]  ;;  %v11148_v31 = vld [vmem:[#allocation8 + $0xe0] sm:$0xff]  ;;  %v4030_v26 = vmul.f32 %v4025_v17, %v12828_v35 }
 0x9a7   :  { %4109 = vmatmul.mubr.f32.vlgmr.msra.gmra.mxu0 %v4028_v34  ;;  %6582 = vmatprep.mubr.f32.mxu1 %v4042_v3  ;;  %13438 = vst [vmem:[#allocation54_spill] sm:$0xff] %v11139_v33  ;;  %13439 = vst [vmem:[#allocation56_spill] sm:$0xff] %v11142_v0  ;;  %v11152_v28 = vld [vmem:[#allocation8 + $0xd8] sm:$0xff]  ;;  %v11155_v34 = vld [vmem:[#allocation8 + $0x2c0] sm:$0xff] }
 0x9a8   :  { %4113 = vmatprep.mubr.f32.mxu0 %v4017_v12  ;;  %6583 = vmatmul.mubr.f32.gmra.mxu1 %v4043_v20  ;;  %v11145_v12 = vld [vmem:[#allocation8 + $0x2c8] sm:$0xff]  ;;  %13441 = vst [vmem:[#allocation58_spill] sm:$0xff] %v11148_v31  ;;  %13442 = vst [vmem:[#allocation60_spill] sm:$0xff] %v11152_v28  ;;  %v11158_v3 = vld [vmem:[#allocation8 + $0xd0] sm:$0xff] }
 0x9a9   :  { %4281 = vmatpush1.msra.mxu0 %v11133_v36  ;;  %4373 = vmatprep.subr.mxu1 %v11136_v52  ;;  %13440 = vst [vmem:[#allocation46_spill] sm:$0xff] %v11145_v12  ;;  %13443 = vst [vmem:[#allocation51_spill] sm:$0xff] %v11155_v34  ;;  %v11161_v20 = vld [vmem:[#allocation8 + $0x2b8] sm:$0xff]  ;;  %v11167_v17 = vld [vmem:[#allocation8 + $0xc0] sm:$0xff] }
 0x9aa   :  { %4282 = vmatprep.subr.mxu0 %v11139_v33  ;;  %4374 = vmatpush1.msra.mxu1 %v11142_v0  ;;  %13444 = vst [vmem:[#allocation62_spill] sm:$0xff] %v11158_v3  ;;  %13445 = vst [vmem:[#allocation64_spill] sm:$0xff] %v11161_v20 }
 0x9ab   :  { %4114 = vmatmul.mubr.f32.gmra.mxu0 %v4029_v37  ;;  %4375 = vmatprep.subr.mxu1 %v11145_v12  ;;  %13447 = vst [vmem:[#allocation65_spill] sm:$0xff] %v11167_v17  ;;  %v4031_v37 = vmul.f32 %v4024_v60, %v8283_v49  ;;  %v11186_v60 = vld [vmem:[#allocation8 + $0xa0] sm:$0xff] }
 0x9ac   :  { %4118 = vmatprep.mubr.f32.mxu0 %v4018_v14  ;;  %4283 = vmatpush1.msra.mxu0 %v11148_v31  ;;  %v11164_v14 = vld [vmem:[#allocation8 + $0xc8] sm:$0xff]  ;;  %13453 = vst [vmem:[#allocation37_spill] sm:$0xff] %v11186_v60  ;;  %v3957_v31 = vpop.f32.mrf.mxu0 }
 0x9ad   :  { %4284 = vmatprep.subr.mxu0 %v11152_v28  ;;  %4376 = vmatpush1.msra.mxu1 %v11155_v34  ;;  %13446 = vst [vmem:[#allocation55_spill] sm:$0xff] %v11164_v14  ;;  %v11171_v34 = vld [vmem:[#allocation8 + $0xb8] sm:$0xff] }
 0x9ae   :  { %4285 = vmatpush1.msra.mxu0 %v11158_v3  ;;  %4377 = vmatprep.subr.mxu1 %v11161_v20  ;;  %13448 = vst [vmem:[#allocation67_spill] sm:$0xff] %v11171_v34  ;;  %v11174_v3 = vld [vmem:[#allocation8 + $0x2b0] sm:$0xff]  ;;  %v3868_v20 = vpop.f32.mrf.mxu1 }
 0x9af   :  { %4119 = vmatmul.mubr.f32.gmra.mxu0 %v4030_v26  ;;  %4286 = vmatprep.subr.mxu0 %v11164_v14  ;;  %13449 = vst [vmem:[#allocation59_spill] sm:$0xff] %v11174_v3  ;;  %v11177_v26 = vld [vmem:[#allocation8 + $0xb0] sm:$0xff]  ;;  %v11180_v14 = vld [vmem:[#allocation8 + $0x2a8] sm:$0xff]  ;;  %v3958_v33 = vadd.f32 %v3957_v31, %v3868_v20 }
 0x9b0   :  { %4123 = vmatprep.mubr.f32.mxu0 %v4019_v25  ;;  %4287 = vmatpush1.msra.mxu0 %v11167_v17  ;;  %13450 = vst [vmem:[#allocation68_spill] sm:$0xff] %v11177_v26  ;;  %13451 = vst [vmem:[#allocation71_spill] sm:$0xff] %v11180_v14  ;;  %v11183_v25 = vld [vmem:[#allocation8 + $0xa8] sm:$0xff] }
 0x9b1   :  { %4288 = vmatprep.subr.mxu0 %v11171_v34  ;;  %4378 = vmatpush1.msra.mxu1 %v11174_v3  ;;  %13452 = vst [vmem:[#allocation63_spill] sm:$0xff] %v11183_v25  ;;  %v11189_v34 = vld [vmem:[#allocation8 + $0x2a0] sm:$0xff]  ;;  %v11192_v3 = vld [vmem:[#allocation8 + $0x98] sm:$0xff] }
 0x9b2   :  { %4289 = vmatpush1.msra.mxu0 %v11177_v26  ;;  %4379 = vmatprep.subr.mxu1 %v11180_v14  ;;  %13454 = vst [vmem:[#allocation41_spill] sm:$0xff] %v11189_v34  ;;  %13455 = vst [vmem:[#allocation48_spill] sm:$0xff] %v11192_v3  ;;  %v11195_v26 = vld [vmem:[#allocation8 + $0x298] sm:$0xff] }
 0x9b3   :  { %4124 = vmatmul.mubr.f32.gmra.mxu0 %v4031_v37  ;;  %4290 = vmatprep.subr.mxu0 %v11183_v25  ;;  %13456 = vst [vmem:[#allocation61_spill] sm:$0xff] %v11195_v26  ;;  %v11198_v37 = vld [vmem:[#allocation8 + $0x90] sm:$0xff] }
 0x9b4   :  { %4291 = vmatpush1.msra.mxu0 %v11186_v60  ;;  %4380 = vmatpush1.msra.mxu1 %v11189_v34  ;;  %13457 = vst [vmem:[#allocation72_spill] sm:$0xff] %v11198_v37  ;;  %v11201_v25 = vld [vmem:[#allocation8 + $0x290] sm:$0xff]  ;;  %v11204_v60 = vld [vmem:[#allocation8 + $0x88] sm:$0xff] }
 0x9b5   :  { %4292 = vmatprep.subr.mxu0 %v11192_v3  ;;  %4381 = vmatprep.subr.mxu1 %v11195_v26  ;;  %13458 = vst [vmem:[#allocation75_spill] sm:$0xff] %v11201_v25  ;;  %13459 = vst [vmem:[#allocation66_spill] sm:$0xff] %v11204_v60  ;;  %v11207_v34 = vld [vmem:[#allocation8 + $0x288] sm:$0xff]  ;;  %v11210_v3 = vld [vmem:[#allocation8 + $0x80] sm:$0xff] }
 0x9b6   :  { %4293 = vmatpush1.msra.mxu0 %v11198_v37  ;;  %4382 = vmatpush1.msra.mxu1 %v11201_v25  ;;  %13460 = vst [vmem:[#allocation76_spill] sm:$0xff] %v11207_v34  ;;  %13461 = vst [vmem:[#allocation77_spill] sm:$0xff] %v11210_v3  ;;  %v11213_v26 = vld [vmem:[#allocation8 + $0x280] sm:$0xff]  ;;  %v11216_v37 = vld [vmem:[#allocation8 + $0x78] sm:$0xff] }
 0x9b7   :  { %4294 = vmatprep.subr.mxu0 %v11204_v60  ;;  %4383 = vmatprep.subr.mxu1 %v11207_v34  ;;  %13462 = vst [vmem:[#allocation69_spill] sm:$0xff] %v11213_v26  ;;  %13463 = vst [vmem:[#allocation82_spill] sm:$0xff] %v11216_v37  ;;  %v11219_v25 = vld [vmem:[#allocation8 + $0x278] sm:$0xff]  ;;  %v11222_v60 = vld [vmem:[#allocation8 + $0x70] sm:$0xff] }
 0x9b8   :  { %4295 = vmatpush1.msra.mxu0 %v11210_v3  ;;  %4384 = vmatpush1.msra.mxu1 %v11213_v26  ;;  %13464 = vst [vmem:[#allocation78_spill] sm:$0xff] %v11219_v25  ;;  %13465 = vst [vmem:[#allocation14_spill] sm:$0xff] %v11222_v60  ;;  %v11225_v34 = vld [vmem:[#allocation8 + $0x270] sm:$0xff]  ;;  %v11228_v3 = vld [vmem:[#allocation8 + $0x68] sm:$0xff] }
 0x9b9   :  { %4296 = vmatprep.subr.mxu0 %v11216_v37  ;;  %4385 = vmatprep.subr.mxu1 %v11219_v25  ;;  %13466 = vst [vmem:[#allocation17_spill] sm:$0xff] %v11225_v34  ;;  %13467 = vst [vmem:[#allocation19_spill] sm:$0xff] %v11228_v3  ;;  %v11231_v26 = vld [vmem:[#allocation8 + $0x268] sm:$0xff]  ;;  %v11234_v37 = vld [vmem:[#allocation8 + $0x60] sm:$0xff] }
 0x9ba   :  { %4297 = vmatpush1.msra.mxu0 %v11222_v60  ;;  %4386 = vmatpush1.msra.mxu1 %v11225_v34  ;;  %13468 = vst [vmem:[#allocation23_spill] sm:$0xff] %v11231_v26  ;;  %13469 = vst [vmem:[#allocation127_spill] sm:$0xff] %v11234_v37  ;;  %v11237_v25 = vld [vmem:[#allocation8 + $0x260] sm:$0xff]  ;;  %v11240_v60 = vld [vmem:[#allocation8 + $0x58] sm:$0xff] }
 0x9bb   :  { %4298 = vmatprep.subr.mxu0 %v11228_v3  ;;  %4387 = vmatprep.subr.mxu1 %v11231_v26  ;;  %13470 = vst [vmem:[#allocation128_spill] sm:$0xff] %v11237_v25  ;;  %13471 = vst [vmem:[#allocation129_spill] sm:$0xff] %v11240_v60  ;;  %v11243_v34 = vld [vmem:[#allocation8 + $0x258] sm:$0xff]  ;;  %v11246_v3 = vld [vmem:[#allocation8 + $0x50] sm:$0xff] }
 0x9bc   :  { %4299 = vmatpush1.msra.mxu0 %v11234_v37  ;;  %4388 = vmatpush1.msra.mxu1 %v11237_v25  ;;  %13472 = vst [vmem:[#allocation130_spill] sm:$0xff] %v11243_v34  ;;  %13473 = vst [vmem:[#allocation131_spill] sm:$0xff] %v11246_v3  ;;  %v11249_v26 = vld [vmem:[#allocation8 + $0x250] sm:$0xff]  ;;  %v11252_v37 = vld [vmem:[#allocation8 + $0x48] sm:$0xff] }
 0x9bd   :  { %4300 = vmatprep.subr.mxu0 %v11240_v60  ;;  %4389 = vmatprep.subr.mxu1 %v11243_v34  ;;  %13474 = vst [vmem:[#allocation132_spill] sm:$0xff] %v11249_v26  ;;  %13475 = vst [vmem:[#allocation133_spill] sm:$0xff] %v11252_v37  ;;  %v11255_v25 = vld [vmem:[#allocation8 + $0x248] sm:$0xff]  ;;  %v11258_v60 = vld [vmem:[#allocation8 + $0x40] sm:$0xff] }
 0x9be   :  { %4301 = vmatpush1.msra.mxu0 %v11246_v3  ;;  %4390 = vmatpush1.msra.mxu1 %v11249_v26  ;;  %13476 = vst [vmem:[#allocation134_spill] sm:$0xff] %v11255_v25  ;;  %13477 = vst [vmem:[#allocation135_spill] sm:$0xff] %v11258_v60  ;;  %v11261_v34 = vld [vmem:[#allocation8 + $0x240] sm:$0xff]  ;;  %v11264_v3 = vld [vmem:[#allocation8 + $0x38] sm:$0xff] }
 0x9bf   :  { %4302 = vmatprep.subr.mxu0 %v11252_v37  ;;  %4391 = vmatprep.subr.mxu1 %v11255_v25  ;;  %13478 = vst [vmem:[#allocation136_spill] sm:$0xff] %v11261_v34  ;;  %13479 = vst [vmem:[#allocation137_spill] sm:$0xff] %v11264_v3  ;;  %v11267_v26 = vld [vmem:[#allocation8 + $0x238] sm:$0xff]  ;;  %v11270_v37 = vld [vmem:[#allocation8 + $0x30] sm:$0xff] }
 0x9c0   :  { %4303 = vmatpush1.msra.mxu0 %v11258_v60  ;;  %4392 = vmatpush1.msra.mxu1 %v11261_v34  ;;  %13480 = vst [vmem:[#allocation138_spill] sm:$0xff] %v11267_v26  ;;  %13481 = vst [vmem:[#allocation139_spill] sm:$0xff] %v11270_v37  ;;  %v11273_v25 = vld [vmem:[#allocation8 + $0x230] sm:$0xff]  ;;  %v11276_v60 = vld [vmem:[#allocation8 + $0x28] sm:$0xff] }
 0x9c1   :  { %4304 = vmatprep.subr.mxu0 %v11264_v3  ;;  %4393 = vmatprep.subr.mxu1 %v11267_v26  ;;  %13482 = vst [vmem:[#allocation140_spill] sm:$0xff] %v11273_v25  ;;  %13483 = vst [vmem:[#allocation141_spill] sm:$0xff] %v11276_v60  ;;  %v11279_v34 = vld [vmem:[#allocation8 + $0x228] sm:$0xff]  ;;  %v11282_v3 = vld [vmem:[#allocation8 + $0x20] sm:$0xff] }
 0x9c2   :  { %4305 = vmatpush1.msra.mxu0 %v11270_v37  ;;  %4394 = vmatpush1.msra.mxu1 %v11273_v25  ;;  %13484 = vst [vmem:[#allocation142_spill] sm:$0xff] %v11279_v34  ;;  %13485 = vst [vmem:[#allocation143_spill] sm:$0xff] %v11282_v3  ;;  %v11285_v26 = vld [vmem:[#allocation8 + $0x220] sm:$0xff]  ;;  %v11288_v37 = vld [vmem:[#allocation8 + $0x18] sm:$0xff] }
 0x9c3   :  { %4306 = vmatprep.subr.mxu0 %v11276_v60  ;;  %4395 = vmatprep.subr.mxu1 %v11279_v34  ;;  %13486 = vst [vmem:[#allocation144_spill] sm:$0xff] %v11285_v26  ;;  %13487 = vst [vmem:[#allocation145_spill] sm:$0xff] %v11288_v37  ;;  %v11291_v25 = vld [vmem:[#allocation8 + $0x218] sm:$0xff]  ;;  %v11294_v60 = vld [vmem:[#allocation8 + $0x10] sm:$0xff] }
 0x9c4   :  { %4307 = vmatpush1.msra.mxu0 %v11282_v3  ;;  %4396 = vmatpush1.msra.mxu1 %v11285_v26  ;;  %13488 = vst [vmem:[#allocation146_spill] sm:$0xff] %v11291_v25  ;;  %13489 = vst [vmem:[#allocation147_spill] sm:$0xff] %v11294_v60  ;;  %v11297_v34 = vld [vmem:[#allocation8 + $0x210] sm:$0xff]  ;;  %v11300_v3 = vld [vmem:[#allocation8 + $0x8] sm:$0xff] }
 0x9c5   :  { %4308 = vmatprep.subr.mxu0 %v11288_v37  ;;  %4397 = vmatprep.subr.mxu1 %v11291_v25  ;;  %13490 = vst [vmem:[#allocation148_spill] sm:$0xff] %v11297_v34  ;;  %13491 = vst [vmem:[#allocation149_spill] sm:$0xff] %v11300_v3  ;;  %v11303_v26 = vld [vmem:[#allocation8 + $0x208] sm:$0xff]  ;;  %v11306_v37 = vld [vmem:[#allocation8] sm:$0xff] }
 0x9c6   :  { %4309 = vmatpush1.msra.mxu0 %v11294_v60  ;;  %4398 = vmatpush1.msra.mxu1 %v11297_v34  ;;  %13492 = vst [vmem:[#allocation150_spill] sm:$0xff] %v11303_v26  ;;  %13493 = vst [vmem:[#allocation151_spill] sm:$0xff] %v11306_v37  ;;  %v11309_v25 = vld [vmem:[#allocation8 + $0x200] sm:$0xff]  ;;  %v11312_v60 = vld [vmem:[#allocation8 + $0x1f8] sm:$0xff] }
 0x9c7   :  { %4310 = vmatprep.subr.mxu0 %v11300_v3  ;;  %4399 = vmatprep.subr.mxu1 %v11303_v26  ;;  %13494 = vst [vmem:[#allocation152_spill] sm:$0xff] %v11309_v25  ;;  %13495 = vst [vmem:[#allocation153_spill] sm:$0xff] %v11312_v60  ;;  %v11316_v34 = vld [vmem:[#allocation8 + $0x1f0] sm:$0xff]  ;;  %v11320_v26 = vld [vmem:[#allocation8 + $0x1e8] sm:$0xff] }
 0x9c8   :  { %4311 = vmatpush1.msra.mxu0 %v11306_v37  ;;  %4400 = vmatpush1.msra.mxu1 %v11309_v25  ;;  %13496 = vst [vmem:[#allocation154_spill] sm:$0xff] %v11316_v34  ;;  %13497 = vst [vmem:[#allocation155_spill] sm:$0xff] %v11320_v26  ;;  %v11323_v37 = vld [vmem:[#allocation8 + $0x1e0] sm:$0xff]  ;;  %v11326_v25 = vld [vmem:[#allocation8 + $0x1d8] sm:$0xff] }
 0x9c9   :  { %4312 = vmatprep.subr.mxu0 %v11312_v60  ;;  %4433 = vmatprep.mubr.f32.mxu1 %v12824_v43  ;;  %13498 = vst [vmem:[#allocation156_spill] sm:$0xff] %v11323_v37  ;;  %13499 = vst [vmem:[#allocation157_spill] sm:$0xff] %v11326_v25  ;;  %v11329_v60 = vld [vmem:[#allocation8 + $0x1d0] sm:$0xff]  ;;  %v11332_v3 = vld [vmem:[#allocation8 + $0x1c8] sm:$0xff] }
 0x9ca   :  { %4313 = vmatpush2.msra.mxu0 %v11316_v34  ;;  %6203 = vmatprep.subr.mxu1 %v10698_v59  ;;  %13500 = vst [vmem:[#allocation158_spill] sm:$0xff] %v11329_v60  ;;  %13501 = vst [vmem:[#allocation159_spill] sm:$0xff] %v11332_v3  ;;  %v11335_v59 = vld [vmem:[#allocation8 + $0x1c0] sm:$0xff]  ;;  %v13528_v34 = vld [vmem:[#allocation83_spill] sm:$0xff] }
 0x9cb   :  { %4314 = vmatprep.subr.mxu0 %v11320_v26  ;;  %13502 = vst [vmem:[#allocation160_spill] sm:$0xff] %v11335_v59  ;;  %v11338_v26 = vld [vmem:[#allocation8 + $0x1b8] sm:$0xff]  ;;  %v1200_v14 = vadd.f32 %v13528_v34, %v13399_v55 }
 0x9cc   :  { %4315 = vmatpush2.msra.mxu0 %v11323_v37  ;;  %13503 = vst [vmem:[#allocation161_spill] sm:$0xff] %v11338_v26  ;;  %v11341_v37 = vld [vmem:[#allocation8 + $0x1b0] sm:$0xff] }
 0x9cd   :  { %4316 = vmatprep.subr.mxu0 %v11326_v25  ;;  %13504 = vst [vmem:[#allocation162_spill] sm:$0xff] %v11341_v37  ;;  %v11344_v25 = vld [vmem:[#allocation8 + $0x1a8] sm:$0xff]  ;;  %v3963_v17 = vadd.f32 %v11090_v8, %v1200_v14 }
 0x9ce   :  { %4317 = vmatpush2.msra.mxu0 %v11329_v60  ;;  %13505 = vst [vmem:[#allocation163_spill] sm:$0xff] %v11344_v25  ;;  %v11347_v60 = vld [vmem:[#allocation8 + $0x1a0] sm:$0xff] }
 0x9cf   :  { %4318 = vmatprep.subr.mxu0 %v11332_v3  ;;  %13506 = vst [vmem:[#allocation164_spill] sm:$0xff] %v11347_v60  ;;  %v11350_v3 = vld [vmem:[#allocation8 + $0x198] sm:$0xff]  ;;  %v5856_v12 = vmul.f32 -1.442695, %v3963_v17 }
 0x9d0   :  { %4319 = vmatpush2.msra.mxu0 %v11335_v59  ;;  %13507 = vst [vmem:[#allocation165_spill] sm:$0xff] %v11350_v3  ;;  %v11353_v59 = vld [vmem:[#allocation8 + $0x190] sm:$0xff] }
 0x9d1   :  { %4320 = vmatprep.subr.mxu0 %v11338_v26  ;;  %13508 = vst [vmem:[#allocation166_spill] sm:$0xff] %v11353_v59  ;;  %v11356_v26 = vld [vmem:[#allocation8 + $0x188] sm:$0xff] }
 0x9d2   :  { %4321 = vmatpush2.msra.mxu0 %v11341_v37  ;;  %13509 = vst [vmem:[#allocation167_spill] sm:$0xff] %v11356_v26  ;;  %v11359_v37 = vld [vmem:[#allocation8 + $0x180] sm:$0xff] }
 0x9d3   :  { %4322 = vmatprep.subr.mxu0 %v11344_v25  ;;  %13510 = vst [vmem:[#allocation168_spill] sm:$0xff] %v11359_v37  ;;  %v11362_v25 = vld [vmem:[#allocation8 + $0x178] sm:$0xff] }
 0x9d4   :  { %4323 = vmatpush2.msra.mxu0 %v11347_v60  ;;  %13511 = vst [vmem:[#allocation169_spill] sm:$0xff] %v11362_v25  ;;  %v11365_v60 = vld [vmem:[#allocation8 + $0x170] sm:$0xff] }
 0x9d5   :  { %4324 = vmatprep.subr.mxu0 %v11350_v3  ;;  %13512 = vst [vmem:[#allocation170_spill] sm:$0xff] %v11365_v60  ;;  %v11368_v3 = vld [vmem:[#allocation8 + $0x168] sm:$0xff] }
 0x9d6   :  { %4325 = vmatpush2.msra.mxu0 %v11353_v59  ;;  %13513 = vst [vmem:[#allocation171_spill] sm:$0xff] %v11368_v3  ;;  %v11371_v59 = vld [vmem:[#allocation8 + $0x160] sm:$0xff] }
 0x9d7   :  { %4326 = vmatprep.subr.mxu0 %v11356_v26  ;;  %13514 = vst [vmem:[#allocation172_spill] sm:$0xff] %v11371_v59  ;;  %v11374_v26 = vld [vmem:[#allocation8 + $0x158] sm:$0xff] }
 0x9d8   :  { %4327 = vmatpush2.msra.mxu0 %v11359_v37  ;;  %13515 = vst [vmem:[#allocation173_spill] sm:$0xff] %v11374_v26  ;;  %v11377_v37 = vld [vmem:[#allocation8 + $0x150] sm:$0xff] }
 0x9d9   :  { %4328 = vmatprep.subr.mxu0 %v11362_v25  ;;  %13516 = vst [vmem:[#allocation174_spill] sm:$0xff] %v11377_v37  ;;  %v11380_v25 = vld [vmem:[#allocation8 + $0x148] sm:$0xff] }
 0x9da   :  { %4329 = vmatpush2.msra.mxu0 %v11365_v60  ;;  %13517 = vst [vmem:[#allocation175_spill] sm:$0xff] %v11380_v25  ;;  %v11383_v60 = vld [vmem:[#allocation8 + $0x140] sm:$0xff] }
 0x9db   :  { %4330 = vmatprep.subr.mxu0 %v11368_v3  ;;  %13518 = vst [vmem:[#allocation176_spill] sm:$0xff] %v11383_v60  ;;  %v11386_v3 = vld [vmem:[#allocation8 + $0x138] sm:$0xff] }
 0x9dc   :  { %4331 = vmatpush2.msra.mxu0 %v11371_v59  ;;  %13519 = vst [vmem:[#allocation177_spill] sm:$0xff] %v11386_v3  ;;  %v11389_v59 = vld [vmem:[#allocation8 + $0x130] sm:$0xff] }
 0x9dd   :  { %4332 = vmatprep.subr.mxu0 %v11374_v26  ;;  %13520 = vst [vmem:[#allocation178_spill] sm:$0xff] %v11389_v59  ;;  %v11392_v26 = vld [vmem:[#allocation8 + $0x128] sm:$0xff] }
 0x9de   :  { %4333 = vmatpush2.msra.mxu0 %v11377_v37  ;;  %13521 = vst [vmem:[#allocation179_spill] sm:$0xff] %v11392_v26  ;;  %v11395_v37 = vld [vmem:[#allocation8 + $0x120] sm:$0xff] }
 0x9df   :  { %4334 = vmatprep.subr.mxu0 %v11380_v25  ;;  %13522 = vst [vmem:[#allocation180_spill] sm:$0xff] %v11395_v37  ;;  %v11398_v25 = vld [vmem:[#allocation8 + $0x118] sm:$0xff] }
 0x9e0   :  { %4335 = vmatpush2.msra.mxu0 %v11383_v60  ;;  %13523 = vst [vmem:[#allocation181_spill] sm:$0xff] %v11398_v25  ;;  %v11401_v60 = vld [vmem:[#allocation8 + $0x110] sm:$0xff] }
 0x9e1   :  { %4336 = vmatprep.subr.mxu0 %v11386_v3  ;;  %13524 = vst [vmem:[#allocation182_spill] sm:$0xff] %v11401_v60  ;;  %v11404_v3 = vld [vmem:[#allocation8 + $0x108] sm:$0xff] }
 0x9e2   :  { %4337 = vmatpush2.msra.mxu0 %v11389_v59  ;;  %13525 = vst [vmem:[#allocation183_spill] sm:$0xff] %v11404_v3  ;;  %v11407_v59 = vld [vmem:[#allocation8 + $0x100] sm:$0xff] }
 0x9e3   :  { %4338 = vmatprep.subr.mxu0 %v11392_v26  ;;  %13526 = vst [vmem:[#allocation184_spill] sm:$0xff] %v11407_v59 }
 0x9e4   :  { %4339 = vmatpush2.msra.mxu0 %v11395_v37  ;;  %v11413_v37 = vld [vmem:[%s12386_s5 + $0x178] sm:$0xff] }
 0x9e5   :  { %4340 = vmatprep.subr.mxu0 %v11398_v25  ;;  %v13527_v25 = vld [vmem:[#allocation79_spill] sm:$0xff] }
 0x9e6   :  { %4341 = vmatpush2.msra.mxu0 %v11401_v60  ;;  %v1194_v26 = vadd.f32 %v13527_v25, %v13399_v55  ;;  %v13530_v25 = vld [vmem:[#allocation89_spill] sm:$0xff] }
 0x9e7   :  { %4342 = vmatprep.subr.mxu0 %v11404_v3  ;;  %v1212_v52 = vadd.f32 %v13530_v25, %v13399_v55 }
 0x9e8   :  { %4343 = vmatpush2.msra.mxu0 %v11407_v59  ;;  %v3961_v60 = vadd.f32 %v11086_v7, %v1194_v26  ;;  %v13529_v59 = vld [vmem:[#allocation86_spill] sm:$0xff] }
 0x9e9   :  { %6585 = vmatprep.subr.mxu0 %v11413_v37  ;;  %v1206_v28 = vadd.f32 %v13529_v59, %v13399_v55  ;;  %v3967_v26 = vadd.f32 %v3958_v33, %v1212_v52  ;;  %v13531_v33 = vld [vmem:[#allocation74_spill] sm:$0xff] }
 0x9ea   :  { %v5855_v3 = vmul.f32 -1.442695, %v3961_v60  ;;  %v1433_v25 = vadd.f32 %v13531_v33, %v9440_v45 }
 0x9eb   :  { %v3965_v0 = vadd.f32 %v11094_v48, %v1206_v28  ;;  %v5858_v34 = vmul.f32 -1.442695, %v3967_v26 }
 0x9ec   :  { %6965 = vpow2.f32 %v5855_v3 }
 0x9ed   :  { %6967 = vpow2.f32 %v5856_v12  ;;  %v5857_v7 = vmul.f32 -1.442695, %v3965_v0 }
 0x9ef   :  { %6969 = vpow2.f32 %v5857_v7 }
 0x9f0   :  { %6971 = vpow2.f32 %v5858_v34 }
 0x9f9   :  { %v6966_v8 = vpop.eup %6965 }
 0x9fa   :  { %v4004_v14 = vadd.f32 1.0, %v6966_v8  ;;  %v6968_v60 = vpop.eup %6967 }
 0x9fb   :  { %v4005_v59 = vadd.f32 1.0, %v6968_v60 }
 0x9fc   :  { %6973 = vrcp.f32 %v4004_v14  ;;  %v6970_v36 = vpop.eup %6969 }
 0x9fd   :  { %6975 = vrcp.f32 %v4005_v59  ;;  %v4006_v3 = vadd.f32 1.0, %v6970_v36  ;;  %v6972_v17 = vpop.eup %6971  ;;  %v13532_v59 = vld [vmem:[#allocation81_spill] sm:$0xff] }
 0x9fe   :  { %v4007_v28 = vadd.f32 1.0, %v6972_v17  ;;  %v1438_v55 = vadd.f32 %v13532_v59, %v9440_v45 }
 0x9ff   :  { %6977 = vrcp.f32 %v4006_v3 }
 0xa00   :  { %6979 = vrcp.f32 %v4007_v28 }
 0xa09   :  { %v6974_v26 = vpop.eup %6973 }
 0xa0a   :  { %v4226_v17 = vsub.f32 1.0, %v6974_v26  ;;  %v4222_v10 = vmul.f32 %v6974_v26, %v10750_v40 }
 0xa63   :  { %v6581_v48 = vpop.f32.mrf.mxu1 }
 0xa65   :  { %v4195_v0 = vpop.f32.mrf.mxu1 }
 0xa67   :  { %v6171_v31 = vpop.f32.mrf.mxu0 }
 0xa68   :  { %v6584_v60 = vpop.f32.mrf.mxu1 }
 0xa69   :  { %v6172_v20 = vpop.f32.mrf.mxu0 }
 0xa6a   :  { %v6173_v12 = vadd.f32 %v6172_v20, %v6171_v31  ;;  %v6976_v31 = vpop.eup %6975 }
 0xa6b   :  { %v6174_v52 = vpop.f32.mrf.mxu0  ;;  %v4227_v50 = vsub.f32 1.0, %v6976_v31 }
 0xa6c   :  { %v4196_v7 = vadd.f32 %v6173_v12, %v4195_v0  ;;  %v13533_v12 = vld [vmem:[#allocation85_spill] sm:$0xff] }
 0xa6d   :  { %v6175_v34 = vpop.f32.mrf.mxu0  ;;  %v1443_v0 = vadd.f32 %v13533_v12, %v9440_v45 }
 0xa6e   :  { %v4214_v8 = vadd.f32 %v4196_v7, %v1433_v25  ;;  %v6176_v14 = vadd.f32 %v6175_v34, %v6174_v52  ;;  %v4205_v25 = vpop.f32.mrf.mxu1 }
 0xa6f   :  { %v6177_v36 = vpop.f32.mrf.mxu0 }
 0xa70   :  { %v4218_v3 = vmax.f32 %v4214_v8, 0.0  ;;  %v4201_v62 = vadd.f32 %v6581_v48, %v6176_v14  ;;  %v6978_v8 = vpop.eup %6977  ;;  %v4223_v48 = vmul.f32 %v6976_v31, %v10757_v6 }
 0xa71   :  { %v6178_v20 = vpop.f32.mrf.mxu0 }
 0xa72   :  { %v4230_v16 = vmul.f32 %v4226_v17, %v4218_v3  ;;  %v4215_v33 = vadd.f32 %v4201_v62, %v1438_v55  ;;  %v6179_v28 = vadd.f32 %v6178_v20, %v6177_v36  ;;  %v13534_v62 = vld [vmem:[#allocation87_spill] sm:$0xff]  ;;  %v6980_v17 = vpop.eup %6979  ;;  %v4224_v20 = vmul.f32 %v6978_v8, %v10763_v44 }
 0xa73   :  { %v6180_v52 = vpop.f32.mrf.mxu0  ;;  %v1448_v14 = vadd.f32 %v13534_v62, %v9440_v45  ;;  %v4229_v12 = vsub.f32 1.0, %v6980_v17  ;;  %v4225_v44 = vmul.f32 %v6980_v17, %v10771_v54  ;;  %v11516_v17 = vld [vmem:[%s12386_s5 + $0x160] sm:$0xff] }
 0xa74   :  { %v11434_v7 = vadd.f32 %v4230_v16, %v4222_v10  ;;  %v4219_v34 = vmax.f32 %v4215_v33, 0.0  ;;  %v4206_v59 = vadd.f32 %v6179_v28, %v4205_v25  ;;  %v4228_v10 = vsub.f32 1.0, %v6978_v8 }
 0xa75   :  { %v6181_v56 = vpop.f32.mrf.mxu0 }
 0xa76   :  { %4239 = vst [vmem:[#allocation9 + $0x80] sm:$0xff] %v11434_v7  ;;  %v4231_v40 = vmul.f32 %v4227_v50, %v4219_v34  ;;  %v4216_v26 = vadd.f32 %v4206_v59, %v1443_v0  ;;  %v6182_v55 = vadd.f32 %v6181_v56, %v6180_v52  ;;  %4344 = vmatprep.mubr.f32.mxu0 %v11434_v7  ;;  %v4268_v50 = vrot.slane %v11434_v7, 1 }
 0xa77   :  { %v4256_v54 = vrot.slane %v11434_v7, 7 }
 0xa78   :  { %v11441_v36 = vadd.f32 %v4231_v40, %v4223_v48  ;;  %v4220_v16 = vmax.f32 %v4216_v26, 0.0  ;;  %v4211_v3 = vadd.f32 %v6584_v60, %v6182_v55 }
 0xa7a   :  { %4240 = vst [vmem:[#allocation9 + $0x88] sm:$0xff] %v11441_v36  ;;  %v4232_v33 = vmul.f32 %v4228_v10, %v4220_v16  ;;  %v4217_v6 = vadd.f32 %v4211_v3, %v1448_v14  ;;  %v4269_v56 = vrot.slane %v11441_v36, 1  ;;  %v4257_v26 = vrot.slane %v11441_v36, 7  ;;  %v11505_v3 = vld [vmem:[%s12386_s5 + $0x168] sm:$0xff] }
 0xa7c   :  { %v11447_v31 = vadd.f32 %v4232_v33, %v4224_v20  ;;  %v4221_v28 = vmax.f32 %v4217_v6, 0.0  ;;  %v4274_v0 = vsel %vm458_vm0, %v4268_v50, %v4269_v56  ;;  %v11525_v20 = vld [vmem:[%s12386_s5 + $0x158] sm:$0xff]  ;;  %v13549_v33 = vld [vmem:[#allocation33_spill] sm:$0xff] }
 0xa7d   :  { %v4276_v60 = vmul.f32 %v4274_v0, %v12826_v9  ;;  %v13550_v6 = vld [vmem:[#allocation36_spill] sm:$0xff]  ;;  %v13555_v0 = vld [vmem:[#allocation45_spill] sm:$0xff] }
 0xa7e   :  { %4241 = vst [vmem:[#allocation9 + $0x90] sm:$0xff] %v11447_v31  ;;  %v4233_v25 = vmul.f32 %v4229_v12, %v4221_v28  ;;  %v4270_v52 = vrot.slane %v11447_v31, 1  ;;  %v4258_v14 = vrot.slane %v11447_v31, 7  ;;  %v13553_v28 = vld [vmem:[#allocation32_spill] sm:$0xff]  ;;  %v13554_v12 = vld [vmem:[#allocation34_spill] sm:$0xff] }
 0xa7f   :  { %4434 = vmatmul.mubr.f32.vlgmr.msra.gmra.mxu1 %v4276_v60 }
 0xa80   :  { %v11455_v34 = vadd.f32 %v4233_v25, %v4225_v44  ;;  %4439 = vmatprep.mubr.f32.mxu1 %v12824_v43  ;;  %v4273_v59 = vsel %vm458_vm0, %v4269_v56, %v4270_v52  ;;  %6204 = vmatpush3.msra.mxu1 %v10779_v1  ;;  %v4261_v10 = vsel %vm201_vm1, %v4257_v26, %v4258_v14  ;;  %v13552_v56 = vld [vmem:[#allocation29_spill] sm:$0xff] }
 0xa81   :  { %v4277_v8 = vmul.f32 %v4273_v59, %v12827_v18  ;;  %6205 = vmatprep.subr.mxu1 %v10786_v27 }
 0xa82   :  { %4242 = vst [vmem:[#allocation9 + $0x98] sm:$0xff] %v11455_v34  ;;  %v4259_v48 = vrot.slane %v11455_v34, 7  ;;  %v4271_v40 = vrot.slane %v11455_v34, 1  ;;  %6206 = vmatpush3.msra.mxu1 %v10797_v58  ;;  %v4262_v58 = vsel %vm201_vm1, %v4256_v54, %v4257_v26 }
 0xa83   :  { %4440 = vmatmul.mubr.f32.gmra.mxu1 %v4277_v8  ;;  %6207 = vmatprep.subr.mxu1 %v10803_v63  ;;  %v4265_v16 = vmul.f32 %v4262_v58, %v8234_v2  ;;  %v13556_v8 = vld [vmem:[#allocation125_spill] sm:$0xff] }
 0xa84   :  { %4445 = vmatprep.mubr.f32.mxu1 %v12824_v43  ;;  %v4263_v1 = vsel %vm201_vm1, %v4259_v48, %v4256_v54  ;;  %v4272_v27 = vsel %vm458_vm0, %v4270_v52, %v4271_v40  ;;  %6208 = vmatpush3.msra.mxu1 %v10816_v57  ;;  %v4275_v63 = vsel %vm458_vm0, %v4271_v40, %v4268_v50  ;;  %v13551_v50 = vld [vmem:[#allocation26_spill] sm:$0xff]  ;;  %v13558_v58 = vld [vmem:[#allocation93_spill] sm:$0xff] }
 0xa85   :  { %v4264_v55 = vmul.f32 %v4263_v1, %v12825_v42  ;;  %v4278_v62 = vmul.f32 %v4272_v27, %v12829_v46  ;;  %6209 = vmatprep.subr.mxu1 %v10827_v51  ;;  %v4279_v57 = vmul.f32 %v4275_v63, %v12830_v39  ;;  %v11495_v51 = vld [vmem:[%s12386_s5 + $0x170] sm:$0xff]  ;;  %v13557_v54 = vld [vmem:[#allocation90_spill] sm:$0xff]  ;;  %v1222_v63 = vadd.f32 %v13558_v58, %v13556_v8 }
 0xa86   :  { %6210 = vmatpush3.msra.mxu1 %v10838_v41  ;;  %v4266_v41 = vmul.f32 %v4261_v10, %v12828_v35 }
 0xa87   :  { %4345 = vmatmul.mubr.f32.vlgmr.msra.gmra.mxu0 %v4264_v55  ;;  %4446 = vmatmul.mubr.f32.gmra.mxu1 %v4278_v62 }
 0xa88   :  { %4350 = vmatprep.mubr.f32.mxu0 %v11441_v36  ;;  %4451 = vmatprep.mubr.f32.mxu1 %v12824_v43 }
 0xa89   :  { %6586 = vmatpush3.msra.mxu0 %v11413_v37  ;;  %6211 = vmatprep.subr.mxu1 %v10847_v21  ;;  %v4260_v21 = vsel %vm201_vm1, %v4258_v14, %v4259_v48  ;;  %v1216_v48 = vadd.f32 %v13557_v54, %v13556_v8 }
 0xa8a   :  { %6587 = vmatprep.subr.mxu0 %v11495_v51  ;;  %6212 = vmatpush3.msra.mxu1 %v10857_v61  ;;  %v4267_v61 = vmul.f32 %v4260_v21, %v8283_v49 }
 0xa8b   :  { %4351 = vmatmul.mubr.f32.gmra.mxu0 %v4265_v16  ;;  %4452 = vmatmul.mubr.f32.gmra.mxu1 %v4279_v57 }
 0xa8c   :  { %4356 = vmatprep.mubr.f32.mxu0 %v11447_v31  ;;  %6588 = vmatpush3.msra.mxu0 %v11495_v51 }
 0xa8d   :  { %6589 = vmatprep.subr.mxu0 %v11505_v3  ;;  %6213 = vmatprep.subr.mxu1 %v10866_v47  ;;  %v13535_v47 = vld [vmem:[#allocation15_spill] sm:$0xff] }
 0xa8e   :  { %6590 = vmatpush3.msra.mxu0 %v11505_v3  ;;  %6214 = vmatpush3.msra.mxu1 %v10877_v22  ;;  %v13536_v22 = vld [vmem:[#allocation18_spill] sm:$0xff] }
 0xa8f   :  { %4357 = vmatmul.mubr.f32.gmra.mxu0 %v4266_v41  ;;  %6591 = vmatprep.subr.mxu0 %v11516_v17 }
 0xa90   :  { %4362 = vmatprep.mubr.f32.mxu0 %v11455_v34  ;;  %6592 = vmatpush3.msra.mxu0 %v11516_v17 }
 0xa91   :  { %6593 = vmatprep.subr.mxu0 %v11525_v20  ;;  %6215 = vmatprep.subr.mxu1 %v10884_v19  ;;  %v13537_v19 = vld [vmem:[#allocation21_spill] sm:$0xff] }
 0xa92   :  { %6594 = vmatpush3.msra.mxu0 %v11525_v20  ;;  %6216 = vmatpush3.msra.mxu1 %v10897_v29  ;;  %v13539_v29 = vld [vmem:[#allocation13_spill] sm:$0xff] }
 0xa93   :  { %4363 = vmatmul.mubr.f32.gmra.mxu0 %v4267_v61  ;;  %6595 = vmatprep.subr.mxu0 %v10890_v32 }
 0xa94   :  { %6596 = vmatpush3.msra.mxu0 %v10890_v32  ;;  %6217 = vmatprep.subr.mxu1 %v10909_v11  ;;  %v13538_v32 = vld [vmem:[#allocation24_spill] sm:$0xff] }
 0xa95   :  { %6597 = vmatprep.subr.mxu0 %v10903_v24  ;;  %6218 = vmatpush3.msra.mxu1 %v10916_v30  ;;  %v13541_v11 = vld [vmem:[#allocation20_spill] sm:$0xff]  ;;  %v13542_v30 = vld [vmem:[#allocation22_spill] sm:$0xff] }
 0xa96   :  { %6598 = vmatpush3.msra.mxu0 %v10903_v24  ;;  %6219 = vmatprep.subr.mxu1 %v10928_v4  ;;  %v13540_v24 = vld [vmem:[#allocation16_spill] sm:$0xff] }
 0xa97   :  { %6599 = vmatprep.subr.mxu0 %v10922_v23  ;;  %6220 = vmatpush3.msra.mxu1 %v10935_v15  ;;  %v13544_v4 = vld [vmem:[#allocation28_spill] sm:$0xff]  ;;  %v13545_v15 = vld [vmem:[#allocation31_spill] sm:$0xff] }
 0xa98   :  { %6600 = vmatpush3.msra.mxu0 %v10922_v23  ;;  %6221 = vmatprep.subr.mxu1 %v10947_v13  ;;  %v13543_v23 = vld [vmem:[#allocation25_spill] sm:$0xff]  ;;  %v13547_v13 = vld [vmem:[#allocation27_spill] sm:$0xff] }
 0xa99   :  { %6601 = vmatprep.subr.mxu0 %v10941_v38  ;;  %6222 = vmatpush3.msra.mxu1 %v10954_v53  ;;  %v13548_v53 = vld [vmem:[#allocation30_spill] sm:$0xff] }
 0xa9a   :  { %6602 = vmatpush3.msra.mxu0 %v10941_v38  ;;  %6223 = vmatprep.subr.mxu1 %v13536_v22  ;;  %v13546_v38 = vld [vmem:[#allocation35_spill] sm:$0xff] }
 0xa9b   :  { %6603 = vmatprep.subr.mxu0 %v13535_v47  ;;  %6224 = vmatpush3.msra.mxu1 %v13537_v19 }
 0xa9c   :  { %6604 = vmatpush3.msra.mxu0 %v13535_v47  ;;  %6225 = vmatprep.subr.mxu1 %v13539_v29  ;;  %v13559_v47 = vld [vmem:[#allocation96_spill] sm:$0xff] }
 0xa9d   :  { %6605 = vmatprep.subr.mxu0 %v13538_v32  ;;  %6226 = vmatpush3.msra.mxu1 %v13540_v24  ;;  %v1228_v22 = vadd.f32 %v13559_v47, %v13556_v8 }
 0xa9e   :  { %6606 = vmatpush3.msra.mxu0 %v13538_v32  ;;  %6227 = vmatprep.subr.mxu1 %v13542_v30 }
 0xa9f   :  { %6607 = vmatprep.subr.mxu0 %v13541_v11  ;;  %6228 = vmatpush3.msra.mxu1 %v13543_v23 }
 0xaa0   :  { %6608 = vmatpush3.msra.mxu0 %v13541_v11  ;;  %6229 = vmatprep.subr.mxu1 %v13545_v15 }
 0xaa1   :  { %6609 = vmatprep.subr.mxu0 %v13544_v4  ;;  %6230 = vmatpush3.msra.mxu1 %v13546_v38 }
 0xaa2   :  { %6610 = vmatpush3.msra.mxu0 %v13544_v4  ;;  %6231 = vmatprep.subr.mxu1 %v13548_v53  ;;  %v13560_v4 = vld [vmem:[#allocation100_spill] sm:$0xff] }
 0xaa3   :  { %6611 = vmatprep.subr.mxu0 %v13547_v13  ;;  %6232 = vmatpush3.msra.mxu1 %v13549_v33  ;;  %v1234_v15 = vadd.f32 %v13560_v4, %v13556_v8  ;;  %v13561_v4 = vld [vmem:[#allocation47_spill] sm:$0xff] }
 0xaa4   :  { %6612 = vmatpush3.msra.mxu0 %v13547_v13  ;;  %6233 = vmatprep.subr.mxu1 %v13551_v50 }
 0xaa5   :  { %6613 = vmatprep.subr.mxu0 %v13550_v6  ;;  %6234 = vmatpush3.msra.mxu1 %v13552_v56 }
 0xaa6   :  { %6614 = vmatpush3.msra.mxu0 %v13550_v6  ;;  %4778 = vmatprep.subr.mxu1 %v13554_v12 }
 0xaa7   :  { %6615 = vmatprep.subr.mxu0 %v13553_v28 }
 0xaa8   :  { %6616 = vmatpush3.msra.mxu0 %v13553_v28 }
 0xaa9   :  { %4867 = vmatprep.subr.mxu0 %v13555_v0 }
 0xb3f   :  { %v4435_v60 = vpop.f32.mrf.mxu1 }
 0xb41   :  { %v4437_v44 = vpop.f32.mrf.mxu1 }
 0xb43   :  { %v4441_v25 = vpop.f32.mrf.mxu1 }
 0xb45   :  { %v4443_v52 = vpop.f32.mrf.mxu1 }
 0xb47   :  { %v4346_v59 = vpop.f32.mrf.mxu0  ;;  %v4447_v55 = vpop.f32.mrf.mxu1 }
 0xb48   :  { %v4436_v40 = vadd.f32 %v4435_v60, %v4346_v59 }
 0xb49   :  { %v4348_v26 = vpop.f32.mrf.mxu0  ;;  %v4449_v21 = vpop.f32.mrf.mxu1 }
 0xb4a   :  { %v4458_v1 = vadd.f32 %v4436_v40, %v1216_v48  ;;  %v11576_v27 = vadd.f32 %v4437_v44, %v4348_v26 }
 0xb4b   :  { %v4352_v62 = vpop.f32.mrf.mxu0  ;;  %v4453_v30 = vpop.f32.mrf.mxu1 }
 0xb4c   :  { %v5859_v14 = vmul.f32 -1.442695, %v4458_v1  ;;  %v4442_v16 = vadd.f32 %v4441_v25, %v4352_v62 }
 0xb4d   :  { %v4354_v57 = vpop.f32.mrf.mxu0 }
 0xb4e   :  { %6981 = vpow2.f32 %v5859_v14  ;;  %v4460_v10 = vadd.f32 %v4442_v16, %v1222_v63  ;;  %v11580_v41 = vadd.f32 %v4443_v52, %v4354_v57 }
 0xb4f   :  { %v4358_v61 = vpop.f32.mrf.mxu0 }
 0xb50   :  { %v5860_v19 = vmul.f32 -1.442695, %v4460_v10  ;;  %v4448_v32 = vadd.f32 %v4447_v55, %v4358_v61 }
 0xb51   :  { %v4360_v29 = vpop.f32.mrf.mxu0 }
 0xb52   :  { %6983 = vpow2.f32 %v5860_v19  ;;  %v4462_v24 = vadd.f32 %v4448_v32, %v1228_v22  ;;  %v11584_v11 = vadd.f32 %v4449_v21, %v4360_v29 }
 0xb53   :  { %v4364_v23 = vpop.f32.mrf.mxu0 }
 0xb54   :  { %v5861_v38 = vmul.f32 -1.442695, %v4462_v24  ;;  %v4454_v13 = vadd.f32 %v4453_v30, %v4364_v23 }
 0xb56   :  { %6985 = vpow2.f32 %v5861_v38  ;;  %v4464_v53 = vadd.f32 %v4454_v13, %v1234_v15 }
 0xb58   :  { %v5862_v33 = vmul.f32 -1.442695, %v4464_v53  ;;  %v13562_v53 = vld [vmem:[#allocation40_spill] sm:$0xff] }
 0xb5a   :  { %6987 = vpow2.f32 %v5862_v33  ;;  %v13563_v33 = vld [vmem:[#allocation50_spill] sm:$0xff] }
 0xb5b   :  { %v6982_v6 = vpop.eup %6981 }
 0xb5c   :  { %v4478_v50 = vadd.f32 1.0, %v6982_v6 }
 0xb5e   :  { %6989 = vrcp.f32 %v4478_v50  ;;  %v13564_v50 = vld [vmem:[#allocation52_spill] sm:$0xff] }
 0xb5f   :  { %v6984_v56 = vpop.eup %6983 }
 0xb60   :  { %v4479_v28 = vadd.f32 1.0, %v6984_v56  ;;  %v13565_v56 = vld [vmem:[#allocation43_spill] sm:$0xff] }
 0xb62   :  { %6991 = vrcp.f32 %v4479_v28  ;;  %v13566_v28 = vld [vmem:[#allocation54_spill] sm:$0xff] }
 0xb63   :  { %v6986_v12 = vpop.eup %6985 }
 0xb64   :  { %v4480_v0 = vadd.f32 1.0, %v6986_v12  ;;  %v13567_v12 = vld [vmem:[#allocation56_spill] sm:$0xff] }
 0xb66   :  { %6993 = vrcp.f32 %v4480_v0  ;;  %v13568_v0 = vld [vmem:[#allocation46_spill] sm:$0xff] }
 0xb67   :  { %v6988_v60 = vpop.eup %6987 }
 0xb68   :  { %v4481_v44 = vadd.f32 1.0, %v6988_v60  ;;  %v13569_v60 = vld [vmem:[#allocation58_spill] sm:$0xff] }
 0xb6a   :  { %6995 = vrcp.f32 %v4481_v44 }
 0xb6b   :  { %v6990_v25 = vpop.eup %6989 }
 0xb6c   :  { %v4514_v52 = vmul.f32 %v6990_v25, %v11434_v7  ;;  %v13570_v25 = vld [vmem:[#allocation60_spill] sm:$0xff] }
 0xb6e   :  { %4606 = vmatprep.mubr.f32.mxu1 %v4514_v52  ;;  %v4518_v48 = vrot.slane %v4514_v52, 7  ;;  %v4530_v40 = vrot.slane %v4514_v52, 1  ;;  %v13571_v52 = vld [vmem:[#allocation51_spill] sm:$0xff] }
 0xb6f   :  { %v6992_v59 = vpop.eup %6991 }
 0xb70   :  { %v4515_v54 = vmul.f32 %v6992_v59, %v11441_v36  ;;  %v13572_v59 = vld [vmem:[#allocation62_spill] sm:$0xff] }
 0xb72   :  { %v4531_v26 = vrot.slane %v4515_v54, 1  ;;  %v4519_v1 = vrot.slane %v4515_v54, 7 }
 0xb73   :  { %v6994_v55 = vpop.eup %6993 }
 0xb74   :  { %v4516_v62 = vmul.f32 %v6994_v55, %v11447_v31  ;;  %v4536_v58 = vsel %vm458_vm0, %v4530_v40, %v4531_v26  ;;  %v4524_v63 = vsel %vm201_vm1, %v4518_v48, %v4519_v1  ;;  %v13577_v55 = vld [vmem:[#allocation59_spill] sm:$0xff] }
 0xb75   :  { %v4538_v14 = vmul.f32 %v4536_v58, %v12826_v9  ;;  %v4527_v6 = vmul.f32 %v4524_v63, %v8234_v2  ;;  %v13579_v58 = vld [vmem:[#allocation71_spill] sm:$0xff] }
 0xb76   :  { %v4532_v16 = vrot.slane %v4516_v62, 1  ;;  %v4520_v57 = vrot.slane %v4516_v62, 7  ;;  %v13580_v63 = vld [vmem:[#allocation63_spill] sm:$0xff] }
 0xb77   :  { %v6996_v10 = vpop.eup %6995  ;;  %6617 = vmatprep.mubr.f32.mxu0 %v4538_v14  ;;  %v13581_v14 = vld [vmem:[#allocation37_spill] sm:$0xff] }
 0xb78   :  { %v4517_v21 = vmul.f32 %v6996_v10, %v11455_v34  ;;  %v4535_v61 = vsel %vm458_vm0, %v4531_v26, %v4532_v16  ;;  %v4523_v47 = vsel %vm201_vm1, %v4519_v1, %v4520_v57  ;;  %v13576_v1 = vld [vmem:[#allocation67_spill] sm:$0xff]  ;;  %v13584_v10 = vld [vmem:[#allocation61_spill] sm:$0xff] }
 0xb79   :  { %v4539_v22 = vmul.f32 %v4535_v61, %v12827_v18  ;;  %v4528_v44 = vmul.f32 %v4523_v47, %v12828_v35  ;;  %v13586_v61 = vld [vmem:[#allocation75_spill] sm:$0xff]  ;;  %v13587_v47 = vld [vmem:[#allocation66_spill] sm:$0xff] }
 0xb7a   :  { %v4521_v19 = vrot.slane %v4517_v21, 7  ;;  %v4533_v32 = vrot.slane %v4517_v21, 1 }
 0xb7b   :  { %6618 = vmatmul.mubr.f32.vlgmr.msra.gmra.mxu0 %v4539_v22  ;;  %v13588_v22 = vld [vmem:[#allocation76_spill] sm:$0xff] }
 0xb7c   :  { %v4525_v29 = vsel %vm201_vm1, %v4521_v19, %v4518_v48  ;;  %v4534_v24 = vsel %vm458_vm0, %v4532_v16, %v4533_v32  ;;  %v4537_v30 = vsel %vm458_vm0, %v4533_v32, %v4530_v40  ;;  %v4522_v23 = vsel %vm201_vm1, %v4520_v57, %v4521_v19  ;;  %4868 = vmatpush1.msra.mxu0 %v13561_v4  ;;  %v13574_v48 = vld [vmem:[#allocation55_spill] sm:$0xff]  ;;  %v13575_v40 = vld [vmem:[#allocation65_spill] sm:$0xff]  ;;  %v13583_v57 = vld [vmem:[#allocation48_spill] sm:$0xff] }
 0xb7d   :  { %v4526_v15 = vmul.f32 %v4525_v29, %v12825_v42  ;;  %v4540_v38 = vmul.f32 %v4534_v24, %v12829_v46  ;;  %v4541_v13 = vmul.f32 %v4537_v30, %v12830_v39  ;;  %4869 = vmatprep.subr.mxu0 %v13562_v53  ;;  %v4529_v26 = vmul.f32 %v4522_v23, %v8283_v49  ;;  %v13582_v16 = vld [vmem:[#allocation41_spill] sm:$0xff]  ;;  %v13591_v29 = vld [vmem:[#allocation82_spill] sm:$0xff]  ;;  %v13595_v4 = vld [vmem:[#allocation19_spill] sm:$0xff] }
 0xb7e   :  { %4870 = vmatpush1.msra.mxu0 %v13563_v33  ;;  %v13589_v19 = vld [vmem:[#allocation77_spill] sm:$0xff]  ;;  %v13592_v24 = vld [vmem:[#allocation78_spill] sm:$0xff] }
 0xb7f   :  { %4607 = vmatmul.mubr.f32.vlgmr.msra.gmra.mxu1 %v4526_v15  ;;  %6620 = vmatprep.mubr.f32.mxu0 %v4540_v38  ;;  %v13590_v32 = vld [vmem:[#allocation69_spill] sm:$0xff]  ;;  %v13593_v30 = vld [vmem:[#allocation14_spill] sm:$0xff]  ;;  %v13596_v15 = vld [vmem:[#allocation23_spill] sm:$0xff] }
 0xb80   :  { %4611 = vmatprep.mubr.f32.mxu1 %v4515_v54  ;;  %6621 = vmatmul.mubr.f32.gmra.mxu0 %v4541_v13  ;;  %v13573_v54 = vld [vmem:[#allocation64_spill] sm:$0xff]  ;;  %v13594_v23 = vld [vmem:[#allocation17_spill] sm:$0xff]  ;;  %v13597_v38 = vld [vmem:[#allocation127_spill] sm:$0xff] }
 0xb81   :  { %4779 = vmatpush1.msra.mxu1 %v13564_v50  ;;  %4871 = vmatprep.subr.mxu0 %v13565_v56  ;;  %v13598_v13 = vld [vmem:[#allocation128_spill] sm:$0xff]  ;;  %v13599_v53 = vld [vmem:[#allocation129_spill] sm:$0xff]  ;;  %v13600_v33 = vld [vmem:[#allocation130_spill] sm:$0xff] }
 0xb82   :  { %4780 = vmatprep.subr.mxu1 %v13566_v28  ;;  %4872 = vmatpush1.msra.mxu0 %v13567_v12  ;;  %v13602_v50 = vld [vmem:[#allocation132_spill] sm:$0xff]  ;;  %v13603_v56 = vld [vmem:[#allocation133_spill] sm:$0xff]  ;;  %v13604_v28 = vld [vmem:[#allocation134_spill] sm:$0xff] }
 0xb83   :  { %4612 = vmatmul.mubr.f32.gmra.mxu1 %v4527_v6  ;;  %4873 = vmatprep.subr.mxu0 %v13568_v0  ;;  %v13601_v6 = vld [vmem:[#allocation131_spill] sm:$0xff]  ;;  %v13606_v0 = vld [vmem:[#allocation136_spill] sm:$0xff] }
 0xb84   :  { %4616 = vmatprep.mubr.f32.mxu1 %v4516_v62  ;;  %4781 = vmatpush1.msra.mxu1 %v13569_v60  ;;  %v13578_v62 = vld [vmem:[#allocation68_spill] sm:$0xff]  ;;  %v13605_v12 = vld [vmem:[#allocation135_spill] sm:$0xff]  ;;  %v13607_v60 = vld [vmem:[#allocation137_spill] sm:$0xff] }
 0xb85   :  { %4782 = vmatprep.subr.mxu1 %v13570_v25  ;;  %4874 = vmatpush1.msra.mxu0 %v13571_v52  ;;  %v13609_v25 = vld [vmem:[#allocation139_spill] sm:$0xff]  ;;  %v13610_v52 = vld [vmem:[#allocation140_spill] sm:$0xff] }
 0xb86   :  { %4783 = vmatpush1.msra.mxu1 %v13572_v59  ;;  %4875 = vmatprep.subr.mxu0 %v13573_v54  ;;  %v13611_v59 = vld [vmem:[#allocation141_spill] sm:$0xff]  ;;  %v13612_v54 = vld [vmem:[#allocation142_spill] sm:$0xff] }
 0xb87   :  { %4617 = vmatmul.mubr.f32.gmra.mxu1 %v4528_v44  ;;  %4784 = vmatprep.subr.mxu1 %v13574_v48  ;;  %v13608_v44 = vld [vmem:[#allocation138_spill] sm:$0xff]  ;;  %v13613_v48 = vld [vmem:[#allocation143_spill] sm:$0xff] }
 0xb88   :  { %4621 = vmatprep.mubr.f32.mxu1 %v4517_v21  ;;  %4785 = vmatpush1.msra.mxu1 %v13575_v40  ;;  %v13585_v21 = vld [vmem:[#allocation72_spill] sm:$0xff] }
 0xb89   :  { %4786 = vmatprep.subr.mxu1 %v13576_v1  ;;  %4876 = vmatpush1.msra.mxu0 %v13577_v55  ;;  %v13614_v40 = vld [vmem:[#allocation144_spill] sm:$0xff]  ;;  %v13616_v1 = vld [vmem:[#allocation146_spill] sm:$0xff]  ;;  %v13617_v55 = vld [vmem:[#allocation147_spill] sm:$0xff] }
 0xb8a   :  { %4787 = vmatpush1.msra.mxu1 %v13578_v62  ;;  %4877 = vmatprep.subr.mxu0 %v13579_v58  ;;  %v13618_v62 = vld [vmem:[#allocation148_spill] sm:$0xff]  ;;  %v13619_v58 = vld [vmem:[#allocation149_spill] sm:$0xff] }
 0xb8b   :  { %4622 = vmatmul.mubr.f32.gmra.mxu1 %v4529_v26  ;;  %4788 = vmatprep.subr.mxu1 %v13580_v63  ;;  %v13615_v26 = vld [vmem:[#allocation145_spill] sm:$0xff]  ;;  %v13620_v63 = vld [vmem:[#allocation150_spill] sm:$0xff] }
 0xb8c   :  { %4789 = vmatpush1.msra.mxu1 %v13581_v14  ;;  %4878 = vmatpush1.msra.mxu0 %v13582_v16  ;;  %v13621_v14 = vld [vmem:[#allocation151_spill] sm:$0xff]  ;;  %v13622_v16 = vld [vmem:[#allocation152_spill] sm:$0xff] }
 0xb8d   :  { %4790 = vmatprep.subr.mxu1 %v13583_v57  ;;  %4879 = vmatprep.subr.mxu0 %v13584_v10  ;;  %v13623_v57 = vld [vmem:[#allocation153_spill] sm:$0xff]  ;;  %v13624_v10 = vld [vmem:[#allocation154_spill] sm:$0xff] }
 0xb8e   :  { %4791 = vmatpush1.msra.mxu1 %v13585_v21  ;;  %4880 = vmatpush1.msra.mxu0 %v13586_v61  ;;  %v11684_v21 = vld [vmem:[%s12386_s5 + $0xf8] sm:$0xff]  ;;  %v13625_v61 = vld [vmem:[#allocation155_spill] sm:$0xff] }
 0xb8f   :  { %4792 = vmatprep.subr.mxu1 %v13587_v47  ;;  %4881 = vmatprep.subr.mxu0 %v13588_v22  ;;  %v13626_v47 = vld [vmem:[#allocation156_spill] sm:$0xff]  ;;  %v13627_v22 = vld [vmem:[#allocation157_spill] sm:$0xff] }
 0xb90   :  { %4793 = vmatpush1.msra.mxu1 %v13589_v19  ;;  %4882 = vmatpush1.msra.mxu0 %v13590_v32  ;;  %v13628_v19 = vld [vmem:[#allocation158_spill] sm:$0xff]  ;;  %v13629_v32 = vld [vmem:[#allocation159_spill] sm:$0xff] }
 0xb91   :  { %4794 = vmatprep.subr.mxu1 %v13591_v29  ;;  %4883 = vmatprep.subr.mxu0 %v13592_v24  ;;  %v13630_v29 = vld [vmem:[#allocation160_spill] sm:$0xff]  ;;  %v13631_v24 = vld [vmem:[#allocation161_spill] sm:$0xff] }
 0xb92   :  { %4795 = vmatpush1.msra.mxu1 %v13593_v30  ;;  %4884 = vmatpush1.msra.mxu0 %v13594_v23  ;;  %v13632_v30 = vld [vmem:[#allocation162_spill] sm:$0xff]  ;;  %v13633_v23 = vld [vmem:[#allocation163_spill] sm:$0xff] }
 0xb93   :  { %4796 = vmatprep.subr.mxu1 %v13595_v4  ;;  %4885 = vmatprep.subr.mxu0 %v13596_v15  ;;  %v13634_v4 = vld [vmem:[#allocation164_spill] sm:$0xff]  ;;  %v13635_v15 = vld [vmem:[#allocation165_spill] sm:$0xff] }
 0xb94   :  { %4797 = vmatpush1.msra.mxu1 %v13597_v38  ;;  %4886 = vmatpush1.msra.mxu0 %v13598_v13  ;;  %v13636_v38 = vld [vmem:[#allocation166_spill] sm:$0xff]  ;;  %v13637_v13 = vld [vmem:[#allocation167_spill] sm:$0xff] }
 0xb95   :  { %4798 = vmatprep.subr.mxu1 %v13599_v53  ;;  %4887 = vmatprep.subr.mxu0 %v13600_v33  ;;  %v13638_v53 = vld [vmem:[#allocation168_spill] sm:$0xff]  ;;  %v13639_v33 = vld [vmem:[#allocation169_spill] sm:$0xff] }
 0xb96   :  { %4799 = vmatpush1.msra.mxu1 %v13601_v6  ;;  %4888 = vmatpush1.msra.mxu0 %v13602_v50  ;;  %v13640_v6 = vld [vmem:[#allocation170_spill] sm:$0xff]  ;;  %v13641_v50 = vld [vmem:[#allocation171_spill] sm:$0xff] }
 0xb97   :  { %4800 = vmatprep.subr.mxu1 %v13603_v56  ;;  %4889 = vmatprep.subr.mxu0 %v13604_v28  ;;  %v13642_v56 = vld [vmem:[#allocation172_spill] sm:$0xff]  ;;  %v13643_v28 = vld [vmem:[#allocation173_spill] sm:$0xff] }
 0xb98   :  { %4801 = vmatpush1.msra.mxu1 %v13605_v12  ;;  %4890 = vmatpush1.msra.mxu0 %v13606_v0  ;;  %v13644_v12 = vld [vmem:[#allocation174_spill] sm:$0xff]  ;;  %v13645_v0 = vld [vmem:[#allocation175_spill] sm:$0xff] }
 0xb99   :  { %4802 = vmatprep.subr.mxu1 %v13607_v60  ;;  %4891 = vmatprep.subr.mxu0 %v13608_v44  ;;  %v13646_v60 = vld [vmem:[#allocation176_spill] sm:$0xff]  ;;  %v13647_v44 = vld [vmem:[#allocation177_spill] sm:$0xff] }
 0xb9a   :  { %4803 = vmatpush1.msra.mxu1 %v13609_v25  ;;  %4892 = vmatpush1.msra.mxu0 %v13610_v52  ;;  %v13648_v25 = vld [vmem:[#allocation178_spill] sm:$0xff]  ;;  %v13649_v52 = vld [vmem:[#allocation179_spill] sm:$0xff] }
 0xb9b   :  { %4804 = vmatprep.subr.mxu1 %v13611_v59  ;;  %4893 = vmatprep.subr.mxu0 %v13612_v54  ;;  %v13650_v59 = vld [vmem:[#allocation180_spill] sm:$0xff]  ;;  %v13651_v54 = vld [vmem:[#allocation181_spill] sm:$0xff] }
 0xb9c   :  { %4805 = vmatpush1.msra.mxu1 %v13613_v48  ;;  %4894 = vmatpush1.msra.mxu0 %v13614_v40  ;;  %v13652_v48 = vld [vmem:[#allocation182_spill] sm:$0xff]  ;;  %v13653_v40 = vld [vmem:[#allocation183_spill] sm:$0xff] }
 0xb9d   :  { %4806 = vmatprep.subr.mxu1 %v13615_v26  ;;  %4895 = vmatprep.subr.mxu0 %v13616_v1  ;;  %v13654_v26 = vld [vmem:[#allocation184_spill] sm:$0xff]  ;;  %v13655_v1 = vld [vmem:[#allocation209_spill] sm:$0xff] }
 0xb9e   :  { %4807 = vmatpush1.msra.mxu1 %v13617_v55  ;;  %4896 = vmatpush1.msra.mxu0 %v13618_v62  ;;  %v13656_v55 = vld [vmem:[#allocation92_spill] sm:$0xff] }
 0xb9f   :  { %4808 = vmatprep.subr.mxu1 %v13619_v58  ;;  %4897 = vmatprep.subr.mxu0 %v13620_v63  ;;  %v1218_v62 = vadd.f32 %v13656_v55, %v13655_v1  ;;  %v13657_v63 = vld [vmem:[#allocation95_spill] sm:$0xff] }
 0xba0   :  { %4809 = vmatpush1.msra.mxu1 %v13621_v14  ;;  %4898 = vmatpush1.msra.mxu0 %v13622_v16  ;;  %v1224_v14 = vadd.f32 %v13657_v63, %v13655_v1 }
 0xba1   :  { %4810 = vmatprep.subr.mxu1 %v13623_v57  ;;  %4931 = vmatprep.mubr.f32.mxu0 %v12824_v43  ;;  %v4459_v58 = vadd.f32 %v11576_v27, %v1218_v62  ;;  %v13661_v62 = vld [vmem:[#allocation94_spill] sm:$0xff] }
 0xba2   :  { %4811 = vmatpush2.msra.mxu1 %v13624_v10  ;;  %6267 = vmatprep.subr.mxu0 %v11684_v21  ;;  %v4461_v57 = vadd.f32 %v11580_v41, %v1224_v14  ;;  %v4366_v10 = vpop.f32.mrf.mxu0 }
 0xba3   :  { %4812 = vmatprep.subr.mxu1 %v13625_v61  ;;  %v5863_v16 = vmul.f32 -1.442695, %v4459_v58  ;;  %v13658_v61 = vld [vmem:[#allocation98_spill] sm:$0xff]  ;;  %v1458_v58 = vadd.f32 %v13661_v62, %v9440_v45 }
 0xba4   :  { %4813 = vmatpush2.msra.mxu1 %v13626_v47  ;;  %v1230_v47 = vadd.f32 %v13658_v61, %v13655_v1 }
 0xba5   :  { %4814 = vmatprep.subr.mxu1 %v13627_v22  ;;  %v4455_v22 = vpop.f32.mrf.mxu1  ;;  %6997 = vpow2.f32 %v5863_v16 }
 0xba6   :  { %4815 = vmatpush2.msra.mxu1 %v13628_v19  ;;  %v5864_v19 = vmul.f32 -1.442695, %v4461_v57 }
 0xba7   :  { %4816 = vmatprep.subr.mxu1 %v13629_v32  ;;  %v4463_v32 = vadd.f32 %v11584_v11, %v1230_v47 }
 0xba8   :  { %4817 = vmatpush2.msra.mxu1 %v13630_v29  ;;  %v4456_v29 = vadd.f32 %v4455_v22, %v4366_v10  ;;  %6999 = vpow2.f32 %v5864_v19 }
 0xba9   :  { %4818 = vmatprep.subr.mxu1 %v13631_v24  ;;  %v13659_v24 = vld [vmem:[#allocation101_spill] sm:$0xff]  ;;  %v5865_v27 = vmul.f32 -1.442695, %v4463_v32 }
 0xbaa   :  { %4819 = vmatpush2.msra.mxu1 %v13632_v30  ;;  %v1236_v30 = vadd.f32 %v13659_v24, %v13655_v1  ;;  %v13662_v32 = vld [vmem:[#allocation97_spill] sm:$0xff] }
 0xbab   :  { %4820 = vmatprep.subr.mxu1 %v13633_v23  ;;  %7001 = vpow2.f32 %v5865_v27 }
 0xbac   :  { %4821 = vmatpush2.msra.mxu1 %v13634_v4  ;;  %v4465_v23 = vadd.f32 %v4456_v29, %v1236_v30  ;;  %v1463_v29 = vadd.f32 %v13662_v32, %v9440_v45 }
 0xbad   :  { %4822 = vmatprep.subr.mxu1 %v13635_v15 }
 0xbae   :  { %4823 = vmatpush2.msra.mxu1 %v13636_v38  ;;  %v5866_v4 = vmul.f32 -1.442695, %v4465_v23 }
 0xbaf   :  { %4824 = vmatprep.subr.mxu1 %v13637_v13 }
 0xbb0   :  { %4825 = vmatpush2.msra.mxu1 %v13638_v53  ;;  %7003 = vpow2.f32 %v5866_v4 }
 0xbb1   :  { %4826 = vmatprep.subr.mxu1 %v13639_v33 }
 0xbb2   :  { %4827 = vmatpush2.msra.mxu1 %v13640_v6  ;;  %v6998_v41 = vpop.eup %6997 }
 0xbb3   :  { %4828 = vmatprep.subr.mxu1 %v13641_v50  ;;  %v4502_v15 = vadd.f32 1.0, %v6998_v41 }
 0xbb4   :  { %4829 = vmatpush2.msra.mxu1 %v13642_v56 }
 0xbb5   :  { %4830 = vmatprep.subr.mxu1 %v13643_v28  ;;  %v7000_v38 = vpop.eup %6999  ;;  %7005 = vrcp.f32 %v4502_v15 }
 0xbb6   :  { %4831 = vmatpush2.msra.mxu1 %v13644_v12  ;;  %v4503_v13 = vadd.f32 1.0, %v7000_v38 }
 0xbb7   :  { %4832 = vmatprep.subr.mxu1 %v13645_v0 }
 0xbb8   :  { %4833 = vmatpush2.msra.mxu1 %v13646_v60  ;;  %v7002_v53 = vpop.eup %7001  ;;  %7007 = vrcp.f32 %v4503_v13 }
 0xbb9   :  { %4834 = vmatprep.subr.mxu1 %v13647_v44  ;;  %v4504_v33 = vadd.f32 1.0, %v7002_v53  ;;  %v13660_v44 = vld [vmem:[#allocation91_spill] sm:$0xff] }
 0xbba   :  { %4835 = vmatpush2.msra.mxu1 %v13648_v25  ;;  %v1453_v25 = vadd.f32 %v13660_v44, %v9440_v45 }
 0xbbb   :  { %4836 = vmatprep.subr.mxu1 %v13649_v52  ;;  %7009 = vrcp.f32 %v4504_v33 }
 0xbbc   :  { %4837 = vmatpush2.msra.mxu1 %v13650_v59 }
 0xbbd   :  { %4838 = vmatprep.subr.mxu1 %v13651_v54  ;;  %v7004_v6 = vpop.eup %7003 }
 0xbbe   :  { %4839 = vmatpush2.msra.mxu1 %v13652_v48  ;;  %v4505_v56 = vadd.f32 1.0, %v7004_v6  ;;  %v13663_v6 = vld [vmem:[#allocation99_spill] sm:$0xff] }
 0xbbf   :  { %4840 = vmatprep.subr.mxu1 %v13653_v40 }
 0xbc0   :  { %4841 = vmatpush2.msra.mxu1 %v13654_v26  ;;  %7011 = vrcp.f32 %v4505_v56 }
 0xbc1   :  { %6623 = vmatprep.subr.mxu1 %v11413_v37 }
 0xbc2   :  { %v7006_v59 = vpop.eup %7005 }
 0xbc3   :  { %v4724_v14 = vsub.f32 1.0, %v7006_v59  ;;  %v4720_v61 = vmul.f32 %v7006_v59, %v11434_v7 }
 0xbc5   :  { %v7008_v57 = vpop.eup %7007 }
 0xbc6   :  { %v4725_v4 = vsub.f32 1.0, %v7008_v57  ;;  %v4721_v13 = vmul.f32 %v7008_v57, %v11441_v36 }
 0xbc8   :  { %v7010_v15 = vpop.eup %7009 }
 0xc3b   :  { %v6619_v11 = vpop.f32.mrf.mxu0 }
 0xc3d   :  { %v4693_v0 = vpop.f32.mrf.mxu0 }
 0xc3f   :  { %v6235_v50 = vpop.f32.mrf.mxu1 }
 0xc40   :  { %v6622_v26 = vpop.f32.mrf.mxu0 }
 0xc41   :  { %v6236_v28 = vpop.f32.mrf.mxu1 }
 0xc42   :  { %v6237_v12 = vadd.f32 %v6236_v28, %v6235_v50  ;;  %v4703_v24 = vpop.f32.mrf.mxu0  ;;  %v4726_v28 = vsub.f32 1.0, %v7010_v15 }
 0xc43   :  { %v6238_v60 = vpop.f32.mrf.mxu1 }
 0xc44   :  { %v4694_v52 = vadd.f32 %v6237_v12, %v4693_v0  ;;  %v7012_v0 = vpop.eup %7011 }
 0xc45   :  { %v6239_v54 = vpop.f32.mrf.mxu1 }
 0xc46   :  { %v4712_v48 = vadd.f32 %v4694_v52, %v1453_v25  ;;  %v6240_v40 = vadd.f32 %v6239_v54, %v6238_v60  ;;  %v4722_v60 = vmul.f32 %v7010_v15, %v11447_v31  ;;  %v4723_v31 = vmul.f32 %v7012_v0, %v11455_v34 }
 0xc47   :  { %v6241_v55 = vpop.f32.mrf.mxu1 }
 0xc48   :  { %v4716_v63 = vmax.f32 %v4712_v48, 0.0  ;;  %v4699_v16 = vadd.f32 %v6619_v11, %v6240_v40  ;;  %v1468_v11 = vadd.f32 %v13663_v6, %v9440_v45  ;;  %v4727_v48 = vsub.f32 1.0, %v7012_v0  ;;  %v11833_v6 = vld [vmem:[%s12386_s5 + $0xd8] sm:$0xff]  ;;  %v11889_v0 = vld [vmem:[%s12386_s5 + $0x148] sm:$0xff] }
 0xc49   :  { %v6242_v10 = vpop.f32.mrf.mxu1 }
 0xc4a   :  { %v4728_v47 = vmul.f32 %v4724_v14, %v4716_v63  ;;  %v4713_v22 = vadd.f32 %v4699_v16, %v1458_v58  ;;  %v6243_v19 = vadd.f32 %v6242_v10, %v6241_v55  ;;  %v11765_v14 = vld [vmem:[%s12386_s5 + $0x78] sm:$0xff]  ;;  %v11772_v16 = vld [vmem:[%s12386_s5 + $0xf0] sm:$0xff] }
 0xc4b   :  { %v6244_v30 = vpop.f32.mrf.mxu1 }
 0xc4c   :  { %v11736_v27 = vadd.f32 %v4728_v47, %v4720_v61  ;;  %v4717_v23 = vmax.f32 %v4713_v22, 0.0  ;;  %v4704_v41 = vadd.f32 %v6243_v19, %v4703_v24  ;;  %v11783_v22 = vld [vmem:[%s12386_s5 + $0x70] sm:$0xff]  ;;  %v11789_v19 = vld [vmem:[%s12386_s5 + $0xe8] sm:$0xff] }
 0xc4d   :  { %v6245_v38 = vpop.f32.mrf.mxu1 }
 0xc4e   :  { %4737 = vst [vmem:[#allocation9 + $0xa0] sm:$0xff] %v11736_v27  ;;  %v4729_v7 = vmul.f32 %v4725_v4, %v4717_v23  ;;  %v4714_v53 = vadd.f32 %v4704_v41, %v1463_v29  ;;  %v6246_v33 = vadd.f32 %v6245_v38, %v6244_v30  ;;  %4842 = vmatprep.mubr.f32.mxu1 %v11736_v27  ;;  %v4766_v25 = vrot.slane %v11736_v27, 1  ;;  %v11802_v23 = vld [vmem:[%s12386_s5 + $0x68] sm:$0xff]  ;;  %v11813_v38 = vld [vmem:[%s12386_s5 + $0xe0] sm:$0xff] }
 0xc4f   :  { %v4754_v57 = vrot.slane %v11736_v27, 7 }
 0xc50   :  { %v11743_v50 = vadd.f32 %v4729_v7, %v4721_v13  ;;  %v4718_v56 = vmax.f32 %v4714_v53, 0.0  ;;  %v4709_v12 = vadd.f32 %v6622_v26, %v6246_v33  ;;  %v11824_v53 = vld [vmem:[%s12386_s5 + $0x60] sm:$0xff] }
 0xc52   :  { %4738 = vst [vmem:[#allocation9 + $0xa8] sm:$0xff] %v11743_v50  ;;  %v4730_v44 = vmul.f32 %v4726_v28, %v4718_v56  ;;  %v4715_v36 = vadd.f32 %v4709_v12, %v1468_v11  ;;  %v4767_v52 = vrot.slane %v11743_v50, 1  ;;  %v4755_v47 = vrot.slane %v11743_v50, 7  ;;  %v11843_v11 = vld [vmem:[%s12386_s5 + $0x58] sm:$0xff]  ;;  %v11870_v12 = vld [vmem:[%s12386_s5 + $0xc8] sm:$0xff] }
 0xc54   :  { %v11749_v59 = vadd.f32 %v4730_v44, %v4722_v60  ;;  %v4719_v54 = vmax.f32 %v4715_v36, 0.0  ;;  %v4772_v40 = vsel %vm458_vm0, %v4766_v25, %v4767_v52  ;;  %v4760_v4 = vsel %vm201_vm1, %v4754_v57, %v4755_v47  ;;  %v11895_v60 = vld [vmem:[%s12386_s5 + $0xc0] sm:$0xff] }
 0xc55   :  { %v4774_v26 = vmul.f32 %v4772_v40, %v12826_v9  ;;  %v4763_v13 = vmul.f32 %v4760_v4, %v8234_v2  ;;  %v11902_v44 = vld [vmem:[%s12386_s5 + $0x40] sm:$0xff]  ;;  %v11940_v40 = vld [vmem:[%s12386_s5 + $0x30] sm:$0xff]  ;;  %v12035_v4 = vld [vmem:[%s12386_s5 + $0x8] sm:$0xff] }
 0xc56   :  { %4739 = vst [vmem:[#allocation9 + $0xb0] sm:$0xff] %v11749_v59  ;;  %v4731_v55 = vmul.f32 %v4727_v48, %v4719_v54  ;;  %v4768_v62 = vrot.slane %v11749_v59, 1  ;;  %v4756_v15 = vrot.slane %v11749_v59, 7  ;;  %v11908_v36 = vld [vmem:[%s12386_s5 + $0x140] sm:$0xff]  ;;  %v11927_v54 = vld [vmem:[%s12386_s5 + $0x138] sm:$0xff]  ;;  %v11933_v48 = vld [vmem:[%s12386_s5 + $0xb0] sm:$0xff] }
 0xc57   :  { %4932 = vmatmul.mubr.f32.vlgmr.msra.gmra.mxu0 %v4774_v26  ;;  %v11946_v26 = vld [vmem:[%s12386_s5 + $0x130] sm:$0xff]  ;;  %13678 = vst [vmem:[#allocation199_spill] sm:$0xff] %v12035_v4 }
 0xc58   :  { %v11757_v58 = vadd.f32 %v4731_v55, %v4723_v31  ;;  %4937 = vmatprep.mubr.f32.mxu0 %v12824_v43  ;;  %v4771_v63 = vsel %vm458_vm0, %v4767_v52, %v4768_v62  ;;  %6268 = vmatpush3.msra.mxu0 %v11765_v14  ;;  %v4759_v33 = vsel %vm201_vm1, %v4755_v47, %v4756_v15  ;;  %v11921_v52 = vld [vmem:[%s12386_s5 + $0x38] sm:$0xff]  ;;  %v11952_v31 = vld [vmem:[%s12386_s5 + $0xa8] sm:$0xff] }
 0xc59   :  { %v4775_v34 = vmul.f32 %v4771_v63, %v12827_v18  ;;  %6269 = vmatprep.subr.mxu0 %v11772_v16  ;;  %13664 = vst [vmem:[#allocation185_spill] sm:$0xff] %v11946_v26  ;;  %13665 = vst [vmem:[#allocation186_spill] sm:$0xff] %v11952_v31  ;;  %v11959_v55 = vld [vmem:[%s12386_s5 + $0x28] sm:$0xff]  ;;  %v11971_v63 = vld [vmem:[%s12386_s5 + $0xa0] sm:$0xff] }
 0xc5a   :  { %4740 = vst [vmem:[#allocation9 + $0xb8] sm:$0xff] %v11757_v58  ;;  %v4757_v10 = vrot.slane %v11757_v58, 7  ;;  %v4769_v61 = vrot.slane %v11757_v58, 1  ;;  %6270 = vmatpush3.msra.mxu0 %v11783_v22  ;;  %13666 = vst [vmem:[#allocation187_spill] sm:$0xff] %v11959_v55  ;;  %v12003_v47 = vld [vmem:[%s12386_s5 + $0x118] sm:$0xff] }
 0xc5b   :  { %4938 = vmatmul.mubr.f32.gmra.mxu0 %v4775_v34  ;;  %6271 = vmatprep.subr.mxu0 %v11789_v19  ;;  %13668 = vst [vmem:[#allocation189_spill] sm:$0xff] %v11971_v63  ;;  %v11978_v34 = vld [vmem:[%s12386_s5 + $0x20] sm:$0xff]  ;;  %13673 = vst [vmem:[#allocation194_spill] sm:$0xff] %v12003_v47 }
 0xc5c   :  { %4943 = vmatprep.mubr.f32.mxu0 %v12824_v43  ;;  %v4761_v32 = vsel %vm201_vm1, %v4757_v10, %v4754_v57  ;;  %v4770_v29 = vsel %vm458_vm0, %v4768_v62, %v4769_v61  ;;  %6272 = vmatpush3.msra.mxu0 %v11802_v23  ;;  %v4773_v41 = vsel %vm458_vm0, %v4769_v61, %v4766_v25  ;;  %v11914_v25 = vld [vmem:[%s12386_s5 + $0xb8] sm:$0xff]  ;;  %v11965_v62 = vld [vmem:[%s12386_s5 + $0x128] sm:$0xff]  ;;  %v11984_v57 = vld [vmem:[%s12386_s5 + $0x120] sm:$0xff] }
 0xc5d   :  { %v4762_v24 = vmul.f32 %v4761_v32, %v12825_v42  ;;  %v4776_v30 = vmul.f32 %v4770_v29, %v12829_v46  ;;  %6273 = vmatprep.subr.mxu0 %v11813_v38  ;;  %v4777_v7 = vmul.f32 %v4773_v41, %v12830_v39  ;;  %v4758_v56 = vsel %vm201_vm1, %v4756_v15, %v4757_v10  ;;  %v11990_v10 = vld [vmem:[%s12386_s5 + $0x98] sm:$0xff]  ;;  %v12009_v32 = vld [vmem:[%s12386_s5 + $0x90] sm:$0xff]  ;;  %v12041_v41 = vld [vmem:[%s12386_s5 + $0x108] sm:$0xff] }
 0xc5e   :  { %6274 = vmatpush3.msra.mxu0 %v11824_v53  ;;  %v4765_v28 = vmul.f32 %v4758_v56, %v8283_v49  ;;  %13667 = vst [vmem:[#allocation188_spill] sm:$0xff] %v11965_v62  ;;  %13669 = vst [vmem:[#allocation190_spill] sm:$0xff] %v11978_v34  ;;  %v11997_v61 = vld [vmem:[%s12386_s5 + $0x18] sm:$0xff]  ;;  %v12016_v29 = vld [vmem:[%s12386_s5 + $0x10] sm:$0xff] }
 0xc5f   :  { %4843 = vmatmul.mubr.f32.vlgmr.msra.gmra.mxu1 %v4762_v24  ;;  %4944 = vmatmul.mubr.f32.gmra.mxu0 %v4776_v30  ;;  %13670 = vst [vmem:[#allocation191_spill] sm:$0xff] %v11984_v57  ;;  %13671 = vst [vmem:[#allocation192_spill] sm:$0xff] %v11990_v10  ;;  %v12022_v24 = vld [vmem:[%s12386_s5 + $0x110] sm:$0xff]  ;;  %v12028_v30 = vld [vmem:[%s12386_s5 + $0x88] sm:$0xff] }
 0xc60   :  { %4848 = vmatprep.mubr.f32.mxu1 %v11743_v50  ;;  %4949 = vmatprep.mubr.f32.mxu0 %v12824_v43  ;;  %13672 = vst [vmem:[#allocation193_spill] sm:$0xff] %v11997_v61  ;;  %13674 = vst [vmem:[#allocation195_spill] sm:$0xff] %v12009_v32  ;;  %v12047_v15 = vld [vmem:[%s12386_s5 + $0x80] sm:$0xff] }
 0xc61   :  { %6624 = vmatpush3.msra.mxu1 %v11413_v37  ;;  %6275 = vmatprep.subr.mxu0 %v11833_v6  ;;  %v4764_v37 = vmul.f32 %v4759_v33, %v12828_v35  ;;  %13675 = vst [vmem:[#allocation196_spill] sm:$0xff] %v12016_v29  ;;  %13676 = vst [vmem:[#allocation197_spill] sm:$0xff] %v12022_v24  ;;  %v7515_v33 = vld [vmem:[#allocation8 + $0xf8] sm:$0xff] }
 0xc62   :  { %6625 = vmatprep.subr.mxu1 %v11495_v51  ;;  %6276 = vmatpush3.msra.mxu0 %v11843_v11  ;;  %13677 = vst [vmem:[#allocation198_spill] sm:$0xff] %v12028_v30  ;;  %13679 = vst [vmem:[#allocation200_spill] sm:$0xff] %v12041_v41 }
 0xc63   :  { %4849 = vmatmul.mubr.f32.gmra.mxu1 %v4763_v13  ;;  %4950 = vmatmul.mubr.f32.gmra.mxu0 %v4777_v7  ;;  %13680 = vst [vmem:[#allocation201_spill] sm:$0xff] %v12047_v15  ;;  %v12054_v13 = vld [vmem:[%s12386_s5] sm:$0xff] }
 0xc64   :  { %4854 = vmatprep.mubr.f32.mxu1 %v11749_v59  ;;  %6626 = vmatpush3.msra.mxu1 %v11495_v51  ;;  %v11852_v51 = vld [vmem:[%s12386_s5 + $0xd0] sm:$0xff]  ;;  %13681 = vst [vmem:[#allocation202_spill] sm:$0xff] %v12054_v13  ;;  %v12060_v7 = vld [vmem:[%s12386_s5 + $0x100] sm:$0xff] }
 0xc65   :  { %6627 = vmatprep.subr.mxu1 %v11505_v3  ;;  %6277 = vmatprep.subr.mxu0 %v11852_v51  ;;  %13682 = vst [vmem:[#allocation203_spill] sm:$0xff] %v12060_v7 }
 0xc66   :  { %6628 = vmatpush3.msra.mxu1 %v11505_v3  ;;  %v11863_v3 = vld [vmem:[%s12386_s5 + $0x50] sm:$0xff] }
 0xc67   :  { %4855 = vmatmul.mubr.f32.gmra.mxu1 %v4764_v37  ;;  %6629 = vmatprep.subr.mxu1 %v11516_v17  ;;  %v7516_v37 = vld [vmem:[#allocation8 + $0x2f8] sm:$0xff] }
 0xc68   :  { %4860 = vmatprep.mubr.f32.mxu1 %v11757_v58  ;;  %6630 = vmatpush3.msra.mxu1 %v11516_v17  ;;  %v11876_v17 = vld [vmem:[%s12386_s5 + $0x150] sm:$0xff] }
 0xc69   :  { %6631 = vmatprep.subr.mxu1 %v11525_v20  ;;  %6278 = vmatpush3.msra.mxu0 %v11863_v3 }
 0xc6a   :  { %6632 = vmatpush3.msra.mxu1 %v11525_v20  ;;  %6279 = vmatprep.subr.mxu0 %v11870_v12  ;;  %v11883_v20 = vld [vmem:[%s12386_s5 + $0x48] sm:$0xff] }
 0xc6b   :  { %4861 = vmatmul.mubr.f32.gmra.mxu1 %v4765_v28  ;;  %6633 = vmatprep.subr.mxu1 %v11876_v17 }
 0xc6c   :  { %6634 = vmatpush3.msra.mxu1 %v11876_v17  ;;  %6280 = vmatpush3.msra.mxu0 %v11883_v20 }
 0xc6d   :  { %6635 = vmatprep.subr.mxu1 %v11889_v0  ;;  %6281 = vmatprep.subr.mxu0 %v11895_v60 }
 0xc6e   :  { %6636 = vmatpush3.msra.mxu1 %v11889_v0  ;;  %6282 = vmatpush3.msra.mxu0 %v11902_v44 }
 0xc6f   :  { %6637 = vmatprep.subr.mxu1 %v11908_v36  ;;  %6283 = vmatprep.subr.mxu0 %v11914_v25 }
 0xc70   :  { %6638 = vmatpush3.msra.mxu1 %v11908_v36  ;;  %6284 = vmatpush3.msra.mxu0 %v11921_v52 }
 0xc71   :  { %6639 = vmatprep.subr.mxu1 %v11927_v54  ;;  %6285 = vmatprep.subr.mxu0 %v11933_v48 }
 0xc72   :  { %6640 = vmatpush3.msra.mxu1 %v11927_v54  ;;  %6286 = vmatpush3.msra.mxu0 %v11940_v40 }
 0xc73   :  { %6641 = vmatprep.subr.mxu1 %v11946_v26  ;;  %6287 = vmatprep.subr.mxu0 %v11952_v31 }
 0xc74   :  { %6642 = vmatpush3.msra.mxu1 %v11946_v26  ;;  %6288 = vmatpush3.msra.mxu0 %v11959_v55 }
 0xc75   :  { %6643 = vmatprep.subr.mxu1 %v11965_v62  ;;  %6289 = vmatprep.subr.mxu0 %v11971_v63 }
 0xc76   :  { %6644 = vmatpush3.msra.mxu1 %v11965_v62  ;;  %6290 = vmatpush3.msra.mxu0 %v11978_v34 }
 0xc77   :  { %6645 = vmatprep.subr.mxu1 %v11984_v57  ;;  %6291 = vmatprep.subr.mxu0 %v11990_v10 }
 0xc78   :  { %6646 = vmatpush3.msra.mxu1 %v11984_v57  ;;  %6292 = vmatpush3.msra.mxu0 %v11997_v61 }
 0xc79   :  { %6647 = vmatprep.subr.mxu1 %v12003_v47  ;;  %6293 = vmatprep.subr.mxu0 %v12009_v32 }
 0xc7a   :  { %6648 = vmatpush3.msra.mxu1 %v12003_v47  ;;  %6294 = vmatpush3.msra.mxu0 %v12016_v29 }
 0xc7b   :  { %6649 = vmatprep.subr.mxu1 %v12022_v24  ;;  %6295 = vmatprep.subr.mxu0 %v12028_v30 }
 0xc7c   :  { %6650 = vmatpush3.msra.mxu1 %v12022_v24  ;;  %6296 = vmatpush3.msra.mxu0 %v12035_v4 }
 0xc7d   :  { %6651 = vmatprep.subr.mxu1 %v12041_v41  ;;  %6297 = vmatprep.subr.mxu0 %v12047_v15 }
 0xc7e   :  { %6652 = vmatpush3.msra.mxu1 %v12041_v41  ;;  %6298 = vmatpush3.msra.mxu0 %v12054_v13  ;;  %v13683_v13 = vld [vmem:[#allocation102_spill] sm:$0xff] }
 0xc7f   :  { %6653 = vmatprep.subr.mxu1 %v12060_v7  ;;  %5276 = vmatprep.subr.mxu0 %v7515_v33  ;;  %v1240_v30 = vadd.f32 %v13683_v13, %v13556_v8  ;;  %v13684_v33 = vld [vmem:[#allocation105_spill] sm:$0xff] }
 0xc80   :  { %6654 = vmatpush3.msra.mxu1 %v12060_v7  ;;  %v1246_v7 = vadd.f32 %v13684_v33, %v13556_v8 }
 0xc81   :  { %5365 = vmatprep.subr.mxu1 %v7516_v37 }
 0xd17   :  { %v4933_v56 = vpop.f32.mrf.mxu0 }
 0xd19   :  { %v4935_v28 = vpop.f32.mrf.mxu0 }
 0xd1b   :  { %v4939_v15 = vpop.f32.mrf.mxu0 }
 0xd1d   :  { %v4941_v41 = vpop.f32.mrf.mxu0 }
 0xd1f   :  { %v4844_v4 = vpop.f32.mrf.mxu1  ;;  %v4945_v61 = vpop.f32.mrf.mxu0 }
 0xd20   :  { %v4934_v24 = vadd.f32 %v4933_v56, %v4844_v4  ;;  %v13685_v4 = vld [vmem:[#allocation108_spill] sm:$0xff] }
 0xd21   :  { %v4846_v29 = vpop.f32.mrf.mxu1  ;;  %v4947_v55 = vpop.f32.mrf.mxu0  ;;  %v1252_v13 = vadd.f32 %v13685_v4, %v13556_v8 }
 0xd22   :  { %v4956_v32 = vadd.f32 %v4934_v24, %v1240_v30  ;;  %v12066_v47 = vadd.f32 %v4935_v28, %v4846_v29 }
 0xd23   :  { %v4850_v10 = vpop.f32.mrf.mxu1  ;;  %v4951_v33 = vpop.f32.mrf.mxu0 }
 0xd24   :  { %v5867_v57 = vmul.f32 -1.442695, %v4956_v32  ;;  %v4940_v37 = vadd.f32 %v4939_v15, %v4850_v10  ;;  %v13686_v10 = vld [vmem:[#allocation112_spill] sm:$0xff] }
 0xd25   :  { %v4852_v34 = vpop.f32.mrf.mxu1 }
 0xd26   :  { %7013 = vpow2.f32 %v5867_v57  ;;  %v4958_v63 = vadd.f32 %v4940_v37, %v1246_v7  ;;  %v12070_v62 = vadd.f32 %v4941_v41, %v4852_v34  ;;  %v1258_v57 = vadd.f32 %v13686_v10, %v13556_v8  ;;  %v7518_v8 = vld [vmem:[#allocation8 + $0x2e8] sm:$0xff] }
 0xd27   :  { %v4856_v31 = vpop.f32.mrf.mxu1 }
 0xd28   :  { %v5868_v24 = vmul.f32 -1.442695, %v4958_v63  ;;  %v4946_v29 = vadd.f32 %v4945_v61, %v4856_v31 }
 0xd29   :  { %v4858_v30 = vpop.f32.mrf.mxu1 }
 0xd2a   :  { %7015 = vpow2.f32 %v5868_v24  ;;  %v4960_v56 = vadd.f32 %v4946_v29, %v1252_v13  ;;  %v12074_v28 = vadd.f32 %v4947_v55, %v4858_v30 }
 0xd2b   :  { %v4862_v32 = vpop.f32.mrf.mxu1 }
 0xd2c   :  { %v5869_v15 = vmul.f32 -1.442695, %v4960_v56  ;;  %v4952_v34 = vadd.f32 %v4951_v33, %v4862_v32 }
 0xd2e   :  { %7017 = vpow2.f32 %v5869_v15  ;;  %v4962_v41 = vadd.f32 %v4952_v34, %v1258_v57 }
 0xd30   :  { %v5870_v7 = vmul.f32 -1.442695, %v4962_v41 }
 0xd32   :  { %7019 = vpow2.f32 %v5870_v7 }
 0xd33   :  { %v7014_v37 = vpop.eup %7013 }
 0xd34   :  { %v4976_v4 = vadd.f32 1.0, %v7014_v37 }
 0xd36   :  { %7021 = vrcp.f32 %v4976_v4 }
 0xd37   :  { %v7016_v31 = vpop.eup %7015 }
 0xd38   :  { %v4977_v63 = vadd.f32 1.0, %v7016_v31 }
 0xd3a   :  { %7023 = vrcp.f32 %v4977_v63 }
 0xd3b   :  { %v7018_v61 = vpop.eup %7017 }
 0xd3c   :  { %v4978_v55 = vadd.f32 1.0, %v7018_v61 }
 0xd3e   :  { %7025 = vrcp.f32 %v4978_v55 }
 0xd3f   :  { %v7020_v13 = vpop.eup %7019 }
 0xd40   :  { %v4979_v24 = vadd.f32 1.0, %v7020_v13 }
 0xd42   :  { %7027 = vrcp.f32 %v4979_v24 }
 0xd43   :  { %v7022_v29 = vpop.eup %7021 }
 0xd44   :  { %v5012_v30 = vmul.f32 %v7022_v29, %v11736_v27 }
 0xd46   :  { %5104 = vmatprep.mubr.f32.mxu0 %v5012_v30  ;;  %v5016_v32 = vrot.slane %v5012_v30, 7  ;;  %v5028_v10 = vrot.slane %v5012_v30, 1 }
 0xd47   :  { %v7024_v56 = vpop.eup %7023 }
 0xd48   :  { %v5013_v33 = vmul.f32 %v7024_v56, %v11743_v50 }
 0xd4a   :  { %v5029_v57 = vrot.slane %v5013_v33, 1  ;;  %v5017_v15 = vrot.slane %v5013_v33, 7 }
 0xd4b   :  { %v7026_v34 = vpop.eup %7025 }
 0xd4c   :  { %v5014_v41 = vmul.f32 %v7026_v34, %v11749_v59  ;;  %v5034_v7 = vsel %vm458_vm0, %v5028_v10, %v5029_v57  ;;  %v5022_v37 = vsel %vm201_vm1, %v5016_v32, %v5017_v15 }
 0xd4d   :  { %v5036_v4 = vmul.f32 %v5034_v7, %v12826_v9 }
 0xd4e   :  { %v5030_v31 = vrot.slane %v5014_v41, 1  ;;  %v5018_v63 = vrot.slane %v5014_v41, 7 }
 0xd4f   :  { %v7028_v61 = vpop.eup %7027  ;;  %6655 = vmatprep.mubr.f32.mxu1 %v5036_v4 }
 0xd50   :  { %v5015_v55 = vmul.f32 %v7028_v61, %v11757_v58  ;;  %v5033_v13 = vsel %vm458_vm0, %v5029_v57, %v5030_v31  ;;  %v5021_v24 = vsel %vm201_vm1, %v5017_v15, %v5018_v63  ;;  %v7517_v61 = vld [vmem:[#allocation8 + $0x2f0] sm:$0xff] }
 0xd51   :  { %v5037_v29 = vmul.f32 %v5033_v13, %v12827_v18 }
 0xd52   :  { %v5019_v30 = vrot.slane %v5015_v55, 7  ;;  %v5031_v56 = vrot.slane %v5015_v55, 1 }
 0xd53   :  { %6656 = vmatmul.mubr.f32.vlgmr.msra.gmra.mxu1 %v5037_v29 }
 0xd54   :  { %v5023_v34 = vsel %vm201_vm1, %v5019_v30, %v5016_v32  ;;  %v5032_v7 = vsel %vm458_vm0, %v5030_v31, %v5031_v56  ;;  %v5035_v4 = vsel %vm458_vm0, %v5031_v56, %v5028_v10  ;;  %v5020_v57 = vsel %vm201_vm1, %v5018_v63, %v5019_v30  ;;  %5366 = vmatpush1.msra.mxu1 %v7517_v61  ;;  %v7519_v32 = vld [vmem:[#allocation8 + $0x2e0] sm:$0xff]  ;;  %v7520_v31 = vld [vmem:[#allocation8 + $0xf0] sm:$0xff]  ;;  %v7521_v63 = vld [vmem:[#allocation8 + $0x2d8] sm:$0xff] }
 0xd55   :  { %v5024_v15 = vmul.f32 %v5023_v34, %v12825_v42  ;;  %v5038_v13 = vmul.f32 %v5032_v7, %v12829_v46  ;;  %v5039_v29 = vmul.f32 %v5035_v4, %v12830_v39  ;;  %5367 = vmatprep.subr.mxu1 %v7518_v8  ;;  %v5025_v10 = vmul.f32 %v5022_v37, %v8234_v2  ;;  %v7522_v30 = vld [vmem:[#allocation8 + $0xe8] sm:$0xff]  ;;  %v7523_v56 = vld [vmem:[#allocation8 + $0x2d0] sm:$0xff]  ;;  %v7525_v8 = vld [vmem:[#allocation8 + $0xe0] sm:$0xff] }
 0xd56   :  { %5368 = vmatpush1.msra.mxu1 %v7519_v32  ;;  %v7524_v34 = vld [vmem:[#allocation8 + $0x2c8] sm:$0xff]  ;;  %v5026_v7 = vmul.f32 %v5021_v24, %v12828_v35  ;;  %v7527_v4 = vld [vmem:[#allocation8 + $0x2c0] sm:$0xff]  ;;  %v7528_v37 = vld [vmem:[#allocation8 + $0xd0] sm:$0xff] }
 0xd57   :  { %5105 = vmatmul.mubr.f32.vlgmr.msra.gmra.mxu0 %v5024_v15  ;;  %6658 = vmatprep.mubr.f32.mxu1 %v5038_v13  ;;  %v7529_v61 = vld [vmem:[#allocation8 + $0x2b8] sm:$0xff]  ;;  %v7530_v15 = vld [vmem:[#allocation8 + $0xc8] sm:$0xff]  ;;  %v7531_v13 = vld [vmem:[#allocation8 + $0xc0] sm:$0xff] }
 0xd58   :  { %5109 = vmatprep.mubr.f32.mxu0 %v5013_v33  ;;  %6659 = vmatmul.mubr.f32.gmra.mxu1 %v5039_v29  ;;  %v7526_v33 = vld [vmem:[#allocation8 + $0xd8] sm:$0xff]  ;;  %v7533_v32 = vld [vmem:[#allocation8 + $0x2b0] sm:$0xff] }
 0xd59   :  { %5277 = vmatpush1.msra.mxu0 %v7520_v31  ;;  %5369 = vmatprep.subr.mxu1 %v7521_v63  ;;  %v7532_v29 = vld [vmem:[#allocation8 + $0xb8] sm:$0xff]  ;;  %v7534_v24 = vld [vmem:[#allocation8 + $0xb0] sm:$0xff]  ;;  %v7536_v31 = vld [vmem:[#allocation8 + $0xa8] sm:$0xff] }
 0xd5a   :  { %5278 = vmatprep.subr.mxu0 %v7522_v30  ;;  %5370 = vmatpush1.msra.mxu1 %v7523_v56  ;;  %v7537_v63 = vld [vmem:[#allocation8 + $0xa0] sm:$0xff]  ;;  %v7540_v56 = vld [vmem:[#allocation8 + $0x298] sm:$0xff] }
 0xd5b   :  { %5110 = vmatmul.mubr.f32.gmra.mxu0 %v5025_v10  ;;  %5371 = vmatprep.subr.mxu1 %v7524_v34  ;;  %v7535_v10 = vld [vmem:[#allocation8 + $0x2a8] sm:$0xff]  ;;  %v7538_v30 = vld [vmem:[#allocation8 + $0x2a0] sm:$0xff]  ;;  %v7542_v34 = vld [vmem:[#allocation8 + $0x290] sm:$0xff] }
 0xd5c   :  { %5114 = vmatprep.mubr.f32.mxu0 %v5014_v41  ;;  %5279 = vmatpush1.msra.mxu0 %v7525_v8  ;;  %v5027_v41 = vmul.f32 %v5020_v57, %v8283_v49  ;;  %v7541_v57 = vld [vmem:[#allocation8 + $0x90] sm:$0xff]  ;;  %v7543_v8 = vld [vmem:[#allocation8 + $0x88] sm:$0xff] }
 0xd5d   :  { %5280 = vmatprep.subr.mxu0 %v7526_v33  ;;  %5372 = vmatpush1.msra.mxu1 %v7527_v4  ;;  %v7545_v33 = vld [vmem:[#allocation8 + $0x80] sm:$0xff] }
 0xd5e   :  { %5281 = vmatpush1.msra.mxu0 %v7528_v37  ;;  %5373 = vmatprep.subr.mxu1 %v7529_v61  ;;  %v7546_v4 = vld [vmem:[#allocation8 + $0x280] sm:$0xff]  ;;  %v7547_v37 = vld [vmem:[#allocation8 + $0x78] sm:$0xff] }
 0xd5f   :  { %5115 = vmatmul.mubr.f32.gmra.mxu0 %v5026_v7  ;;  %5282 = vmatprep.subr.mxu0 %v7530_v15  ;;  %v7544_v7 = vld [vmem:[#allocation8 + $0x288] sm:$0xff]  ;;  %v7548_v61 = vld [vmem:[#allocation8 + $0x278] sm:$0xff]  ;;  %v7549_v15 = vld [vmem:[#allocation8 + $0x70] sm:$0xff] }
 0xd60   :  { %5119 = vmatprep.mubr.f32.mxu0 %v5015_v55  ;;  %5283 = vmatpush1.msra.mxu0 %v7531_v13  ;;  %v7539_v55 = vld [vmem:[#allocation8 + $0x98] sm:$0xff]  ;;  %v7550_v13 = vld [vmem:[#allocation8 + $0x270] sm:$0xff] }
 0xd61   :  { %5284 = vmatprep.subr.mxu0 %v7532_v29  ;;  %5374 = vmatpush1.msra.mxu1 %v7533_v32  ;;  %v7552_v29 = vld [vmem:[#allocation8 + $0x268] sm:$0xff]  ;;  %v7553_v32 = vld [vmem:[#allocation8 + $0x60] sm:$0xff] }
 0xd62   :  { %5285 = vmatpush1.msra.mxu0 %v7534_v24  ;;  %5375 = vmatprep.subr.mxu1 %v7535_v10  ;;  %v7554_v24 = vld [vmem:[#allocation8 + $0x260] sm:$0xff]  ;;  %v7555_v10 = vld [vmem:[#allocation8 + $0x58] sm:$0xff] }
 0xd63   :  { %5120 = vmatmul.mubr.f32.gmra.mxu0 %v5027_v41  ;;  %5286 = vmatprep.subr.mxu0 %v7536_v31  ;;  %v7551_v41 = vld [vmem:[#allocation8 + $0x68] sm:$0xff]  ;;  %v7556_v31 = vld [vmem:[#allocation8 + $0x258] sm:$0xff] }
 0xd64   :  { %5287 = vmatpush1.msra.mxu0 %v7537_v63  ;;  %5376 = vmatpush1.msra.mxu1 %v7538_v30  ;;  %v7557_v63 = vld [vmem:[#allocation8 + $0x50] sm:$0xff] }
 0xd65   :  { %5288 = vmatprep.subr.mxu0 %v7539_v55  ;;  %5377 = vmatprep.subr.mxu1 %v7540_v56  ;;  %v7558_v30 = vld [vmem:[#allocation8 + $0x250] sm:$0xff]  ;;  %v7559_v55 = vld [vmem:[#allocation8 + $0x48] sm:$0xff] }
 0xd66   :  { %5289 = vmatpush1.msra.mxu0 %v7541_v57  ;;  %5378 = vmatpush1.msra.mxu1 %v7542_v34  ;;  %v7560_v56 = vld [vmem:[#allocation8 + $0x248] sm:$0xff]  ;;  %v7561_v57 = vld [vmem:[#allocation8 + $0x40] sm:$0xff] }
 0xd67   :  { %5290 = vmatprep.subr.mxu0 %v7543_v8  ;;  %5379 = vmatprep.subr.mxu1 %v7544_v7  ;;  %v7562_v34 = vld [vmem:[#allocation8 + $0x240] sm:$0xff]  ;;  %v7563_v8 = vld [vmem:[#allocation8 + $0x38] sm:$0xff] }
 0xd68   :  { %5291 = vmatpush1.msra.mxu0 %v7545_v33  ;;  %5380 = vmatpush1.msra.mxu1 %v7546_v4  ;;  %v7564_v7 = vld [vmem:[#allocation8 + $0x238] sm:$0xff]  ;;  %v7565_v33 = vld [vmem:[#allocation8 + $0x30] sm:$0xff] }
 0xd69   :  { %5292 = vmatprep.subr.mxu0 %v7547_v37  ;;  %5381 = vmatprep.subr.mxu1 %v7548_v61  ;;  %v7566_v4 = vld [vmem:[#allocation8 + $0x230] sm:$0xff]  ;;  %v7567_v37 = vld [vmem:[#allocation8 + $0x28] sm:$0xff] }
 0xd6a   :  { %5293 = vmatpush1.msra.mxu0 %v7549_v15  ;;  %5382 = vmatpush1.msra.mxu1 %v7550_v13  ;;  %v7568_v61 = vld [vmem:[#allocation8 + $0x228] sm:$0xff]  ;;  %v7569_v15 = vld [vmem:[#allocation8 + $0x20] sm:$0xff] }
 0xd6b   :  { %5294 = vmatprep.subr.mxu0 %v7551_v41  ;;  %5383 = vmatprep.subr.mxu1 %v7552_v29  ;;  %v7570_v13 = vld [vmem:[#allocation8 + $0x220] sm:$0xff]  ;;  %v7571_v41 = vld [vmem:[#allocation8 + $0x18] sm:$0xff] }
 0xd6c   :  { %5295 = vmatpush1.msra.mxu0 %v7553_v32  ;;  %5384 = vmatpush1.msra.mxu1 %v7554_v24  ;;  %v7572_v29 = vld [vmem:[#allocation8 + $0x218] sm:$0xff]  ;;  %v7573_v32 = vld [vmem:[#allocation8 + $0x10] sm:$0xff] }
 0xd6d   :  { %5296 = vmatprep.subr.mxu0 %v7555_v10  ;;  %5385 = vmatprep.subr.mxu1 %v7556_v31  ;;  %v7574_v24 = vld [vmem:[#allocation8 + $0x210] sm:$0xff]  ;;  %v7575_v10 = vld [vmem:[#allocation8 + $0x8] sm:$0xff] }
 0xd6e   :  { %5297 = vmatpush1.msra.mxu0 %v7557_v63  ;;  %5386 = vmatpush1.msra.mxu1 %v7558_v30  ;;  %v7576_v31 = vld [vmem:[#allocation8 + $0x208] sm:$0xff]  ;;  %v7577_v63 = vld [vmem:[#allocation8] sm:$0xff] }
 0xd6f   :  { %5298 = vmatprep.subr.mxu0 %v7559_v55  ;;  %5387 = vmatprep.subr.mxu1 %v7560_v56  ;;  %v7578_v30 = vld [vmem:[#allocation8 + $0x200] sm:$0xff]  ;;  %v7579_v55 = vld [vmem:[#allocation8 + $0x1f8] sm:$0xff]  ;;  %v7580_v56 = vld [vmem:[#allocation8 + $0x1f0] sm:$0xff] }
 0xd70   :  { %5299 = vmatpush1.msra.mxu0 %v7561_v57  ;;  %5388 = vmatpush1.msra.mxu1 %v7562_v34  ;;  %v7581_v57 = vld [vmem:[#allocation8 + $0x1e8] sm:$0xff]  ;;  %v7582_v34 = vld [vmem:[#allocation8 + $0x1e0] sm:$0xff] }
 0xd71   :  { %5300 = vmatprep.subr.mxu0 %v7563_v8  ;;  %5389 = vmatprep.subr.mxu1 %v7564_v7  ;;  %v7583_v8 = vld [vmem:[#allocation8 + $0x1d8] sm:$0xff]  ;;  %v7584_v7 = vld [vmem:[#allocation8 + $0x1d0] sm:$0xff] }
 0xd72   :  { %5301 = vmatpush1.msra.mxu0 %v7565_v33  ;;  %5390 = vmatpush1.msra.mxu1 %v7566_v4  ;;  %v7585_v33 = vld [vmem:[#allocation8 + $0x1c8] sm:$0xff]  ;;  %v7586_v4 = vld [vmem:[#allocation8 + $0x1c0] sm:$0xff] }
 0xd73   :  { %5302 = vmatprep.subr.mxu0 %v7567_v37  ;;  %5391 = vmatprep.subr.mxu1 %v7568_v61  ;;  %v7587_v37 = vld [vmem:[#allocation8 + $0x1b8] sm:$0xff]  ;;  %v7588_v61 = vld [vmem:[#allocation8 + $0x1b0] sm:$0xff] }
 0xd74   :  { %5303 = vmatpush1.msra.mxu0 %v7569_v15  ;;  %5392 = vmatpush1.msra.mxu1 %v7570_v13  ;;  %v7589_v15 = vld [vmem:[#allocation8 + $0x1a8] sm:$0xff]  ;;  %v7590_v13 = vld [vmem:[#allocation8 + $0x1a0] sm:$0xff] }
 0xd75   :  { %5304 = vmatprep.subr.mxu0 %v7571_v41  ;;  %5393 = vmatprep.subr.mxu1 %v7572_v29  ;;  %v7592_v41 = vld [vmem:[#allocation8 + $0x190] sm:$0xff]  ;;  %v7593_v29 = vld [vmem:[#allocation8 + $0x188] sm:$0xff] }
 0xd76   :  { %5305 = vmatpush1.msra.mxu0 %v7573_v32  ;;  %5394 = vmatpush1.msra.mxu1 %v7574_v24  ;;  %v7594_v32 = vld [vmem:[#allocation8 + $0x180] sm:$0xff]  ;;  %v7595_v24 = vld [vmem:[#allocation8 + $0x178] sm:$0xff] }
 0xd77   :  { %5306 = vmatprep.subr.mxu0 %v7575_v10  ;;  %5395 = vmatprep.subr.mxu1 %v7576_v31  ;;  %v7596_v10 = vld [vmem:[#allocation8 + $0x170] sm:$0xff]  ;;  %v7597_v31 = vld [vmem:[#allocation8 + $0x168] sm:$0xff] }
 0xd78   :  { %5307 = vmatpush1.msra.mxu0 %v7577_v63  ;;  %5396 = vmatpush1.msra.mxu1 %v7578_v30  ;;  %v7598_v63 = vld [vmem:[#allocation8 + $0x160] sm:$0xff]  ;;  %v7599_v30 = vld [vmem:[#allocation8 + $0x158] sm:$0xff] }
 0xd79   :  { %5308 = vmatprep.subr.mxu0 %v7579_v55  ;;  %5429 = vmatprep.mubr.f32.mxu1 %v12824_v43  ;;  %v7600_v55 = vld [vmem:[#allocation8 + $0x150] sm:$0xff] }
 0xd7a   :  { %5309 = vmatpush2.msra.mxu0 %v7580_v56  ;;  %6331 = vmatprep.subr.mxu1 %v11684_v21  ;;  %v7591_v21 = vld [vmem:[#allocation8 + $0x198] sm:$0xff]  ;;  %v7601_v56 = vld [vmem:[#allocation8 + $0x148] sm:$0xff] }
 0xd7b   :  { %5310 = vmatprep.subr.mxu0 %v7581_v57  ;;  %v7602_v57 = vld [vmem:[#allocation8 + $0x140] sm:$0xff] }
 0xd7c   :  { %5311 = vmatpush2.msra.mxu0 %v7582_v34  ;;  %v7603_v34 = vld [vmem:[#allocation8 + $0x138] sm:$0xff] }
 0xd7d   :  { %5312 = vmatprep.subr.mxu0 %v7583_v8  ;;  %v7604_v8 = vld [vmem:[#allocation8 + $0x130] sm:$0xff] }
 0xd7e   :  { %5313 = vmatpush2.msra.mxu0 %v7584_v7  ;;  %v7605_v7 = vld [vmem:[#allocation8 + $0x128] sm:$0xff] }
 0xd7f   :  { %5314 = vmatprep.subr.mxu0 %v7585_v33  ;;  %v7606_v33 = vld [vmem:[#allocation8 + $0x120] sm:$0xff] }
 0xd80   :  { %5315 = vmatpush2.msra.mxu0 %v7586_v4  ;;  %v7607_v4 = vld [vmem:[#allocation8 + $0x118] sm:$0xff] }
 0xd81   :  { %5316 = vmatprep.subr.mxu0 %v7587_v37  ;;  %v7608_v37 = vld [vmem:[#allocation8 + $0x110] sm:$0xff] }
 0xd82   :  { %5317 = vmatpush2.msra.mxu0 %v7588_v61  ;;  %v7609_v61 = vld [vmem:[#allocation8 + $0x108] sm:$0xff] }
 0xd83   :  { %5318 = vmatprep.subr.mxu0 %v7589_v15  ;;  %v7610_v15 = vld [vmem:[#allocation8 + $0x100] sm:$0xff] }
 0xd84   :  { %5319 = vmatpush2.msra.mxu0 %v7590_v13  ;;  %v12111_v13 = vld [vmem:[%s12386_s5 + $0x178] sm:$0xff] }
 0xd85   :  { %5320 = vmatprep.subr.mxu0 %v7591_v21  ;;  %v13687_v21 = vld [vmem:[#allocation104_spill] sm:$0xff] }
 0xd86   :  { %5321 = vmatpush2.msra.mxu0 %v7592_v41  ;;  %v1242_v41 = vadd.f32 %v13687_v21, %v13655_v1 }
 0xd87   :  { %5322 = vmatprep.subr.mxu0 %v7593_v29 }
 0xd88   :  { %5323 = vmatpush2.msra.mxu0 %v7594_v32  ;;  %v4957_v29 = vadd.f32 %v12066_v47, %v1242_v41  ;;  %v13688_v32 = vld [vmem:[#allocation107_spill] sm:$0xff] }
 0xd89   :  { %5324 = vmatprep.subr.mxu0 %v7595_v24  ;;  %v1248_v24 = vadd.f32 %v13688_v32, %v13655_v1 }
 0xd8a   :  { %5325 = vmatpush2.msra.mxu0 %v7596_v10  ;;  %v5871_v10 = vmul.f32 -1.442695, %v4957_v29 }
 0xd8b   :  { %5326 = vmatprep.subr.mxu0 %v7597_v31  ;;  %v4959_v31 = vadd.f32 %v12070_v62, %v1248_v24 }
 0xd8c   :  { %5327 = vmatpush2.msra.mxu0 %v7598_v63  ;;  %v4864_v63 = vpop.f32.mrf.mxu1  ;;  %7029 = vpow2.f32 %v5871_v10 }
 0xd8d   :  { %5328 = vmatprep.subr.mxu0 %v7599_v30  ;;  %v13689_v30 = vld [vmem:[#allocation110_spill] sm:$0xff] }
 0xd8e   :  { %5329 = vmatpush2.msra.mxu0 %v7600_v55  ;;  %v1254_v55 = vadd.f32 %v13689_v30, %v13655_v1 }
 0xd8f   :  { %5330 = vmatprep.subr.mxu0 %v7601_v56  ;;  %v4953_v56 = vpop.f32.mrf.mxu0 }
 0xd90   :  { %5331 = vmatpush2.msra.mxu0 %v7602_v57  ;;  %v5872_v57 = vmul.f32 -1.442695, %v4959_v31 }
 0xd91   :  { %5332 = vmatprep.subr.mxu0 %v7603_v34  ;;  %v4961_v34 = vadd.f32 %v12074_v28, %v1254_v55 }
 0xd92   :  { %5333 = vmatpush2.msra.mxu0 %v7604_v8  ;;  %v4954_v8 = vadd.f32 %v4953_v56, %v4864_v63  ;;  %7031 = vpow2.f32 %v5872_v57  ;;  %v13691_v56 = vld [vmem:[#allocation103_spill] sm:$0xff] }
 0xd93   :  { %5334 = vmatprep.subr.mxu0 %v7605_v7  ;;  %v13690_v7 = vld [vmem:[#allocation113_spill] sm:$0xff]  ;;  %v5873_v47 = vmul.f32 -1.442695, %v4961_v34  ;;  %v1473_v57 = vadd.f32 %v13691_v56, %v9440_v45 }
 0xd94   :  { %5335 = vmatpush2.msra.mxu0 %v7606_v33  ;;  %v1260_v33 = vadd.f32 %v13690_v7, %v13655_v1 }
 0xd95   :  { %5336 = vmatprep.subr.mxu0 %v7607_v4  ;;  %7033 = vpow2.f32 %v5873_v47 }
 0xd96   :  { %5337 = vmatpush2.msra.mxu0 %v7608_v37  ;;  %v4963_v4 = vadd.f32 %v4954_v8, %v1260_v33 }
 0xd97   :  { %5338 = vmatprep.subr.mxu0 %v7609_v61 }
 0xd98   :  { %5339 = vmatpush2.msra.mxu0 %v7610_v15  ;;  %v5874_v37 = vmul.f32 -1.442695, %v4963_v4 }
 0xd99   :  { %6661 = vmatprep.subr.mxu0 %v12111_v13  ;;  %v7030_v62 = vpop.eup %7029 }
 0xd9a   :  { %7035 = vpow2.f32 %v5874_v37  ;;  %v5000_v61 = vadd.f32 1.0, %v7030_v62  ;;  %v13692_v62 = vld [vmem:[#allocation106_spill] sm:$0xff] }
 0xd9c   :  { %7037 = vrcp.f32 %v5000_v61  ;;  %v1478_v61 = vadd.f32 %v13692_v62, %v9440_v45 }
 0xd9f   :  { %v7032_v15 = vpop.eup %7031 }
 0xda0   :  { %v5001_v21 = vadd.f32 1.0, %v7032_v15 }
 0xda2   :  { %v7034_v41 = vpop.eup %7033  ;;  %7039 = vrcp.f32 %v5001_v21 }
 0xda3   :  { %v5002_v29 = vadd.f32 1.0, %v7034_v41 }
 0xda5   :  { %7041 = vrcp.f32 %v5002_v29 }
 0xda7   :  { %v7036_v32 = vpop.eup %7035 }
 0xda8   :  { %v5003_v10 = vadd.f32 1.0, %v7036_v32 }
 0xda9   :  { %v7038_v8 = vpop.eup %7037 }
 0xdaa   :  { %7043 = vrcp.f32 %v5003_v10  ;;  %v5222_v21 = vsub.f32 1.0, %v7038_v8 }
 0xdaf   :  { %v7040_v29 = vpop.eup %7039 }
 0xdb0   :  { %v5223_v1 = vsub.f32 1.0, %v7040_v29 }
 0xe13   :  { %v6657_v28 = vpop.f32.mrf.mxu1 }
 0xe15   :  { %v5191_v30 = vpop.f32.mrf.mxu1 }
 0xe17   :  { %v6299_v24 = vpop.f32.mrf.mxu0 }
 0xe18   :  { %v6660_v4 = vpop.f32.mrf.mxu1 }
 0xe19   :  { %v6300_v31 = vpop.f32.mrf.mxu0 }
 0xe1a   :  { %v6301_v63 = vadd.f32 %v6300_v31, %v6299_v24  ;;  %v5218_v24 = vmul.f32 %v7038_v8, %v11736_v27 }
 0xe1b   :  { %v6302_v55 = vpop.f32.mrf.mxu0 }
 0xe1c   :  { %v5192_v34 = vadd.f32 %v6301_v63, %v5191_v30  ;;  %v13693_v63 = vld [vmem:[#allocation109_spill] sm:$0xff] }
 0xe1d   :  { %v6303_v7 = vpop.f32.mrf.mxu0  ;;  %v1483_v30 = vadd.f32 %v13693_v63, %v9440_v45 }
 0xe1e   :  { %v5210_v33 = vadd.f32 %v5192_v34, %v1473_v57  ;;  %v6304_v47 = vadd.f32 %v6303_v7, %v6302_v55  ;;  %v5201_v57 = vpop.f32.mrf.mxu1 }
 0xe1f   :  { %v6305_v37 = vpop.f32.mrf.mxu0 }
 0xe20   :  { %v5214_v15 = vmax.f32 %v5210_v33, 0.0  ;;  %v5197_v41 = vadd.f32 %v6657_v28, %v6304_v47  ;;  %v7042_v33 = vpop.eup %7041  ;;  %v5219_v28 = vmul.f32 %v7040_v29, %v11743_v50 }
 0xe21   :  { %v6306_v32 = vpop.f32.mrf.mxu0 }
 0xe22   :  { %v5226_v31 = vmul.f32 %v5222_v21, %v5214_v15  ;;  %v5211_v56 = vadd.f32 %v5197_v41, %v1478_v61  ;;  %v6307_v10 = vadd.f32 %v6306_v32, %v6305_v37  ;;  %v13694_v37 = vld [vmem:[#allocation111_spill] sm:$0xff]  ;;  %v5224_v41 = vsub.f32 1.0, %v7042_v33 }
 0xe23   :  { %v6308_v55 = vpop.f32.mrf.mxu0  ;;  %v1488_v61 = vadd.f32 %v13694_v37, %v9440_v45 }
 0xe24   :  { %v12132_v34 = vadd.f32 %v5226_v31, %v5218_v24  ;;  %v5215_v7 = vmax.f32 %v5211_v56, 0.0  ;;  %v5202_v62 = vadd.f32 %v6307_v10, %v5201_v57  ;;  %v7044_v24 = vpop.eup %7043  ;;  %v5220_v31 = vmul.f32 %v7042_v33, %v11749_v59 }
 0xe25   :  { %v6309_v26 = vpop.f32.mrf.mxu0  ;;  %v5225_v63 = vsub.f32 1.0, %v7044_v24  ;;  %v5221_v59 = vmul.f32 %v7044_v24, %v11757_v58  ;;  %v12223_v24 = vld [vmem:[%s12386_s5 + $0x158] sm:$0xff] }
 0xe26   :  { %5235 = vst [vmem:[#allocation9 + $0xc0] sm:$0xff] %v12132_v34  ;;  %v5227_v27 = vmul.f32 %v5223_v1, %v5215_v7  ;;  %v5212_v8 = vadd.f32 %v5202_v62, %v1483_v30  ;;  %v6310_v47 = vadd.f32 %v6309_v26, %v6308_v55  ;;  %5340 = vmatprep.mubr.f32.mxu0 %v12132_v34  ;;  %v5264_v1 = vrot.slane %v12132_v34, 1 }
 0xe27   :  { %v5252_v58 = vrot.slane %v12132_v34, 7 }
 0xe28   :  { %v12139_v15 = vadd.f32 %v5227_v27, %v5219_v28  ;;  %v5216_v21 = vmax.f32 %v5212_v8, 0.0  ;;  %v5207_v32 = vadd.f32 %v6660_v4, %v6310_v47 }
 0xe2a   :  { %5236 = vst [vmem:[#allocation9 + $0xc8] sm:$0xff] %v12139_v15  ;;  %v5228_v56 = vmul.f32 %v5224_v41, %v5216_v21  ;;  %v5213_v50 = vadd.f32 %v5207_v32, %v1488_v61  ;;  %v5265_v26 = vrot.slane %v12139_v15, 1  ;;  %v5253_v8 = vrot.slane %v12139_v15, 7  ;;  %v12214_v32 = vld [vmem:[%s12386_s5 + $0x160] sm:$0xff] }
 0xe2c   :  { %v12145_v29 = vadd.f32 %v5228_v56, %v5220_v31  ;;  %v5217_v10 = vmax.f32 %v5213_v50, 0.0  ;;  %v5270_v30 = vsel %vm458_vm0, %v5264_v1, %v5265_v26  ;;  %v13709_v31 = vld [vmem:[#allocation199_spill] sm:$0xff]  ;;  %v13710_v56 = vld [vmem:[#allocation200_spill] sm:$0xff]  ;;  %v13711_v50 = vld [vmem:[#allocation201_spill] sm:$0xff] }
 0xe2d   :  { %v5272_v4 = vmul.f32 %v5270_v30, %v12826_v9 }
 0xe2e   :  { %5237 = vst [vmem:[#allocation9 + $0xd0] sm:$0xff] %v12145_v29  ;;  %v5229_v57 = vmul.f32 %v5225_v63, %v5217_v10  ;;  %v5266_v55 = vrot.slane %v12145_v29, 1  ;;  %v5254_v61 = vrot.slane %v12145_v29, 7 }
 0xe2f   :  { %5430 = vmatmul.mubr.f32.vlgmr.msra.gmra.mxu1 %v5272_v4 }
 0xe30   :  { %v12153_v7 = vadd.f32 %v5229_v57, %v5221_v59  ;;  %5435 = vmatprep.mubr.f32.mxu1 %v12824_v43  ;;  %v5269_v62 = vsel %vm458_vm0, %v5265_v26, %v5266_v55  ;;  %6332 = vmatpush3.msra.mxu1 %v11765_v14  ;;  %v5257_v41 = vsel %vm201_vm1, %v5253_v8, %v5254_v61  ;;  %v13713_v26 = vld [vmem:[#allocation203_spill] sm:$0xff]  ;;  %v13714_v57 = vld [vmem:[#allocation125_spill] sm:$0xff] }
 0xe31   :  { %v5273_v33 = vmul.f32 %v5269_v62, %v12827_v18  ;;  %6333 = vmatprep.subr.mxu1 %v11772_v16 }
 0xe32   :  { %5238 = vst [vmem:[#allocation9 + $0xd8] sm:$0xff] %v12153_v7  ;;  %v5255_v28 = vrot.slane %v12153_v7, 7  ;;  %v5267_v27 = vrot.slane %v12153_v7, 1  ;;  %6334 = vmatpush3.msra.mxu1 %v11783_v22  ;;  %v5258_v22 = vsel %vm201_vm1, %v5252_v58, %v5253_v8 }
 0xe33   :  { %5436 = vmatmul.mubr.f32.gmra.mxu1 %v5273_v33  ;;  %6335 = vmatprep.subr.mxu1 %v11789_v19  ;;  %v5261_v21 = vmul.f32 %v5258_v22, %v8234_v2 }
 0xe34   :  { %5441 = vmatprep.mubr.f32.mxu1 %v12824_v43  ;;  %v5259_v14 = vsel %vm201_vm1, %v5255_v28, %v5252_v58  ;;  %v5268_v16 = vsel %vm458_vm0, %v5266_v55, %v5267_v27  ;;  %6336 = vmatpush3.msra.mxu1 %v11802_v23  ;;  %v5271_v19 = vsel %vm458_vm0, %v5267_v27, %v5264_v1  ;;  %v13712_v1 = vld [vmem:[#allocation202_spill] sm:$0xff] }
 0xe35   :  { %v5260_v47 = vmul.f32 %v5259_v14, %v12825_v42  ;;  %v5274_v37 = vmul.f32 %v5268_v16, %v12829_v46  ;;  %6337 = vmatprep.subr.mxu1 %v11813_v38  ;;  %v5275_v23 = vmul.f32 %v5271_v19, %v12830_v39  ;;  %v12193_v38 = vld [vmem:[%s12386_s5 + $0x170] sm:$0xff]  ;;  %v13715_v55 = vld [vmem:[#allocation114_spill] sm:$0xff]  ;;  %v13716_v16 = vld [vmem:[#allocation117_spill] sm:$0xff] }
 0xe36   :  { %6338 = vmatpush3.msra.mxu1 %v11824_v53  ;;  %v12203_v53 = vld [vmem:[%s12386_s5 + $0x168] sm:$0xff]  ;;  %v1264_v62 = vadd.f32 %v13715_v55, %v13714_v57 }
 0xe37   :  { %5341 = vmatmul.mubr.f32.vlgmr.msra.gmra.mxu0 %v5260_v47  ;;  %5442 = vmatmul.mubr.f32.gmra.mxu1 %v5274_v37  ;;  %v1270_v47 = vadd.f32 %v13716_v16, %v13714_v57 }
 0xe38   :  { %5346 = vmatprep.mubr.f32.mxu0 %v12139_v15  ;;  %5447 = vmatprep.mubr.f32.mxu1 %v12824_v43  ;;  %v5262_v43 = vmul.f32 %v5257_v41, %v12828_v35 }
 0xe39   :  { %6662 = vmatpush3.msra.mxu0 %v12111_v13  ;;  %6339 = vmatprep.subr.mxu1 %v11833_v6  ;;  %v5256_v6 = vsel %vm201_vm1, %v5254_v61, %v5255_v28 }
 0xe3a   :  { %6663 = vmatprep.subr.mxu0 %v12193_v38  ;;  %6340 = vmatpush3.msra.mxu1 %v11843_v11  ;;  %v5263_v11 = vmul.f32 %v5256_v6, %v8283_v49 }
 0xe3b   :  { %5347 = vmatmul.mubr.f32.gmra.mxu0 %v5261_v21  ;;  %5448 = vmatmul.mubr.f32.gmra.mxu1 %v5275_v23 }
 0xe3c   :  { %5352 = vmatprep.mubr.f32.mxu0 %v12145_v29  ;;  %6664 = vmatpush3.msra.mxu0 %v12193_v38 }
 0xe3d   :  { %6665 = vmatprep.subr.mxu0 %v12203_v53  ;;  %6341 = vmatprep.subr.mxu1 %v11852_v51  ;;  %v13695_v51 = vld [vmem:[#allocation185_spill] sm:$0xff] }
 0xe3e   :  { %6666 = vmatpush3.msra.mxu0 %v12203_v53  ;;  %6342 = vmatpush3.msra.mxu1 %v11863_v3  ;;  %v13696_v3 = vld [vmem:[#allocation186_spill] sm:$0xff] }
 0xe3f   :  { %5353 = vmatmul.mubr.f32.gmra.mxu0 %v5262_v43  ;;  %6667 = vmatprep.subr.mxu0 %v12214_v32  ;;  %v13717_v43 = vld [vmem:[#allocation120_spill] sm:$0xff] }
 0xe40   :  { %5358 = vmatprep.mubr.f32.mxu0 %v12153_v7  ;;  %6668 = vmatpush3.msra.mxu0 %v12214_v32  ;;  %v1276_v6 = vadd.f32 %v13717_v43, %v13714_v57 }
 0xe41   :  { %6669 = vmatprep.subr.mxu0 %v12223_v24  ;;  %6343 = vmatprep.subr.mxu1 %v11870_v12  ;;  %v13697_v12 = vld [vmem:[#allocation187_spill] sm:$0xff] }
 0xe42   :  { %6670 = vmatpush3.msra.mxu0 %v12223_v24  ;;  %6344 = vmatpush3.msra.mxu1 %v11883_v20  ;;  %v13699_v20 = vld [vmem:[#allocation189_spill] sm:$0xff] }
 0xe43   :  { %5359 = vmatmul.mubr.f32.gmra.mxu0 %v5263_v11  ;;  %6671 = vmatprep.subr.mxu0 %v11876_v17 }
 0xe44   :  { %6672 = vmatpush3.msra.mxu0 %v11876_v17  ;;  %6345 = vmatprep.subr.mxu1 %v11895_v60  ;;  %v13698_v17 = vld [vmem:[#allocation188_spill] sm:$0xff]  ;;  %v13701_v60 = vld [vmem:[#allocation191_spill] sm:$0xff] }
 0xe45   :  { %6673 = vmatprep.subr.mxu0 %v11889_v0  ;;  %6346 = vmatpush3.msra.mxu1 %v11902_v44  ;;  %v13702_v44 = vld [vmem:[#allocation192_spill] sm:$0xff] }
 0xe46   :  { %6674 = vmatpush3.msra.mxu0 %v11889_v0  ;;  %6347 = vmatprep.subr.mxu1 %v11914_v25  ;;  %v13700_v0 = vld [vmem:[#allocation190_spill] sm:$0xff] }
 0xe47   :  { %6675 = vmatprep.subr.mxu0 %v11908_v36  ;;  %6348 = vmatpush3.msra.mxu1 %v11921_v52  ;;  %v13704_v25 = vld [vmem:[#allocation194_spill] sm:$0xff]  ;;  %v13705_v52 = vld [vmem:[#allocation195_spill] sm:$0xff] }
 0xe48   :  { %6676 = vmatpush3.msra.mxu0 %v11908_v36  ;;  %6349 = vmatprep.subr.mxu1 %v11933_v48  ;;  %v13703_v36 = vld [vmem:[#allocation193_spill] sm:$0xff] }
 0xe49   :  { %6677 = vmatprep.subr.mxu0 %v11927_v54  ;;  %6350 = vmatpush3.msra.mxu1 %v11940_v40  ;;  %v13707_v48 = vld [vmem:[#allocation197_spill] sm:$0xff]  ;;  %v13708_v40 = vld [vmem:[#allocation198_spill] sm:$0xff] }
 0xe4a   :  { %6678 = vmatpush3.msra.mxu0 %v11927_v54  ;;  %6351 = vmatprep.subr.mxu1 %v13696_v3  ;;  %v13706_v54 = vld [vmem:[#allocation196_spill] sm:$0xff] }
 0xe4b   :  { %6679 = vmatprep.subr.mxu0 %v13695_v51  ;;  %6352 = vmatpush3.msra.mxu1 %v13697_v12 }
 0xe4c   :  { %6680 = vmatpush3.msra.mxu0 %v13695_v51  ;;  %6353 = vmatprep.subr.mxu1 %v13699_v20 }
 0xe4d   :  { %6681 = vmatprep.subr.mxu0 %v13698_v17  ;;  %6354 = vmatpush3.msra.mxu1 %v13700_v0 }
 0xe4e   :  { %6682 = vmatpush3.msra.mxu0 %v13698_v17  ;;  %6355 = vmatprep.subr.mxu1 %v13702_v44  ;;  %v13718_v44 = vld [vmem:[#allocation123_spill] sm:$0xff] }
 0xe4f   :  { %6683 = vmatprep.subr.mxu0 %v13701_v60  ;;  %6356 = vmatpush3.msra.mxu1 %v13703_v36  ;;  %v1282_v36 = vadd.f32 %v13718_v44, %v13714_v57 }
 0xe50   :  { %6684 = vmatpush3.msra.mxu0 %v13701_v60  ;;  %6357 = vmatprep.subr.mxu1 %v13705_v52 }
 0xe51   :  { %6685 = vmatprep.subr.mxu0 %v13704_v25  ;;  %6358 = vmatpush3.msra.mxu1 %v13706_v54 }
 0xe52   :  { %6686 = vmatpush3.msra.mxu0 %v13704_v25  ;;  %6359 = vmatprep.subr.mxu1 %v13708_v40 }
 0xe53   :  { %6687 = vmatprep.subr.mxu0 %v13707_v48  ;;  %6360 = vmatpush3.msra.mxu1 %v13709_v31 }
 0xe54   :  { %6688 = vmatpush3.msra.mxu0 %v13707_v48  ;;  %6361 = vmatprep.subr.mxu1 %v13711_v50 }
 0xe55   :  { %6689 = vmatprep.subr.mxu0 %v13710_v56  ;;  %6362 = vmatpush3.msra.mxu1 %v13712_v1 }
 0xe56   :  { %6690 = vmatpush3.msra.mxu0 %v13710_v56  ;;  %6699 = vmatprep.subr.mxu1 %v12111_v13 }
 0xe57   :  { %6691 = vmatprep.subr.mxu0 %v13713_v26 }
 0xe58   :  { %6692 = vmatpush3.msra.mxu0 %v13713_v26 }
 0xeef   :  { %v5431_v10 = vpop.f32.mrf.mxu1 }
 0xef1   :  { %v5433_v63 = vpop.f32.mrf.mxu1 }
 0xef3   :  { %v5437_v30 = vpop.f32.mrf.mxu1 }
 0xef5   :  { %v5439_v4 = vpop.f32.mrf.mxu1 }
 0xef7   :  { %v5342_v59 = vpop.f32.mrf.mxu0  ;;  %v5443_v8 = vpop.f32.mrf.mxu1 }
 0xef8   :  { %v5432_v33 = vadd.f32 %v5431_v10, %v5342_v59 }
 0xef9   :  { %v5344_v58 = vpop.f32.mrf.mxu0  ;;  %v5445_v23 = vpop.f32.mrf.mxu1 }
 0xefa   :  { %v5454_v28 = vadd.f32 %v5432_v33, %v1264_v62  ;;  %v12273_v27 = vadd.f32 %v5433_v63, %v5344_v58 }
 0xefb   :  { %v5348_v14 = vpop.f32.mrf.mxu0  ;;  %v5449_v20 = vpop.f32.mrf.mxu1 }
 0xefc   :  { %v5875_v37 = vmul.f32 -1.442695, %v5454_v28  ;;  %v5438_v22 = vadd.f32 %v5437_v30, %v5348_v14 }
 0xefd   :  { %v5350_v19 = vpop.f32.mrf.mxu0 }
 0xefe   :  { %7045 = vpow2.f32 %v5875_v37  ;;  %v5456_v61 = vadd.f32 %v5438_v22, %v1270_v47  ;;  %v12277_v21 = vadd.f32 %v5439_v4, %v5350_v19 }
 0xeff   :  { %v5354_v41 = vpop.f32.mrf.mxu0 }
 0xf00   :  { %v5876_v11 = vmul.f32 -1.442695, %v5456_v61  ;;  %v5444_v51 = vadd.f32 %v5443_v8, %v5354_v41 }
 0xf01   :  { %v5356_v3 = vpop.f32.mrf.mxu0 }
 0xf02   :  { %7047 = vpow2.f32 %v5876_v11  ;;  %v5458_v12 = vadd.f32 %v5444_v51, %v1276_v6  ;;  %v12281_v17 = vadd.f32 %v5445_v23, %v5356_v3 }
 0xf03   :  { %v5360_v0 = vpop.f32.mrf.mxu0 }
 0xf04   :  { %v5877_v52 = vmul.f32 -1.442695, %v5458_v12  ;;  %v5450_v54 = vadd.f32 %v5449_v20, %v5360_v0 }
 0xf06   :  { %7049 = vpow2.f32 %v5877_v52  ;;  %v5460_v40 = vadd.f32 %v5450_v54, %v1282_v36  ;;  %v13720_v54 = vld [vmem:[#allocation116_spill] sm:$0xff] }
 0xf08   :  { %v5878_v31 = vmul.f32 -1.442695, %v5460_v40 }
 0xf0a   :  { %7051 = vpow2.f32 %v5878_v31  ;;  %v13721_v31 = vld [vmem:[#allocation119_spill] sm:$0xff] }
 0xf0b   :  { %v7046_v50 = vpop.eup %7045 }
 0xf0c   :  { %v5474_v1 = vadd.f32 1.0, %v7046_v50 }
 0xf0e   :  { %7053 = vrcp.f32 %v5474_v1 }
 0xf0f   :  { %v7048_v10 = vpop.eup %7047 }
 0xf10   :  { %v5475_v63 = vadd.f32 1.0, %v7048_v10  ;;  %v5362_v10 = vpop.f32.mrf.mxu0 }
 0xf12   :  { %7055 = vrcp.f32 %v5475_v63  ;;  %v5451_v63 = vpop.f32.mrf.mxu1 }
 0xf13   :  { %v7050_v30 = vpop.eup %7049 }
 0xf14   :  { %v5476_v4 = vadd.f32 1.0, %v7050_v30 }
 0xf16   :  { %7057 = vrcp.f32 %v5476_v4 }
 0xf17   :  { %v7052_v59 = vpop.eup %7051 }
 0xf18   :  { %v5477_v55 = vadd.f32 1.0, %v7052_v59  ;;  %v13722_v59 = vld [vmem:[#allocation126_spill] sm:$0xff] }
 0xf1a   :  { %7059 = vrcp.f32 %v5477_v55 }
 0xf1b   :  { %v7054_v62 = vpop.eup %7053 }
 0xf1c   :  { %v5510_v57 = vmul.f32 %v7054_v62, %v12132_v34 }
 0xf1e   :  { %5602 = vmatprep.mubr.f32.mxu1 %v5510_v57  ;;  %v5514_v28 = vrot.slane %v5510_v57, 7  ;;  %v5526_v8 = vrot.slane %v5510_v57, 1 }
 0xf1f   :  { %v7056_v33 = vpop.eup %7055 }
 0xf20   :  { %v5511_v58 = vmul.f32 %v7056_v33, %v12139_v15 }
 0xf22   :  { %v5527_v14 = vrot.slane %v5511_v58, 1  ;;  %v5515_v16 = vrot.slane %v5511_v58, 7 }
 0xf23   :  { %v7058_v47 = vpop.eup %7057 }
 0xf24   :  { %v5512_v37 = vmul.f32 %v7058_v47, %v12145_v29  ;;  %v5532_v22 = vsel %vm458_vm0, %v5526_v8, %v5527_v14  ;;  %v5520_v19 = vsel %vm201_vm1, %v5514_v28, %v5515_v16 }
 0xf25   :  { %v5534_v61 = vmul.f32 %v5532_v22, %v12826_v9 }
 0xf26   :  { %v5528_v23 = vrot.slane %v5512_v37, 1  ;;  %v5516_v41 = vrot.slane %v5512_v37, 7 }
 0xf27   :  { %v7060_v43 = vpop.eup %7059  ;;  %6693 = vmatprep.mubr.f32.mxu0 %v5534_v61 }
 0xf28   :  { %v5513_v6 = vmul.f32 %v7060_v43, %v12153_v7  ;;  %v5531_v11 = vsel %vm458_vm0, %v5527_v14, %v5528_v23  ;;  %v5519_v51 = vsel %vm201_vm1, %v5515_v16, %v5516_v41 }
 0xf29   :  { %v5535_v3 = vmul.f32 %v5531_v11, %v12827_v18  ;;  %v5523_v18 = vmul.f32 %v5520_v19, %v8234_v2  ;;  %v5524_v5 = vmul.f32 %v5519_v51, %v12828_v35  ;;  %v7616_v2 = vld [vmem:[%s12386_s5 + $0x150] sm:$0xff]  ;;  %v7617_v35 = vld [vmem:[%s12386_s5 + $0x148] sm:$0xff] }
 0xf2a   :  { %v5517_v12 = vrot.slane %v5513_v6, 7  ;;  %v5529_v20 = vrot.slane %v5513_v6, 1  ;;  %v13724_v19 = vld [vmem:[#allocation115_spill] sm:$0xff] }
 0xf2b   :  { %6694 = vmatmul.mubr.f32.vlgmr.msra.gmra.mxu0 %v5535_v3  ;;  %v1493_v61 = vadd.f32 %v13724_v19, %v9440_v45 }
 0xf2c   :  { %v5521_v9 = vsel %vm201_vm1, %v5517_v12, %v5514_v28  ;;  %v5518_v0 = vsel %vm201_vm1, %v5516_v41, %v5517_v12  ;;  %v5530_v44 = vsel %vm458_vm0, %v5528_v23, %v5529_v20  ;;  %v5533_v36 = vsel %vm458_vm0, %v5529_v20, %v5526_v8 }
 0xf2d   :  { %v5522_v52 = vmul.f32 %v5521_v9, %v12825_v42  ;;  %v5525_v42 = vmul.f32 %v5518_v0, %v8283_v49  ;;  %v7619_v49 = vld [vmem:[%s12386_s5 + $0x138] sm:$0xff] }
 0xf2f   :  { %5603 = vmatmul.mubr.f32.vlgmr.msra.gmra.mxu1 %v5522_v52 }
 0xf30   :  { %6715 = vmatpush3.msra.mxu1 %v12111_v13  ;;  %5607 = vmatprep.mubr.f32.mxu1 %v5511_v58  ;;  %v5536_v13 = vmul.f32 %v5530_v44, %v12829_v46  ;;  %v7620_v46 = vld [vmem:[%s12386_s5 + $0x130] sm:$0xff] }
 0xf31   :  { %6700 = vmatprep.subr.mxu1 %v12193_v38 }
 0xf32   :  { %6716 = vmatpush3.msra.mxu1 %v12193_v38  ;;  %v7618_v38 = vld [vmem:[%s12386_s5 + $0x140] sm:$0xff] }
 0xf33   :  { %6701 = vmatprep.subr.mxu1 %v12203_v53  ;;  %5608 = vmatmul.mubr.f32.gmra.mxu1 %v5523_v18 }
 0xf34   :  { %6717 = vmatpush3.msra.mxu1 %v12203_v53  ;;  %5612 = vmatprep.mubr.f32.mxu1 %v5512_v37  ;;  %v7621_v53 = vld [vmem:[%s12386_s5 + $0x128] sm:$0xff] }
 0xf35   :  { %6702 = vmatprep.subr.mxu1 %v12214_v32 }
 0xf36   :  { %6718 = vmatpush3.msra.mxu1 %v12214_v32  ;;  %v7622_v32 = vld [vmem:[%s12386_s5 + $0x120] sm:$0xff]  ;;  %s7721_s5 = smov [#allocation9]  }
 0xf37   :  { %6703 = vmatprep.subr.mxu1 %v12223_v24  ;;  %5613 = vmatmul.mubr.f32.gmra.mxu1 %v5524_v5  ;;  %s5742_s20 = sshll.u32 %s7721_s5, 4  ;;  %s5743_s20 = int_to_ptr.vmem [resolvable:$true] %s5742_s20 }
 0xf38   :  { %6719 = vmatpush3.msra.mxu1 %v12223_v24  ;;  %5617 = vmatprep.mubr.f32.mxu1 %v5513_v6  ;;  %v5537_v24 = vmul.f32 %v5533_v36, %v12830_v39  ;;  %s7683_s21 = scalar_lea.vmem %s5743_s20, 4096  ;;  %p7688_p2 = scmp.lt.s32.totalorder %s5743_s20, %s5743_s20 }
 0xf39   :  { %6704 = vmatprep.subr.mxu1 %v7616_v2  ;;  %p7684_p1 = scmp.ne.s32.totalorder %s5743_s20, %s7683_s21  ;;  %p7689_p3 = scmp.lt.s32.totalorder %s7683_s21, %s7683_s21 }
 0xf3a   :  { %6720 = vmatpush3.msra.mxu1 %v7616_v2 }
 0xf3b   :  { %6705 = vmatprep.subr.mxu1 %v7617_v35  ;;  %5618 = vmatmul.mubr.f32.gmra.mxu1 %v5525_v42  ;;  %p7690_p4 = por %p7689_p3, %p7688_p2 }
 0xf3c   :  { %6721 = vmatpush3.msra.mxu1 %v7617_v35  ;;  %6696 = vmatprep.mubr.f32.mxu1 %v5536_v13 }
 0xf3d   :  { %6706 = vmatprep.subr.mxu1 %v7618_v38  ;;  %p7691_p5 = pnand %p7690_p4, %p7684_p1 }
 0xf3e   :  { %6722 = vmatpush3.msra.mxu1 %v7618_v38 }
 0xf3f   :  { %6707 = vmatprep.subr.mxu1 %v7619_v49 }
 0xf40   :  { %6723 = vmatpush3.msra.mxu1 %v7619_v49 }
 0xf41   :  { %6708 = vmatprep.subr.mxu1 %v7620_v46 }
 0xf42   :  { %6724 = vmatpush3.msra.mxu1 %v7620_v46 }
 0xf43   :  { %6709 = vmatprep.subr.mxu1 %v7621_v53 }
 0xf44   :  { %6725 = vmatpush3.msra.mxu1 %v7621_v53 }
 0xf45   :  { %6710 = vmatprep.subr.mxu1 %v13701_v60  ;;  %v13719_v60 = vld [vmem:[#allocation209_spill] sm:$0xff] }
 0xf46   :  { %6726 = vmatpush3.msra.mxu1 %v7622_v32  ;;  %v1266_v40 = vadd.f32 %v13720_v54, %v13719_v60  ;;  %v1272_v50 = vadd.f32 %v13721_v31, %v13719_v60  ;;  %v1284_v55 = vadd.f32 %v13722_v59, %v13719_v60 }
 0xf47   :  { %6711 = vmatprep.subr.mxu1 %v13704_v25 }
 0xf48   :  { %6727 = vmatpush3.msra.mxu1 %v13704_v25  ;;  %v5455_v25 = vadd.f32 %v12273_v27, %v1266_v40  ;;  %v5457_v1 = vadd.f32 %v12277_v21, %v1272_v50  ;;  %v13723_v27 = vld [vmem:[#allocation122_spill] sm:$0xff]  ;;  %v13726_v40 = vld [vmem:[#allocation124_spill] sm:$0xff] }
 0xf49   :  { %6712 = vmatprep.subr.mxu1 %v13707_v48  ;;  %v1278_v62 = vadd.f32 %v13723_v27, %v13719_v60 }
 0xf4a   :  { %6728 = vmatpush3.msra.mxu1 %v13707_v48  ;;  %v5879_v48 = vmul.f32 -1.442695, %v5455_v25  ;;  %v1508_v25 = vadd.f32 %v13726_v40, %v9440_v45 }
 0xf4b   :  { %6713 = vmatprep.subr.mxu1 %v13710_v56  ;;  %v5459_v21 = vadd.f32 %v12281_v17, %v1278_v62  ;;  %v13725_v17 = vld [vmem:[#allocation118_spill] sm:$0xff] }
 0xf4c   :  { %6729 = vmatpush3.msra.mxu1 %v13710_v56  ;;  %7061 = vpow2.f32 %v5879_v48  ;;  %v5880_v56 = vmul.f32 -1.442695, %v5457_v1  ;;  %v1498_v51 = vadd.f32 %v13725_v17, %v9440_v45  ;;  %v13727_v1 = vld [vmem:[#allocation121_spill] sm:$0xff] }
 0xf4d   :  { %6714 = vmatprep.subr.mxu1 %v13713_v26  ;;  %v5881_v28 = vmul.f32 -1.442695, %v5459_v21 }
 0xf4e   :  { %6730 = vmatpush3.msra.mxu1 %v13713_v26  ;;  %7063 = vpow2.f32 %v5880_v56  ;;  %v5452_v26 = vadd.f32 %v5451_v63, %v5362_v10  ;;  %v1503_v56 = vadd.f32 %v13727_v1, %v9440_v45 }
 0xf4f   :  { %6697 = vmatmul.mubr.f32.vlgmr.msra.gmra.mxu1 %v5537_v24 }
 0xf50   :  { %v5461_v33 = vadd.f32 %v5452_v26, %v1284_v55 }
 0xf52   :  { %v5882_v58 = vmul.f32 -1.442695, %v5461_v33 }
 0xf59   :  { %v7062_v39 = vpop.eup %7061 }
 0xf5a   :  { %v5498_v30 = vadd.f32 1.0, %v7062_v39 }
 0xf5b   :  { %v7064_v4 = vpop.eup %7063 }
 0xf5c   :  { %7065 = vrcp.f32 %v5498_v30  ;;  %v5499_v57 = vadd.f32 1.0, %v7064_v4 }
 0xf5e   :  { %7067 = vrcp.f32 %v5499_v57 }
 0xf5f   :  { %7069 = vpow2.f32 %v5882_v58 }
 0xf60   :  { %7071 = vpow2.f32 %v5881_v28 }
 0xf69   :  { %v7066_v41 = vpop.eup %7065 }
 0xf6a   :  { %v5720_v12 = vsub.f32 1.0, %v7066_v41  ;;  %v5716_v0 = vmul.f32 %v7066_v41, %v12132_v34 }
 0xf6b   :  { %v7068_v9 = vpop.eup %7067 }
 0xf6c   :  { %v5721_v5 = vsub.f32 1.0, %v7068_v9  ;;  %v7070_v2 = vpop.eup %7069  ;;  %v5717_v42 = vmul.f32 %v7068_v9, %v12139_v15 }
 0xf6d   :  { %v7072_v35 = vpop.eup %7071  ;;  %v5501_v49 = vadd.f32 1.0, %v7070_v2 }
 0xf6e   :  { %v5500_v53 = vadd.f32 1.0, %v7072_v35 }
 0xf6f   :  { %7073 = vrcp.f32 %v5501_v49 }
 0xf70   :  { %7075 = vrcp.f32 %v5500_v53 }
 0xf7c   :  { %v7074_v15 = vpop.eup %7073 }
 0xf7d   :  { %v7076_v63 = vpop.eup %7075  ;;  %v5723_v26 = vsub.f32 1.0, %v7074_v15  ;;  %v5719_v59 = vmul.f32 %v7074_v15, %v12153_v7 }
 0xf7e   :  { %v5722_v62 = vsub.f32 1.0, %v7076_v63  ;;  %v5718_v33 = vmul.f32 %v7076_v63, %v12145_v29 }
 0xfeb   :  { %v6695_v8 = vpop.f32.mrf.mxu0 }
 0xfed   :  { %v5689_v37 = vpop.f32.mrf.mxu0 }
 0xfef   :  { %v6363_v14 = vpop.f32.mrf.mxu1 }
 0xff1   :  { %v6364_v16 = vpop.f32.mrf.mxu1 }
 0xff2   :  { %v6365_v47 = vadd.f32 %v6364_v16, %v6363_v14 }
 0xff3   :  { %v6366_v22 = vpop.f32.mrf.mxu1 }
 0xff4   :  { %v5690_v23 = vadd.f32 %v6365_v47, %v5689_v37 }
 0xff5   :  { %v6367_v43 = vpop.f32.mrf.mxu1 }
 0xff6   :  { %v5708_v6 = vadd.f32 %v5690_v23, %v1493_v61  ;;  %v6368_v11 = vadd.f32 %v6367_v43, %v6366_v22 }
 0xff7   :  { %v6369_v38 = vpop.f32.mrf.mxu1 }
 0xff8   :  { %v5712_v3 = vmax.f32 %v5708_v6, 0.0  ;;  %v5695_v20 = vadd.f32 %v6695_v8, %v6368_v11 }
 0xff9   :  { %v6370_v32 = vpop.f32.mrf.mxu1 }
 0xffa   :  { %v5724_v44 = vmul.f32 %v5720_v12, %v5712_v3  ;;  %v5709_v36 = vadd.f32 %v5695_v20, %v1498_v51  ;;  %v6371_v31 = vadd.f32 %v6370_v32, %v6369_v38 }
 0xffb   :  { %v6372_v34 = vpop.f32.mrf.mxu1 }
 0xffc   :  { %v5728_v52 = vadd.f32 %v5724_v44, %v5716_v0  ;;  %v5713_v18 = vmax.f32 %v5709_v36, 0.0 }
 0xffd   :  { %v6373_v24 = vpop.f32.mrf.mxu1 }
 0xffe   :  { %5733 = vst [vmem:[#allocation9 + $0xe0] sm:$0xff] %v5728_v52  ;;  %v5725_v13 = vmul.f32 %v5721_v5, %v5713_v18  ;;  %v6374_v60 = vadd.f32 %v6373_v24, %v6372_v34 }
0x1000   :  { %v5729_v46 = vadd.f32 %v5725_v13, %v5717_v42 }
0x1002   :  { %5734 = vst [vmem:[#allocation9 + $0xe8] sm:$0xff] %v5729_v46 }
0x100f   :  { %v6698_v54 = vpop.f32.mrf.mxu1 }
0x1010   :  { %v5705_v50 = vadd.f32 %v6698_v54, %v6374_v60 }
0x1011   :  { %v5699_v48 = vpop.f32.mrf.mxu1 }
0x1012   :  { %v5711_v39 = vadd.f32 %v5705_v50, %v1508_v25  ;;  %v5700_v10 = vadd.f32 %v6371_v31, %v5699_v48 }
0x1014   :  { %v5715_v30 = vmax.f32 %v5711_v39, 0.0  ;;  %v5710_v4 = vadd.f32 %v5700_v10, %v1503_v56 }
0x1016   :  { %v5727_v55 = vmul.f32 %v5723_v26, %v5715_v30  ;;  %v5714_v27 = vmax.f32 %v5710_v4, 0.0 }
0x1018   :  { %v5731_v57 = vadd.f32 %v5727_v55, %v5719_v59  ;;  %v5726_v21 = vmul.f32 %v5722_v62, %v5714_v27 }
0x101a   :  { %5736 = vst [vmem:[#allocation9 + $0xf8] sm:$0xff] %v5731_v57  ;;  %v5730_v58 = vadd.f32 %v5726_v21, %v5718_v33 }
0x101c   :  { %5735 = vst [vmem:[#allocation9 + $0xf0] sm:$0xff] %v5730_v58 }
0x101d   :  { %7694 = shalt.err (!%p7691_p5)
}
0x101e   :  { %5748 = dma.vmem_to_hbm [thread:$0]  %s5743_s20, 4096, %s12389_s8, [#allocation5], %s7713_s15, %s7713_s15, %s7714_s16  }
0x101f   :  { %7707 = dma.done.wait [#allocation5], 4096  }
0x1020   :  { %7708 = vsyncadd [#allocation5], 4294963200 }
0x1021   :  { %5752 = vsyncpa [#allocation4], 1 }
0x1022   :  { %5753 = vsyncpa [#allocation7], 1 }
0x1023   :  { %5754 = vsyncpa [#allocation5], 1 }

</bundles_post_ra>
